<compile_context>
chip_gen: v7x
topology: tpu7x:2x2x1
jax: 0.10.0
libtpu: 0.0.40
codegen_flags: <defaults>
</compile_context>

<pallas_src>
import math

import jax
import jax.numpy as jnp
from jax.experimental import pallas as pl
from jax.experimental.pallas import tpu as pltpu

NUM_PLAYERS = 10
PER_PLAYER_FEATURES = 15
NUM_TEAMS = 2
INPUT_SIZE = NUM_PLAYERS * PER_PLAYER_FEATURES * NUM_TEAMS + 1  # 301
K1_PAD = 384  # 301 padded up to a multiple of 128 (zero padding => exact)

H1, H2, H3, H_OUT = 2048, 1024, 256, 1


# ----------------------------------------------------------------------------
# Fused kernel
# ----------------------------------------------------------------------------
def _fused_mlp_kernel(x_ref, w1_ref, b1_ref, w2_ref, b2_ref,
                      w3_ref, b3_ref, wh_ref, bh_ref, o_ref):
    """Entire MLP in one kernel invocation.

    Weights are bf16 (HBM bandwidth is the bottleneck at tiny batch); every
    matmul accumulates in f32 via preferred_element_type; bias + ReLU run on
    the f32 accumulator before casting back to bf16 for the next MXU pass.
    """

    def layer(h, w_ref, b_ref, relu):
        acc = jnp.dot(h, w_ref[...], preferred_element_type=jnp.float32)
        acc = acc + b_ref[...]
        if relu:
            acc = jnp.maximum(acc, 0.0)
        return acc

    x = x_ref[...]                                              # (B, K1_PAD) bf16
    h = layer(x, w1_ref, b1_ref, relu=True).astype(jnp.bfloat16)   # (B, 2048)
    h = layer(h, w2_ref, b2_ref, relu=True).astype(jnp.bfloat16)   # (B, 1024)
    h = layer(h, w3_ref, b3_ref, relu=True).astype(jnp.bfloat16)   # (B, 256)
    out = layer(h, wh_ref, bh_ref, relu=False)                     # (B, 1) f32
    o_ref[...] = out.astype(o_ref.dtype)


def fused_mlp_forward(x_pad, prep):
    """x_pad: (B, K1_PAD) bf16; prep: prepared (padded/bf16) parameters."""
    B = x_pad.shape[0]
    args = (
        x_pad,
        prep["proj1_w"], prep["proj1_b"],
        prep["proj2_w"], prep["proj2_b"],
        prep["proj3_w"], prep["proj3_b"],
        prep["head_w"], prep["head_b"],
    )
    vmem_spec = pl.BlockSpec(memory_space=pltpu.MemorySpace.VMEM)
    return pl.pallas_call(
        _fused_mlp_kernel,
        out_shape=jax.ShapeDtypeStruct((B, H_OUT), jnp.float32),
        in_specs=[vmem_spec] * len(args),
        out_specs=vmem_spec,
        compiler_params=pltpu.CompilerParams(
            vmem_limit_bytes=32 * 1024 * 1024,
        ),
    )(*args)


# ----------------------------------------------------------------------------
# Parameters
# ----------------------------------------------------------------------------
def init_params(key):
    """Deterministic init mimicking PyTorch Linear default U(-1/sqrt(fan_in), ...).

    Weights are stored as (in_features, out_features), i.e. transposed from
    PyTorch's (out, in), so the forward computes y = x @ W + b directly.
    """
    dims = [("proj1", INPUT_SIZE, H1), ("proj2", H1, H2),
            ("proj3", H2, H3), ("head", H3, H_OUT)]
    params = {}
    for name, fin, fout in dims:
        key, kw, kb = jax.random.split(key, 3)
        bound = 1.0 / math.sqrt(fin)
        params[name + "_w"] = jax.random.uniform(
            kw, (fin, fout), jnp.float32, -bound, bound)
        params[name + "_b"] = jax.random.uniform(
            kb, (fout,), jnp.float32, -bound, bound)
    return params


def prepare_params(params):
    """One-time weight prep, hoisted out of the forward pass:
       - pad proj1_w's K dim 301 -> 384 with zeros (exact),
       - cast weights to bf16 (halves HBM traffic, MXU-native input dtype),
       - reshape biases to (1, N) f32 rows for direct in-kernel broadcast."""
    w1 = jnp.pad(params["proj1_w"], ((0, K1_PAD - INPUT_SIZE), (0, 0)))
    return {
        "proj1_w": w1.astype(jnp.bfloat16),
        "proj2_w": params["proj2_w"].astype(jnp.bfloat16),
        "proj3_w": params["proj3_w"].astype(jnp.bfloat16),
        "head_w": params["head_w"].astype(jnp.bfloat16),
        "proj1_b": params["proj1_b"].reshape(1, H1),
        "proj2_b": params["proj2_b"].reshape(1, H2),
        "proj3_b": params["proj3_b"].reshape(1, H3),
        "head_b": params["head_b"].reshape(1, H_OUT),
    }


# ----------------------------------------------------------------------------
# Forward
# ----------------------------------------------------------------------------
@jax.jit
def submodel2_forward(x, prep):
    x = x.reshape(-1, INPUT_SIZE).astype(jnp.float32)
    # Only the tiny activation is padded per call (B x 83 extra zeros); the
    # big weight padding/casting was hoisted into prepare_params().
    x_pad = jnp.pad(x, ((0, 0), (0, K1_PAD - INPUT_SIZE))).astype(jnp.bfloat16)
    return fused_mlp_forward(x_pad, prep)


# ----------------------------------------------------------------------------
# References
# ----------------------------------------------------------------------------
def reference_forward_f32(x, params):
    """Pure-f32 reference matching the PyTorch module exactly."""
    x = x.reshape(-1, INPUT_SIZE).astype(jnp.float32)
    h = jnp.maximum(x @ params["proj1_w"] + params["proj1_b"], 0.0)
    h = jnp.maximum(h @ params["proj2_w"] + params["proj2_b"], 0.0)
    h = jnp.maximum(h @ params["proj3_w"] + params["proj3_b"], 0.0)
    return h @ params["head_w"] + params["head_b"]


def reference_forward_bf16(x, prep):
    """Mirrors the kernel's exact dtype sequence (bf16 weights/activations,
    f32 accumulation) in plain JAX."""
    x = x.reshape(-1, INPUT_SIZE).astype(jnp.float32)
    x = jnp.pad(x, ((0, 0), (0, K1_PAD - INPUT_SIZE))).astype(jnp.bfloat16)

    def layer(h, w, b, relu):
        acc = jnp.dot(h, w, preferred_element_type=jnp.float32) + b
        return jnp.maximum(acc, 0.0) if relu else acc

    h = layer(x, prep["proj1_w"], prep["proj1_b"], True).astype(jnp.bfloat16)
    h = layer(h, prep["proj2_w"], prep["proj2_b"], True).astype(jnp.bfloat16)
    h = layer(h, prep["proj3_w"], prep["proj3_b"], True).astype(jnp.bfloat16)
    return layer(h, prep["head_w"], prep["head_b"], False)


if __name__ == "__main__":
    key = jax.random.PRNGKey(0)
    k_params, k_x = jax.random.split(key)
    params = init_params(k_params)
    prep = prepare_params(params)

    B = 2
    x = jax.random.normal(k_x, (B, INPUT_SIZE), jnp.float32)

    out = submodel2_forward(x, prep)
    out = jax.block_until_ready(out)
    assert out.shape == (B, 1), out.shape

    # Exact-path check against a pure-JAX replica of the kernel's bf16 math.
    ref_bf16 = reference_forward_bf16(x, prep)
    assert jnp.allclose(out, ref_bf16, atol=1e-2, rtol=1e-2), (out, ref_bf16)

    # Semantic check against the full-f32 PyTorch-equivalent forward.
    ref_f32 = reference_forward_f32(x, params)
    assert jnp.allclose(out, ref_f32, atol=5e-2, rtol=5e-2), (out, ref_f32)

    print("KERNEL_OK")
</pallas_src>

<mosaic_0001>
module attributes {stable_mosaic.version = 11 : i64} {
  func.func @_fused_mlp_kernel(%arg0: memref<2x384xbf16, #tpu.memory_space<vmem>>, %arg1: memref<384x2048xbf16, #tpu.memory_space<vmem>>, %arg2: memref<1x2048xf32, #tpu.memory_space<vmem>>, %arg3: memref<2048x1024xbf16, #tpu.memory_space<vmem>>, %arg4: memref<1x1024xf32, #tpu.memory_space<vmem>>, %arg5: memref<1024x256xbf16, #tpu.memory_space<vmem>>, %arg6: memref<1x256xf32, #tpu.memory_space<vmem>>, %arg7: memref<256x1xbf16, #tpu.memory_space<vmem>>, %arg8: memref<1x1xf32, #tpu.memory_space<vmem>>, %arg9: memref<2x1xf32, #tpu.memory_space<vmem>>) attributes {dimension_semantics = [], scalar_prefetch = 0 : i64, scratch_operands = 0 : i64, tpu.core_type = #tpu.core_type<tc>} {
    %c0 = arith.constant 0 : index
    %c0_0 = arith.constant 0 : index
    %0 = vector.load %arg0[%c0, %c0_0] : memref<2x384xbf16, #tpu.memory_space<vmem>>, vector<2x384xbf16>
    %c0_1 = arith.constant 0 : index
    %c0_2 = arith.constant 0 : index
    %1 = vector.load %arg1[%c0_1, %c0_2] : memref<384x2048xbf16, #tpu.memory_space<vmem>>, vector<384x2048xbf16>
    %cst = arith.constant dense<0.000000e+00> : vector<2x2048xf32>
    %2 = tpu.matmul %0, %1, %cst {dimension_numbers = #tpu.dot_dimension_numbers<[1], [0], [0], [1], [0, 0, 1, 1], [], []>} : vector<2x384xbf16>, vector<384x2048xbf16>, vector<2x2048xf32> -> vector<2x2048xf32>
    %c0_3 = arith.constant 0 : index
    %c0_4 = arith.constant 0 : index
    %3 = vector.load %arg2[%c0_3, %c0_4] : memref<1x2048xf32, #tpu.memory_space<vmem>>, vector<1x2048xf32>
    %4 = vector.broadcast %3 : vector<1x2048xf32> to vector<2x2048xf32>
    %5 = arith.addf %2, %4 : vector<2x2048xf32>
    %cst_5 = arith.constant 0.000000e+00 : f32
    %6 = vector.broadcast %cst_5 : f32 to vector<2x2048xf32>
    %7 = arith.maximumf %5, %6 : vector<2x2048xf32>
    %8 = arith.truncf %7 : vector<2x2048xf32> to vector<2x2048xbf16>
    %c0_6 = arith.constant 0 : index
    %c0_7 = arith.constant 0 : index
    %9 = vector.load %arg3[%c0_6, %c0_7] : memref<2048x1024xbf16, #tpu.memory_space<vmem>>, vector<2048x1024xbf16>
    %cst_8 = arith.constant dense<0.000000e+00> : vector<2x1024xf32>
    %10 = tpu.matmul %8, %9, %cst_8 {dimension_numbers = #tpu.dot_dimension_numbers<[1], [0], [0], [1], [0, 0, 1, 1], [], []>} : vector<2x2048xbf16>, vector<2048x1024xbf16>, vector<2x1024xf32> -> vector<2x1024xf32>
    %c0_9 = arith.constant 0 : index
    %c0_10 = arith.constant 0 : index
    %11 = vector.load %arg4[%c0_9, %c0_10] : memref<1x1024xf32, #tpu.memory_space<vmem>>, vector<1x1024xf32>
    %12 = vector.broadcast %11 : vector<1x1024xf32> to vector<2x1024xf32>
    %13 = arith.addf %10, %12 : vector<2x1024xf32>
    %cst_11 = arith.constant 0.000000e+00 : f32
    %14 = vector.broadcast %cst_11 : f32 to vector<2x1024xf32>
    %15 = arith.maximumf %13, %14 : vector<2x1024xf32>
    %16 = arith.truncf %15 : vector<2x1024xf32> to vector<2x1024xbf16>
    %c0_12 = arith.constant 0 : index
    %c0_13 = arith.constant 0 : index
    %17 = vector.load %arg5[%c0_12, %c0_13] : memref<1024x256xbf16, #tpu.memory_space<vmem>>, vector<1024x256xbf16>
    %cst_14 = arith.constant dense<0.000000e+00> : vector<2x256xf32>
    %18 = tpu.matmul %16, %17, %cst_14 {dimension_numbers = #tpu.dot_dimension_numbers<[1], [0], [0], [1], [0, 0, 1, 1], [], []>} : vector<2x1024xbf16>, vector<1024x256xbf16>, vector<2x256xf32> -> vector<2x256xf32>
    %c0_15 = arith.constant 0 : index
    %c0_16 = arith.constant 0 : index
    %19 = vector.load %arg6[%c0_15, %c0_16] : memref<1x256xf32, #tpu.memory_space<vmem>>, vector<1x256xf32>
    %20 = vector.broadcast %19 : vector<1x256xf32> to vector<2x256xf32>
    %21 = arith.addf %18, %20 : vector<2x256xf32>
    %cst_17 = arith.constant 0.000000e+00 : f32
    %22 = vector.broadcast %cst_17 : f32 to vector<2x256xf32>
    %23 = arith.maximumf %21, %22 : vector<2x256xf32>
    %24 = arith.truncf %23 : vector<2x256xf32> to vector<2x256xbf16>
    %c0_18 = arith.constant 0 : index
    %c0_19 = arith.constant 0 : index
    %25 = vector.load %arg7[%c0_18, %c0_19] : memref<256x1xbf16, #tpu.memory_space<vmem>>, vector<256x1xbf16>
    %cst_20 = arith.constant dense<0.000000e+00> : vector<2x1xf32>
    %26 = tpu.matmul %24, %25, %cst_20 {dimension_numbers = #tpu.dot_dimension_numbers<[1], [0], [0], [1], [0, 0, 1, 1], [], []>} : vector<2x256xbf16>, vector<256x1xbf16>, vector<2x1xf32> -> vector<2x1xf32>
    %c0_21 = arith.constant 0 : index
    %c0_22 = arith.constant 0 : index
    %27 = vector.load %arg8[%c0_21, %c0_22] : memref<1x1xf32, #tpu.memory_space<vmem>>, vector<1x1xf32>
    %28 = vector.broadcast %27 : vector<1x1xf32> to vector<2x1xf32>
    %29 = arith.addf %26, %28 : vector<2x1xf32>
    %c0_23 = arith.constant 0 : index
    %c0_24 = arith.constant 0 : index
    %30 = vector.load %arg9[%c0_23, %c0_24] : memref<2x1xf32, #tpu.memory_space<vmem>>, vector<2x1xf32>
    tpu.vector_store %arg9[%c0_23, %c0_24], %29 {strides = array<i32>} : memref<2x1xf32, #tpu.memory_space<vmem>>, vector<2x1xf32>,
    return
  }
}

</mosaic_0001>

<bundles_post_ra>
// kernel: submodel2_forward.1
= control target key start
LH: loop header
LB: loop body
LE: loop exit
PB: predicated region body
PF: predicated region fallthrough
CT: control target
= control target key end

     0   :  { %s14457_s0 = inlined_call_operand.vmem [shape: bf16[2,384], index: 0, kind: input, shape index: {}]   ;;  %s14458_s1 = inlined_call_operand.hbm [shape: bf16[384,2048], index: 1, kind: input, shape index: {}]   ;;  %s14459_s2 = inlined_call_operand.hbm [shape: f32[1,2048], index: 2, kind: input, shape index: {}]   ;;  %s14460_s3 = inlined_call_operand.hbm [shape: bf16[2048,1024], index: 3, kind: input, shape index: {}]   ;;  %s14461_s4 = inlined_call_operand.hbm [shape: f32[1,1024], index: 4, kind: input, shape index: {}]   ;;  %s14462_s5 = inlined_call_operand.hbm [shape: bf16[1024,256], index: 5, kind: input, shape index: {}]   ;;  %s14463_s6 = inlined_call_operand.hbm [shape: f32[1,256], index: 6, kind: input, shape index: {}]   ;;  %s14464_s7 = inlined_call_operand.vmem [shape: bf16[256,1], index: 7, kind: input, shape index: {}]   ;;  %s14465_s8 = inlined_call_operand.<no memory space> [shape: f32[1,1], index: 8, kind: input, shape index: {}]   ;;  %s14466_s9 = inlined_call_operand.vmem [shape: f32[2,1], index: 9, kind: output, shape index: {}]  }
   0x1   :  { %v14_v0 = vstv %s14465_s8 }
   0x2   :  { %15 = vst [vmem:[#allocation2] sm:$0x1] %v14_v0 }
   0x3   :  { %16 = vsyncpa [#allocation4], 0 }
   0x4   :  { %17 = vsyncpa [#allocation6], 0 }
   0x5   :  { %18 = vsyncpa [#allocation9], 0 }
   0x6   :  { %19 = vsyncpa [#allocation12], 0  ;;  %s13985_s11 = smov [#allocation5]   ;;  %s13986_s13 = smov [#allocation8]  }
   0x7   :  { %s40_s12 = sshll.u32 %s13985_s11, 4  ;;  %s62_s14 = sshll.u32 %s13986_s13, 4  ;;  %s41_s12 = int_to_ptr.vmem [resolvable:$true] %s40_s12  ;;  %s63_s14 = int_to_ptr.vmem [resolvable:$true] %s62_s14 }
   0x8   :  { %s13845_s17 = scalar_lea.hbm %s14459_s2, 256 }
   0x9   :  { %p13846_p0 = scmp.ne.s32.totalorder %s14459_s2, %s13845_s17  ;;  %p13849_p1 = scmp.lt.u32.totalorder %s13845_s17, %s14459_s2 }
   0xb   :  { %p13851_p2 = pnand %p13849_p1, %p13846_p0 }
   0xd   :  { %13854 = shalt.err (!%p13851_p2)
}
   0xe   :  { %s13855_s21 = scalar_lea.vmem %s41_s12, 256  ;;  %p13860_p4 = scmp.lt.s32.totalorder %s41_s12, %s41_s12 }
   0xf   :  { %p13856_p3 = scmp.ne.s32.totalorder %s41_s12, %s13855_s21  ;;  %p13861_p5 = scmp.lt.s32.totalorder %s13855_s21, %s13855_s21 }
  0x11   :  { %p13862_p6 = por %p13861_p5, %p13860_p4 }
  0x13   :  { %p13863_p7 = pnand %p13862_p6, %p13856_p3 }
  0x15   :  { %13866 = shalt.err (!%p13863_p7)
}
  0x16   :  { %43 = dma.hbm_to_vmem [thread:$0]  %s14459_s2, 256, %s41_s12, [#allocation6]  }
  0x17   :  { %s13867_s26 = scalar_lea.hbm %s14461_s4, 128 }
  0x18   :  { %p13868_p8 = scmp.ne.s32.totalorder %s14461_s4, %s13867_s26  ;;  %p13871_p9 = scmp.lt.u32.totalorder %s13867_s26, %s14461_s4 }
  0x1a   :  { %p13873_p10 = pnand %p13871_p9, %p13868_p8 }
  0x1c   :  { %13876 = shalt.err (!%p13873_p10)
}
  0x1d   :  { %s13877_s10 = scalar_lea.vmem %s63_s14, 128  ;;  %p13882_p12 = scmp.lt.s32.totalorder %s63_s14, %s63_s14 }
  0x1e   :  { %p13878_p11 = scmp.ne.s32.totalorder %s63_s14, %s13877_s10  ;;  %p13883_p13 = scmp.lt.s32.totalorder %s13877_s10, %s13877_s10 }
  0x20   :  { %p13884_p0 = por %p13883_p13, %p13882_p12 }
  0x22   :  { %p13885_p1 = pnand %p13884_p0, %p13878_p11 }
  0x24   :  { %13888 = shalt.err (!%p13885_p1)
}
  0x25   :  { %65 = dma.hbm_to_vmem [thread:$0]  %s14461_s4, 128, %s63_s14, [#allocation9]  }
  0x26   :  { %s13987_s12 = smov [#allocation3]   ;;  %s13889_s17 = scalar_lea.hbm %s14458_s1, 49152 }
  0x27   :  { %s27_s13 = sshll.u32 %s13987_s12, 4  ;;  %p13890_p2 = scmp.ne.s32.totalorder %s14458_s1, %s13889_s17  ;;  %s28_s13 = int_to_ptr.vmem [resolvable:$true] %s27_s13 }
  0x28   :  { %p13893_p3 = scmp.lt.u32.totalorder %s13889_s17, %s14458_s1 }
  0x2a   :  { %p13895_p4 = pnand %p13893_p3, %p13890_p2 }
  0x2c   :  { %13898 = shalt.err (!%p13895_p4)
}
  0x2d   :  { %s13899_s21 = scalar_lea.vmem %s28_s13, 49152  ;;  %p13904_p6 = scmp.lt.s32.totalorder %s28_s13, %s28_s13 }
  0x2e   :  { %p13900_p5 = scmp.ne.s32.totalorder %s28_s13, %s13899_s21  ;;  %p13905_p7 = scmp.lt.s32.totalorder %s13899_s21, %s13899_s21 }
  0x30   :  { %p13906_p8 = por %p13905_p7, %p13904_p6 }
  0x32   :  { %p13907_p9 = pnand %p13906_p8, %p13900_p5 }
  0x34   :  { %13910 = shalt.err (!%p13907_p9)
}
  0x35   :  { %s13988_s4 = smov 1024   ;;  %s13989_s14 = smov 64  }
  0x36   :  { %33 = dma.hbm_to_vmem [thread:$0]  %s14458_s1, 49152, %s28_s13, [#allocation4], %s13988_s4, %s13988_s4, %s13989_s14  }
  0x37   :  { %s13990_s24 = smov [#allocation7]   ;;  %s13911_s28 = scalar_lea.hbm %s14460_s3, 131072 }
  0x38   :  { %s49_s25 = sshll.u32 %s13990_s24, 4  ;;  %p13912_p10 = scmp.ne.s32.totalorder %s14460_s3, %s13911_s28  ;;  %s50_s25 = int_to_ptr.vmem [resolvable:$true] %s49_s25 }
  0x39   :  { %p13915_p11 = scmp.lt.u32.totalorder %s13911_s28, %s14460_s3 }
  0x3b   :  { %p13917_p12 = pnand %p13915_p11, %p13912_p10 }
  0x3d   :  { %13920 = shalt.err (!%p13917_p12)
}
  0x3e   :  { %s13921_s11 = scalar_lea.vmem %s50_s25, 131072  ;;  %p13926_p0 = scmp.lt.s32.totalorder %s50_s25, %s50_s25 }
  0x3f   :  { %p13922_p13 = scmp.ne.s32.totalorder %s50_s25, %s13921_s11  ;;  %p13927_p1 = scmp.lt.s32.totalorder %s13921_s11, %s13921_s11 }
  0x41   :  { %p13928_p2 = por %p13927_p1, %p13926_p0 }
  0x43   :  { %p13929_p3 = pnand %p13928_p2, %p13922_p13 }
  0x45   :  { %13932 = shalt.err (!%p13929_p3)
}
  0x46   :  { %s13991_s1 = smov 512   ;;  %s13992_s12 = smov 32  }
  0x47   :  { %55 = dma.hbm_to_vmem [thread:$0]  %s14460_s3, 131072, %s50_s25, [#allocation6], %s13991_s1, %s13991_s1, %s13992_s12  }
  0x48   :  { %s13993_s16 = smov [#allocation10]   ;;  %s13933_s8 = scalar_lea.hbm %s14462_s5, 16384 }
  0x49   :  { %s71_s17 = sshll.u32 %s13993_s16, 4  ;;  %p13934_p4 = scmp.ne.s32.totalorder %s14462_s5, %s13933_s8  ;;  %s72_s17 = int_to_ptr.vmem [resolvable:$true] %s71_s17 }
  0x4a   :  { %p13937_p5 = scmp.lt.u32.totalorder %s13933_s8, %s14462_s5 }
  0x4c   :  { %p13939_p6 = pnand %p13937_p5, %p13934_p4 }
  0x4e   :  { %13942 = shalt.err (!%p13939_p6)
}
  0x4f   :  { %s13943_s22 = scalar_lea.vmem %s72_s17, 16384  ;;  %p13948_p8 = scmp.lt.s32.totalorder %s72_s17, %s72_s17 }
  0x50   :  { %p13944_p7 = scmp.ne.s32.totalorder %s72_s17, %s13943_s22  ;;  %p13949_p9 = scmp.lt.s32.totalorder %s13943_s22, %s13943_s22 }
  0x52   :  { %p13950_p10 = por %p13949_p9, %p13948_p8 }
  0x54   :  { %p13951_p11 = pnand %p13950_p10, %p13944_p7 }
  0x56   :  { %13954 = shalt.err (!%p13951_p11)
}
  0x57   :  { %s13994_s3 = smov 128   ;;  %s13995_s23 = smov 8  }
  0x58   :  { %77 = dma.hbm_to_vmem [thread:$0]  %s14462_s5, 16384, %s72_s17, [#allocation9], %s13994_s3, %s13994_s3, %s13995_s23  }
  0x59   :  { %s13996_s26 = smov [#allocation11]   ;;  %s13955_s30 = scalar_lea.hbm %s14463_s6, 32 }
  0x5a   :  { %s84_s27 = sshll.u32 %s13996_s26, 4  ;;  %p13956_p12 = scmp.ne.s32.totalorder %s14463_s6, %s13955_s30  ;;  %s85_s27 = int_to_ptr.vmem [resolvable:$true] %s84_s27 }
  0x5b   :  { %p13959_p13 = scmp.lt.u32.totalorder %s13955_s30, %s14463_s6 }
  0x5d   :  { %p13961_p0 = pnand %p13959_p13, %p13956_p12 }
  0x5f   :  { %13964 = shalt.err (!%p13961_p0)
}
  0x60   :  { %s13965_s12 = scalar_lea.vmem %s85_s27, 32  ;;  %p13970_p2 = scmp.lt.s32.totalorder %s85_s27, %s85_s27 }
  0x61   :  { %p13966_p1 = scmp.ne.s32.totalorder %s85_s27, %s13965_s12  ;;  %p13971_p3 = scmp.lt.s32.totalorder %s13965_s12, %s13965_s12 }
  0x63   :  { %p13972_p4 = por %p13971_p3, %p13970_p2 }
  0x65   :  { %p13973_p5 = pnand %p13972_p4, %p13966_p1 }
  0x67   :  { %13976 = shalt.err (!%p13973_p5)
}
  0x68   :  { %87 = dma.hbm_to_vmem [thread:$0]  %s14463_s6, 32, %s85_s27, [#allocation12]  }
  0x69   :  { %13977 = dma.done.wait [#allocation4], 49152  }
  0x6a   :  { %13978 = vsyncadd [#allocation4], 4294918144 }
  0x6b   :  { %13979 = dma.done.wait [#allocation6], 131328  }
  0x6c   :  { %13980 = vsyncadd [#allocation6], 4294835968 }
  0x6d   :  { %13981 = dma.done.wait [#allocation9], 16512  }
  0x6e   :  { %13982 = vsyncadd [#allocation9], 4294950784 }
  0x6f   :  { %13983 = dma.done.wait [#allocation12], 32  }
  0x70   :  { %13984 = vsyncadd [#allocation12], 4294967264  ;;  %v112_v1 = vld [vmem:[#allocation3] sm:$0xff]  ;;  %v114_v3 = vld [vmem:[#allocation3 + $0x10] sm:$0xff]  ;;  %v500_v36 = vlaneseq  ;;  %v13997_v37 = vmov 1966171168  }
  0x71   :  { %v120_v2 = vld [vmem:[#allocation3 + $0x40] sm:$0xff]  ;;  %v122_v5 = vld [vmem:[#allocation3 + $0x50] sm:$0xff]  ;;  %v590_v38 = vunpack.c.l.s4 %v13997_v37  ;;  %vm11852_vm0 = vcmask 1024  }
  0x72   :  { %v11864_v4 = vcombine.high %v112_v1, %v120_v2  ;;  %v11863_v6 = vcombine.low %v112_v1, %v120_v2  ;;  %v128_v7 = vld [vmem:[#allocation3 + $0x80] sm:$0xff]  ;;  %v11868_v9 = vcombine.high %v114_v3, %v122_v5  ;;  %v11867_v10 = vcombine.low %v114_v3, %v122_v5  ;;  %v130_v12 = vld [vmem:[#allocation3 + $0x90] sm:$0xff] }
  0x73   :  { %v136_v8 = vld [vmem:[#allocation3 + $0xc0] sm:$0xff]  ;;  %v138_v13 = vld [vmem:[#allocation3 + $0xd0] sm:$0xff]  ;;  %v14124_v47 = vshrl.u32 %v500_v36, 7  ;;  %v591_v48 = vunpack.c.0.s8 %v590_v38 }
  0x74   :  { %v11880_v11 = vcombine.high %v128_v7, %v136_v8  ;;  %v144_v14 = vld [vmem:[#allocation3 + $0x100] sm:$0xff]  ;;  %2527 = vmatprep.subr.bf16.mxu1 %v11864_v4  ;;  %v11884_v15 = vcombine.high %v130_v12, %v138_v13  ;;  %v146_v17 = vld [vmem:[#allocation3 + $0x110] sm:$0xff]  ;;  %2691 = vmatprep.subr.bf16.mxu0 %v11868_v9  ;;  %v11879_v19 = vcombine.low %v128_v7, %v136_v8 }
  0x75   :  { %v152_v16 = vld [vmem:[#allocation3 + $0x140] sm:$0xff]  ;;  %v154_v18 = vld [vmem:[#allocation3 + $0x150] sm:$0xff]  ;;  %2528 = vmatpush1.bf16.msra.mxu1 %v11863_v6  ;;  %2692 = vmatpush1.bf16.msra.mxu0 %v11867_v10  ;;  %v11883_v20 = vcombine.low %v130_v12, %v138_v13  ;;  %v14127_v57 = vsub.s32 %v591_v48, %v14124_v47 }
  0x76   :  { %2529 = vmatprep.subr.bf16.mxu1 %v11880_v11  ;;  %v11896_v21 = vcombine.high %v144_v14, %v152_v16  ;;  %2693 = vmatprep.subr.bf16.mxu0 %v11884_v15  ;;  %v11900_v22 = vcombine.high %v146_v17, %v154_v18  ;;  %v160_v23 = vld [vmem:[#allocation3 + $0x180] sm:$0xff]  ;;  %v162_v25 = vld [vmem:[#allocation3 + $0x190] sm:$0xff]  ;;  %v11895_v27 = vcombine.low %v144_v14, %v152_v16 }
  0x77   :  { %v168_v24 = vld [vmem:[#allocation3 + $0x1c0] sm:$0xff]  ;;  %v170_v26 = vld [vmem:[#allocation3 + $0x1d0] sm:$0xff]  ;;  %v11899_v28 = vcombine.low %v146_v17, %v154_v18 }
  0x78   :  { %v11912_v29 = vcombine.high %v160_v23, %v168_v24  ;;  %v11916_v30 = vcombine.high %v162_v25, %v170_v26  ;;  %v176_v31 = vld [vmem:[#allocation3 + $0x200] sm:$0xff]  ;;  %v178_v33 = vld [vmem:[#allocation3 + $0x210] sm:$0xff]  ;;  %v11911_v35 = vcombine.low %v160_v23, %v168_v24  ;;  %v11915_v39 = vcombine.low %v162_v25, %v170_v26 }
  0x79   :  { %2530 = vmatpush1.bf16.msra.mxu1 %v11879_v19  ;;  %2694 = vmatpush1.bf16.msra.mxu0 %v11883_v20  ;;  %v184_v32 = vld [vmem:[#allocation3 + $0x240] sm:$0xff]  ;;  %v186_v34 = vld [vmem:[#allocation3 + $0x250] sm:$0xff] }
  0x7a   :  { %2531 = vmatprep.subr.bf16.mxu1 %v11896_v21  ;;  %2695 = vmatprep.subr.bf16.mxu0 %v11900_v22  ;;  %v11928_v40 = vcombine.high %v176_v31, %v184_v32  ;;  %v11932_v41 = vcombine.high %v178_v33, %v186_v34  ;;  %v192_v42 = vld [vmem:[#allocation3 + $0x280] sm:$0xff]  ;;  %v194_v44 = vld [vmem:[#allocation3 + $0x290] sm:$0xff]  ;;  %v11927_v46 = vcombine.low %v176_v31, %v184_v32 }
  0x7b   :  { %v200_v43 = vld [vmem:[#allocation3 + $0x2c0] sm:$0xff]  ;;  %v202_v45 = vld [vmem:[#allocation3 + $0x2d0] sm:$0xff]  ;;  %v11931_v49 = vcombine.low %v178_v33, %v186_v34 }
  0x7c   :  { %v11944_v50 = vcombine.high %v192_v42, %v200_v43  ;;  %v11948_v51 = vcombine.high %v194_v44, %v202_v45  ;;  %v208_v52 = vld [vmem:[#allocation3 + $0x300] sm:$0xff]  ;;  %v210_v54 = vld [vmem:[#allocation3 + $0x310] sm:$0xff]  ;;  %v11943_v56 = vcombine.low %v192_v42, %v200_v43  ;;  %v11947_v58 = vcombine.low %v194_v44, %v202_v45 }
  0x7d   :  { %2532 = vmatpush1.bf16.msra.mxu1 %v11895_v27  ;;  %2696 = vmatpush1.bf16.msra.mxu0 %v11899_v28  ;;  %v216_v53 = vld [vmem:[#allocation3 + $0x340] sm:$0xff]  ;;  %v218_v55 = vld [vmem:[#allocation3 + $0x350] sm:$0xff] }
  0x7e   :  { %2533 = vmatprep.subr.bf16.mxu1 %v11912_v29  ;;  %2697 = vmatprep.subr.bf16.mxu0 %v11916_v30  ;;  %v11960_v59 = vcombine.high %v208_v52, %v216_v53  ;;  %v14132_v60 = vld.sshfl [vmem:[%s14457_s0] sm:$0x13 pattern:$0x75316420]  ;;  %v11964_v61 = vcombine.high %v210_v54, %v218_v55  ;;  %v226_v1 = vld [vmem:[#allocation3 + $0x390] sm:$0xff]  ;;  %v11959_v3 = vcombine.low %v208_v52, %v216_v53 }
  0x7f   :  { %v224_v62 = vld [vmem:[#allocation3 + $0x380] sm:$0xff]  ;;  %v588_v0 = vcombine.high %v14132_v60, %v14132_v60  ;;  %v234_v2 = vld [vmem:[#allocation3 + $0x3d0] sm:$0xff]  ;;  %v11963_v5 = vcombine.low %v210_v54, %v218_v55 }
  0x80   :  { %v232_v63 = vld [vmem:[#allocation3 + $0x3c0] sm:$0xff]  ;;  %v11980_v7 = vcombine.high %v226_v1, %v234_v2  ;;  %v242_v10 = vld [vmem:[#allocation3 + $0x410] sm:$0xff]  ;;  %v11979_v13 = vcombine.low %v226_v1, %v234_v2 }
  0x81   :  { %2534 = vmatpush1.bf16.msra.mxu1 %v11911_v35  ;;  %2698 = vmatpush1.bf16.msra.mxu0 %v11915_v39  ;;  %v14137_v4 = vrot.slane %v588_v0, %v14127_v57  ;;  %v11976_v6 = vcombine.high %v224_v62, %v232_v63  ;;  %v240_v8 = vld [vmem:[#allocation3 + $0x400] sm:$0xff]  ;;  %v250_v11 = vld [vmem:[#allocation3 + $0x450] sm:$0xff]  ;;  %v11975_v12 = vcombine.low %v224_v62, %v232_v63 }
  0x82   :  { %2535 = vmatprep.subr.bf16.mxu1 %v11928_v40  ;;  %2699 = vmatprep.subr.bf16.mxu0 %v11932_v41  ;;  %v248_v9 = vld [vmem:[#allocation3 + $0x440] sm:$0xff]  ;;  %v11996_v15 = vcombine.high %v242_v10, %v250_v11  ;;  %v258_v18 = vld [vmem:[#allocation3 + $0x490] sm:$0xff]  ;;  %v11995_v21 = vcombine.low %v242_v10, %v250_v11 }
  0x83   :  { %2559 = vmatprep.mubr.bf16.mxu1 %v14137_v4  ;;  %2723 = vmatprep.mubr.bf16.mxu0 %v14137_v4  ;;  %v11992_v14 = vcombine.high %v240_v8, %v248_v9  ;;  %v256_v16 = vld [vmem:[#allocation3 + $0x480] sm:$0xff]  ;;  %v266_v19 = vld [vmem:[#allocation3 + $0x4d0] sm:$0xff]  ;;  %v11991_v20 = vcombine.low %v240_v8, %v248_v9 }
  0x84   :  { %v264_v17 = vld [vmem:[#allocation3 + $0x4c0] sm:$0xff]  ;;  %v12012_v23 = vcombine.high %v258_v18, %v266_v19  ;;  %v274_v26 = vld [vmem:[#allocation3 + $0x510] sm:$0xff]  ;;  %v12011_v29 = vcombine.low %v258_v18, %v266_v19 }
  0x85   :  { %2536 = vmatpush1.bf16.msra.mxu1 %v11927_v46  ;;  %2700 = vmatpush1.bf16.msra.mxu0 %v11931_v49  ;;  %v12008_v22 = vcombine.high %v256_v16, %v264_v17  ;;  %v272_v24 = vld [vmem:[#allocation3 + $0x500] sm:$0xff]  ;;  %v282_v27 = vld [vmem:[#allocation3 + $0x550] sm:$0xff]  ;;  %v12007_v28 = vcombine.low %v256_v16, %v264_v17 }
  0x86   :  { %2537 = vmatprep.subr.bf16.mxu1 %v11944_v50  ;;  %2701 = vmatprep.subr.bf16.mxu0 %v11948_v51  ;;  %v280_v25 = vld [vmem:[#allocation3 + $0x540] sm:$0xff]  ;;  %v12028_v31 = vcombine.high %v274_v26, %v282_v27  ;;  %v290_v34 = vld [vmem:[#allocation3 + $0x590] sm:$0xff]  ;;  %v12027_v37 = vcombine.low %v274_v26, %v282_v27 }
  0x87   :  { %v12024_v30 = vcombine.high %v272_v24, %v280_v25  ;;  %v288_v32 = vld [vmem:[#allocation3 + $0x580] sm:$0xff]  ;;  %v298_v35 = vld [vmem:[#allocation3 + $0x5d0] sm:$0xff]  ;;  %v12023_v36 = vcombine.low %v272_v24, %v280_v25 }
  0x88   :  { %v296_v33 = vld [vmem:[#allocation3 + $0x5c0] sm:$0xff]  ;;  %v12044_v39 = vcombine.high %v290_v34, %v298_v35  ;;  %v306_v42 = vld [vmem:[#allocation3 + $0x610] sm:$0xff]  ;;  %v12043_v45 = vcombine.low %v290_v34, %v298_v35 }
  0x89   :  { %2538 = vmatpush1.bf16.msra.mxu1 %v11943_v56  ;;  %2702 = vmatpush1.bf16.msra.mxu0 %v11947_v58  ;;  %v12040_v38 = vcombine.high %v288_v32, %v296_v33  ;;  %v304_v40 = vld [vmem:[#allocation3 + $0x600] sm:$0xff]  ;;  %v314_v43 = vld [vmem:[#allocation3 + $0x650] sm:$0xff]  ;;  %v12039_v44 = vcombine.low %v288_v32, %v296_v33 }
  0x8a   :  { %2539 = vmatprep.subr.bf16.mxu1 %v11960_v59  ;;  %2703 = vmatprep.subr.bf16.mxu0 %v11964_v61  ;;  %v312_v41 = vld [vmem:[#allocation3 + $0x640] sm:$0xff]  ;;  %v12060_v48 = vcombine.high %v306_v42, %v314_v43  ;;  %v322_v51 = vld [vmem:[#allocation3 + $0x690] sm:$0xff]  ;;  %v12059_v54 = vcombine.low %v306_v42, %v314_v43 }
  0x8b   :  { %v12056_v46 = vcombine.high %v304_v40, %v312_v41  ;;  %v320_v49 = vld [vmem:[#allocation3 + $0x680] sm:$0xff]  ;;  %v330_v52 = vld [vmem:[#allocation3 + $0x6d0] sm:$0xff]  ;;  %v12055_v53 = vcombine.low %v304_v40, %v312_v41 }
  0x8c   :  { %v328_v50 = vld [vmem:[#allocation3 + $0x6c0] sm:$0xff]  ;;  %v12076_v56 = vcombine.high %v322_v51, %v330_v52  ;;  %v338_v61 = vld [vmem:[#allocation3 + $0x710] sm:$0xff]  ;;  %v12075_v0 = vcombine.low %v322_v51, %v330_v52 }
  0x8d   :  { %2540 = vmatpush1.bf16.msra.mxu1 %v11959_v3  ;;  %2704 = vmatpush1.bf16.msra.mxu0 %v11963_v5  ;;  %v12072_v55 = vcombine.high %v320_v49, %v328_v50  ;;  %v336_v58 = vld [vmem:[#allocation3 + $0x700] sm:$0xff]  ;;  %v346_v62 = vld [vmem:[#allocation3 + $0x750] sm:$0xff]  ;;  %v12071_v63 = vcombine.low %v320_v49, %v328_v50 }
  0x8e   :  { %2541 = vmatprep.subr.bf16.mxu1 %v11976_v6  ;;  %2705 = vmatprep.subr.bf16.mxu0 %v11980_v7  ;;  %v344_v59 = vld [vmem:[#allocation3 + $0x740] sm:$0xff]  ;;  %v12092_v2 = vcombine.high %v338_v61, %v346_v62  ;;  %v354_v6 = vld [vmem:[#allocation3 + $0x790] sm:$0xff]  ;;  %v12091_v9 = vcombine.low %v338_v61, %v346_v62 }
  0x8f   :  { %v12088_v1 = vcombine.high %v336_v58, %v344_v59  ;;  %v352_v3 = vld [vmem:[#allocation3 + $0x780] sm:$0xff]  ;;  %v362_v7 = vld [vmem:[#allocation3 + $0x7d0] sm:$0xff]  ;;  %v12087_v8 = vcombine.low %v336_v58, %v344_v59 }
  0x90   :  { %v360_v5 = vld [vmem:[#allocation3 + $0x7c0] sm:$0xff]  ;;  %v12108_v11 = vcombine.high %v354_v6, %v362_v7  ;;  %v12107_v17 = vcombine.low %v354_v6, %v362_v7  ;;  %v394_v24 = vld [vmem:[#allocation3 + $0x8d0] sm:$0xff] }
  0x91   :  { %2542 = vmatpush1.bf16.msra.mxu1 %v11975_v12  ;;  %2706 = vmatpush1.bf16.msra.mxu0 %v11979_v13  ;;  %v12104_v10 = vcombine.high %v352_v3, %v360_v5  ;;  %v368_v12 = vld [vmem:[#allocation3 + $0x800] sm:$0xff]  ;;  %v12103_v16 = vcombine.low %v352_v3, %v360_v5  ;;  %v410_v32 = vld [vmem:[#allocation3 + $0x950] sm:$0xff] }
  0x92   :  { %2543 = vmatprep.subr.bf16.mxu1 %v11992_v14  ;;  %2707 = vmatprep.subr.bf16.mxu0 %v11996_v15  ;;  %v376_v13 = vld [vmem:[#allocation3 + $0x840] sm:$0xff]  ;;  %v370_v14 = vld [vmem:[#allocation3 + $0x810] sm:$0xff] }
  0x93   :  { %v378_v15 = vld [vmem:[#allocation3 + $0x850] sm:$0xff]  ;;  %v12120_v18 = vcombine.high %v368_v12, %v376_v13  ;;  %v12119_v25 = vcombine.low %v368_v12, %v376_v13  ;;  %v416_v34 = vld [vmem:[#allocation3 + $0x980] sm:$0xff] }
  0x94   :  { %v12124_v19 = vcombine.high %v370_v14, %v378_v15  ;;  %v12123_v26 = vcombine.low %v370_v14, %v378_v15  ;;  %v424_v35 = vld [vmem:[#allocation3 + $0x9c0] sm:$0xff]  ;;  %v113_v15 = vld [vmem:[#allocation3 + $0x8] sm:$0xff] }
  0x95   :  { %2544 = vmatpush1.bf16.msra.mxu1 %v11991_v20  ;;  %2708 = vmatpush1.bf16.msra.mxu0 %v11995_v21  ;;  %v384_v20 = vld [vmem:[#allocation3 + $0x880] sm:$0xff]  ;;  %v12168_v42 = vcombine.high %v416_v34, %v424_v35  ;;  %v12167_v49 = vcombine.low %v416_v34, %v424_v35 }
  0x96   :  { %2545 = vmatprep.subr.bf16.mxu1 %v12008_v22  ;;  %2709 = vmatprep.subr.bf16.mxu0 %v12012_v23  ;;  %v392_v21 = vld [vmem:[#allocation3 + $0x8c0] sm:$0xff]  ;;  %v14143_v22 = vrot.slane %v14132_v60, %v14127_v57  ;;  %v386_v23 = vld [vmem:[#allocation3 + $0x890] sm:$0xff] }
  0x97   :  { %v12136_v27 = vcombine.high %v384_v20, %v392_v21  ;;  %v12135_v57 = vcombine.low %v384_v20, %v392_v21  ;;  %v12139_v60 = vcombine.low %v386_v23, %v394_v24  ;;  %v432_v43 = vld [vmem:[#allocation3 + $0xa00] sm:$0xff] }
  0x98   :  { %v448_v52 = vld [vmem:[#allocation3 + $0xa80] sm:$0xff] }
  0x99   :  { %2546 = vmatpush1.bf16.msra.mxu1 %v12007_v28  ;;  %2710 = vmatpush1.bf16.msra.mxu0 %v12011_v29  ;;  %v400_v28 = vld [vmem:[#allocation3 + $0x900] sm:$0xff] }
  0x9a   :  { %2547 = vmatprep.subr.bf16.mxu1 %v12024_v30  ;;  %2711 = vmatprep.subr.bf16.mxu0 %v12028_v31  ;;  %v408_v29 = vld [vmem:[#allocation3 + $0x940] sm:$0xff]  ;;  %v402_v30 = vld [vmem:[#allocation3 + $0x910] sm:$0xff]  ;;  %v12140_v31 = vcombine.high %v386_v23, %v394_v24  ;;  %v129_v24 = vld [vmem:[#allocation3 + $0x88] sm:$0xff] }
  0x9b   :  { %v12152_v33 = vcombine.high %v400_v28, %v408_v29  ;;  %v12151_v40 = vcombine.low %v400_v28, %v408_v29  ;;  %v12155_v41 = vcombine.low %v402_v30, %v410_v32  ;;  %v464_v62 = vld [vmem:[#allocation3 + $0xb00] sm:$0xff]  ;;  %v14151_v29 = vcombine.high %v14143_v22, %v14143_v22 }
  0x9c   :  { %v480_v7 = vld [vmem:[#allocation3 + $0xb80] sm:$0xff] }
  0x9d   :  { %2548 = vmatpush1.bf16.msra.mxu1 %v12023_v36  ;;  %2712 = vmatpush1.bf16.msra.mxu0 %v12027_v37  ;;  %v418_v36 = vld [vmem:[#allocation3 + $0x990] sm:$0xff]  ;;  %v12156_v37 = vcombine.high %v402_v30, %v410_v32  ;;  %v140_v28 = vld [vmem:[#allocation3 + $0xe0] sm:$0xff] }
  0x9e   :  { %2549 = vmatprep.subr.bf16.mxu1 %v12040_v38  ;;  %2713 = vmatprep.subr.bf16.mxu0 %v12044_v39  ;;  %v426_v38 = vld [vmem:[#allocation3 + $0x9d0] sm:$0xff]  ;;  %v13998_v39 = vmov 0   ;;  %v156_v35 = vld [vmem:[#allocation3 + $0x160] sm:$0xff] }
  0x9f   :  { %v12171_v50 = vcombine.low %v418_v36, %v426_v38 }
  0xa1   :  { %2550 = vmatpush1.bf16.msra.mxu1 %v12039_v44  ;;  %2714 = vmatpush1.bf16.msra.mxu0 %v12043_v45  ;;  %v440_v44 = vld [vmem:[#allocation3 + $0xa40] sm:$0xff]  ;;  %v434_v45 = vld [vmem:[#allocation3 + $0xa10] sm:$0xff] }
  0xa2   :  { %2551 = vmatprep.subr.bf16.mxu1 %v12056_v46  ;;  %2715 = vmatprep.subr.bf16.mxu0 %v12060_v48  ;;  %v12172_v46 = vcombine.high %v418_v36, %v426_v38  ;;  %v442_v48 = vld [vmem:[#allocation3 + $0xa50] sm:$0xff]  ;;  %v12184_v51 = vcombine.high %v432_v43, %v440_v44  ;;  %v12183_v58 = vcombine.low %v432_v43, %v440_v44  ;;  %v172_v44 = vld [vmem:[#allocation3 + $0x1e0] sm:$0xff] }
  0xa3   :  { %v12187_v59 = vcombine.low %v434_v45, %v442_v48 }
  0xa5   :  { %2552 = vmatpush1.bf16.msra.mxu1 %v12055_v53  ;;  %2716 = vmatpush1.bf16.msra.mxu0 %v12059_v54  ;;  %v456_v53 = vld [vmem:[#allocation3 + $0xac0] sm:$0xff]  ;;  %v450_v54 = vld [vmem:[#allocation3 + $0xa90] sm:$0xff] }
  0xa6   :  { %2553 = vmatprep.subr.bf16.mxu1 %v12072_v55  ;;  %2717 = vmatprep.subr.bf16.mxu0 %v12076_v56  ;;  %v12188_v55 = vcombine.high %v434_v45, %v442_v48  ;;  %v458_v56 = vld [vmem:[#allocation3 + $0xad0] sm:$0xff]  ;;  %v12200_v61 = vcombine.high %v448_v52, %v456_v53  ;;  %v12199_v3 = vcombine.low %v448_v52, %v456_v53  ;;  %v188_v53 = vld [vmem:[#allocation3 + $0x260] sm:$0xff] }
  0xa7   :  { %v12203_v5 = vcombine.low %v450_v54, %v458_v56 }
  0xa9   :  { %2554 = vmatpush1.bf16.msra.mxu1 %v12071_v63  ;;  %2718 = vmatpush1.bf16.msra.mxu0 %v12075_v0  ;;  %v472_v63 = vld [vmem:[#allocation3 + $0xb40] sm:$0xff]  ;;  %v466_v0 = vld [vmem:[#allocation3 + $0xb10] sm:$0xff] }
  0xaa   :  { %2555 = vmatprep.subr.bf16.mxu1 %v12088_v1  ;;  %2719 = vmatprep.subr.bf16.mxu0 %v12092_v2  ;;  %v12204_v1 = vcombine.high %v450_v54, %v458_v56  ;;  %v474_v2 = vld [vmem:[#allocation3 + $0xb50] sm:$0xff]  ;;  %v12216_v6 = vcombine.high %v464_v62, %v472_v63  ;;  %v12215_v12 = vcombine.low %v464_v62, %v472_v63  ;;  %v204_v63 = vld [vmem:[#allocation3 + $0x2e0] sm:$0xff] }
  0xab   :  { %v12219_v13 = vcombine.low %v466_v0, %v474_v2 }
  0xad   :  { %2556 = vmatpush1.bf16.msra.mxu1 %v12087_v8  ;;  %2720 = vmatpush1.bf16.msra.mxu0 %v12091_v9  ;;  %v488_v8 = vld [vmem:[#allocation3 + $0xbc0] sm:$0xff]  ;;  %v482_v9 = vld [vmem:[#allocation3 + $0xb90] sm:$0xff] }
  0xae   :  { %2557 = vmatprep.subr.bf16.mxu1 %v12104_v10  ;;  %2721 = vmatprep.subr.bf16.mxu0 %v12108_v11  ;;  %v12220_v10 = vcombine.high %v466_v0, %v474_v2  ;;  %v490_v11 = vld [vmem:[#allocation3 + $0xbd0] sm:$0xff]  ;;  %v12232_v14 = vcombine.high %v480_v7, %v488_v8  ;;  %v12231_v20 = vcombine.low %v480_v7, %v488_v8  ;;  %v220_v8 = vld [vmem:[#allocation3 + $0x360] sm:$0xff] }
  0xaf   :  { %v12235_v21 = vcombine.low %v482_v9, %v490_v11 }
  0xb1   :  { %2558 = vmatpush1.bf16.msra.mxu1 %v12103_v16  ;;  %2722 = vmatpush1.bf16.msra.mxu0 %v12107_v17  ;;  %v121_v16 = vld [vmem:[#allocation3 + $0x48] sm:$0xff]  ;;  %v116_v17 = vld [vmem:[#allocation3 + $0x20] sm:$0xff] }
  0xb2   :  { %2568 = vmatprep.subr.bf16.mxu1 %v12120_v18  ;;  %2732 = vmatprep.subr.bf16.mxu0 %v12124_v19  ;;  %v12236_v18 = vcombine.high %v482_v9, %v490_v11  ;;  %v124_v19 = vld [vmem:[#allocation3 + $0x60] sm:$0xff]  ;;  %v11866_v23 = vcombine.high %v113_v15, %v121_v16  ;;  %v11865_v30 = vcombine.low %v113_v15, %v121_v16 }
  0xb3   :  { %v236_v16 = vld [vmem:[#allocation3 + $0x3e0] sm:$0xff] }
  0xb4   :  { %2560 = vmatmul.mubr.bf16.vlgmr.msra.gmra.mrb[0].mxu1 %v14143_v22  ;;  %2724 = vmatmul.mubr.bf16.vlgmr.msra.gmra.mrb[0].mxu0 %v14143_v22 }
  0xb5   :  { %2569 = vmatpush1.bf16.msra.mxu1 %v12119_v25  ;;  %2733 = vmatpush1.bf16.msra.mxu0 %v12123_v26  ;;  %v137_v25 = vld [vmem:[#allocation3 + $0xc8] sm:$0xff]  ;;  %v132_v26 = vld [vmem:[#allocation3 + $0xa0] sm:$0xff] }
  0xb6   :  { %2570 = vmatprep.subr.bf16.mxu1 %v12136_v27  ;;  %2734 = vmatprep.subr.bf16.mxu0 %v12140_v31  ;;  %v11872_v27 = vcombine.high %v116_v17, %v124_v19  ;;  %v11871_v31 = vcombine.low %v116_v17, %v124_v19  ;;  %v11882_v32 = vcombine.high %v129_v24, %v137_v25 }
  0xb7   :  { %2600 = vmatprep.mubr.bf16.mxu1 %v13998_v39  ;;  %2764 = vmatprep.mubr.bf16.mxu0 %v13998_v39  ;;  %v11888_v34 = vcombine.high %v132_v26, %v140_v28  ;;  %v11881_v36 = vcombine.low %v129_v24, %v137_v25  ;;  %v252_v25 = vld [vmem:[#allocation3 + $0x460] sm:$0xff] }
  0xb9   :  { %2571 = vmatpush1.bf16.msra.mxu1 %v12135_v57  ;;  %2735 = vmatpush1.bf16.msra.mxu0 %v12139_v60  ;;  %v145_v57 = vld [vmem:[#allocation3 + $0x108] sm:$0xff] }
  0xba   :  { %2572 = vmatprep.subr.bf16.mxu1 %v12152_v33  ;;  %2736 = vmatprep.subr.bf16.mxu0 %v12156_v37  ;;  %v153_v60 = vld [vmem:[#allocation3 + $0x148] sm:$0xff]  ;;  %v148_v33 = vld [vmem:[#allocation3 + $0x120] sm:$0xff]  ;;  %v11887_v37 = vcombine.low %v132_v26, %v140_v28 }
  0xbb   :  { %v11898_v38 = vcombine.high %v145_v57, %v153_v60  ;;  %v11904_v43 = vcombine.high %v148_v33, %v156_v35  ;;  %v11897_v45 = vcombine.low %v145_v57, %v153_v60  ;;  %v268_v60 = vld [vmem:[#allocation3 + $0x4e0] sm:$0xff] }
  0xbd   :  { %2573 = vmatpush1.bf16.msra.mxu1 %v12151_v40  ;;  %2737 = vmatpush1.bf16.msra.mxu0 %v12155_v41  ;;  %v161_v40 = vld [vmem:[#allocation3 + $0x188] sm:$0xff] }
  0xbe   :  { %2574 = vmatprep.subr.bf16.mxu1 %v12168_v42  ;;  %2738 = vmatprep.subr.bf16.mxu0 %v12172_v46  ;;  %v169_v41 = vld [vmem:[#allocation3 + $0x1c8] sm:$0xff]  ;;  %v164_v42 = vld [vmem:[#allocation3 + $0x1a0] sm:$0xff]  ;;  %v11903_v46 = vcombine.low %v148_v33, %v156_v35 }
  0xbf   :  { %v11914_v48 = vcombine.high %v161_v40, %v169_v41  ;;  %v11920_v52 = vcombine.high %v164_v42, %v172_v44  ;;  %v11913_v54 = vcombine.low %v161_v40, %v169_v41  ;;  %v284_v41 = vld [vmem:[#allocation3 + $0x560] sm:$0xff] }
  0xc1   :  { %2575 = vmatpush1.bf16.msra.mxu1 %v12167_v49  ;;  %2739 = vmatpush1.bf16.msra.mxu0 %v12171_v50  ;;  %v177_v49 = vld [vmem:[#allocation3 + $0x208] sm:$0xff] }
  0xc2   :  { %2576 = vmatprep.subr.bf16.mxu1 %v12184_v51  ;;  %2740 = vmatprep.subr.bf16.mxu0 %v12188_v55  ;;  %v185_v50 = vld [vmem:[#allocation3 + $0x248] sm:$0xff]  ;;  %v180_v51 = vld [vmem:[#allocation3 + $0x220] sm:$0xff]  ;;  %v11919_v55 = vcombine.low %v164_v42, %v172_v44 }
  0xc3   :  { %v11930_v56 = vcombine.high %v177_v49, %v185_v50  ;;  %v11936_v62 = vcombine.high %v180_v51, %v188_v53  ;;  %v11929_v0 = vcombine.low %v177_v49, %v185_v50  ;;  %v300_v50 = vld [vmem:[#allocation3 + $0x5e0] sm:$0xff] }
  0xc5   :  { %2577 = vmatpush1.bf16.msra.mxu1 %v12183_v58  ;;  %2741 = vmatpush1.bf16.msra.mxu0 %v12187_v59  ;;  %v193_v58 = vld [vmem:[#allocation3 + $0x288] sm:$0xff] }
  0xc6   :  { %2578 = vmatprep.subr.bf16.mxu1 %v12200_v61  ;;  %2742 = vmatprep.subr.bf16.mxu0 %v12204_v1  ;;  %v201_v59 = vld [vmem:[#allocation3 + $0x2c8] sm:$0xff]  ;;  %v196_v61 = vld [vmem:[#allocation3 + $0x2a0] sm:$0xff]  ;;  %v11935_v1 = vcombine.low %v180_v51, %v188_v53 }
  0xc7   :  { %v11946_v2 = vcombine.high %v193_v58, %v201_v59  ;;  %v11952_v7 = vcombine.high %v196_v61, %v204_v63  ;;  %v11945_v9 = vcombine.low %v193_v58, %v201_v59  ;;  %v316_v59 = vld [vmem:[#allocation3 + $0x660] sm:$0xff] }
  0xc9   :  { %2579 = vmatpush1.bf16.msra.mxu1 %v12199_v3  ;;  %2743 = vmatpush1.bf16.msra.mxu0 %v12203_v5  ;;  %v209_v3 = vld [vmem:[#allocation3 + $0x308] sm:$0xff] }
  0xca   :  { %2580 = vmatprep.subr.bf16.mxu1 %v12216_v6  ;;  %2744 = vmatprep.subr.bf16.mxu0 %v12220_v10  ;;  %v217_v5 = vld [vmem:[#allocation3 + $0x348] sm:$0xff]  ;;  %v212_v6 = vld [vmem:[#allocation3 + $0x320] sm:$0xff]  ;;  %v11951_v10 = vcombine.low %v196_v61, %v204_v63 }
  0xcb   :  { %v11962_v11 = vcombine.high %v209_v3, %v217_v5  ;;  %v11968_v15 = vcombine.high %v212_v6, %v220_v8  ;;  %v11961_v17 = vcombine.low %v209_v3, %v217_v5  ;;  %v332_v5 = vld [vmem:[#allocation3 + $0x6e0] sm:$0xff] }
  0xcd   :  { %2581 = vmatpush1.bf16.msra.mxu1 %v12215_v12  ;;  %2745 = vmatpush1.bf16.msra.mxu0 %v12219_v13  ;;  %v225_v12 = vld [vmem:[#allocation3 + $0x388] sm:$0xff] }
  0xce   :  { %2582 = vmatprep.subr.bf16.mxu1 %v12232_v14  ;;  %2746 = vmatprep.subr.bf16.mxu0 %v12236_v18  ;;  %v233_v13 = vld [vmem:[#allocation3 + $0x3c8] sm:$0xff]  ;;  %v228_v14 = vld [vmem:[#allocation3 + $0x3a0] sm:$0xff]  ;;  %v11967_v18 = vcombine.low %v212_v6, %v220_v8 }
  0xcf   :  { %v11978_v19 = vcombine.high %v225_v12, %v233_v13  ;;  %v11984_v24 = vcombine.high %v228_v14, %v236_v16  ;;  %v11977_v26 = vcombine.low %v225_v12, %v233_v13  ;;  %v340_v12 = vld [vmem:[#allocation3 + $0x720] sm:$0xff] }
  0xd0   :  { %v348_v13 = vld [vmem:[#allocation3 + $0x760] sm:$0xff] }
  0xd1   :  { %2583 = vmatpush1.bf16.msra.mxu1 %v12231_v20  ;;  %2747 = vmatpush1.bf16.msra.mxu0 %v12235_v21  ;;  %v241_v20 = vld [vmem:[#allocation3 + $0x408] sm:$0xff] }
  0xd2   :  { %2609 = vmatprep.subr.bf16.mxu1 %v11866_v23  ;;  %2855 = vmatprep.subr.bf16.mxu0 %v11872_v27  ;;  %v249_v21 = vld [vmem:[#allocation3 + $0x448] sm:$0xff]  ;;  %v244_v23 = vld [vmem:[#allocation3 + $0x420] sm:$0xff]  ;;  %v11983_v27 = vcombine.low %v228_v14, %v236_v16 }
  0xd3   :  { %v11994_v28 = vcombine.high %v241_v20, %v249_v21  ;;  %v12000_v57 = vcombine.high %v244_v23, %v252_v25  ;;  %v11993_v33 = vcombine.low %v241_v20, %v249_v21  ;;  %v356_v20 = vld [vmem:[#allocation3 + $0x7a0] sm:$0xff] }
  0xd4   :  { %2601 = vmatmul.mubr.bf16.vlgmr.msra.gmra.mrb[0].mxu1 %v14151_v29  ;;  %2765 = vmatmul.mubr.bf16.vlgmr.msra.gmra.mrb[0].mxu0 %v14151_v29  ;;  %v364_v21 = vld [vmem:[#allocation3 + $0x7e0] sm:$0xff] }
  0xd5   :  { %2610 = vmatpush1.bf16.msra.mxu1 %v11865_v30  ;;  %2856 = vmatpush1.bf16.msra.mxu0 %v11871_v31  ;;  %v257_v30 = vld [vmem:[#allocation3 + $0x488] sm:$0xff] }
  0xd6   :  { %2611 = vmatprep.subr.bf16.mxu1 %v11882_v32  ;;  %2857 = vmatprep.subr.bf16.mxu0 %v11888_v34  ;;  %v265_v31 = vld [vmem:[#allocation3 + $0x4c8] sm:$0xff]  ;;  %v260_v32 = vld [vmem:[#allocation3 + $0x4a0] sm:$0xff]  ;;  %v11999_v34 = vcombine.low %v244_v23, %v252_v25 }
  0xd7   :  { %2641 = vmatprep.mubr.bf16.mxu1 %v14137_v4  ;;  %2887 = vmatprep.mubr.bf16.mxu0 %v14137_v4  ;;  %v12010_v35 = vcombine.high %v257_v30, %v265_v31  ;;  %v12016_v40 = vcombine.high %v260_v32, %v268_v60  ;;  %v12009_v42 = vcombine.low %v257_v30, %v265_v31  ;;  %v372_v30 = vld [vmem:[#allocation3 + $0x820] sm:$0xff] }
  0xd8   :  { %v380_v31 = vld [vmem:[#allocation3 + $0x860] sm:$0xff] }
  0xd9   :  { %2612 = vmatpush1.bf16.msra.mxu1 %v11881_v36  ;;  %2858 = vmatpush1.bf16.msra.mxu0 %v11887_v37  ;;  %v273_v36 = vld [vmem:[#allocation3 + $0x508] sm:$0xff] }
  0xda   :  { %2613 = vmatprep.subr.bf16.mxu1 %v11898_v38  ;;  %2859 = vmatprep.subr.bf16.mxu0 %v11904_v43  ;;  %v281_v37 = vld [vmem:[#allocation3 + $0x548] sm:$0xff]  ;;  %v276_v38 = vld [vmem:[#allocation3 + $0x520] sm:$0xff]  ;;  %v12015_v43 = vcombine.low %v260_v32, %v268_v60 }
  0xdb   :  { %v12026_v44 = vcombine.high %v273_v36, %v281_v37  ;;  %v12032_v49 = vcombine.high %v276_v38, %v284_v41  ;;  %v12025_v51 = vcombine.low %v273_v36, %v281_v37  ;;  %v388_v36 = vld [vmem:[#allocation3 + $0x8a0] sm:$0xff] }
  0xdc   :  { %v396_v37 = vld [vmem:[#allocation3 + $0x8e0] sm:$0xff] }
  0xdd   :  { %2614 = vmatpush1.bf16.msra.mxu1 %v11897_v45  ;;  %2860 = vmatpush1.bf16.msra.mxu0 %v11903_v46  ;;  %v289_v45 = vld [vmem:[#allocation3 + $0x588] sm:$0xff] }
  0xde   :  { %2615 = vmatprep.subr.bf16.mxu1 %v11914_v48  ;;  %2861 = vmatprep.subr.bf16.mxu0 %v11920_v52  ;;  %v297_v46 = vld [vmem:[#allocation3 + $0x5c8] sm:$0xff]  ;;  %v292_v48 = vld [vmem:[#allocation3 + $0x5a0] sm:$0xff]  ;;  %v12031_v52 = vcombine.low %v276_v38, %v284_v41 }
  0xdf   :  { %v12042_v53 = vcombine.high %v289_v45, %v297_v46  ;;  %v12048_v58 = vcombine.high %v292_v48, %v300_v50  ;;  %v12041_v61 = vcombine.low %v289_v45, %v297_v46  ;;  %v404_v45 = vld [vmem:[#allocation3 + $0x920] sm:$0xff] }
  0xe0   :  { %v412_v46 = vld [vmem:[#allocation3 + $0x960] sm:$0xff] }
  0xe1   :  { %2616 = vmatpush1.bf16.msra.mxu1 %v11913_v54  ;;  %2862 = vmatpush1.bf16.msra.mxu0 %v11919_v55  ;;  %v305_v54 = vld [vmem:[#allocation3 + $0x608] sm:$0xff] }
  0xe2   :  { %2617 = vmatprep.subr.bf16.mxu1 %v11930_v56  ;;  %2863 = vmatprep.subr.bf16.mxu0 %v11936_v62  ;;  %v313_v55 = vld [vmem:[#allocation3 + $0x648] sm:$0xff]  ;;  %v308_v56 = vld [vmem:[#allocation3 + $0x620] sm:$0xff]  ;;  %v12047_v62 = vcombine.low %v292_v48, %v300_v50 }
  0xe3   :  { %v12058_v63 = vcombine.high %v305_v54, %v313_v55  ;;  %v12064_v3 = vcombine.high %v308_v56, %v316_v59  ;;  %v12057_v6 = vcombine.low %v305_v54, %v313_v55  ;;  %v420_v54 = vld [vmem:[#allocation3 + $0x9a0] sm:$0xff] }
  0xe4   :  { %v428_v55 = vld [vmem:[#allocation3 + $0x9e0] sm:$0xff] }
  0xe5   :  { %2618 = vmatpush1.bf16.msra.mxu1 %v11929_v0  ;;  %2864 = vmatpush1.bf16.msra.mxu0 %v11935_v1  ;;  %v321_v0 = vld [vmem:[#allocation3 + $0x688] sm:$0xff] }
  0xe6   :  { %2619 = vmatprep.subr.bf16.mxu1 %v11946_v2  ;;  %2865 = vmatprep.subr.bf16.mxu0 %v11952_v7  ;;  %v329_v1 = vld [vmem:[#allocation3 + $0x6c8] sm:$0xff]  ;;  %v324_v2 = vld [vmem:[#allocation3 + $0x6a0] sm:$0xff]  ;;  %v12063_v7 = vcombine.low %v308_v56, %v316_v59 }
  0xe7   :  { %v12074_v8 = vcombine.high %v321_v0, %v329_v1  ;;  %v12073_v14 = vcombine.low %v321_v0, %v329_v1  ;;  %v436_v0 = vld [vmem:[#allocation3 + $0xa20] sm:$0xff] }
  0xe8   :  { %v444_v1 = vld [vmem:[#allocation3 + $0xa60] sm:$0xff] }
  0xe9   :  { %2620 = vmatpush1.bf16.msra.mxu1 %v11945_v9  ;;  %2866 = vmatpush1.bf16.msra.mxu0 %v11951_v10  ;;  %v12080_v9 = vcombine.high %v324_v2, %v332_v5  ;;  %v337_v10 = vld [vmem:[#allocation3 + $0x708] sm:$0xff] }
  0xea   :  { %2621 = vmatprep.subr.bf16.mxu1 %v11962_v11  ;;  %2867 = vmatprep.subr.bf16.mxu0 %v11968_v15  ;;  %v345_v11 = vld [vmem:[#allocation3 + $0x748] sm:$0xff]  ;;  %v12079_v15 = vcombine.low %v324_v2, %v332_v5 }
  0xeb   :  { %v12090_v16 = vcombine.high %v337_v10, %v345_v11  ;;  %v12089_v23 = vcombine.low %v337_v10, %v345_v11  ;;  %v460_v10 = vld [vmem:[#allocation3 + $0xae0] sm:$0xff] }
  0xed   :  { %2622 = vmatpush1.bf16.msra.mxu1 %v11961_v17  ;;  %2868 = vmatpush1.bf16.msra.mxu0 %v11967_v18  ;;  %v12096_v17 = vcombine.high %v340_v12, %v348_v13  ;;  %v353_v18 = vld [vmem:[#allocation3 + $0x788] sm:$0xff] }
  0xee   :  { %2623 = vmatprep.subr.bf16.mxu1 %v11978_v19  ;;  %2869 = vmatprep.subr.bf16.mxu0 %v11984_v24  ;;  %v361_v19 = vld [vmem:[#allocation3 + $0x7c8] sm:$0xff]  ;;  %v12095_v24 = vcombine.low %v340_v12, %v348_v13  ;;  %v12191_v12 = vcombine.low %v436_v0, %v444_v1 }
  0xef   :  { %v12106_v25 = vcombine.high %v353_v18, %v361_v19  ;;  %v12105_v32 = vcombine.low %v353_v18, %v361_v19  ;;  %v476_v18 = vld [vmem:[#allocation3 + $0xb60] sm:$0xff] }
  0xf1   :  { %2624 = vmatpush1.bf16.msra.mxu1 %v11977_v26  ;;  %2870 = vmatpush1.bf16.msra.mxu0 %v11983_v27  ;;  %v12112_v26 = vcombine.high %v356_v20, %v364_v21  ;;  %v369_v27 = vld [vmem:[#allocation3 + $0x808] sm:$0xff] }
  0xf2   :  { %2625 = vmatprep.subr.bf16.mxu1 %v11994_v28  ;;  %2871 = vmatprep.subr.bf16.mxu0 %v12000_v57  ;;  %v377_v28 = vld [vmem:[#allocation3 + $0x848] sm:$0xff]  ;;  %v12111_v57 = vcombine.low %v356_v20, %v364_v21 }
  0xf3   :  { %v12122_v60 = vcombine.high %v369_v27, %v377_v28  ;;  %v12121_v38 = vcombine.low %v369_v27, %v377_v28  ;;  %v492_v27 = vld [vmem:[#allocation3 + $0xbe0] sm:$0xff] }
  0xf5   :  { %2626 = vmatpush1.bf16.msra.mxu1 %v11993_v33  ;;  %2872 = vmatpush1.bf16.msra.mxu0 %v11999_v34  ;;  %v12128_v33 = vcombine.high %v372_v30, %v380_v31  ;;  %v385_v34 = vld [vmem:[#allocation3 + $0x888] sm:$0xff] }
  0xf6   :  { %2627 = vmatprep.subr.bf16.mxu1 %v12010_v35  ;;  %2873 = vmatprep.subr.bf16.mxu0 %v12016_v40  ;;  %v393_v35 = vld [vmem:[#allocation3 + $0x8c8] sm:$0xff]  ;;  %v12127_v40 = vcombine.low %v372_v30, %v380_v31 }
  0xf7   :  { %v12138_v41 = vcombine.high %v385_v34, %v393_v35  ;;  %v12137_v48 = vcombine.low %v385_v34, %v393_v35  ;;  %v126_v34 = vld [vmem:[#allocation3 + $0x70] sm:$0xff] }
  0xf9   :  { %2628 = vmatpush1.bf16.msra.mxu1 %v12009_v42  ;;  %2874 = vmatpush1.bf16.msra.mxu0 %v12015_v43  ;;  %v12144_v42 = vcombine.high %v388_v36, %v396_v37  ;;  %v401_v43 = vld [vmem:[#allocation3 + $0x908] sm:$0xff] }
  0xfa   :  { %2629 = vmatprep.subr.bf16.mxu1 %v12026_v44  ;;  %2875 = vmatprep.subr.bf16.mxu0 %v12032_v49  ;;  %v409_v44 = vld [vmem:[#allocation3 + $0x948] sm:$0xff]  ;;  %v12143_v49 = vcombine.low %v388_v36, %v396_v37 }
  0xfb   :  { %v12154_v50 = vcombine.high %v401_v43, %v409_v44  ;;  %v12153_v56 = vcombine.low %v401_v43, %v409_v44  ;;  %v142_v43 = vld [vmem:[#allocation3 + $0xf0] sm:$0xff] }
  0xfd   :  { %2630 = vmatpush1.bf16.msra.mxu1 %v12025_v51  ;;  %2876 = vmatpush1.bf16.msra.mxu0 %v12031_v52  ;;  %v12160_v51 = vcombine.high %v404_v45, %v412_v46  ;;  %v417_v52 = vld [vmem:[#allocation3 + $0x988] sm:$0xff] }
  0xfe   :  { %2631 = vmatprep.subr.bf16.mxu1 %v12042_v53  ;;  %2877 = vmatprep.subr.bf16.mxu0 %v12048_v58  ;;  %v425_v53 = vld [vmem:[#allocation3 + $0x9c8] sm:$0xff]  ;;  %v12159_v58 = vcombine.low %v404_v45, %v412_v46 }
  0xff   :  { %v12170_v59 = vcombine.high %v417_v52, %v425_v53  ;;  %v12169_v2 = vcombine.low %v417_v52, %v425_v53  ;;  %v158_v52 = vld [vmem:[#allocation3 + $0x170] sm:$0xff] }
 0x101   :  { %2632 = vmatpush1.bf16.msra.mxu1 %v12041_v61  ;;  %2878 = vmatpush1.bf16.msra.mxu0 %v12047_v62  ;;  %v12176_v61 = vcombine.high %v420_v54, %v428_v55  ;;  %v433_v62 = vld [vmem:[#allocation3 + $0xa08] sm:$0xff] }
 0x102   :  { %2633 = vmatprep.subr.bf16.mxu1 %v12058_v63  ;;  %2879 = vmatprep.subr.bf16.mxu0 %v12064_v3  ;;  %v441_v63 = vld [vmem:[#allocation3 + $0xa48] sm:$0xff]  ;;  %v12175_v3 = vcombine.low %v420_v54, %v428_v55 }
 0x103   :  { %v12186_v5 = vcombine.high %v433_v62, %v441_v63  ;;  %v12185_v11 = vcombine.low %v433_v62, %v441_v63  ;;  %v174_v62 = vld [vmem:[#allocation3 + $0x1f0] sm:$0xff] }
 0x105   :  { %2634 = vmatpush1.bf16.msra.mxu1 %v12057_v6  ;;  %2880 = vmatpush1.bf16.msra.mxu0 %v12063_v7  ;;  %v12192_v6 = vcombine.high %v436_v0, %v444_v1  ;;  %v449_v7 = vld [vmem:[#allocation3 + $0xa88] sm:$0xff] }
 0x106   :  { %2635 = vmatprep.subr.bf16.mxu1 %v12074_v8  ;;  %2881 = vmatprep.subr.bf16.mxu0 %v12080_v9  ;;  %v457_v8 = vld [vmem:[#allocation3 + $0xac8] sm:$0xff]  ;;  %v452_v9 = vld [vmem:[#allocation3 + $0xaa0] sm:$0xff] }
 0x107   :  { %v12202_v13 = vcombine.high %v449_v7, %v457_v8  ;;  %v12201_v19 = vcombine.low %v449_v7, %v457_v8  ;;  %v12207_v20 = vcombine.low %v452_v9, %v460_v10  ;;  %v190_v7 = vld [vmem:[#allocation3 + $0x270] sm:$0xff] }
 0x109   :  { %2636 = vmatpush1.bf16.msra.mxu1 %v12073_v14  ;;  %2882 = vmatpush1.bf16.msra.mxu0 %v12079_v15  ;;  %v12208_v14 = vcombine.high %v452_v9, %v460_v10  ;;  %v465_v15 = vld [vmem:[#allocation3 + $0xb08] sm:$0xff] }
 0x10a   :  { %2637 = vmatprep.subr.bf16.mxu1 %v12090_v16  ;;  %2883 = vmatprep.subr.bf16.mxu0 %v12096_v17  ;;  %v473_v16 = vld [vmem:[#allocation3 + $0xb48] sm:$0xff]  ;;  %v468_v17 = vld [vmem:[#allocation3 + $0xb20] sm:$0xff] }
 0x10b   :  { %v12218_v21 = vcombine.high %v465_v15, %v473_v16  ;;  %v12217_v28 = vcombine.low %v465_v15, %v473_v16  ;;  %v12223_v30 = vcombine.low %v468_v17, %v476_v18  ;;  %v206_v15 = vld [vmem:[#allocation3 + $0x2f0] sm:$0xff] }
 0x10d   :  { %2638 = vmatpush1.bf16.msra.mxu1 %v12089_v23  ;;  %2884 = vmatpush1.bf16.msra.mxu0 %v12095_v24  ;;  %v12224_v23 = vcombine.high %v468_v17, %v476_v18  ;;  %v481_v24 = vld [vmem:[#allocation3 + $0xb88] sm:$0xff] }
 0x10e   :  { %2639 = vmatprep.subr.bf16.mxu1 %v12106_v25  ;;  %2885 = vmatprep.subr.bf16.mxu0 %v12112_v26  ;;  %v489_v25 = vld [vmem:[#allocation3 + $0xbc8] sm:$0xff]  ;;  %v484_v26 = vld [vmem:[#allocation3 + $0xba0] sm:$0xff] }
 0x10f   :  { %v12234_v31 = vcombine.high %v481_v24, %v489_v25  ;;  %v12233_v35 = vcombine.low %v481_v24, %v489_v25  ;;  %v12239_v36 = vcombine.low %v484_v26, %v492_v27  ;;  %v222_v24 = vld [vmem:[#allocation3 + $0x370] sm:$0xff] }
 0x111   :  { %2640 = vmatpush1.bf16.msra.mxu1 %v12105_v32  ;;  %2886 = vmatpush1.bf16.msra.mxu0 %v12111_v57  ;;  %v12240_v32 = vcombine.high %v484_v26, %v492_v27  ;;  %v115_v57 = vld [vmem:[#allocation3 + $0x18] sm:$0xff] }
 0x112   :  { %2650 = vmatprep.subr.bf16.mxu1 %v12122_v60  ;;  %2896 = vmatprep.subr.bf16.mxu0 %v12128_v33  ;;  %v123_v60 = vld [vmem:[#allocation3 + $0x58] sm:$0xff]  ;;  %v118_v33 = vld [vmem:[#allocation3 + $0x30] sm:$0xff] }
 0x113   :  { %v11870_v37 = vcombine.high %v115_v57, %v123_v60  ;;  %v11869_v44 = vcombine.low %v115_v57, %v123_v60  ;;  %v11875_v45 = vcombine.low %v118_v33, %v126_v34  ;;  %v238_v57 = vld [vmem:[#allocation3 + $0x3f0] sm:$0xff] }
 0x114   :  { %2642 = vmatmul.mubr.bf16.vlgmr.msra.gmra.mrb[4].mxu1 %v14143_v22  ;;  %2888 = vmatmul.mubr.bf16.vlgmr.msra.gmra.mrb[4].mxu0 %v14143_v22 }
 0x115   :  { %2651 = vmatpush1.bf16.msra.mxu1 %v12121_v38  ;;  %2897 = vmatpush1.bf16.msra.mxu0 %v12127_v40  ;;  %v11876_v38 = vcombine.high %v118_v33, %v126_v34  ;;  %v131_v40 = vld [vmem:[#allocation3 + $0x98] sm:$0xff] }
 0x116   :  { %2652 = vmatprep.subr.bf16.mxu1 %v12138_v41  ;;  %2898 = vmatprep.subr.bf16.mxu0 %v12144_v42  ;;  %v139_v41 = vld [vmem:[#allocation3 + $0xd8] sm:$0xff]  ;;  %v134_v42 = vld [vmem:[#allocation3 + $0xb0] sm:$0xff] }
 0x117   :  { %2682 = vmatprep.mubr.bf16.mxu1 %v13998_v39  ;;  %2928 = vmatprep.mubr.bf16.mxu0 %v13998_v39  ;;  %v11886_v46 = vcombine.high %v131_v40, %v139_v41  ;;  %v11885_v53 = vcombine.low %v131_v40, %v139_v41  ;;  %v11891_v54 = vcombine.low %v134_v42, %v142_v43  ;;  %v254_v40 = vld [vmem:[#allocation3 + $0x470] sm:$0xff] }
 0x119   :  { %2653 = vmatpush1.bf16.msra.mxu1 %v12137_v48  ;;  %2899 = vmatpush1.bf16.msra.mxu0 %v12143_v49  ;;  %v11892_v48 = vcombine.high %v134_v42, %v142_v43  ;;  %v147_v49 = vld [vmem:[#allocation3 + $0x118] sm:$0xff] }
 0x11a   :  { %2654 = vmatprep.subr.bf16.mxu1 %v12154_v50  ;;  %2900 = vmatprep.subr.bf16.mxu0 %v12160_v51  ;;  %v155_v50 = vld [vmem:[#allocation3 + $0x158] sm:$0xff]  ;;  %v150_v51 = vld [vmem:[#allocation3 + $0x130] sm:$0xff] }
 0x11b   :  { %v11902_v55 = vcombine.high %v147_v49, %v155_v50  ;;  %v11901_v63 = vcombine.low %v147_v49, %v155_v50  ;;  %v11907_v0 = vcombine.low %v150_v51, %v158_v52  ;;  %v270_v49 = vld [vmem:[#allocation3 + $0x4f0] sm:$0xff] }
 0x11d   :  { %2655 = vmatpush1.bf16.msra.mxu1 %v12153_v56  ;;  %2901 = vmatpush1.bf16.msra.mxu0 %v12159_v58  ;;  %v11908_v56 = vcombine.high %v150_v51, %v158_v52  ;;  %v163_v58 = vld [vmem:[#allocation3 + $0x198] sm:$0xff] }
 0x11e   :  { %2656 = vmatprep.subr.bf16.mxu1 %v12170_v59  ;;  %2902 = vmatprep.subr.bf16.mxu0 %v12176_v61  ;;  %v171_v59 = vld [vmem:[#allocation3 + $0x1d8] sm:$0xff]  ;;  %v166_v61 = vld [vmem:[#allocation3 + $0x1b0] sm:$0xff] }
 0x11f   :  { %v11918_v1 = vcombine.high %v163_v58, %v171_v59  ;;  %v11917_v8 = vcombine.low %v163_v58, %v171_v59  ;;  %v11923_v9 = vcombine.low %v166_v61, %v174_v62  ;;  %v286_v58 = vld [vmem:[#allocation3 + $0x570] sm:$0xff] }
 0x121   :  { %2657 = vmatpush1.bf16.msra.mxu1 %v12169_v2  ;;  %2903 = vmatpush1.bf16.msra.mxu0 %v12175_v3  ;;  %v11924_v2 = vcombine.high %v166_v61, %v174_v62  ;;  %v179_v3 = vld [vmem:[#allocation3 + $0x218] sm:$0xff] }
 0x122   :  { %2658 = vmatprep.subr.bf16.mxu1 %v12186_v5  ;;  %2904 = vmatprep.subr.bf16.mxu0 %v12192_v6  ;;  %v187_v5 = vld [vmem:[#allocation3 + $0x258] sm:$0xff]  ;;  %v182_v6 = vld [vmem:[#allocation3 + $0x230] sm:$0xff] }
 0x123   :  { %v11934_v10 = vcombine.high %v179_v3, %v187_v5  ;;  %v11933_v16 = vcombine.low %v179_v3, %v187_v5  ;;  %v11939_v17 = vcombine.low %v182_v6, %v190_v7  ;;  %v302_v3 = vld [vmem:[#allocation3 + $0x5f0] sm:$0xff] }
 0x125   :  { %2659 = vmatpush1.bf16.msra.mxu1 %v12185_v11  ;;  %2905 = vmatpush1.bf16.msra.mxu0 %v12191_v12  ;;  %v11940_v11 = vcombine.high %v182_v6, %v190_v7  ;;  %v195_v12 = vld [vmem:[#allocation3 + $0x298] sm:$0xff] }
 0x126   :  { %2660 = vmatprep.subr.bf16.mxu1 %v12202_v13  ;;  %2906 = vmatprep.subr.bf16.mxu0 %v12208_v14  ;;  %v203_v13 = vld [vmem:[#allocation3 + $0x2d8] sm:$0xff]  ;;  %v198_v14 = vld [vmem:[#allocation3 + $0x2b0] sm:$0xff] }
 0x127   :  { %v11950_v18 = vcombine.high %v195_v12, %v203_v13  ;;  %v11949_v25 = vcombine.low %v195_v12, %v203_v13  ;;  %v11955_v26 = vcombine.low %v198_v14, %v206_v15  ;;  %v318_v12 = vld [vmem:[#allocation3 + $0x670] sm:$0xff] }
 0x129   :  { %2661 = vmatpush1.bf16.msra.mxu1 %v12201_v19  ;;  %2907 = vmatpush1.bf16.msra.mxu0 %v12207_v20  ;;  %v11956_v19 = vcombine.high %v198_v14, %v206_v15  ;;  %v211_v20 = vld [vmem:[#allocation3 + $0x318] sm:$0xff] }
 0x12a   :  { %2662 = vmatprep.subr.bf16.mxu1 %v12218_v21  ;;  %2908 = vmatprep.subr.bf16.mxu0 %v12224_v23  ;;  %v219_v21 = vld [vmem:[#allocation3 + $0x358] sm:$0xff]  ;;  %v214_v23 = vld [vmem:[#allocation3 + $0x330] sm:$0xff] }
 0x12b   :  { %v11966_v27 = vcombine.high %v211_v20, %v219_v21  ;;  %v11965_v60 = vcombine.low %v211_v20, %v219_v21  ;;  %v11971_v33 = vcombine.low %v214_v23, %v222_v24  ;;  %v334_v20 = vld [vmem:[#allocation3 + $0x6f0] sm:$0xff] }
 0x12d   :  { %2663 = vmatpush1.bf16.msra.mxu1 %v12217_v28  ;;  %2909 = vmatpush1.bf16.msra.mxu0 %v12223_v30  ;;  %v11972_v28 = vcombine.high %v214_v23, %v222_v24  ;;  %v227_v30 = vld [vmem:[#allocation3 + $0x398] sm:$0xff] }
 0x12e   :  { %2664 = vmatprep.subr.bf16.mxu1 %v12234_v31  ;;  %2910 = vmatprep.subr.bf16.mxu0 %v12240_v32  ;;  %v235_v31 = vld [vmem:[#allocation3 + $0x3d8] sm:$0xff]  ;;  %v230_v32 = vld [vmem:[#allocation3 + $0x3b0] sm:$0xff] }
 0x12f   :  { %v11982_v34 = vcombine.high %v227_v30, %v235_v31  ;;  %v11981_v41 = vcombine.low %v227_v30, %v235_v31  ;;  %v11987_v42 = vcombine.low %v230_v32, %v238_v57  ;;  %v350_v30 = vld [vmem:[#allocation3 + $0x770] sm:$0xff] }
 0x131   :  { %2665 = vmatpush1.bf16.msra.mxu1 %v12233_v35  ;;  %2911 = vmatpush1.bf16.msra.mxu0 %v12239_v36  ;;  %v11988_v35 = vcombine.high %v230_v32, %v238_v57  ;;  %v243_v36 = vld [vmem:[#allocation3 + $0x418] sm:$0xff] }
 0x132   :  { %2773 = vmatprep.subr.bf16.mxu1 %v11870_v37  ;;  %3019 = vmatprep.subr.bf16.mxu0 %v11876_v38  ;;  %v251_v37 = vld [vmem:[#allocation3 + $0x458] sm:$0xff]  ;;  %v246_v38 = vld [vmem:[#allocation3 + $0x430] sm:$0xff] }
 0x133   :  { %v11998_v43 = vcombine.high %v243_v36, %v251_v37  ;;  %v11997_v50 = vcombine.low %v243_v36, %v251_v37  ;;  %v12003_v51 = vcombine.low %v246_v38, %v254_v40  ;;  %v366_v36 = vld [vmem:[#allocation3 + $0x7f0] sm:$0xff] }
 0x134   :  { %2683 = vmatmul.mubr.bf16.vlgmr.msra.gmra.mrb[4].mxu1 %v14151_v29  ;;  %2929 = vmatmul.mubr.bf16.vlgmr.msra.gmra.mrb[4].mxu0 %v14151_v29 }
 0x135   :  { %2774 = vmatpush1.bf16.msra.mxu1 %v11869_v44  ;;  %3020 = vmatpush1.bf16.msra.mxu0 %v11875_v45  ;;  %v12004_v44 = vcombine.high %v246_v38, %v254_v40  ;;  %v259_v45 = vld [vmem:[#allocation3 + $0x498] sm:$0xff] }
 0x136   :  { %2775 = vmatprep.subr.bf16.mxu1 %v11886_v46  ;;  %3021 = vmatprep.subr.bf16.mxu0 %v11892_v48  ;;  %v267_v46 = vld [vmem:[#allocation3 + $0x4d8] sm:$0xff]  ;;  %v262_v48 = vld [vmem:[#allocation3 + $0x4b0] sm:$0xff] }
 0x137   :  { %2805 = vmatprep.mubr.bf16.mxu1 %v14137_v4  ;;  %3051 = vmatprep.mubr.bf16.mxu0 %v14137_v4  ;;  %v12014_v52 = vcombine.high %v259_v45, %v267_v46  ;;  %v12013_v59 = vcombine.low %v259_v45, %v267_v46  ;;  %v12019_v61 = vcombine.low %v262_v48, %v270_v49  ;;  %v382_v45 = vld [vmem:[#allocation3 + $0x870] sm:$0xff] }
 0x139   :  { %2776 = vmatpush1.bf16.msra.mxu1 %v11885_v53  ;;  %3022 = vmatpush1.bf16.msra.mxu0 %v11891_v54  ;;  %v12020_v53 = vcombine.high %v262_v48, %v270_v49  ;;  %v275_v54 = vld [vmem:[#allocation3 + $0x518] sm:$0xff] }
 0x13a   :  { %2777 = vmatprep.subr.bf16.mxu1 %v11902_v55  ;;  %3023 = vmatprep.subr.bf16.mxu0 %v11908_v56  ;;  %v283_v55 = vld [vmem:[#allocation3 + $0x558] sm:$0xff]  ;;  %v278_v56 = vld [vmem:[#allocation3 + $0x530] sm:$0xff] }
 0x13b   :  { %v12030_v62 = vcombine.high %v275_v54, %v283_v55  ;;  %v12029_v5 = vcombine.low %v275_v54, %v283_v55  ;;  %v12035_v6 = vcombine.low %v278_v56, %v286_v58  ;;  %v398_v54 = vld [vmem:[#allocation3 + $0x8f0] sm:$0xff] }
 0x13d   :  { %2778 = vmatpush1.bf16.msra.mxu1 %v11901_v63  ;;  %3024 = vmatpush1.bf16.msra.mxu0 %v11907_v0  ;;  %v12036_v63 = vcombine.high %v278_v56, %v286_v58  ;;  %v291_v0 = vld [vmem:[#allocation3 + $0x598] sm:$0xff] }
 0x13e   :  { %2779 = vmatprep.subr.bf16.mxu1 %v11918_v1  ;;  %3025 = vmatprep.subr.bf16.mxu0 %v11924_v2  ;;  %v299_v1 = vld [vmem:[#allocation3 + $0x5d8] sm:$0xff]  ;;  %v294_v2 = vld [vmem:[#allocation3 + $0x5b0] sm:$0xff] }
 0x13f   :  { %v12046_v7 = vcombine.high %v291_v0, %v299_v1  ;;  %v12045_v13 = vcombine.low %v291_v0, %v299_v1  ;;  %v12051_v14 = vcombine.low %v294_v2, %v302_v3  ;;  %v414_v0 = vld [vmem:[#allocation3 + $0x970] sm:$0xff] }
 0x141   :  { %2780 = vmatpush1.bf16.msra.mxu1 %v11917_v8  ;;  %3026 = vmatpush1.bf16.msra.mxu0 %v11923_v9  ;;  %v12052_v8 = vcombine.high %v294_v2, %v302_v3  ;;  %v307_v9 = vld [vmem:[#allocation3 + $0x618] sm:$0xff] }
 0x142   :  { %2781 = vmatprep.subr.bf16.mxu1 %v11934_v10  ;;  %3027 = vmatprep.subr.bf16.mxu0 %v11940_v11  ;;  %v315_v10 = vld [vmem:[#allocation3 + $0x658] sm:$0xff]  ;;  %v310_v11 = vld [vmem:[#allocation3 + $0x630] sm:$0xff] }
 0x143   :  { %v12062_v15 = vcombine.high %v307_v9, %v315_v10  ;;  %v12061_v21 = vcombine.low %v307_v9, %v315_v10  ;;  %v12067_v23 = vcombine.low %v310_v11, %v318_v12  ;;  %v430_v9 = vld [vmem:[#allocation3 + $0x9f0] sm:$0xff] }
 0x145   :  { %2782 = vmatpush1.bf16.msra.mxu1 %v11933_v16  ;;  %3028 = vmatpush1.bf16.msra.mxu0 %v11939_v17  ;;  %v12068_v16 = vcombine.high %v310_v11, %v318_v12  ;;  %v323_v17 = vld [vmem:[#allocation3 + $0x698] sm:$0xff] }
 0x146   :  { %2783 = vmatprep.subr.bf16.mxu1 %v11950_v18  ;;  %3029 = vmatprep.subr.bf16.mxu0 %v11956_v19  ;;  %v331_v18 = vld [vmem:[#allocation3 + $0x6d8] sm:$0xff]  ;;  %v326_v19 = vld [vmem:[#allocation3 + $0x6b0] sm:$0xff] }
 0x147   :  { %v12078_v24 = vcombine.high %v323_v17, %v331_v18  ;;  %v12077_v31 = vcombine.low %v323_v17, %v331_v18  ;;  %v12083_v32 = vcombine.low %v326_v19, %v334_v20  ;;  %v446_v17 = vld [vmem:[#allocation3 + $0xa70] sm:$0xff] }
 0x149   :  { %2784 = vmatpush1.bf16.msra.mxu1 %v11949_v25  ;;  %3030 = vmatpush1.bf16.msra.mxu0 %v11955_v26  ;;  %v12084_v25 = vcombine.high %v326_v19, %v334_v20  ;;  %v339_v26 = vld [vmem:[#allocation3 + $0x718] sm:$0xff] }
 0x14a   :  { %2785 = vmatprep.subr.bf16.mxu1 %v11966_v27  ;;  %3031 = vmatprep.subr.bf16.mxu0 %v11972_v28  ;;  %v347_v27 = vld [vmem:[#allocation3 + $0x758] sm:$0xff]  ;;  %v342_v28 = vld [vmem:[#allocation3 + $0x730] sm:$0xff] }
 0x14b   :  { %v12094_v57 = vcombine.high %v339_v26, %v347_v27  ;;  %v12093_v37 = vcombine.low %v339_v26, %v347_v27  ;;  %v12099_v38 = vcombine.low %v342_v28, %v350_v30  ;;  %v462_v26 = vld [vmem:[#allocation3 + $0xaf0] sm:$0xff] }
 0x14d   :  { %2786 = vmatpush1.bf16.msra.mxu1 %v11965_v60  ;;  %3032 = vmatpush1.bf16.msra.mxu0 %v11971_v33  ;;  %v12100_v60 = vcombine.high %v342_v28, %v350_v30  ;;  %v355_v33 = vld [vmem:[#allocation3 + $0x798] sm:$0xff] }
 0x14e   :  { %2787 = vmatprep.subr.bf16.mxu1 %v11982_v34  ;;  %3033 = vmatprep.subr.bf16.mxu0 %v11988_v35  ;;  %v363_v34 = vld [vmem:[#allocation3 + $0x7d8] sm:$0xff]  ;;  %v358_v35 = vld [vmem:[#allocation3 + $0x7b0] sm:$0xff] }
 0x14f   :  { %v12110_v40 = vcombine.high %v355_v33, %v363_v34  ;;  %v12109_v46 = vcombine.low %v355_v33, %v363_v34  ;;  %v12115_v48 = vcombine.low %v358_v35, %v366_v36  ;;  %v478_v33 = vld [vmem:[#allocation3 + $0xb70] sm:$0xff] }
 0x151   :  { %2788 = vmatpush1.bf16.msra.mxu1 %v11981_v41  ;;  %3034 = vmatpush1.bf16.msra.mxu0 %v11987_v42  ;;  %v12116_v41 = vcombine.high %v358_v35, %v366_v36  ;;  %v371_v42 = vld [vmem:[#allocation3 + $0x818] sm:$0xff] }
 0x152   :  { %2789 = vmatprep.subr.bf16.mxu1 %v11998_v43  ;;  %3035 = vmatprep.subr.bf16.mxu0 %v12004_v44  ;;  %v379_v43 = vld [vmem:[#allocation3 + $0x858] sm:$0xff]  ;;  %v374_v44 = vld [vmem:[#allocation3 + $0x830] sm:$0xff] }
 0x153   :  { %v12126_v49 = vcombine.high %v371_v42, %v379_v43  ;;  %v12125_v55 = vcombine.low %v371_v42, %v379_v43  ;;  %v12131_v56 = vcombine.low %v374_v44, %v382_v45  ;;  %v494_v42 = vld [vmem:[#allocation3 + $0xbf0] sm:$0xff] }
 0x155   :  { %2790 = vmatpush1.bf16.msra.mxu1 %v11997_v50  ;;  %3036 = vmatpush1.bf16.msra.mxu0 %v12003_v51  ;;  %v12132_v50 = vcombine.high %v374_v44, %v382_v45  ;;  %v387_v51 = vld [vmem:[#allocation3 + $0x898] sm:$0xff] }
 0x156   :  { %2791 = vmatprep.subr.bf16.mxu1 %v12014_v52  ;;  %3037 = vmatprep.subr.bf16.mxu0 %v12020_v53  ;;  %v395_v52 = vld [vmem:[#allocation3 + $0x8d8] sm:$0xff]  ;;  %v390_v53 = vld [vmem:[#allocation3 + $0x8b0] sm:$0xff] }
 0x157   :  { %v12142_v58 = vcombine.high %v387_v51, %v395_v52  ;;  %v12141_v1 = vcombine.low %v387_v51, %v395_v52  ;;  %v12147_v2 = vcombine.low %v390_v53, %v398_v54  ;;  %v3219_v51 = vld [vmem:[#allocation7 + $0x20] sm:$0xff] }
 0x159   :  { %2792 = vmatpush1.bf16.msra.mxu1 %v12013_v59  ;;  %3038 = vmatpush1.bf16.msra.mxu0 %v12019_v61  ;;  %v12148_v59 = vcombine.high %v390_v53, %v398_v54  ;;  %v403_v61 = vld [vmem:[#allocation3 + $0x918] sm:$0xff] }
 0x15a   :  { %2793 = vmatprep.subr.bf16.mxu1 %v12030_v62  ;;  %3039 = vmatprep.subr.bf16.mxu0 %v12036_v63  ;;  %v411_v62 = vld [vmem:[#allocation3 + $0x958] sm:$0xff]  ;;  %v406_v63 = vld [vmem:[#allocation3 + $0x930] sm:$0xff] }
 0x15b   :  { %v12158_v3 = vcombine.high %v403_v61, %v411_v62  ;;  %v12157_v10 = vcombine.low %v403_v61, %v411_v62  ;;  %v12163_v11 = vcombine.low %v406_v63, %v414_v0  ;;  %v3227_v61 = vld [vmem:[#allocation7 + $0x60] sm:$0xff] }
 0x15d   :  { %2794 = vmatpush1.bf16.msra.mxu1 %v12029_v5  ;;  %3040 = vmatpush1.bf16.msra.mxu0 %v12035_v6  ;;  %v12164_v5 = vcombine.high %v406_v63, %v414_v0  ;;  %v419_v6 = vld [vmem:[#allocation3 + $0x998] sm:$0xff] }
 0x15e   :  { %2795 = vmatprep.subr.bf16.mxu1 %v12046_v7  ;;  %3041 = vmatprep.subr.bf16.mxu0 %v12052_v8  ;;  %v427_v7 = vld [vmem:[#allocation3 + $0x9d8] sm:$0xff]  ;;  %v422_v8 = vld [vmem:[#allocation3 + $0x9b0] sm:$0xff] }
 0x15f   :  { %v12174_v12 = vcombine.high %v419_v6, %v427_v7  ;;  %v12173_v18 = vcombine.low %v419_v6, %v427_v7  ;;  %v12179_v19 = vcombine.low %v422_v8, %v430_v9  ;;  %v3235_v6 = vld [vmem:[#allocation7 + $0xa0] sm:$0xff] }
 0x161   :  { %2796 = vmatpush1.bf16.msra.mxu1 %v12045_v13  ;;  %3042 = vmatpush1.bf16.msra.mxu0 %v12051_v14  ;;  %v12180_v13 = vcombine.high %v422_v8, %v430_v9  ;;  %v435_v14 = vld [vmem:[#allocation3 + $0xa18] sm:$0xff] }
 0x162   :  { %2797 = vmatprep.subr.bf16.mxu1 %v12062_v15  ;;  %3043 = vmatprep.subr.bf16.mxu0 %v12068_v16  ;;  %v443_v15 = vld [vmem:[#allocation3 + $0xa58] sm:$0xff]  ;;  %v438_v16 = vld [vmem:[#allocation3 + $0xa30] sm:$0xff] }
 0x163   :  { %v12190_v20 = vcombine.high %v435_v14, %v443_v15  ;;  %v12189_v27 = vcombine.low %v435_v14, %v443_v15  ;;  %v12195_v28 = vcombine.low %v438_v16, %v446_v17  ;;  %v3243_v14 = vld [vmem:[#allocation7 + $0xe0] sm:$0xff] }
 0x165   :  { %2798 = vmatpush1.bf16.msra.mxu1 %v12061_v21  ;;  %3044 = vmatpush1.bf16.msra.mxu0 %v12067_v23  ;;  %v12196_v21 = vcombine.high %v438_v16, %v446_v17  ;;  %v451_v23 = vld [vmem:[#allocation3 + $0xa98] sm:$0xff] }
 0x166   :  { %2799 = vmatprep.subr.bf16.mxu1 %v12078_v24  ;;  %3045 = vmatprep.subr.bf16.mxu0 %v12084_v25  ;;  %v459_v24 = vld [vmem:[#allocation3 + $0xad8] sm:$0xff]  ;;  %v454_v25 = vld [vmem:[#allocation3 + $0xab0] sm:$0xff] }
 0x167   :  { %v12206_v30 = vcombine.high %v451_v23, %v459_v24  ;;  %v12205_v34 = vcombine.low %v451_v23, %v459_v24  ;;  %v12211_v35 = vcombine.low %v454_v25, %v462_v26  ;;  %v3251_v23 = vld [vmem:[#allocation7 + $0x120] sm:$0xff] }
 0x169   :  { %2800 = vmatpush1.bf16.msra.mxu1 %v12077_v31  ;;  %3046 = vmatpush1.bf16.msra.mxu0 %v12083_v32  ;;  %v12212_v31 = vcombine.high %v454_v25, %v462_v26  ;;  %v467_v32 = vld [vmem:[#allocation3 + $0xb18] sm:$0xff] }
 0x16a   :  { %2801 = vmatprep.subr.bf16.mxu1 %v12094_v57  ;;  %3047 = vmatprep.subr.bf16.mxu0 %v12100_v60  ;;  %v475_v57 = vld [vmem:[#allocation3 + $0xb58] sm:$0xff]  ;;  %v470_v60 = vld [vmem:[#allocation3 + $0xb30] sm:$0xff] }
 0x16b   :  { %v12222_v36 = vcombine.high %v467_v32, %v475_v57  ;;  %v12221_v43 = vcombine.low %v467_v32, %v475_v57  ;;  %v12227_v44 = vcombine.low %v470_v60, %v478_v33  ;;  %v3259_v32 = vld [vmem:[#allocation7 + $0x160] sm:$0xff] }
 0x16d   :  { %2802 = vmatpush1.bf16.msra.mxu1 %v12093_v37  ;;  %3048 = vmatpush1.bf16.msra.mxu0 %v12099_v38  ;;  %v12228_v37 = vcombine.high %v470_v60, %v478_v33  ;;  %v483_v38 = vld [vmem:[#allocation3 + $0xb98] sm:$0xff]  ;;  %v14173_v60 = vsub.s32 1, %v14124_v47 }
 0x16e   :  { %2803 = vmatprep.subr.bf16.mxu1 %v12110_v40  ;;  %3049 = vmatprep.subr.bf16.mxu0 %v12116_v41  ;;  %v491_v40 = vld [vmem:[#allocation3 + $0xbd8] sm:$0xff]  ;;  %v486_v41 = vld [vmem:[#allocation3 + $0xbb0] sm:$0xff] }
 0x16f   :  { %v12238_v45 = vcombine.high %v483_v38, %v491_v40  ;;  %v12237_v52 = vcombine.low %v483_v38, %v491_v40  ;;  %v12243_v53 = vcombine.low %v486_v41, %v494_v42  ;;  %v221_v38 = vld [vmem:[#allocation3 + $0x368] sm:$0xff]  ;;  %v3263_v40 = vld [vmem:[#allocation7 + $0x180] sm:$0xff] }
 0x171   :  { %2804 = vmatpush1.bf16.msra.mxu1 %v12109_v46  ;;  %3050 = vmatpush1.bf16.msra.mxu0 %v12115_v48  ;;  %v12244_v46 = vcombine.high %v486_v41, %v494_v42  ;;  %v117_v48 = vld [vmem:[#allocation3 + $0x28] sm:$0xff]  ;;  %v3267_v41 = vld [vmem:[#allocation7 + $0x1a0] sm:$0xff] }
 0x172   :  { %2814 = vmatprep.subr.bf16.mxu1 %v12126_v49  ;;  %3060 = vmatprep.subr.bf16.mxu0 %v12132_v50  ;;  %v125_v49 = vld [vmem:[#allocation3 + $0x68] sm:$0xff]  ;;  %v3215_v50 = vld [vmem:[#allocation7] sm:$0xff] }
 0x173   :  { %v11874_v54 = vcombine.high %v117_v48, %v125_v49  ;;  %v11873_v62 = vcombine.low %v117_v48, %v125_v49  ;;  %v12247_v63 = vcombine.low %v3215_v50, %v3219_v51  ;;  %v12296_v48 = vcombine.high %v3263_v40, %v3267_v41  ;;  %v229_v49 = vld [vmem:[#allocation3 + $0x3a8] sm:$0xff] }
 0x174   :  { %2806 = vmatmul.mubr.bf16.vlgmr.msra.gmra.mrb[8].mxu1 %v14143_v22  ;;  %3052 = vmatmul.mubr.bf16.vlgmr.msra.gmra.mrb[8].mxu0 %v14143_v22 }
 0x175   :  { %2815 = vmatpush1.bf16.msra.mxu1 %v12125_v55  ;;  %3061 = vmatpush1.bf16.msra.mxu0 %v12131_v56  ;;  %v12248_v55 = vcombine.high %v3215_v50, %v3219_v51  ;;  %v133_v56 = vld [vmem:[#allocation3 + $0xa8] sm:$0xff] }
 0x176   :  { %2816 = vmatprep.subr.bf16.mxu1 %v12142_v58  ;;  %3062 = vmatprep.subr.bf16.mxu0 %v12148_v59  ;;  %v141_v58 = vld [vmem:[#allocation3 + $0xe8] sm:$0xff]  ;;  %v3223_v59 = vld [vmem:[#allocation7 + $0x40] sm:$0xff] }
 0x177   :  { %2846 = vmatprep.mubr.bf16.mxu1 %v13998_v39  ;;  %3092 = vmatprep.mubr.bf16.mxu0 %v13998_v39  ;;  %v11890_v0 = vcombine.high %v133_v56, %v141_v58  ;;  %v11889_v7 = vcombine.low %v133_v56, %v141_v58  ;;  %v12255_v8 = vcombine.low %v3223_v59, %v3227_v61  ;;  %v237_v50 = vld [vmem:[#allocation3 + $0x3e8] sm:$0xff] }
 0x179   :  { %2817 = vmatpush1.bf16.msra.mxu1 %v12141_v1  ;;  %3063 = vmatpush1.bf16.msra.mxu0 %v12147_v2  ;;  %v12256_v1 = vcombine.high %v3223_v59, %v3227_v61  ;;  %v149_v2 = vld [vmem:[#allocation3 + $0x128] sm:$0xff] }
 0x17a   :  { %2818 = vmatprep.subr.bf16.mxu1 %v12158_v3  ;;  %3064 = vmatprep.subr.bf16.mxu0 %v12164_v5  ;;  %v157_v3 = vld [vmem:[#allocation3 + $0x168] sm:$0xff]  ;;  %v3231_v5 = vld [vmem:[#allocation7 + $0x80] sm:$0xff] }
 0x17b   :  { %v11906_v9 = vcombine.high %v149_v2, %v157_v3  ;;  %v11905_v15 = vcombine.low %v149_v2, %v157_v3  ;;  %v12263_v16 = vcombine.low %v3231_v5, %v3235_v6  ;;  %v245_v3 = vld [vmem:[#allocation3 + $0x428] sm:$0xff] }
 0x17d   :  { %2819 = vmatpush1.bf16.msra.mxu1 %v12157_v10  ;;  %3065 = vmatpush1.bf16.msra.mxu0 %v12163_v11  ;;  %v12264_v10 = vcombine.high %v3231_v5, %v3235_v6  ;;  %v165_v11 = vld [vmem:[#allocation3 + $0x1a8] sm:$0xff] }
 0x17e   :  { %2820 = vmatprep.subr.bf16.mxu1 %v12174_v12  ;;  %3066 = vmatprep.subr.bf16.mxu0 %v12180_v13  ;;  %v173_v12 = vld [vmem:[#allocation3 + $0x1e8] sm:$0xff]  ;;  %v3239_v13 = vld [vmem:[#allocation7 + $0xc0] sm:$0xff] }
 0x17f   :  { %v11922_v17 = vcombine.high %v165_v11, %v173_v12  ;;  %v11921_v24 = vcombine.low %v165_v11, %v173_v12  ;;  %v12271_v25 = vcombine.low %v3239_v13, %v3243_v14  ;;  %v253_v5 = vld [vmem:[#allocation3 + $0x468] sm:$0xff] }
 0x180   :  { %v12002_v12 = vcombine.high %v245_v3, %v253_v5 }
 0x181   :  { %2821 = vmatpush1.bf16.msra.mxu1 %v12173_v18  ;;  %3067 = vmatpush1.bf16.msra.mxu0 %v12179_v19  ;;  %v12272_v18 = vcombine.high %v3239_v13, %v3243_v14  ;;  %v181_v19 = vld [vmem:[#allocation3 + $0x228] sm:$0xff] }
 0x182   :  { %2822 = vmatprep.subr.bf16.mxu1 %v12190_v20  ;;  %3068 = vmatprep.subr.bf16.mxu0 %v12196_v21  ;;  %v189_v20 = vld [vmem:[#allocation3 + $0x268] sm:$0xff]  ;;  %v3247_v21 = vld [vmem:[#allocation7 + $0x100] sm:$0xff] }
 0x183   :  { %v11938_v26 = vcombine.high %v181_v19, %v189_v20  ;;  %v11937_v57 = vcombine.low %v181_v19, %v189_v20  ;;  %v12279_v33 = vcombine.low %v3247_v21, %v3251_v23  ;;  %v261_v14 = vld [vmem:[#allocation3 + $0x4a8] sm:$0xff] }
 0x185   :  { %2823 = vmatpush1.bf16.msra.mxu1 %v12189_v27  ;;  %3069 = vmatpush1.bf16.msra.mxu0 %v12195_v28  ;;  %v12280_v27 = vcombine.high %v3247_v21, %v3251_v23  ;;  %v197_v28 = vld [vmem:[#allocation3 + $0x2a8] sm:$0xff] }
 0x186   :  { %2824 = vmatprep.subr.bf16.mxu1 %v12206_v30  ;;  %3070 = vmatprep.subr.bf16.mxu0 %v12212_v31  ;;  %v205_v30 = vld [vmem:[#allocation3 + $0x2e8] sm:$0xff]  ;;  %v3255_v31 = vld [vmem:[#allocation7 + $0x140] sm:$0xff] }
 0x187   :  { %v277_v23 = vld [vmem:[#allocation3 + $0x528] sm:$0xff] }
 0x189   :  { %2825 = vmatpush1.bf16.msra.mxu1 %v12205_v34  ;;  %3071 = vmatpush1.bf16.msra.mxu0 %v12211_v35  ;;  %v14175_v34 = vld [vmem:[#allocation5] sm:$0xff]  ;;  %v11954_v35 = vcombine.high %v197_v28, %v205_v30 }
 0x18a   :  { %2826 = vmatprep.subr.bf16.mxu1 %v12222_v36  ;;  %3072 = vmatprep.subr.bf16.mxu0 %v12228_v37  ;;  %v12288_v36 = vcombine.high %v3255_v31, %v3259_v32  ;;  %v213_v37 = vld [vmem:[#allocation3 + $0x328] sm:$0xff]  ;;  %v507_v42 = vrot.slane %v14175_v34, %v14173_v60 }
 0x18b   :  { %v11969_v58 = vcombine.low %v213_v37, %v221_v38 }
 0x18d   :  { %2827 = vmatpush1.bf16.msra.mxu1 %v12221_v43  ;;  %3073 = vmatpush1.bf16.msra.mxu0 %v12227_v44  ;;  %v11953_v43 = vcombine.low %v197_v28, %v205_v30  ;;  %v12287_v44 = vcombine.low %v3255_v31, %v3259_v32  ;;  %v293_v32 = vld [vmem:[#allocation3 + $0x5a8] sm:$0xff] }
 0x18e   :  { %2828 = vmatprep.subr.bf16.mxu1 %v12238_v45  ;;  %3074 = vmatprep.subr.bf16.mxu0 %v12244_v46  ;;  %v11970_v45 = vcombine.high %v213_v37, %v221_v38 }
 0x191   :  { %2829 = vmatpush1.bf16.msra.mxu1 %v12237_v52  ;;  %3075 = vmatpush1.bf16.msra.mxu0 %v12243_v53  ;;  %v3271_v52 = vld [vmem:[#allocation7 + $0x1c0] sm:$0xff] }
 0x192   :  { %2937 = vmatprep.subr.bf16.mxu1 %v11874_v54  ;;  %9401 = vmatprep.subr.bf16.mxu0 %v12248_v55  ;;  %v3275_v53 = vld [vmem:[#allocation7 + $0x1e0] sm:$0xff] }
 0x193   :  { %v12304_v2 = vcombine.high %v3271_v52, %v3275_v53  ;;  %v12303_v11 = vcombine.low %v3271_v52, %v3275_v53  ;;  %v333_v52 = vld [vmem:[#allocation3 + $0x6e8] sm:$0xff]  ;;  %v3319_v53 = vld [vmem:[#allocation7 + $0x340] sm:$0xff] }
 0x194   :  { %2847 = vmatmul.mubr.bf16.vlgmr.msra.gmra.mrb[8].mxu1 %v14151_v29  ;;  %3093 = vmatmul.mubr.bf16.vlgmr.msra.gmra.mrb[8].mxu0 %v14151_v29 }
 0x195   :  { %2938 = vmatpush1.bf16.msra.mxu1 %v11873_v62  ;;  %9402 = vmatpush1.bf16.msra.mxu0 %v12247_v63  ;;  %v12295_v62 = vcombine.low %v3263_v40, %v3267_v41  ;;  %v11986_v63 = vcombine.high %v229_v49, %v237_v50  ;;  %v309_v41 = vld [vmem:[#allocation3 + $0x628] sm:$0xff] }
 0x196   :  { %2939 = vmatprep.subr.bf16.mxu1 %v11890_v0  ;;  %9403 = vmatprep.subr.bf16.mxu0 %v12256_v1 }
 0x197   :  { %2969 = vmatprep.mubr.bf16.mxu1 %v14137_v4 }
 0x199   :  { %2940 = vmatpush1.bf16.msra.mxu1 %v11889_v7  ;;  %9404 = vmatpush1.bf16.msra.mxu0 %v12255_v8  ;;  %v3279_v7 = vld [vmem:[#allocation7 + $0x200] sm:$0xff] }
 0x19a   :  { %2941 = vmatprep.subr.bf16.mxu1 %v11906_v9  ;;  %9405 = vmatprep.subr.bf16.mxu0 %v12264_v10  ;;  %v3283_v8 = vld [vmem:[#allocation7 + $0x220] sm:$0xff]  ;;  %v11985_v10 = vcombine.low %v229_v49, %v237_v50 }
 0x19b   :  { %v12312_v13 = vcombine.high %v3279_v7, %v3283_v8  ;;  %v12311_v19 = vcombine.low %v3279_v7, %v3283_v8 }
 0x19d   :  { %2942 = vmatpush1.bf16.msra.mxu1 %v11905_v15  ;;  %9406 = vmatpush1.bf16.msra.mxu0 %v12263_v16  ;;  %v269_v15 = vld [vmem:[#allocation3 + $0x4e8] sm:$0xff]  ;;  %v3287_v16 = vld [vmem:[#allocation7 + $0x240] sm:$0xff] }
 0x19e   :  { %2943 = vmatprep.subr.bf16.mxu1 %v11922_v17  ;;  %9407 = vmatprep.subr.bf16.mxu0 %v12272_v18  ;;  %v3291_v17 = vld [vmem:[#allocation7 + $0x260] sm:$0xff]  ;;  %v12001_v18 = vcombine.low %v245_v3, %v253_v5  ;;  %v12018_v20 = vcombine.high %v261_v14, %v269_v15 }
 0x19f   :  { %v12320_v21 = vcombine.high %v3287_v16, %v3291_v17  ;;  %v12319_v28 = vcombine.low %v3287_v16, %v3291_v17  ;;  %v3331_v3 = vld [vmem:[#allocation7 + $0x3a0] sm:$0xff] }
 0x1a1   :  { %2944 = vmatpush1.bf16.msra.mxu1 %v11921_v24  ;;  %9408 = vmatpush1.bf16.msra.mxu0 %v12271_v25  ;;  %v285_v24 = vld [vmem:[#allocation3 + $0x568] sm:$0xff]  ;;  %v3295_v25 = vld [vmem:[#allocation7 + $0x280] sm:$0xff] }
 0x1a2   :  { %2945 = vmatprep.subr.bf16.mxu1 %v11938_v26  ;;  %9409 = vmatprep.subr.bf16.mxu0 %v12280_v27  ;;  %v3299_v26 = vld [vmem:[#allocation7 + $0x2a0] sm:$0xff]  ;;  %v12017_v27 = vcombine.low %v261_v14, %v269_v15  ;;  %v12034_v30 = vcombine.high %v277_v23, %v285_v24 }
 0x1a3   :  { %v12328_v31 = vcombine.high %v3295_v25, %v3299_v26  ;;  %v12327_v37 = vcombine.low %v3295_v25, %v3299_v26  ;;  %v3339_v14 = vld [vmem:[#allocation7 + $0x3e0] sm:$0xff] }
 0x1a5   :  { %2946 = vmatpush1.bf16.msra.mxu1 %v11937_v57  ;;  %9410 = vmatpush1.bf16.msra.mxu0 %v12279_v33  ;;  %v301_v57 = vld [vmem:[#allocation3 + $0x5e8] sm:$0xff]  ;;  %v3303_v33 = vld [vmem:[#allocation7 + $0x2c0] sm:$0xff] }
 0x1a6   :  { %2947 = vmatprep.subr.bf16.mxu1 %v11954_v35  ;;  %9411 = vmatprep.subr.bf16.mxu0 %v12288_v36  ;;  %v3307_v35 = vld [vmem:[#allocation7 + $0x2e0] sm:$0xff]  ;;  %v12033_v36 = vcombine.low %v277_v23, %v285_v24  ;;  %v12050_v38 = vcombine.high %v293_v32, %v301_v57 }
 0x1a7   :  { %v14179_v46 = vpop.f32.mrb[0].mxu1  ;;  %v14181_v54 = vpop.f32.mrb[0].mxu0  ;;  %v12336_v40 = vcombine.high %v3303_v33, %v3307_v35  ;;  %v3343_v23 = vld [vmem:[#allocation7 + $0x400] sm:$0xff] }
 0x1a8   :  { %v2604_v51 = vpop.f32.mrb[1].mxu1  ;;  %v14183_v59 = vpop.f32.mrb[1].mxu0  ;;  %v3347_v24 = vld [vmem:[#allocation7 + $0x420] sm:$0xff] }
 0x1a9   :  { %v13439_v55 = vadd.f32 %v2604_v51, %v507_v42  ;;  %v2606_v56 = vpop.f32.mrb[2].mxu1  ;;  %2948 = vmatpush1.bf16.msra.mxu1 %v11953_v43  ;;  %9412 = vmatpush1.bf16.msra.mxu0 %v12287_v44  ;;  %v2770_v0 = vpop.f32.mrb[2].mxu0  ;;  %v317_v42 = vld [vmem:[#allocation3 + $0x668] sm:$0xff]  ;;  %v3311_v43 = vld [vmem:[#allocation7 + $0x300] sm:$0xff] }
 0x1aa   :  { %v2607_v61 = vpop.f32.mrb[3].mxu1  ;;  %2949 = vmatprep.subr.bf16.mxu1 %v11970_v45  ;;  %9413 = vmatprep.subr.bf16.mxu0 %v12296_v48  ;;  %v2771_v6 = vpop.f32.mrb[3].mxu0  ;;  %v3315_v44 = vld [vmem:[#allocation7 + $0x320] sm:$0xff]  ;;  %v12049_v45 = vcombine.low %v293_v32, %v301_v57  ;;  %v12335_v48 = vcombine.low %v3303_v33, %v3307_v35  ;;  %v12066_v49 = vcombine.high %v309_v41, %v317_v42  ;;  %v325_v51 = vld [vmem:[#allocation3 + $0x6a8] sm:$0xff] }
 0x1ab   :  { %v3184_v1 = vmax.f32 %v13439_v55, 0.0  ;;  %v12344_v50 = vcombine.high %v3311_v43, %v3315_v44  ;;  %v3323_v55 = vld [vmem:[#allocation7 + $0x360] sm:$0xff]  ;;  %v12065_v56 = vcombine.low %v309_v41, %v317_v42  ;;  %v12082_v61 = vcombine.high %v325_v51, %v333_v52  ;;  %v341_v0 = vld [vmem:[#allocation3 + $0x728] sm:$0xff] }
 0x1ac   :  { %v12081_v5 = vcombine.low %v325_v51, %v333_v52  ;;  %v12351_v6 = vcombine.low %v3319_v53, %v3323_v55  ;;  %v397_v32 = vld [vmem:[#allocation3 + $0x8e8] sm:$0xff]  ;;  %v3351_v57 = vld [vmem:[#allocation7 + $0x440] sm:$0xff]  ;;  %v12375_v35 = vcombine.low %v3343_v23, %v3347_v24 }
 0x1ad   :  { %v14185_v9 = vpack.c.bf16 %v3184_v1, %v3184_v1  ;;  %2950 = vmatpush1.bf16.msra.mxu1 %v11969_v58  ;;  %9414 = vmatpush1.bf16.msra.mxu0 %v12295_v62  ;;  %v12343_v58 = vcombine.low %v3311_v43, %v3315_v44  ;;  %v14189_v62 = vsub.s32 0, %v14124_v47  ;;  %v349_v1 = vld [vmem:[#allocation3 + $0x768] sm:$0xff]  ;;  %v3355_v33 = vld [vmem:[#allocation7 + $0x460] sm:$0xff] }
 0x1ae   :  { %2951 = vmatprep.subr.bf16.mxu1 %v11986_v63  ;;  %9415 = vmatprep.subr.bf16.mxu0 %v12304_v2  ;;  %v12352_v63 = vcombine.high %v3319_v53, %v3323_v55  ;;  %v3327_v2 = vld [vmem:[#allocation7 + $0x380] sm:$0xff]  ;;  %v12098_v7 = vcombine.high %v341_v0, %v349_v1  ;;  %v12097_v15 = vcombine.low %v341_v0, %v349_v1  ;;  %v413_v41 = vld [vmem:[#allocation3 + $0x968] sm:$0xff] }
 0x1af   :  { %9433 = vmatprep.mubr.bf16.mxu0 %v14185_v9  ;;  %v503_v8 = vrot.slane %v14175_v34, %v14189_v62  ;;  %v12359_v16 = vcombine.low %v3327_v2, %v3331_v3  ;;  %v3359_v42 = vld [vmem:[#allocation7 + $0x480] sm:$0xff]  ;;  %v429_v51 = vld [vmem:[#allocation3 + $0x9e8] sm:$0xff] }
 0x1b0   :  { %v3363_v43 = vld [vmem:[#allocation7 + $0x4a0] sm:$0xff]  ;;  %v445_v0 = vld [vmem:[#allocation3 + $0xa68] sm:$0xff] }
 0x1b1   :  { %2952 = vmatpush1.bf16.msra.mxu1 %v11985_v10  ;;  %9416 = vmatpush1.bf16.msra.mxu0 %v12303_v11  ;;  %v12360_v10 = vcombine.high %v3327_v2, %v3331_v3  ;;  %v357_v11 = vld [vmem:[#allocation3 + $0x7a8] sm:$0xff]  ;;  %v3367_v52 = vld [vmem:[#allocation7 + $0x4c0] sm:$0xff] }
 0x1b2   :  { %2953 = vmatprep.subr.bf16.mxu1 %v12002_v12  ;;  %9417 = vmatprep.subr.bf16.mxu0 %v12312_v13  ;;  %v365_v12 = vld [vmem:[#allocation3 + $0x7e8] sm:$0xff]  ;;  %v3335_v13 = vld [vmem:[#allocation7 + $0x3c0] sm:$0xff] }
 0x1b3   :  { %v12114_v17 = vcombine.high %v357_v11, %v365_v12  ;;  %v12113_v25 = vcombine.low %v357_v11, %v365_v12  ;;  %v12367_v26 = vcombine.low %v3335_v13, %v3339_v14  ;;  %v3371_v53 = vld [vmem:[#allocation7 + $0x4e0] sm:$0xff] }
 0x1b4   :  { %v3375_v1 = vld [vmem:[#allocation7 + $0x500] sm:$0xff] }
 0x1b5   :  { %2954 = vmatpush1.bf16.msra.mxu1 %v12001_v18  ;;  %9418 = vmatpush1.bf16.msra.mxu0 %v12311_v19  ;;  %v13438_v18 = vadd.f32 %v14179_v46, %v503_v8  ;;  %v12368_v19 = vcombine.high %v3335_v13, %v3339_v14  ;;  %v3379_v2 = vld [vmem:[#allocation7 + $0x520] sm:$0xff]  ;;  %v453_v8 = vld [vmem:[#allocation3 + $0xaa8] sm:$0xff] }
 0x1b6   :  { %2955 = vmatprep.subr.bf16.mxu1 %v12018_v20  ;;  %9419 = vmatprep.subr.bf16.mxu0 %v12320_v21  ;;  %v373_v20 = vld [vmem:[#allocation3 + $0x828] sm:$0xff]  ;;  %v3383_v11 = vld [vmem:[#allocation7 + $0x540] sm:$0xff]  ;;  %v12407_v14 = vcombine.low %v3375_v1, %v3379_v2 }
 0x1b7   :  { %v381_v21 = vld [vmem:[#allocation3 + $0x868] sm:$0xff]  ;;  %v3387_v12 = vld [vmem:[#allocation7 + $0x560] sm:$0xff] }
 0x1b8   :  { %v12129_v46 = vcombine.low %v373_v20, %v381_v21 }
 0x1b9   :  { %2956 = vmatpush1.bf16.msra.mxu1 %v12017_v27  ;;  %9420 = vmatpush1.bf16.msra.mxu0 %v12319_v28  ;;  %v12130_v27 = vcombine.high %v373_v20, %v381_v21  ;;  %v3183_v28 = vmax.f32 %v13438_v18, 0.0  ;;  %v477_v18 = vld [vmem:[#allocation3 + $0xb68] sm:$0xff]  ;;  %v3395_v20 = vld [vmem:[#allocation7 + $0x5a0] sm:$0xff] }
 0x1ba   :  { %2957 = vmatprep.subr.bf16.mxu1 %v12034_v30  ;;  %9421 = vmatprep.subr.bf16.mxu0 %v12328_v31  ;;  %v12376_v30 = vcombine.high %v3343_v23, %v3347_v24  ;;  %v389_v31 = vld [vmem:[#allocation3 + $0x8a8] sm:$0xff]  ;;  %v12415_v23 = vcombine.low %v3383_v11, %v3387_v12 }
 0x1bb   :  { %v12145_v44 = vcombine.low %v389_v31, %v397_v32 }
 0x1bd   :  { %2958 = vmatpush1.bf16.msra.mxu1 %v12033_v36  ;;  %9422 = vmatpush1.bf16.msra.mxu0 %v12327_v37  ;;  %v12146_v36 = vcombine.high %v389_v31, %v397_v32  ;;  %v14194_v37 = vpack.c.bf16 %v3183_v28, %v3183_v28  ;;  %v3399_v28 = vld [vmem:[#allocation7 + $0x5c0] sm:$0xff] }
 0x1be   :  { %2959 = vmatprep.subr.bf16.mxu1 %v12050_v38  ;;  %9423 = vmatprep.subr.bf16.mxu0 %v12336_v40  ;;  %v12384_v38 = vcombine.high %v3351_v57, %v3355_v33  ;;  %v405_v40 = vld [vmem:[#allocation3 + $0x928] sm:$0xff] }
 0x1bf   :  { %v12161_v55 = vcombine.low %v405_v40, %v413_v41 }
 0x1c1   :  { %2960 = vmatpush1.bf16.msra.mxu1 %v12049_v45  ;;  %9424 = vmatpush1.bf16.msra.mxu0 %v12335_v48  ;;  %v12383_v45 = vcombine.low %v3351_v57, %v3355_v33  ;;  %v12162_v48 = vcombine.high %v405_v40, %v413_v41 }
 0x1c2   :  { %2961 = vmatprep.subr.bf16.mxu1 %v12066_v49  ;;  %9425 = vmatprep.subr.bf16.mxu0 %v12344_v50  ;;  %v12392_v49 = vcombine.high %v3359_v42, %v3363_v43  ;;  %v421_v50 = vld [vmem:[#allocation3 + $0x9a8] sm:$0xff] }
 0x1c3   :  { %v12177_v3 = vcombine.low %v421_v50, %v429_v51 }
 0x1c5   :  { %2962 = vmatpush1.bf16.msra.mxu1 %v12065_v56  ;;  %9426 = vmatpush1.bf16.msra.mxu0 %v12343_v58  ;;  %v12391_v56 = vcombine.low %v3359_v42, %v3363_v43  ;;  %v12178_v58 = vcombine.high %v421_v50, %v429_v51 }
 0x1c6   :  { %2963 = vmatprep.subr.bf16.mxu1 %v12082_v61  ;;  %9427 = vmatprep.subr.bf16.mxu0 %v12352_v63  ;;  %v12400_v61 = vcombine.high %v3367_v52, %v3371_v53  ;;  %v437_v63 = vld [vmem:[#allocation3 + $0xa28] sm:$0xff] }
 0x1c7   :  { %v12193_v13 = vcombine.low %v437_v63, %v445_v0 }
 0x1c9   :  { %2964 = vmatpush1.bf16.msra.mxu1 %v12081_v5  ;;  %9428 = vmatpush1.bf16.msra.mxu0 %v12351_v6  ;;  %v12399_v5 = vcombine.low %v3367_v52, %v3371_v53  ;;  %v12194_v6 = vcombine.high %v437_v63, %v445_v0 }
 0x1ca   :  { %2965 = vmatprep.subr.bf16.mxu1 %v12098_v7  ;;  %9429 = vmatprep.subr.bf16.mxu0 %v12360_v10  ;;  %v12408_v7 = vcombine.high %v3375_v1, %v3379_v2  ;;  %v461_v10 = vld [vmem:[#allocation3 + $0xae8] sm:$0xff] }
 0x1cb   :  { %v12209_v21 = vcombine.low %v453_v8, %v461_v10 }
 0x1cd   :  { %2966 = vmatpush1.bf16.msra.mxu1 %v12097_v15  ;;  %9430 = vmatpush1.bf16.msra.mxu0 %v12359_v16  ;;  %v12210_v15 = vcombine.high %v453_v8, %v461_v10  ;;  %v12416_v16 = vcombine.high %v3383_v11, %v3387_v12 }
 0x1ce   :  { %2967 = vmatprep.subr.bf16.mxu1 %v12114_v17  ;;  %9431 = vmatprep.subr.bf16.mxu0 %v12368_v19  ;;  %v469_v17 = vld [vmem:[#allocation3 + $0xb28] sm:$0xff]  ;;  %v3391_v19 = vld [vmem:[#allocation7 + $0x580] sm:$0xff] }
 0x1cf   :  { %v12226_v24 = vcombine.high %v469_v17, %v477_v18  ;;  %v12225_v31 = vcombine.low %v469_v17, %v477_v18  ;;  %v12423_v32 = vcombine.low %v3391_v19, %v3395_v20 }
 0x1d1   :  { %2968 = vmatpush1.bf16.msra.mxu1 %v12113_v25  ;;  %9432 = vmatpush1.bf16.msra.mxu0 %v12367_v26  ;;  %v12424_v25 = vcombine.high %v3391_v19, %v3395_v20  ;;  %v485_v26 = vld [vmem:[#allocation3 + $0xba8] sm:$0xff]  ;;  %v199_v20 = vld [vmem:[#allocation3 + $0x2b8] sm:$0xff] }
 0x1d2   :  { %2978 = vmatprep.subr.bf16.mxu1 %v12130_v27  ;;  %9442 = vmatprep.subr.bf16.mxu0 %v12376_v30  ;;  %v493_v27 = vld [vmem:[#allocation3 + $0xbe8] sm:$0xff]  ;;  %v3403_v30 = vld [vmem:[#allocation7 + $0x5e0] sm:$0xff] }
 0x1d3   :  { %v12242_v57 = vcombine.high %v485_v26, %v493_v27  ;;  %v12432_v33 = vcombine.high %v3399_v28, %v3403_v30  ;;  %v12241_v40 = vcombine.low %v485_v26, %v493_v27  ;;  %v12431_v41 = vcombine.low %v3399_v28, %v3403_v30 }
 0x1d4   :  { %2970 = vmatmul.mubr.bf16.vlgmr.msra.gmra.mrb[12].mxu1 %v14143_v22  ;;  %9434 = vmatmul.mubr.bf16.vlgmr.msra.gmra.mrb[12].mxu0 %v14194_v37  ;;  %v14202_v26 = vsub.s32 3, %v14124_v47  ;;  %v14205_v30 = vsub.s32 2, %v14124_v47 }
 0x1d5   :  { %2979 = vmatpush1.bf16.msra.mxu1 %v12129_v46  ;;  %9443 = vmatpush1.bf16.msra.mxu0 %v12375_v35  ;;  %v119_v46 = vld [vmem:[#allocation3 + $0x38] sm:$0xff] }
 0x1d6   :  { %2980 = vmatprep.subr.bf16.mxu1 %v12146_v36  ;;  %9444 = vmatprep.subr.bf16.mxu0 %v12384_v38  ;;  %v127_v35 = vld [vmem:[#allocation3 + $0x78] sm:$0xff]  ;;  %v3407_v36 = vld [vmem:[#allocation7 + $0x600] sm:$0xff] }
 0x1d7   :  { %3010 = vmatprep.mubr.bf16.mxu1 %v13998_v39  ;;  %v3411_v38 = vld [vmem:[#allocation7 + $0x620] sm:$0xff]  ;;  %v11878_v42 = vcombine.high %v119_v46, %v127_v35  ;;  %v11877_v50 = vcombine.low %v119_v46, %v127_v35 }
 0x1d8   :  { %v12440_v43 = vcombine.high %v3407_v36, %v3411_v38  ;;  %v12439_v51 = vcombine.low %v3407_v36, %v3411_v38  ;;  %v3455_v46 = vld [vmem:[#allocation7 + $0x780] sm:$0xff]  ;;  %v515_v36 = vrot.slane %v14175_v34, %v14202_v26 }
 0x1d9   :  { %2981 = vmatpush1.bf16.msra.mxu1 %v12145_v44  ;;  %9445 = vmatpush1.bf16.msra.mxu0 %v12383_v45  ;;  %v135_v44 = vld [vmem:[#allocation3 + $0xb8] sm:$0xff]  ;;  %v3459_v35 = vld [vmem:[#allocation7 + $0x7a0] sm:$0xff] }
 0x1da   :  { %2982 = vmatprep.subr.bf16.mxu1 %v12162_v48  ;;  %9446 = vmatprep.subr.bf16.mxu0 %v12392_v49  ;;  %v143_v45 = vld [vmem:[#allocation3 + $0xf8] sm:$0xff]  ;;  %v3415_v48 = vld [vmem:[#allocation7 + $0x640] sm:$0xff] }
 0x1db   :  { %v3419_v49 = vld [vmem:[#allocation7 + $0x660] sm:$0xff]  ;;  %v11894_v52 = vcombine.high %v135_v44, %v143_v45  ;;  %v11893_v63 = vcombine.low %v135_v44, %v143_v45  ;;  %v12488_v44 = vcombine.high %v3455_v46, %v3459_v35  ;;  %v231_v45 = vld [vmem:[#allocation3 + $0x3b8] sm:$0xff] }
 0x1dc   :  { %v12448_v53 = vcombine.high %v3415_v48, %v3419_v49  ;;  %v12447_v0 = vcombine.low %v3415_v48, %v3419_v49  ;;  %v239_v48 = vld [vmem:[#allocation3 + $0x3f8] sm:$0xff] }
 0x1dd   :  { %2983 = vmatpush1.bf16.msra.mxu1 %v12161_v55  ;;  %9447 = vmatpush1.bf16.msra.mxu0 %v12391_v56  ;;  %v151_v55 = vld [vmem:[#allocation3 + $0x138] sm:$0xff] }
 0x1de   :  { %2984 = vmatprep.subr.bf16.mxu1 %v12178_v58  ;;  %9448 = vmatprep.subr.bf16.mxu0 %v12400_v61  ;;  %v159_v56 = vld [vmem:[#allocation3 + $0x178] sm:$0xff]  ;;  %v3423_v58 = vld [vmem:[#allocation7 + $0x680] sm:$0xff] }
 0x1df   :  { %v3427_v61 = vld [vmem:[#allocation7 + $0x6a0] sm:$0xff]  ;;  %v11910_v1 = vcombine.high %v151_v55, %v159_v56  ;;  %v11909_v8 = vcombine.low %v151_v55, %v159_v56 }
 0x1e0   :  { %v12456_v2 = vcombine.high %v3423_v58, %v3427_v61  ;;  %v12455_v10 = vcombine.low %v3423_v58, %v3427_v61 }
 0x1e1   :  { %2985 = vmatpush1.bf16.msra.mxu1 %v12177_v3  ;;  %9449 = vmatpush1.bf16.msra.mxu0 %v12399_v5  ;;  %v167_v3 = vld [vmem:[#allocation3 + $0x1b8] sm:$0xff] }
 0x1e2   :  { %2986 = vmatprep.subr.bf16.mxu1 %v12194_v6  ;;  %9450 = vmatprep.subr.bf16.mxu0 %v12408_v7  ;;  %v175_v5 = vld [vmem:[#allocation3 + $0x1f8] sm:$0xff]  ;;  %v3431_v6 = vld [vmem:[#allocation7 + $0x6c0] sm:$0xff] }
 0x1e3   :  { %v3435_v7 = vld [vmem:[#allocation7 + $0x6e0] sm:$0xff]  ;;  %v11926_v11 = vcombine.high %v167_v3, %v175_v5 }
 0x1e4   :  { %v12464_v12 = vcombine.high %v3431_v6, %v3435_v7  ;;  %v12463_v17 = vcombine.low %v3431_v6, %v3435_v7  ;;  %v247_v6 = vld [vmem:[#allocation3 + $0x438] sm:$0xff] }
 0x1e5   :  { %2987 = vmatpush1.bf16.msra.mxu1 %v12193_v13  ;;  %9451 = vmatpush1.bf16.msra.mxu0 %v12407_v14  ;;  %v183_v13 = vld [vmem:[#allocation3 + $0x238] sm:$0xff]  ;;  %v3439_v14 = vld [vmem:[#allocation7 + $0x700] sm:$0xff] }
 0x1e6   :  { %2988 = vmatprep.subr.bf16.mxu1 %v12210_v15  ;;  %9452 = vmatprep.subr.bf16.mxu0 %v12416_v16  ;;  %v3443_v15 = vld [vmem:[#allocation7 + $0x720] sm:$0xff]  ;;  %v11925_v16 = vcombine.low %v167_v3, %v175_v5  ;;  %v255_v7 = vld [vmem:[#allocation3 + $0x478] sm:$0xff] }
 0x1e7   :  { %v12472_v19 = vcombine.high %v3439_v14, %v3443_v15  ;;  %v12471_v27 = vcombine.low %v3439_v14, %v3443_v15  ;;  %v12006_v15 = vcombine.high %v247_v6, %v255_v7 }
 0x1e9   :  { %2989 = vmatpush1.bf16.msra.mxu1 %v12209_v21  ;;  %9453 = vmatpush1.bf16.msra.mxu0 %v12415_v23  ;;  %v207_v21 = vld [vmem:[#allocation3 + $0x2f8] sm:$0xff]  ;;  %v3447_v23 = vld [vmem:[#allocation7 + $0x740] sm:$0xff] }
 0x1ea   :  { %2990 = vmatprep.subr.bf16.mxu1 %v12226_v24  ;;  %9454 = vmatprep.subr.bf16.mxu0 %v12424_v25  ;;  %v3451_v24 = vld [vmem:[#allocation7 + $0x760] sm:$0xff]  ;;  %v11958_v28 = vcombine.high %v199_v20, %v207_v21  ;;  %v11957_v38 = vcombine.low %v199_v20, %v207_v21  ;;  %v271_v20 = vld [vmem:[#allocation3 + $0x4f8] sm:$0xff] }
 0x1eb   :  { %v3479_v21 = vld [vmem:[#allocation7 + $0x840] sm:$0xff] }
 0x1ed   :  { %2991 = vmatpush1.bf16.msra.mxu1 %v12225_v31  ;;  %9455 = vmatpush1.bf16.msra.mxu0 %v12423_v32  ;;  %v12480_v31 = vcombine.high %v3447_v23, %v3451_v24  ;;  %v215_v32 = vld [vmem:[#allocation3 + $0x338] sm:$0xff] }
 0x1ee   :  { %2992 = vmatprep.subr.bf16.mxu1 %v12242_v57  ;;  %9456 = vmatprep.subr.bf16.mxu0 %v12432_v33  ;;  %v223_v57 = vld [vmem:[#allocation3 + $0x378] sm:$0xff]  ;;  %v14208_v33 = vsub.s32 5, %v14124_v47 }
 0x1ef   :  { %v11973_v58 = vcombine.low %v215_v32, %v223_v57 }
 0x1f0   :  { %v523_v49 = vrot.slane %v14175_v34, %v14208_v33 }
 0x1f1   :  { %2993 = vmatpush1.bf16.msra.mxu1 %v12241_v40  ;;  %9457 = vmatpush1.bf16.msra.mxu0 %v12431_v41  ;;  %v12479_v40 = vcombine.low %v3447_v23, %v3451_v24  ;;  %v11974_v41 = vcombine.high %v215_v32, %v223_v57  ;;  %v12005_v23 = vcombine.low %v247_v6, %v255_v7  ;;  %v287_v32 = vld [vmem:[#allocation3 + $0x578] sm:$0xff]  ;;  %v3515_v6 = vld [vmem:[#allocation7 + $0x960] sm:$0xff] }
 0x1f2   :  { %3101 = vmatprep.subr.bf16.mxu1 %v11878_v42  ;;  %9458 = vmatprep.subr.bf16.mxu0 %v12440_v43  ;;  %v511_v42 = vrot.slane %v14175_v34, %v14205_v30 }
 0x1f4   :  { %3011 = vmatmul.mubr.bf16.vlgmr.msra.gmra.mrb[12].mxu1 %v14151_v29 }
 0x1f5   :  { %3102 = vmatpush1.bf16.msra.mxu1 %v11877_v50  ;;  %3133 = vmatprep.mubr.bf16.mxu1 %v14137_v4  ;;  %v191_v4 = vld [vmem:[#allocation3 + $0x278] sm:$0xff] }
 0x1f6   :  { %9459 = vmatpush1.bf16.msra.mxu0 %v12439_v51  ;;  %3103 = vmatprep.subr.bf16.mxu1 %v11894_v52  ;;  %v11942_v18 = vcombine.high %v183_v13, %v191_v4  ;;  %v11941_v25 = vcombine.low %v183_v13, %v191_v4  ;;  %v3463_v51 = vld [vmem:[#allocation7 + $0x7c0] sm:$0xff]  ;;  %v11989_v4 = vcombine.low %v231_v45, %v239_v48 }
 0x1f7   :  { %9460 = vmatprep.subr.bf16.mxu0 %v12448_v53  ;;  %v3467_v52 = vld [vmem:[#allocation7 + $0x7e0] sm:$0xff] }
 0x1f8   :  { %v12496_v34 = vcombine.high %v3463_v51, %v3467_v52  ;;  %v12495_v14 = vcombine.low %v3463_v51, %v3467_v52  ;;  %v311_v52 = vld [vmem:[#allocation3 + $0x638] sm:$0xff] }
 0x1f9   :  { %3104 = vmatpush1.bf16.msra.mxu1 %v11893_v63 }
 0x1fa   :  { %9461 = vmatpush1.bf16.msra.mxu0 %v12447_v0  ;;  %3105 = vmatprep.subr.bf16.mxu1 %v11910_v1  ;;  %v12487_v0 = vcombine.low %v3455_v46, %v3459_v35  ;;  %v11990_v1 = vcombine.high %v231_v45, %v239_v48  ;;  %v3487_v46 = vld [vmem:[#allocation7 + $0x880] sm:$0xff] }
 0x1fb   :  { %9462 = vmatprep.subr.bf16.mxu0 %v12456_v2  ;;  %v3491_v35 = vld [vmem:[#allocation7 + $0x8a0] sm:$0xff] }
 0x1fc   :  { %v3499_v45 = vld [vmem:[#allocation7 + $0x8e0] sm:$0xff] }
 0x1fd   :  { %3106 = vmatpush1.bf16.msra.mxu1 %v11909_v8 }
 0x1fe   :  { %9463 = vmatpush1.bf16.msra.mxu0 %v12455_v10  ;;  %3107 = vmatprep.subr.bf16.mxu1 %v11926_v11  ;;  %v13443_v10 = vadd.f32 %v14183_v59, %v523_v49  ;;  %v3471_v11 = vld [vmem:[#allocation7 + $0x800] sm:$0xff]  ;;  %v12519_v49 = vcombine.low %v3487_v46, %v3491_v35 }
 0x1ff   :  { %9464 = vmatprep.subr.bf16.mxu0 %v12464_v12  ;;  %v3475_v12 = vld [vmem:[#allocation7 + $0x820] sm:$0xff] }
 0x200   :  { %v3483_v59 = vld [vmem:[#allocation7 + $0x860] sm:$0xff]  ;;  %v12503_v24 = vcombine.low %v3471_v11, %v3475_v12 }
 0x201   :  { %3108 = vmatpush1.bf16.msra.mxu1 %v11925_v16 }
 0x202   :  { %9465 = vmatpush1.bf16.msra.mxu0 %v12463_v17  ;;  %3109 = vmatprep.subr.bf16.mxu1 %v11942_v18  ;;  %v12504_v17 = vcombine.high %v3471_v11, %v3475_v12  ;;  %v263_v18 = vld [vmem:[#allocation3 + $0x4b8] sm:$0xff] }
 0x203   :  { %9466 = vmatprep.subr.bf16.mxu0 %v12472_v19  ;;  %v3188_v19 = vmax.f32 %v13443_v10, 0.0  ;;  %v343_v12 = vld [vmem:[#allocation3 + $0x738] sm:$0xff] }
 0x205   :  { %3110 = vmatpush1.bf16.msra.mxu1 %v11941_v25  ;;  %v14226_v57 = vpack.c.bf16 %v3188_v19, %v3188_v19 }
 0x206   :  { %9467 = vmatpush1.bf16.msra.mxu0 %v12471_v27  ;;  %3111 = vmatprep.subr.bf16.mxu1 %v11958_v28  ;;  %v12022_v27 = vcombine.high %v263_v18, %v271_v20  ;;  %v12512_v28 = vcombine.high %v3479_v21, %v3483_v59 }
 0x207   :  { %v2684_v43 = vpop.f32.mrb[4].mxu1  ;;  %9468 = vmatprep.subr.bf16.mxu0 %v12480_v31  ;;  %v14216_v53 = vpop.f32.mrb[4].mxu0  ;;  %v279_v31 = vld [vmem:[#allocation3 + $0x538] sm:$0xff] }
 0x208   :  { %v2686_v50 = vpop.f32.mrb[5].mxu1  ;;  %v14218_v61 = vpop.f32.mrb[5].mxu0  ;;  %v13440_v3 = vadd.f32 %v2684_v43, %v511_v42  ;;  %v295_v42 = vld [vmem:[#allocation3 + $0x5b8] sm:$0xff]  ;;  %v12037_v48 = vcombine.low %v279_v31, %v287_v32 }
 0x209   :  { %v13441_v55 = vadd.f32 %v2686_v50, %v515_v36  ;;  %v2688_v56 = vpop.f32.mrb[6].mxu1  ;;  %3112 = vmatpush1.bf16.msra.mxu1 %v11957_v38  ;;  %v2934_v2 = vpop.f32.mrb[6].mxu0  ;;  %v12021_v36 = vcombine.low %v263_v18, %v271_v20  ;;  %v12511_v38 = vcombine.low %v3479_v21, %v3483_v59  ;;  %v303_v43 = vld [vmem:[#allocation3 + $0x5f8] sm:$0xff]  ;;  %v3527_v59 = vld [vmem:[#allocation7 + $0x9c0] sm:$0xff] }
 0x20a   :  { %9469 = vmatpush1.bf16.msra.mxu0 %v12479_v40  ;;  %v2689_v63 = vpop.f32.mrb[7].mxu1  ;;  %3113 = vmatprep.subr.bf16.mxu1 %v11974_v41  ;;  %v2935_v8 = vpop.f32.mrb[7].mxu0  ;;  %v3185_v16 = vmax.f32 %v13440_v3, 0.0  ;;  %v12038_v40 = vcombine.high %v279_v31, %v287_v32  ;;  %v12520_v41 = vcombine.high %v3487_v46, %v3491_v35  ;;  %v12054_v50 = vcombine.high %v295_v42, %v303_v43  ;;  %v3503_v56 = vld [vmem:[#allocation7 + $0x900] sm:$0xff]  ;;  %v327_v3 = vld [vmem:[#allocation3 + $0x6b8] sm:$0xff] }
 0x20b   :  { %v3186_v5 = vmax.f32 %v13441_v55, 0.0  ;;  %9470 = vmatprep.subr.bf16.mxu0 %v12488_v44  ;;  %v3495_v44 = vld [vmem:[#allocation7 + $0x8c0] sm:$0xff]  ;;  %v319_v55 = vld [vmem:[#allocation3 + $0x678] sm:$0xff]  ;;  %v12053_v63 = vcombine.low %v295_v42, %v303_v43 }
 0x20c   :  { %v14224_v25 = vpack.c.bf16 %v3185_v16, %v3185_v16  ;;  %v12528_v51 = vcombine.high %v3495_v44, %v3499_v45  ;;  %v12069_v7 = vcombine.low %v311_v52, %v319_v55  ;;  %v359_v20 = vld [vmem:[#allocation3 + $0x7b8] sm:$0xff]  ;;  %v3535_v35 = vld [vmem:[#allocation7 + $0xa00] sm:$0xff] }
 0x20d   :  { %v14221_v13 = vpack.c.bf16 %v3186_v5, %v3186_v5  ;;  %3114 = vmatpush1.bf16.msra.mxu1 %v11973_v58  ;;  %v3507_v58 = vld [vmem:[#allocation7 + $0x920] sm:$0xff]  ;;  %v335_v5 = vld [vmem:[#allocation3 + $0x6f8] sm:$0xff] }
 0x20e   :  { %9471 = vmatpush1.bf16.msra.mxu0 %v12487_v0  ;;  %3115 = vmatprep.subr.bf16.mxu1 %v11990_v1  ;;  %v12527_v0 = vcombine.low %v3495_v44, %v3499_v45  ;;  %v12070_v1 = vcombine.high %v311_v52, %v319_v55  ;;  %v12536_v2 = vcombine.high %v3503_v56, %v3507_v58  ;;  %v367_v21 = vld [vmem:[#allocation3 + $0x7f8] sm:$0xff]  ;;  %v3543_v45 = vld [vmem:[#allocation7 + $0xa40] sm:$0xff] }
 0x20f   :  { %9474 = vmatprep.mubr.bf16.mxu0 %v14221_v13  ;;  %9472 = vmatprep.subr.bf16.mxu0 %v12496_v34  ;;  %v3511_v34 = vld [vmem:[#allocation7 + $0x940] sm:$0xff]  ;;  %v12535_v8 = vcombine.low %v3503_v56, %v3507_v58  ;;  %v12086_v10 = vcombine.high %v327_v3, %v335_v5  ;;  %v12085_v16 = vcombine.low %v327_v3, %v335_v5  ;;  %v375_v32 = vld [vmem:[#allocation3 + $0x838] sm:$0xff] }
 0x210   :  { %v12544_v11 = vcombine.high %v3511_v34, %v3515_v6  ;;  %v383_v46 = vld [vmem:[#allocation3 + $0x878] sm:$0xff]  ;;  %v3551_v58 = vld [vmem:[#allocation7 + $0xa80] sm:$0xff] }
 0x211   :  { %3116 = vmatpush1.bf16.msra.mxu1 %v11989_v4  ;;  %v351_v4 = vld [vmem:[#allocation3 + $0x778] sm:$0xff] }
 0x212   :  { %9473 = vmatpush1.bf16.msra.mxu0 %v12495_v14  ;;  %3117 = vmatprep.subr.bf16.mxu1 %v12006_v15  ;;  %v3519_v14 = vld [vmem:[#allocation7 + $0x980] sm:$0xff]  ;;  %v12102_v18 = vcombine.high %v343_v12, %v351_v4  ;;  %v391_v43 = vld [vmem:[#allocation3 + $0x8b8] sm:$0xff] }
 0x213   :  { %9483 = vmatprep.subr.bf16.mxu0 %v12504_v17  ;;  %v3523_v15 = vld [vmem:[#allocation7 + $0x9a0] sm:$0xff]  ;;  %v12543_v17 = vcombine.low %v3511_v34, %v3515_v6  ;;  %v399_v44 = vld [vmem:[#allocation3 + $0x8f8] sm:$0xff] }
 0x214   :  { %v12552_v19 = vcombine.high %v3519_v14, %v3523_v15  ;;  %v407_v55 = vld [vmem:[#allocation3 + $0x938] sm:$0xff]  ;;  %v3559_v6 = vld [vmem:[#allocation7 + $0xac0] sm:$0xff] }
 0x215   :  { %9475 = vmatmul.mubr.bf16.vlgmr.msra.gmra.mrb[12].mxu0 %v14224_v25  ;;  %3118 = vmatpush1.bf16.msra.mxu1 %v12005_v23  ;;  %v3531_v23 = vld [vmem:[#allocation7 + $0x9e0] sm:$0xff]  ;;  %v415_v56 = vld [vmem:[#allocation3 + $0x978] sm:$0xff] }
 0x216   :  { %9484 = vmatpush1.bf16.msra.mxu0 %v12503_v24  ;;  %9515 = vmatprep.mubr.bf16.mxu0 %v14226_v57  ;;  %v12101_v24 = vcombine.low %v343_v12, %v351_v4  ;;  %v12560_v31 = vcombine.high %v3527_v59, %v3531_v23  ;;  %v423_v5 = vld [vmem:[#allocation3 + $0x9b8] sm:$0xff]  ;;  %v3567_v4 = vld [vmem:[#allocation7 + $0xb00] sm:$0xff] }
 0x217   :  { %3119 = vmatprep.subr.bf16.mxu1 %v12022_v27  ;;  %9485 = vmatprep.subr.bf16.mxu0 %v12512_v28  ;;  %v12551_v27 = vcombine.low %v3519_v14, %v3523_v15  ;;  %v12118_v28 = vcombine.high %v359_v20, %v367_v21  ;;  %v431_v34 = vld [vmem:[#allocation3 + $0x9f8] sm:$0xff]  ;;  %v3571_v14 = vld [vmem:[#allocation7 + $0xb20] sm:$0xff] }
 0x218   :  { %v439_v12 = vld [vmem:[#allocation3 + $0xa38] sm:$0xff]  ;;  %v12181_v15 = vcombine.low %v423_v5, %v431_v34 }
 0x219   :  { %3120 = vmatpush1.bf16.msra.mxu1 %v12021_v36  ;;  %v3539_v36 = vld [vmem:[#allocation7 + $0xa20] sm:$0xff] }
 0x21a   :  { %9486 = vmatpush1.bf16.msra.mxu0 %v12511_v38  ;;  %3121 = vmatprep.subr.bf16.mxu1 %v12038_v40  ;;  %v12117_v38 = vcombine.low %v359_v20, %v367_v21  ;;  %v12559_v40 = vcombine.low %v3527_v59, %v3531_v23  ;;  %v12568_v42 = vcombine.high %v3535_v35, %v3539_v36  ;;  %v463_v20 = vld [vmem:[#allocation3 + $0xaf8] sm:$0xff]  ;;  %v3575_v21 = vld [vmem:[#allocation7 + $0xb40] sm:$0xff] }
 0x21b   :  { %9487 = vmatprep.subr.bf16.mxu0 %v12520_v41  ;;  %v12134_v41 = vcombine.high %v375_v32, %v383_v46  ;;  %v3579_v59 = vld [vmem:[#allocation7 + $0xb60] sm:$0xff] }
 0x21d   :  { %3122 = vmatpush1.bf16.msra.mxu1 %v12037_v48  ;;  %v3547_v48 = vld [vmem:[#allocation7 + $0xa60] sm:$0xff] }
 0x21e   :  { %9488 = vmatpush1.bf16.msra.mxu0 %v12519_v49  ;;  %3123 = vmatprep.subr.bf16.mxu1 %v12054_v50  ;;  %v12133_v49 = vcombine.low %v375_v32, %v383_v46  ;;  %v12567_v50 = vcombine.low %v3535_v35, %v3539_v36  ;;  %v12576_v52 = vcombine.high %v3543_v45, %v3547_v48  ;;  %v471_v32 = vld [vmem:[#allocation3 + $0xb38] sm:$0xff]  ;;  %v3583_v35 = vld [vmem:[#allocation7 + $0xb80] sm:$0xff] }
 0x21f   :  { %9489 = vmatprep.subr.bf16.mxu0 %v12528_v51  ;;  %v12150_v51 = vcombine.high %v391_v43, %v399_v44  ;;  %v479_v46 = vld [vmem:[#allocation3 + $0xb78] sm:$0xff]  ;;  %v3587_v36 = vld [vmem:[#allocation7 + $0xba0] sm:$0xff] }
 0x221   :  { %3124 = vmatpush1.bf16.msra.mxu1 %v12053_v63  ;;  %v3555_v63 = vld [vmem:[#allocation7 + $0xaa0] sm:$0xff] }
 0x222   :  { %9490 = vmatpush1.bf16.msra.mxu0 %v12527_v0  ;;  %3125 = vmatprep.subr.bf16.mxu1 %v12070_v1  ;;  %v12149_v0 = vcombine.low %v391_v43, %v399_v44  ;;  %v12575_v1 = vcombine.low %v3543_v45, %v3547_v48  ;;  %v12584_v3 = vcombine.high %v3551_v58, %v3555_v63  ;;  %v487_v45 = vld [vmem:[#allocation3 + $0xbb8] sm:$0xff] }
 0x223   :  { %9491 = vmatprep.subr.bf16.mxu0 %v12536_v2  ;;  %v12166_v2 = vcombine.high %v407_v55, %v415_v56  ;;  %v12616_v44 = vcombine.high %v3583_v35, %v3587_v36  ;;  %v495_v48 = vld [vmem:[#allocation3 + $0xbf8] sm:$0xff] }
 0x225   :  { %3126 = vmatpush1.bf16.msra.mxu1 %v12069_v7  ;;  %v3563_v7 = vld [vmem:[#allocation7 + $0xae0] sm:$0xff] }
 0x226   :  { %9492 = vmatpush1.bf16.msra.mxu0 %v12535_v8  ;;  %3127 = vmatprep.subr.bf16.mxu1 %v12086_v10  ;;  %v12165_v8 = vcombine.low %v407_v55, %v415_v56  ;;  %v12182_v10 = vcombine.high %v423_v5, %v431_v34  ;;  %v12246_v55 = vcombine.high %v487_v45, %v495_v48 }
 0x227   :  { %9493 = vmatprep.subr.bf16.mxu0 %v12544_v11  ;;  %v12592_v11 = vcombine.high %v3559_v6, %v3563_v7 }
 0x229   :  { %3128 = vmatpush1.bf16.msra.mxu1 %v12085_v16  ;;  %v12591_v16 = vcombine.low %v3559_v6, %v3563_v7 }
 0x22a   :  { %9494 = vmatpush1.bf16.msra.mxu0 %v12543_v17  ;;  %3129 = vmatprep.subr.bf16.mxu1 %v12102_v18  ;;  %v12600_v18 = vcombine.high %v3567_v4, %v3571_v14 }
 0x22b   :  { %9495 = vmatprep.subr.bf16.mxu0 %v12552_v19  ;;  %v455_v19 = vld [vmem:[#allocation3 + $0xab8] sm:$0xff] }
 0x22d   :  { %3130 = vmatpush1.bf16.msra.mxu1 %v12101_v24  ;;  %v12599_v24 = vcombine.low %v3567_v4, %v3571_v14 }
 0x22e   :  { %9496 = vmatpush1.bf16.msra.mxu0 %v12551_v27  ;;  %3131 = vmatprep.subr.bf16.mxu1 %v12118_v28  ;;  %v12214_v27 = vcombine.high %v455_v19, %v463_v20  ;;  %v14233_v28 = vsub.s32 4, %v14124_v47 }
 0x22f   :  { %9497 = vmatprep.subr.bf16.mxu0 %v12560_v31  ;;  %v12608_v31 = vcombine.high %v3575_v21, %v3579_v59 }
 0x231   :  { %3132 = vmatpush1.bf16.msra.mxu1 %v12117_v38  ;;  %v12213_v38 = vcombine.low %v455_v19, %v463_v20 }
 0x232   :  { %9498 = vmatpush1.bf16.msra.mxu0 %v12559_v40  ;;  %3142 = vmatprep.subr.bf16.mxu1 %v12134_v41  ;;  %v12607_v40 = vcombine.low %v3575_v21, %v3579_v59  ;;  %v12230_v41 = vcombine.high %v471_v32, %v479_v46 }
 0x233   :  { %9499 = vmatprep.subr.bf16.mxu0 %v12568_v42  ;;  %v14235_v42 = vld [vmem:[#allocation5] sm:$0xff] }
 0x234   :  { %3134 = vmatmul.mubr.bf16.vlgmr.msra.gmra.mrb[16].mxu1 %v14143_v22  ;;  %v12583_v22 = vcombine.low %v3551_v58, %v3555_v63  ;;  %v519_v43 = vrot.slane %v14235_v42, %v14233_v28  ;;  %v3216_v63 = vld [vmem:[#allocation7 + $0x8] sm:$0xff] }
 0x235   :  { %3143 = vmatpush1.bf16.msra.mxu1 %v12133_v49  ;;  %3174 = vmatprep.mubr.bf16.mxu1 %v13998_v39  ;;  %v447_v39 = vld [vmem:[#allocation3 + $0xa78] sm:$0xff]  ;;  %v3591_v49 = vld [vmem:[#allocation7 + $0xbc0] sm:$0xff] }
 0x236   :  { %9500 = vmatpush1.bf16.msra.mxu0 %v12567_v50  ;;  %3144 = vmatprep.subr.bf16.mxu1 %v12150_v51  ;;  %v12198_v17 = vcombine.high %v439_v12, %v447_v39  ;;  %v12197_v23 = vcombine.low %v439_v12, %v447_v39  ;;  %v3595_v50 = vld [vmem:[#allocation7 + $0xbe0] sm:$0xff]  ;;  %v12229_v51 = vcombine.low %v471_v32, %v479_v46 }
 0x237   :  { %9501 = vmatprep.subr.bf16.mxu0 %v12576_v52  ;;  %v12615_v52 = vcombine.low %v3583_v35, %v3587_v36  ;;  %v13442_v56 = vadd.f32 %v14181_v54, %v519_v43  ;;  %v12624_v58 = vcombine.high %v3591_v49, %v3595_v50  ;;  %v12623_v5 = vcombine.low %v3591_v49, %v3595_v50  ;;  %v3248_v36 = vld [vmem:[#allocation7 + $0x108] sm:$0xff] }
 0x238   :  { %v3256_v49 = vld [vmem:[#allocation7 + $0x148] sm:$0xff] }
 0x239   :  { %3145 = vmatpush1.bf16.msra.mxu1 %v12149_v0  ;;  %v3220_v0 = vld [vmem:[#allocation7 + $0x28] sm:$0xff]  ;;  %v3187_v6 = vmax.f32 %v13442_v56, 0.0  ;;  %v14246_v56 = vsub.s32 7, %v14124_v47 }
 0x23a   :  { %9502 = vmatpush1.bf16.msra.mxu0 %v12575_v1  ;;  %3146 = vmatprep.subr.bf16.mxu1 %v12166_v2  ;;  %v3599_v1 = vld [vmem:[#allocation7 + $0xc00] sm:$0xff]  ;;  %v12250_v34 = vcombine.high %v3216_v63, %v3220_v0  ;;  %v12249_v54 = vcombine.low %v3216_v63, %v3220_v0  ;;  %v3260_v50 = vld [vmem:[#allocation7 + $0x168] sm:$0xff] }
 0x23b   :  { %9503 = vmatprep.subr.bf16.mxu0 %v12584_v3  ;;  %v3603_v2 = vld [vmem:[#allocation7 + $0xc20] sm:$0xff]  ;;  %v12245_v3 = vcombine.low %v487_v45, %v495_v48  ;;  %v14240_v39 = vpack.c.bf16 %v3187_v6, %v3187_v6  ;;  %v12290_v63 = vcombine.high %v3256_v49, %v3260_v50  ;;  %v12289_v6 = vcombine.low %v3256_v49, %v3260_v50 }
 0x23c   :  { %v12632_v7 = vcombine.high %v3599_v1, %v3603_v2  ;;  %v12631_v12 = vcombine.low %v3599_v1, %v3603_v2  ;;  %v3264_v1 = vld [vmem:[#allocation7 + $0x188] sm:$0xff]  ;;  %v3675_v49 = vld [vmem:[#allocation7 + $0xe60] sm:$0xff] }
 0x23d   :  { %3147 = vmatpush1.bf16.msra.mxu1 %v12165_v8  ;;  %v3607_v8 = vld [vmem:[#allocation7 + $0xc40] sm:$0xff]  ;;  %v3268_v2 = vld [vmem:[#allocation7 + $0x1a8] sm:$0xff] }
 0x23e   :  { %9504 = vmatpush1.bf16.msra.mxu0 %v12583_v22  ;;  %3148 = vmatprep.subr.bf16.mxu1 %v12182_v10  ;;  %v3611_v22 = vld [vmem:[#allocation7 + $0xc60] sm:$0xff]  ;;  %v3224_v10 = vld [vmem:[#allocation7 + $0x48] sm:$0xff] }
 0x23f   :  { %9505 = vmatprep.subr.bf16.mxu0 %v12592_v11  ;;  %v3228_v11 = vld [vmem:[#allocation7 + $0x68] sm:$0xff]  ;;  %v12640_v4 = vcombine.high %v3607_v8, %v3611_v22  ;;  %v12639_v20 = vcombine.low %v3607_v8, %v3611_v22  ;;  %v12298_v8 = vcombine.high %v3264_v1, %v3268_v2 }
 0x240   :  { %v12258_v14 = vcombine.high %v3224_v10, %v3228_v11  ;;  %v12257_v19 = vcombine.low %v3224_v10, %v3228_v11  ;;  %v3272_v11 = vld [vmem:[#allocation7 + $0x1c8] sm:$0xff] }
 0x241   :  { %3149 = vmatpush1.bf16.msra.mxu1 %v12181_v15  ;;  %v3232_v15 = vld [vmem:[#allocation7 + $0x88] sm:$0xff] }
 0x242   :  { %9506 = vmatpush1.bf16.msra.mxu0 %v12591_v16  ;;  %3150 = vmatprep.subr.bf16.mxu1 %v12198_v17  ;;  %v3236_v16 = vld [vmem:[#allocation7 + $0xa8] sm:$0xff]  ;;  %v3615_v17 = vld [vmem:[#allocation7 + $0xc80] sm:$0xff] }
 0x243   :  { %9507 = vmatprep.subr.bf16.mxu0 %v12600_v18  ;;  %v3619_v18 = vld [vmem:[#allocation7 + $0xca0] sm:$0xff]  ;;  %v12266_v21 = vcombine.high %v3232_v15, %v3236_v16 }
 0x244   :  { %v12648_v59 = vcombine.high %v3615_v17, %v3619_v18  ;;  %v12647_v32 = vcombine.low %v3615_v17, %v3619_v18  ;;  %v12297_v18 = vcombine.low %v3264_v1, %v3268_v2  ;;  %v3683_v1 = vld [vmem:[#allocation7 + $0xea0] sm:$0xff] }
 0x245   :  { %3151 = vmatpush1.bf16.msra.mxu1 %v12197_v23  ;;  %v3240_v23 = vld [vmem:[#allocation7 + $0xc8] sm:$0xff] }
 0x246   :  { %9508 = vmatpush1.bf16.msra.mxu0 %v12599_v24  ;;  %3152 = vmatprep.subr.bf16.mxu1 %v12214_v27  ;;  %v3244_v24 = vld [vmem:[#allocation7 + $0xe8] sm:$0xff]  ;;  %v3623_v27 = vld [vmem:[#allocation7 + $0xcc0] sm:$0xff] }
 0x247   :  { %9509 = vmatprep.subr.bf16.mxu0 %v12608_v31  ;;  %v3627_v31 = vld [vmem:[#allocation7 + $0xce0] sm:$0xff]  ;;  %v12274_v46 = vcombine.high %v3240_v23, %v3244_v24  ;;  %v12273_v43 = vcombine.low %v3240_v23, %v3244_v24 }
 0x248   :  { %v12656_v35 = vcombine.high %v3623_v27, %v3627_v31 }
 0x249   :  { %3153 = vmatpush1.bf16.msra.mxu1 %v12213_v38  ;;  %v3252_v38 = vld [vmem:[#allocation7 + $0x128] sm:$0xff] }
 0x24a   :  { %9510 = vmatpush1.bf16.msra.mxu0 %v12607_v40  ;;  %3154 = vmatprep.subr.bf16.mxu1 %v12230_v41  ;;  %v3631_v40 = vld [vmem:[#allocation7 + $0xd00] sm:$0xff]  ;;  %v12282_v45 = vcombine.high %v3248_v36, %v3252_v38 }
 0x24b   :  { %9511 = vmatprep.subr.bf16.mxu0 %v12616_v44  ;;  %v3635_v41 = vld [vmem:[#allocation7 + $0xd20] sm:$0xff]  ;;  %v12655_v44 = vcombine.low %v3623_v27, %v3627_v31  ;;  %v3280_v31 = vld [vmem:[#allocation7 + $0x208] sm:$0xff] }
 0x24c   :  { %v12664_v48 = vcombine.high %v3631_v40, %v3635_v41 }
 0x24d   :  { %3155 = vmatpush1.bf16.msra.mxu1 %v12229_v51  ;;  %v3639_v51 = vld [vmem:[#allocation7 + $0xd40] sm:$0xff] }
 0x24e   :  { %9512 = vmatpush1.bf16.msra.mxu0 %v12615_v52  ;;  %3156 = vmatprep.subr.bf16.mxu1 %v12246_v55  ;;  %v3643_v52 = vld [vmem:[#allocation7 + $0xd60] sm:$0xff]  ;;  %v12281_v55 = vcombine.low %v3248_v36, %v3252_v38 }
 0x24f   :  { %9513 = vmatprep.subr.bf16.mxu0 %v12624_v58  ;;  %v12663_v58 = vcombine.low %v3631_v40, %v3635_v41  ;;  %v12672_v0 = vcombine.high %v3639_v51, %v3643_v52 }
 0x251   :  { %3157 = vmatpush1.bf16.msra.mxu1 %v12245_v3  ;;  %v3647_v3 = vld [vmem:[#allocation7 + $0xd80] sm:$0xff] }
 0x252   :  { %9514 = vmatpush1.bf16.msra.mxu0 %v12623_v5  ;;  %9729 = vmatprep.subr.bf16.mxu1 %v12250_v34  ;;  %v3651_v5 = vld [vmem:[#allocation7 + $0xda0] sm:$0xff]  ;;  %v531_v34 = vrot.slane %v14235_v42, %v14246_v56 }
 0x253   :  { %9524 = vmatprep.subr.bf16.mxu0 %v12632_v7  ;;  %v12671_v7 = vcombine.low %v3639_v51, %v3643_v52  ;;  %v12680_v10 = vcombine.high %v3647_v3, %v3651_v5 }
 0x254   :  { %3175 = vmatmul.mubr.bf16.vlgmr.msra.gmra.mrb[16].mxu1 %v14151_v29  ;;  %v12265_v29 = vcombine.low %v3232_v15, %v3236_v16 }
 0x255   :  { %9516 = vmatmul.mubr.bf16.vlgmr.msra.gmra.mrb[12].mxu0 %v14240_v39  ;;  %9730 = vmatpush1.bf16.msra.mxu1 %v12249_v54  ;;  %v3276_v54 = vld [vmem:[#allocation7 + $0x1e8] sm:$0xff] }
 0x256   :  { %9525 = vmatpush1.bf16.msra.mxu0 %v12631_v12  ;;  %9761 = vmatprep.mubr.bf16.mxu1 %v14185_v9  ;;  %v12305_v38 = vcombine.low %v3272_v11, %v3276_v54 }
 0x257   :  { %9526 = vmatprep.subr.bf16.mxu0 %v12640_v4  ;;  %9731 = vmatprep.subr.bf16.mxu1 %v12258_v14  ;;  %v3655_v4 = vld [vmem:[#allocation7 + $0xdc0] sm:$0xff] }
 0x258   :  { %v3659_v14 = vld [vmem:[#allocation7 + $0xde0] sm:$0xff] }
 0x259   :  { %9732 = vmatpush1.bf16.msra.mxu1 %v12257_v19  ;;  %v12688_v27 = vcombine.high %v3655_v4, %v3659_v14  ;;  %v12687_v40 = vcombine.low %v3655_v4, %v3659_v14  ;;  %v3312_v14 = vld [vmem:[#allocation7 + $0x308] sm:$0xff] }
 0x25a   :  { %9527 = vmatpush1.bf16.msra.mxu0 %v12639_v20  ;;  %9733 = vmatprep.subr.bf16.mxu1 %v12266_v21  ;;  %v12679_v21 = vcombine.low %v3647_v3, %v3651_v5 }
 0x25b   :  { %9528 = vmatprep.subr.bf16.mxu0 %v12648_v59  ;;  %v12306_v59 = vcombine.high %v3272_v11, %v3276_v54 }
 0x25d   :  { %9734 = vmatpush1.bf16.msra.mxu1 %v12265_v29  ;;  %v3284_v29 = vld [vmem:[#allocation7 + $0x228] sm:$0xff] }
 0x25e   :  { %9529 = vmatpush1.bf16.msra.mxu0 %v12647_v32  ;;  %9735 = vmatprep.subr.bf16.mxu1 %v12274_v46  ;;  %v3663_v46 = vld [vmem:[#allocation7 + $0xe00] sm:$0xff]  ;;  %v12314_v41 = vcombine.high %v3280_v31, %v3284_v29  ;;  %v12313_v50 = vcombine.low %v3280_v31, %v3284_v29 }
 0x25f   :  { %9530 = vmatprep.subr.bf16.mxu0 %v12656_v35  ;;  %v3667_v35 = vld [vmem:[#allocation7 + $0xe20] sm:$0xff] }
 0x260   :  { %v12695_v51 = vcombine.low %v3663_v46, %v3667_v35  ;;  %v3703_v31 = vld [vmem:[#allocation7 + $0xf40] sm:$0xff] }
 0x261   :  { %9736 = vmatpush1.bf16.msra.mxu1 %v12273_v43  ;;  %v12696_v43 = vcombine.high %v3663_v46, %v3667_v35  ;;  %v3707_v29 = vld [vmem:[#allocation7 + $0xf60] sm:$0xff] }
 0x262   :  { %9531 = vmatpush1.bf16.msra.mxu0 %v12655_v44  ;;  %9737 = vmatprep.subr.bf16.mxu1 %v12282_v45  ;;  %v3288_v44 = vld [vmem:[#allocation7 + $0x248] sm:$0xff] }
 0x263   :  { %9532 = vmatprep.subr.bf16.mxu0 %v12664_v48  ;;  %v3292_v45 = vld [vmem:[#allocation7 + $0x268] sm:$0xff]  ;;  %v3671_v48 = vld [vmem:[#allocation7 + $0xe40] sm:$0xff] }
 0x264   :  { %v12322_v52 = vcombine.high %v3288_v44, %v3292_v45  ;;  %v12321_v2 = vcombine.low %v3288_v44, %v3292_v45  ;;  %v12703_v3 = vcombine.low %v3671_v48, %v3675_v49  ;;  %v3711_v44 = vld [vmem:[#allocation7 + $0xf80] sm:$0xff] }
 0x265   :  { %9738 = vmatpush1.bf16.msra.mxu1 %v12281_v55  ;;  %v12704_v55 = vcombine.high %v3671_v48, %v3675_v49  ;;  %v3715_v45 = vld [vmem:[#allocation7 + $0xfa0] sm:$0xff]  ;;  %v14262_v48 = vld [vmem:[#allocation5 + $0x8] sm:$0xff] }
 0x266   :  { %9533 = vmatpush1.bf16.msra.mxu0 %v12663_v58  ;;  %9739 = vmatprep.subr.bf16.mxu1 %v12290_v63  ;;  %v3296_v58 = vld [vmem:[#allocation7 + $0x288] sm:$0xff] }
 0x267   :  { %v14250_v22 = vpop.f32.mrb[8].mxu1  ;;  %9534 = vmatprep.subr.bf16.mxu0 %v12672_v0  ;;  %v14252_v15 = vpop.f32.mrb[8].mxu0  ;;  %v3300_v63 = vld [vmem:[#allocation7 + $0x2a8] sm:$0xff]  ;;  %v3679_v0 = vld [vmem:[#allocation7 + $0xe80] sm:$0xff] }
 0x268   :  { %v2850_v12 = vpop.f32.mrb[9].mxu1  ;;  %v14254_v19 = vpop.f32.mrb[9].mxu0  ;;  %v12330_v5 = vcombine.high %v3296_v58, %v3300_v63  ;;  %v12329_v11 = vcombine.low %v3296_v58, %v3300_v63  ;;  %v12711_v54 = vcombine.low %v3679_v0, %v3683_v1  ;;  %v3340_v58 = vld [vmem:[#allocation7 + $0x3e8] sm:$0xff]  ;;  %v539_v63 = vrot.slane %v14262_v48, %v14173_v60 }
 0x269   :  { %v13445_v16 = vadd.f32 %v2850_v12, %v531_v34  ;;  %v2852_v17 = vpop.f32.mrb[10].mxu1  ;;  %9740 = vmatpush1.bf16.msra.mxu1 %v12289_v6  ;;  %v3098_v23 = vpop.f32.mrb[10].mxu0  ;;  %v12712_v34 = vcombine.high %v3679_v0, %v3683_v1  ;;  %v3304_v6 = vld [vmem:[#allocation7 + $0x2c8] sm:$0xff]  ;;  %v3719_v0 = vld [vmem:[#allocation7 + $0xfc0] sm:$0xff] }
 0x26a   :  { %9535 = vmatpush1.bf16.msra.mxu0 %v12671_v7  ;;  %v2853_v20 = vpop.f32.mrb[11].mxu1  ;;  %9741 = vmatprep.subr.bf16.mxu1 %v12298_v8  ;;  %v3099_v32 = vpop.f32.mrb[11].mxu0  ;;  %v3308_v7 = vld [vmem:[#allocation7 + $0x2e8] sm:$0xff]  ;;  %v3687_v8 = vld [vmem:[#allocation7 + $0xec0] sm:$0xff] }
 0x26b   :  { %v3190_v24 = vmax.f32 %v13445_v16, 0.0  ;;  %9536 = vmatprep.subr.bf16.mxu0 %v12680_v10  ;;  %v3691_v10 = vld [vmem:[#allocation7 + $0xee0] sm:$0xff]  ;;  %v12338_v12 = vcombine.high %v3304_v6, %v3308_v7  ;;  %v3316_v16 = vld [vmem:[#allocation7 + $0x328] sm:$0xff]  ;;  %v12337_v20 = vcombine.low %v3304_v6, %v3308_v7 }
 0x26c   :  { %v12720_v4 = vcombine.high %v3687_v8, %v3691_v10  ;;  %v3695_v17 = vld [vmem:[#allocation7 + $0xf00] sm:$0xff]  ;;  %v12345_v32 = vcombine.low %v3312_v14, %v3316_v16  ;;  %v3348_v7 = vld [vmem:[#allocation7 + $0x428] sm:$0xff] }
 0x26d   :  { %v14256_v36 = vpack.c.bf16 %v3190_v24, %v3190_v24  ;;  %9742 = vmatpush1.bf16.msra.mxu1 %v12297_v18  ;;  %v3699_v18 = vld [vmem:[#allocation7 + $0xf20] sm:$0xff]  ;;  %v3320_v24 = vld [vmem:[#allocation7 + $0x348] sm:$0xff] }
 0x26e   :  { %9537 = vmatpush1.bf16.msra.mxu0 %v12679_v21  ;;  %9743 = vmatprep.subr.bf16.mxu1 %v12306_v59  ;;  %v12719_v21 = vcombine.low %v3687_v8, %v3691_v10  ;;  %v12346_v59 = vcombine.high %v3312_v14, %v3316_v16  ;;  %v12728_v23 = vcombine.high %v3695_v17, %v3699_v18  ;;  %v3723_v1 = vld [vmem:[#allocation7 + $0xfe0] sm:$0xff] }
 0x26f   :  { %9556 = vmatprep.mubr.bf16.mxu0 %v14256_v36  ;;  %9538 = vmatprep.subr.bf16.mxu0 %v12688_v27  ;;  %v3324_v27 = vld [vmem:[#allocation7 + $0x368] sm:$0xff]  ;;  %v12727_v46 = vcombine.low %v3695_v17, %v3699_v18  ;;  %v12752_v6 = vcombine.high %v3719_v0, %v3723_v1  ;;  %v13447_v8 = vadd.f32 %v14218_v61, %v539_v63  ;;  %v3727_v10 = vld [vmem:[#allocation7 + $0x1000] sm:$0xff] }
 0x270   :  { %v12354_v35 = vcombine.high %v3320_v24, %v3324_v27  ;;  %v12353_v49 = vcombine.low %v3320_v24, %v3324_v27  ;;  %v3735_v18 = vld [vmem:[#allocation7 + $0x1040] sm:$0xff]  ;;  %v3360_v27 = vld [vmem:[#allocation7 + $0x488] sm:$0xff] }
 0x271   :  { %9744 = vmatpush1.bf16.msra.mxu1 %v12305_v38  ;;  %v14260_v38 = vsub.s32 6, %v14124_v47  ;;  %v12744_v47 = vcombine.high %v3711_v44, %v3715_v45  ;;  %v3192_v17 = vmax.f32 %v13447_v8, 0.0  ;;  %v3376_v63 = vld [vmem:[#allocation7 + $0x508] sm:$0xff]  ;;  %v3767_v8 = vld [vmem:[#allocation7 + $0x1140] sm:$0xff] }
 0x272   :  { %9539 = vmatpush1.bf16.msra.mxu0 %v12687_v40  ;;  %9745 = vmatprep.subr.bf16.mxu1 %v12314_v41  ;;  %v12736_v40 = vcombine.high %v3703_v31, %v3707_v29  ;;  %v3328_v41 = vld [vmem:[#allocation7 + $0x388] sm:$0xff] }
 0x273   :  { %9540 = vmatprep.subr.bf16.mxu0 %v12696_v43  ;;  %v3332_v43 = vld [vmem:[#allocation7 + $0x3a8] sm:$0xff] }
 0x275   :  { %9746 = vmatpush1.bf16.msra.mxu1 %v12313_v50  ;;  %v12735_v50 = vcombine.low %v3703_v31, %v3707_v29  ;;  %v3364_v31 = vld [vmem:[#allocation7 + $0x4a8] sm:$0xff]  ;;  %v14272_v29 = vpack.c.bf16 %v3192_v17, %v3192_v17  ;;  %v3775_v17 = vld [vmem:[#allocation7 + $0x1180] sm:$0xff] }
 0x276   :  { %9541 = vmatpush1.bf16.msra.mxu0 %v12695_v51  ;;  %9747 = vmatprep.subr.bf16.mxu1 %v12322_v52  ;;  %v12362_v51 = vcombine.high %v3328_v41, %v3332_v43  ;;  %v527_v52 = vrot.slane %v14235_v42, %v14260_v38  ;;  %v3344_v42 = vld [vmem:[#allocation7 + $0x408] sm:$0xff] }
 0x277   :  { %9542 = vmatprep.subr.bf16.mxu0 %v12704_v55  ;;  %v3336_v55 = vld [vmem:[#allocation7 + $0x3c8] sm:$0xff] }
 0x279   :  { %9748 = vmatpush1.bf16.msra.mxu1 %v12321_v2  ;;  %v12361_v2 = vcombine.low %v3328_v41, %v3332_v43  ;;  %v12394_v43 = vcombine.high %v3360_v27, %v3364_v31 }
 0x27a   :  { %9543 = vmatpush1.bf16.msra.mxu0 %v12703_v3  ;;  %9749 = vmatprep.subr.bf16.mxu1 %v12330_v5  ;;  %v12743_v3 = vcombine.low %v3711_v44, %v3715_v45  ;;  %v12370_v5 = vcombine.high %v3336_v55, %v3340_v58  ;;  %v3368_v45 = vld [vmem:[#allocation7 + $0x4c8] sm:$0xff] }
 0x27b   :  { %9544 = vmatprep.subr.bf16.mxu0 %v12712_v34  ;;  %v13444_v34 = vadd.f32 %v14250_v22, %v527_v52  ;;  %v3739_v22 = vld [vmem:[#allocation7 + $0x1060] sm:$0xff]  ;;  %v12393_v52 = vcombine.low %v3360_v27, %v3364_v31 }
 0x27c   :  { %v12768_v24 = vcombine.high %v3735_v18, %v3739_v22  ;;  %v12767_v41 = vcombine.low %v3735_v18, %v3739_v22  ;;  %v3779_v18 = vld [vmem:[#allocation7 + $0x11a0] sm:$0xff] }
 0x27d   :  { %9750 = vmatpush1.bf16.msra.mxu1 %v12329_v11  ;;  %v3731_v11 = vld [vmem:[#allocation7 + $0x1020] sm:$0xff]  ;;  %v3189_v14 = vmax.f32 %v13444_v34, 0.0 }
 0x27e   :  { %9545 = vmatpush1.bf16.msra.mxu0 %v12711_v54  ;;  %9751 = vmatprep.subr.bf16.mxu1 %v12338_v12  ;;  %v12369_v54 = vcombine.low %v3336_v55, %v3340_v58  ;;  %v12751_v12 = vcombine.low %v3719_v0, %v3723_v1  ;;  %v12760_v16 = vcombine.high %v3727_v10, %v3731_v11  ;;  %v3380_v0 = vld [vmem:[#allocation7 + $0x528] sm:$0xff]  ;;  %v3759_v1 = vld [vmem:[#allocation7 + $0x1100] sm:$0xff] }
 0x27f   :  { %9546 = vmatprep.subr.bf16.mxu0 %v12720_v4  ;;  %v12378_v4 = vcombine.high %v3344_v42, %v3348_v7  ;;  %v12759_v61 = vcombine.low %v3727_v10, %v3731_v11  ;;  %v12410_v34 = vcombine.high %v3376_v63, %v3380_v0  ;;  %v3771_v10 = vld [vmem:[#allocation7 + $0x1160] sm:$0xff]  ;;  %v12409_v11 = vcombine.low %v3376_v63, %v3380_v0 }
 0x280   :  { %v3783_v27 = vld [vmem:[#allocation7 + $0x11c0] sm:$0xff] }
 0x281   :  { %9752 = vmatpush1.bf16.msra.mxu1 %v12337_v20  ;;  %v12377_v20 = vcombine.low %v3344_v42, %v3348_v7  ;;  %v3384_v42 = vld [vmem:[#allocation7 + $0x548] sm:$0xff]  ;;  %v3787_v31 = vld [vmem:[#allocation7 + $0x11e0] sm:$0xff] }
 0x282   :  { %9547 = vmatpush1.bf16.msra.mxu0 %v12719_v21  ;;  %9753 = vmatprep.subr.bf16.mxu1 %v12346_v59  ;;  %v3352_v21 = vld [vmem:[#allocation7 + $0x448] sm:$0xff]  ;;  %v3803_v63 = vld [vmem:[#allocation7 + $0x1260] sm:$0xff] }
 0x283   :  { %9548 = vmatprep.subr.bf16.mxu0 %v12728_v23  ;;  %v3356_v59 = vld [vmem:[#allocation7 + $0x468] sm:$0xff]  ;;  %v14270_v23 = vpack.c.bf16 %v3189_v14, %v3189_v14 }
 0x284   :  { %v3388_v7 = vld [vmem:[#allocation7 + $0x568] sm:$0xff] }
 0x285   :  { %9754 = vmatpush1.bf16.msra.mxu1 %v12345_v32  ;;  %v12386_v32 = vcombine.high %v3352_v21, %v3356_v59  ;;  %v3392_v14 = vld [vmem:[#allocation7 + $0x588] sm:$0xff]  ;;  %v12417_v22 = vcombine.low %v3384_v42, %v3388_v7 }
 0x286   :  { %9549 = vmatpush1.bf16.msra.mxu0 %v12727_v46  ;;  %9755 = vmatprep.subr.bf16.mxu1 %v12354_v35  ;;  %v3743_v46 = vld [vmem:[#allocation7 + $0x1080] sm:$0xff] }
 0x287   :  { %9550 = vmatprep.subr.bf16.mxu0 %v12736_v40  ;;  %v3747_v35 = vld [vmem:[#allocation7 + $0x10a0] sm:$0xff]  ;;  %v12385_v40 = vcombine.low %v3352_v21, %v3356_v59  ;;  %v12808_v59 = vcombine.high %v3775_v17, %v3779_v18 }
 0x288   :  { %v12776_v44 = vcombine.high %v3743_v46, %v3747_v35 }
 0x289   :  { %9756 = vmatpush1.bf16.msra.mxu1 %v12353_v49  ;;  %v3372_v49 = vld [vmem:[#allocation7 + $0x4e8] sm:$0xff] }
 0x28a   :  { %9551 = vmatpush1.bf16.msra.mxu0 %v12735_v50  ;;  %9757 = vmatprep.subr.bf16.mxu1 %v12362_v51  ;;  %v3751_v50 = vld [vmem:[#allocation7 + $0x10c0] sm:$0xff]  ;;  %v12402_v55 = vcombine.high %v3368_v45, %v3372_v49 }
 0x28b   :  { %9552 = vmatprep.subr.bf16.mxu0 %v12744_v47  ;;  %v3755_v51 = vld [vmem:[#allocation7 + $0x10e0] sm:$0xff]  ;;  %v12775_v47 = vcombine.low %v3743_v46, %v3747_v35  ;;  %v12807_v46 = vcombine.low %v3775_v17, %v3779_v18 }
 0x28c   :  { %v12784_v58 = vcombine.high %v3751_v50, %v3755_v51 }
 0x28d   :  { %9758 = vmatpush1.bf16.msra.mxu1 %v12361_v2  ;;  %v3763_v2 = vld [vmem:[#allocation7 + $0x1120] sm:$0xff] }
 0x28e   :  { %9553 = vmatpush1.bf16.msra.mxu0 %v12743_v3  ;;  %9759 = vmatprep.subr.bf16.mxu1 %v12370_v5  ;;  %v12401_v3 = vcombine.low %v3368_v45, %v3372_v49  ;;  %v12783_v5 = vcombine.low %v3751_v50, %v3755_v51  ;;  %v3795_v45 = vld [vmem:[#allocation7 + $0x1220] sm:$0xff]  ;;  %v12815_v50 = vcombine.low %v3783_v27, %v3787_v31 }
 0x28f   :  { %9554 = vmatprep.subr.bf16.mxu0 %v12752_v6  ;;  %v12792_v6 = vcombine.high %v3759_v1, %v3763_v2 }
 0x291   :  { %9760 = vmatpush1.bf16.msra.mxu1 %v12369_v54  ;;  %v12791_v54 = vcombine.low %v3759_v1, %v3763_v2 }
 0x292   :  { %9555 = vmatpush1.bf16.msra.mxu0 %v12751_v12  ;;  %9770 = vmatprep.subr.bf16.mxu1 %v12378_v4  ;;  %v12418_v12 = vcombine.high %v3384_v42, %v3388_v7  ;;  %v12800_v4 = vcombine.high %v3767_v8, %v3771_v10  ;;  %v3811_v42 = vld [vmem:[#allocation7 + $0x12a0] sm:$0xff] }
 0x293   :  { %9565 = vmatprep.subr.bf16.mxu0 %v12760_v16  ;;  %v3396_v16 = vld [vmem:[#allocation7 + $0x5a8] sm:$0xff] }
 0x294   :  { %9762 = vmatmul.mubr.bf16.vlgmr.msra.gmra.mrb[20].mxu1 %v14194_v37  ;;  %v12426_v21 = vcombine.high %v3392_v14, %v3396_v16 }
 0x295   :  { %9557 = vmatmul.mubr.bf16.vlgmr.msra.gmra.mrb[12].mxu0 %v14270_v23  ;;  %9771 = vmatpush1.bf16.msra.mxu1 %v12377_v20  ;;  %v12799_v20 = vcombine.low %v3767_v8, %v3771_v10 }
 0x296   :  { %9566 = vmatpush1.bf16.msra.mxu0 %v12759_v61  ;;  %9597 = vmatprep.mubr.bf16.mxu0 %v14272_v29  ;;  %v3400_v61 = vld [vmem:[#allocation7 + $0x5c8] sm:$0xff] }
 0x297   :  { %9802 = vmatprep.mubr.bf16.mxu1 %v14221_v13  ;;  %9567 = vmatprep.subr.bf16.mxu0 %v12768_v24  ;;  %v3404_v24 = vld [vmem:[#allocation7 + $0x5e8] sm:$0xff] }
 0x298   :  { %9772 = vmatprep.subr.bf16.mxu1 %v12386_v32  ;;  %v12425_v32 = vcombine.low %v3392_v14, %v3396_v16  ;;  %v12434_v35 = vcombine.high %v3400_v61, %v3404_v24  ;;  %v12433_v49 = vcombine.low %v3400_v61, %v3404_v24  ;;  %v3819_v14 = vld [vmem:[#allocation7 + $0x12e0] sm:$0xff] }
 0x299   :  { %9773 = vmatpush1.bf16.msra.mxu1 %v12385_v40  ;;  %v12816_v40 = vcombine.high %v3783_v27, %v3787_v31  ;;  %v3827_v61 = vld [vmem:[#allocation7 + $0x1320] sm:$0xff] }
 0x29a   :  { %9568 = vmatpush1.bf16.msra.mxu0 %v12767_v41  ;;  %9774 = vmatprep.subr.bf16.mxu1 %v12394_v43  ;;  %v3408_v41 = vld [vmem:[#allocation7 + $0x608] sm:$0xff] }
 0x29b   :  { %9569 = vmatprep.subr.bf16.mxu0 %v12776_v44  ;;  %v3412_v43 = vld [vmem:[#allocation7 + $0x628] sm:$0xff]  ;;  %v3791_v44 = vld [vmem:[#allocation7 + $0x1200] sm:$0xff] }
 0x29c   :  { %v12442_v51 = vcombine.high %v3408_v41, %v3412_v43  ;;  %v12441_v0 = vcombine.low %v3408_v41, %v3412_v43  ;;  %v12823_v1 = vcombine.low %v3791_v44, %v3795_v45  ;;  %v3835_v41 = vld [vmem:[#allocation7 + $0x1360] sm:$0xff] }
 0x29d   :  { %9775 = vmatpush1.bf16.msra.mxu1 %v12393_v52  ;;  %v12824_v52 = vcombine.high %v3791_v44, %v3795_v45 }
 0x29e   :  { %9570 = vmatpush1.bf16.msra.mxu0 %v12775_v47  ;;  %9776 = vmatprep.subr.bf16.mxu1 %v12402_v55  ;;  %v3416_v47 = vld [vmem:[#allocation7 + $0x648] sm:$0xff] }
 0x29f   :  { %9571 = vmatprep.subr.bf16.mxu0 %v12784_v58  ;;  %v3420_v55 = vld [vmem:[#allocation7 + $0x668] sm:$0xff]  ;;  %v3799_v58 = vld [vmem:[#allocation7 + $0x1240] sm:$0xff] }
 0x2a0   :  { %v12450_v2 = vcombine.high %v3416_v47, %v3420_v55  ;;  %v12449_v7 = vcombine.low %v3416_v47, %v3420_v55  ;;  %v12831_v8 = vcombine.low %v3799_v58, %v3803_v63  ;;  %v3843_v47 = vld [vmem:[#allocation7 + $0x13a0] sm:$0xff] }
 0x2a1   :  { %9777 = vmatpush1.bf16.msra.mxu1 %v12401_v3  ;;  %v12832_v3 = vcombine.high %v3799_v58, %v3803_v63 }
 0x2a2   :  { %9572 = vmatpush1.bf16.msra.mxu0 %v12783_v5  ;;  %9778 = vmatprep.subr.bf16.mxu1 %v12410_v34  ;;  %v3424_v5 = vld [vmem:[#allocation7 + $0x688] sm:$0xff] }
 0x2a3   :  { %9573 = vmatprep.subr.bf16.mxu0 %v12792_v6  ;;  %v3428_v34 = vld [vmem:[#allocation7 + $0x6a8] sm:$0xff]  ;;  %v3807_v6 = vld [vmem:[#allocation7 + $0x1280] sm:$0xff] }
 0x2a4   :  { %v12458_v10 = vcombine.high %v3424_v5, %v3428_v34  ;;  %v12457_v16 = vcombine.low %v3424_v5, %v3428_v34  ;;  %v12839_v17 = vcombine.low %v3807_v6, %v3811_v42  ;;  %v3468_v5 = vld [vmem:[#allocation7 + $0x7e8] sm:$0xff]  ;;  %v547_v34 = vrot.slane %v14262_v48, %v14202_v26 }
 0x2a5   :  { %9779 = vmatpush1.bf16.msra.mxu1 %v12409_v11  ;;  %v12840_v11 = vcombine.high %v3807_v6, %v3811_v42  ;;  %v3847_v42 = vld [vmem:[#allocation7 + $0x13c0] sm:$0xff] }
 0x2a6   :  { %9574 = vmatpush1.bf16.msra.mxu0 %v12791_v54  ;;  %9780 = vmatprep.subr.bf16.mxu1 %v12418_v12  ;;  %v3432_v54 = vld [vmem:[#allocation7 + $0x6c8] sm:$0xff] }
 0x2a7   :  { %9575 = vmatprep.subr.bf16.mxu0 %v12800_v4  ;;  %v3436_v12 = vld [vmem:[#allocation7 + $0x6e8] sm:$0xff]  ;;  %v3815_v4 = vld [vmem:[#allocation7 + $0x12c0] sm:$0xff] }
 0x2a8   :  { %v12466_v18 = vcombine.high %v3432_v54, %v3436_v12  ;;  %v12465_v24 = vcombine.low %v3432_v54, %v3436_v12  ;;  %v12847_v27 = vcombine.low %v3815_v4, %v3819_v14 }
 0x2a9   :  { %9781 = vmatpush1.bf16.msra.mxu1 %v12417_v22  ;;  %v12848_v22 = vcombine.high %v3815_v4, %v3819_v14 }
 0x2aa   :  { %9576 = vmatpush1.bf16.msra.mxu0 %v12799_v20  ;;  %9782 = vmatprep.subr.bf16.mxu1 %v12426_v21  ;;  %v3440_v20 = vld [vmem:[#allocation7 + $0x708] sm:$0xff] }
 0x2ab   :  { %9577 = vmatprep.subr.bf16.mxu0 %v12808_v59  ;;  %v3444_v21 = vld [vmem:[#allocation7 + $0x728] sm:$0xff]  ;;  %v3823_v59 = vld [vmem:[#allocation7 + $0x1300] sm:$0xff] }
 0x2ac   :  { %v12474_v31 = vcombine.high %v3440_v20, %v3444_v21  ;;  %v12473_v43 = vcombine.low %v3440_v20, %v3444_v21  ;;  %v12855_v44 = vcombine.low %v3823_v59, %v3827_v61  ;;  %v3859_v20 = vld [vmem:[#allocation7 + $0x1420] sm:$0xff] }
 0x2ad   :  { %9783 = vmatpush1.bf16.msra.mxu1 %v12425_v32  ;;  %v12856_v32 = vcombine.high %v3823_v59, %v3827_v61 }
 0x2ae   :  { %9578 = vmatpush1.bf16.msra.mxu0 %v12807_v46  ;;  %9784 = vmatprep.subr.bf16.mxu1 %v12434_v35  ;;  %v3448_v46 = vld [vmem:[#allocation7 + $0x748] sm:$0xff] }
 0x2af   :  { %9579 = vmatprep.subr.bf16.mxu0 %v12816_v40  ;;  %v3452_v35 = vld [vmem:[#allocation7 + $0x768] sm:$0xff]  ;;  %v3831_v40 = vld [vmem:[#allocation7 + $0x1340] sm:$0xff] }
 0x2b0   :  { %v12482_v45 = vcombine.high %v3448_v46, %v3452_v35  ;;  %v12481_v55 = vcombine.low %v3448_v46, %v3452_v35  ;;  %v12863_v58 = vcombine.low %v3831_v40, %v3835_v41  ;;  %v3867_v46 = vld [vmem:[#allocation7 + $0x1460] sm:$0xff]  ;;  %v3480_v35 = vld [vmem:[#allocation7 + $0x848] sm:$0xff] }
 0x2b1   :  { %9785 = vmatpush1.bf16.msra.mxu1 %v12433_v49  ;;  %v12864_v49 = vcombine.high %v3831_v40, %v3835_v41  ;;  %v3484_v40 = vld [vmem:[#allocation7 + $0x868] sm:$0xff] }
 0x2b2   :  { %9580 = vmatpush1.bf16.msra.mxu0 %v12815_v50  ;;  %9786 = vmatprep.subr.bf16.mxu1 %v12442_v51  ;;  %v3456_v50 = vld [vmem:[#allocation7 + $0x788] sm:$0xff] }
 0x2b3   :  { %9581 = vmatprep.subr.bf16.mxu0 %v12824_v52  ;;  %v3460_v51 = vld [vmem:[#allocation7 + $0x7a8] sm:$0xff]  ;;  %v3839_v52 = vld [vmem:[#allocation7 + $0x1380] sm:$0xff] }
 0x2b4   :  { %v12490_v63 = vcombine.high %v3456_v50, %v3460_v51  ;;  %v12871_v54 = vcombine.low %v3839_v52, %v3843_v47 }
 0x2b5   :  { %9787 = vmatpush1.bf16.msra.mxu1 %v12441_v0  ;;  %v535_v0 = vrot.slane %v14262_v48, %v14189_v62 }
 0x2b6   :  { %9582 = vmatpush1.bf16.msra.mxu0 %v12823_v1  ;;  %9788 = vmatprep.subr.bf16.mxu1 %v12450_v2  ;;  %v12872_v2 = vcombine.high %v3839_v52, %v3843_v47  ;;  %v3871_v52 = vld [vmem:[#allocation7 + $0x1480] sm:$0xff] }
 0x2b7   :  { %9583 = vmatprep.subr.bf16.mxu0 %v12832_v3  ;;  %v3464_v3 = vld [vmem:[#allocation7 + $0x7c8] sm:$0xff]  ;;  %v13446_v4 = vadd.f32 %v14216_v53, %v535_v0  ;;  %v3875_v47 = vld [vmem:[#allocation7 + $0x14a0] sm:$0xff] }
 0x2b8   :  { %v12498_v12 = vcombine.high %v3464_v3, %v3468_v5  ;;  %v12497_v21 = vcombine.low %v3464_v3, %v3468_v5  ;;  %v12904_v0 = vcombine.high %v3871_v52, %v3875_v47  ;;  %v3500_v3 = vld [vmem:[#allocation7 + $0x8e8] sm:$0xff]  ;;  %v3879_v5 = vld [vmem:[#allocation7 + $0x14c0] sm:$0xff] }
 0x2b9   :  { %9789 = vmatpush1.bf16.msra.mxu1 %v12449_v7  ;;  %v3851_v7 = vld [vmem:[#allocation7 + $0x13e0] sm:$0xff] }
 0x2ba   :  { %9584 = vmatpush1.bf16.msra.mxu0 %v12831_v8  ;;  %9790 = vmatprep.subr.bf16.mxu1 %v12458_v10  ;;  %v12489_v10 = vcombine.low %v3456_v50, %v3460_v51  ;;  %v12880_v14 = vcombine.high %v3847_v42, %v3851_v7  ;;  %v12879_v59 = vcombine.low %v3847_v42, %v3851_v7 }
 0x2bb   :  { %9585 = vmatprep.subr.bf16.mxu0 %v12840_v11  ;;  %v12514_v51 = vcombine.high %v3480_v35, %v3484_v40  ;;  %v12903_v42 = vcombine.low %v3871_v52, %v3875_v47  ;;  %v3915_v52 = vld [vmem:[#allocation7 + $0x15e0] sm:$0xff] }
 0x2bd   :  { %9791 = vmatpush1.bf16.msra.mxu1 %v12457_v16  ;;  %v3472_v16 = vld [vmem:[#allocation7 + $0x808] sm:$0xff] }
 0x2be   :  { %9586 = vmatpush1.bf16.msra.mxu0 %v12839_v17  ;;  %9792 = vmatprep.subr.bf16.mxu1 %v12466_v18  ;;  %v3476_v17 = vld [vmem:[#allocation7 + $0x828] sm:$0xff] }
 0x2bf   :  { %9587 = vmatprep.subr.bf16.mxu0 %v12848_v22  ;;  %v3855_v22 = vld [vmem:[#allocation7 + $0x1400] sm:$0xff]  ;;  %v12506_v61 = vcombine.high %v3472_v16, %v3476_v17  ;;  %v12505_v53 = vcombine.low %v3472_v16, %v3476_v17 }
 0x2c0   :  { %v12887_v41 = vcombine.low %v3855_v22, %v3859_v20 }
 0x2c1   :  { %9793 = vmatpush1.bf16.msra.mxu1 %v12465_v24  ;;  %v3191_v24 = vmax.f32 %v13446_v4, 0.0 }
 0x2c2   :  { %9588 = vmatpush1.bf16.msra.mxu0 %v12847_v27  ;;  %9794 = vmatprep.subr.bf16.mxu1 %v12474_v31  ;;  %v12888_v27 = vcombine.high %v3855_v22, %v3859_v20  ;;  %v3516_v22 = vld [vmem:[#allocation7 + $0x968] sm:$0xff]  ;;  %v3895_v20 = vld [vmem:[#allocation7 + $0x1540] sm:$0xff] }
 0x2c3   :  { %9589 = vmatprep.subr.bf16.mxu0 %v12856_v32  ;;  %v3863_v32 = vld [vmem:[#allocation7 + $0x1440] sm:$0xff] }
 0x2c5   :  { %9795 = vmatpush1.bf16.msra.mxu1 %v12473_v43  ;;  %v14285_v43 = vpack.c.bf16 %v3191_v24, %v3191_v24 }
 0x2c6   :  { %9590 = vmatpush1.bf16.msra.mxu0 %v12855_v44  ;;  %9796 = vmatprep.subr.bf16.mxu1 %v12482_v45  ;;  %v12896_v44 = vcombine.high %v3863_v32, %v3867_v46  ;;  %v3488_v45 = vld [vmem:[#allocation7 + $0x888] sm:$0xff] }
 0x2c7   :  { %v14280_v1 = vpop.f32.mrb[12].mxu1  ;;  %9591 = vmatprep.subr.bf16.mxu0 %v12864_v49  ;;  %v3492_v49 = vld [vmem:[#allocation7 + $0x8a8] sm:$0xff] }
 0x2c8   :  { %v3014_v6 = vpop.f32.mrb[13].mxu1 }
 0x2c9   :  { %v3016_v8 = vpop.f32.mrb[14].mxu1  ;;  %9797 = vmatpush1.bf16.msra.mxu1 %v12481_v55  ;;  %v13449_v18 = vadd.f32 %v3014_v6, %v547_v34  ;;  %v12513_v55 = vcombine.low %v3480_v35, %v3484_v40  ;;  %v3883_v34 = vld [vmem:[#allocation7 + $0x14e0] sm:$0xff]  ;;  %v12521_v6 = vcombine.low %v3488_v45, %v3492_v49 }
 0x2ca   :  { %9592 = vmatpush1.bf16.msra.mxu0 %v12863_v58  ;;  %v3017_v11 = vpop.f32.mrb[15].mxu1  ;;  %9798 = vmatprep.subr.bf16.mxu1 %v12490_v63  ;;  %v12895_v58 = vcombine.low %v3863_v32, %v3867_v46  ;;  %v12522_v63 = vcombine.high %v3488_v45, %v3492_v49  ;;  %v12912_v8 = vcombine.high %v3879_v5, %v3883_v34  ;;  %v3524_v32 = vld [vmem:[#allocation7 + $0x9a8] sm:$0xff]  ;;  %v3903_v46 = vld [vmem:[#allocation7 + $0x1580] sm:$0xff] }
 0x2cb   :  { %9593 = vmatprep.subr.bf16.mxu0 %v12872_v2  ;;  %v3194_v31 = vmax.f32 %v13449_v18, 0.0  ;;  %v3496_v2 = vld [vmem:[#allocation7 + $0x8c8] sm:$0xff] }
 0x2cc   :  { %v12530_v7 = vcombine.high %v3496_v2, %v3500_v3  ;;  %v3508_v11 = vld [vmem:[#allocation7 + $0x928] sm:$0xff]  ;;  %v12529_v4 = vcombine.low %v3496_v2, %v3500_v3  ;;  %v3919_v3 = vld [vmem:[#allocation7 + $0x1600] sm:$0xff] }
 0x2cd   :  { %9799 = vmatpush1.bf16.msra.mxu1 %v12489_v10  ;;  %v14287_v50 = vpack.c.bf16 %v3194_v31, %v3194_v31  ;;  %v3504_v10 = vld [vmem:[#allocation7 + $0x908] sm:$0xff] }
 0x2ce   :  { %9594 = vmatpush1.bf16.msra.mxu0 %v12871_v54  ;;  %9800 = vmatprep.subr.bf16.mxu1 %v12498_v12  ;;  %v3887_v54 = vld [vmem:[#allocation7 + $0x1500] sm:$0xff]  ;;  %v12538_v16 = vcombine.high %v3504_v10, %v3508_v11  ;;  %v3512_v18 = vld [vmem:[#allocation7 + $0x948] sm:$0xff] }
 0x2cf   :  { %9595 = vmatprep.subr.bf16.mxu0 %v12880_v14  ;;  %v3891_v12 = vld [vmem:[#allocation7 + $0x1520] sm:$0xff]  ;;  %v12911_v14 = vcombine.low %v3879_v5, %v3883_v34  ;;  %v12546_v24 = vcombine.high %v3512_v18, %v3516_v22  ;;  %v3520_v31 = vld [vmem:[#allocation7 + $0x988] sm:$0xff]  ;;  %v12545_v35 = vcombine.low %v3512_v18, %v3516_v22 }
 0x2d0   :  { %v12920_v17 = vcombine.high %v3887_v54, %v3891_v12  ;;  %v3528_v45 = vld [vmem:[#allocation7 + $0x9c8] sm:$0xff]  ;;  %v12553_v47 = vcombine.low %v3520_v31, %v3524_v32  ;;  %v3923_v5 = vld [vmem:[#allocation7 + $0x1620] sm:$0xff] }
 0x2d1   :  { %9801 = vmatpush1.bf16.msra.mxu1 %v12497_v21  ;;  %v3899_v21 = vld [vmem:[#allocation7 + $0x1560] sm:$0xff]  ;;  %v3532_v49 = vld [vmem:[#allocation7 + $0x9e8] sm:$0xff] }
 0x2d2   :  { %9596 = vmatpush1.bf16.msra.mxu0 %v12879_v59  ;;  %9811 = vmatprep.subr.bf16.mxu1 %v12506_v61  ;;  %v12537_v59 = vcombine.low %v3504_v10, %v3508_v11  ;;  %v12919_v61 = vcombine.low %v3887_v54, %v3891_v12  ;;  %v12927_v40 = vcombine.low %v3895_v20, %v3899_v21  ;;  %v3540_v2 = vld [vmem:[#allocation7 + $0xa28] sm:$0xff]  ;;  %v3927_v11 = vld [vmem:[#allocation7 + $0x1640] sm:$0xff] }
 0x2d3   :  { %9606 = vmatprep.subr.bf16.mxu0 %v12888_v27  ;;  %v12928_v27 = vcombine.high %v3895_v20, %v3899_v21  ;;  %v12561_v34 = vcombine.low %v3528_v45, %v3532_v49  ;;  %v3548_v10 = vld [vmem:[#allocation7 + $0xa68] sm:$0xff]  ;;  %v3931_v54 = vld [vmem:[#allocation7 + $0x1660] sm:$0xff] }
 0x2d4   :  { %9803 = vmatmul.mubr.bf16.vlgmr.msra.gmra.mrb[20].mxu1 %v14224_v25  ;;  %v3556_v18 = vld [vmem:[#allocation7 + $0xaa8] sm:$0xff]  ;;  %v3935_v22 = vld [vmem:[#allocation7 + $0x1680] sm:$0xff] }
 0x2d5   :  { %9598 = vmatmul.mubr.bf16.vlgmr.msra.gmra.mrb[12].mxu0 %v14285_v43  ;;  %9812 = vmatpush1.bf16.msra.mxu1 %v12505_v53  ;;  %v3907_v53 = vld [vmem:[#allocation7 + $0x15a0] sm:$0xff] }
 0x2d6   :  { %9607 = vmatpush1.bf16.msra.mxu0 %v12887_v41  ;;  %9638 = vmatprep.mubr.bf16.mxu0 %v14287_v50  ;;  %v12554_v41 = vcombine.high %v3520_v31, %v3524_v32  ;;  %v3939_v20 = vld [vmem:[#allocation7 + $0x16a0] sm:$0xff]  ;;  %v3564_v31 = vld [vmem:[#allocation7 + $0xae8] sm:$0xff] }
 0x2d7   :  { %9843 = vmatprep.mubr.bf16.mxu1 %v14226_v57  ;;  %9608 = vmatprep.subr.bf16.mxu0 %v12896_v44  ;;  %v12936_v44 = vcombine.high %v3903_v46, %v3907_v53  ;;  %v3943_v32 = vld [vmem:[#allocation7 + $0x16c0] sm:$0xff] }
 0x2d8   :  { %9813 = vmatprep.subr.bf16.mxu1 %v12514_v51  ;;  %v3911_v51 = vld [vmem:[#allocation7 + $0x15c0] sm:$0xff] }
 0x2d9   :  { %9814 = vmatpush1.bf16.msra.mxu1 %v12513_v55  ;;  %v12935_v55 = vcombine.low %v3903_v46, %v3907_v53  ;;  %v3947_v46 = vld [vmem:[#allocation7 + $0x16e0] sm:$0xff] }
 0x2da   :  { %9609 = vmatpush1.bf16.msra.mxu0 %v12895_v58  ;;  %9815 = vmatprep.subr.bf16.mxu1 %v12522_v63  ;;  %v12562_v58 = vcombine.high %v3528_v45, %v3532_v49  ;;  %v12944_v63 = vcombine.high %v3911_v51, %v3915_v52  ;;  %v3572_v45 = vld [vmem:[#allocation7 + $0xb28] sm:$0xff]  ;;  %v3951_v49 = vld [vmem:[#allocation7 + $0x1700] sm:$0xff] }
 0x2db   :  { %9610 = vmatprep.subr.bf16.mxu0 %v12904_v0  ;;  %v3536_v0 = vld [vmem:[#allocation7 + $0xa08] sm:$0xff] }
 0x2dc   :  { %v12569_v12 = vcombine.low %v3536_v0, %v3540_v2 }
 0x2dd   :  { %9816 = vmatpush1.bf16.msra.mxu1 %v12521_v6  ;;  %v12943_v6 = vcombine.low %v3911_v51, %v3915_v52  ;;  %v3955_v51 = vld [vmem:[#allocation7 + $0x1720] sm:$0xff] }
 0x2de   :  { %9611 = vmatpush1.bf16.msra.mxu0 %v12903_v42  ;;  %9817 = vmatprep.subr.bf16.mxu1 %v12530_v7  ;;  %v12570_v42 = vcombine.high %v3536_v0, %v3540_v2  ;;  %v12952_v7 = vcombine.high %v3919_v3, %v3923_v5  ;;  %v3580_v0 = vld [vmem:[#allocation7 + $0xb68] sm:$0xff]  ;;  %v3959_v2 = vld [vmem:[#allocation7 + $0x1740] sm:$0xff] }
 0x2df   :  { %9612 = vmatprep.subr.bf16.mxu0 %v12912_v8  ;;  %v3544_v8 = vld [vmem:[#allocation7 + $0xa48] sm:$0xff] }
 0x2e0   :  { %v12577_v21 = vcombine.low %v3544_v8, %v3548_v10 }
 0x2e1   :  { %9818 = vmatpush1.bf16.msra.mxu1 %v12529_v4  ;;  %v12951_v4 = vcombine.low %v3919_v3, %v3923_v5  ;;  %v3963_v3 = vld [vmem:[#allocation7 + $0x1760] sm:$0xff] }
 0x2e2   :  { %9613 = vmatpush1.bf16.msra.mxu0 %v12911_v14  ;;  %9819 = vmatprep.subr.bf16.mxu1 %v12538_v16  ;;  %v12578_v14 = vcombine.high %v3544_v8, %v3548_v10  ;;  %v12960_v16 = vcombine.high %v3927_v11, %v3931_v54  ;;  %v3588_v8 = vld [vmem:[#allocation7 + $0xba8] sm:$0xff]  ;;  %v3967_v10 = vld [vmem:[#allocation7 + $0x1780] sm:$0xff] }
 0x2e3   :  { %9614 = vmatprep.subr.bf16.mxu0 %v12920_v17  ;;  %v3552_v17 = vld [vmem:[#allocation7 + $0xa88] sm:$0xff] }
 0x2e4   :  { %v12585_v53 = vcombine.low %v3552_v17, %v3556_v18 }
 0x2e5   :  { %9820 = vmatpush1.bf16.msra.mxu1 %v12537_v59  ;;  %v12959_v59 = vcombine.low %v3927_v11, %v3931_v54  ;;  %v3971_v11 = vld [vmem:[#allocation7 + $0x17a0] sm:$0xff] }
 0x2e6   :  { %9615 = vmatpush1.bf16.msra.mxu0 %v12919_v61  ;;  %9821 = vmatprep.subr.bf16.mxu1 %v12546_v24  ;;  %v12586_v61 = vcombine.high %v3552_v17, %v3556_v18  ;;  %v12968_v24 = vcombine.high %v3935_v22, %v3939_v20  ;;  %v3592_v17 = vld [vmem:[#allocation7 + $0xbc8] sm:$0xff] }
 0x2e7   :  { %9616 = vmatprep.subr.bf16.mxu0 %v12928_v27  ;;  %v3560_v27 = vld [vmem:[#allocation7 + $0xac8] sm:$0xff] }
 0x2e8   :  { %v12593_v52 = vcombine.low %v3560_v27, %v3564_v31  ;;  %v3596_v18 = vld [vmem:[#allocation7 + $0xbe8] sm:$0xff] }
 0x2e9   :  { %9822 = vmatpush1.bf16.msra.mxu1 %v12545_v35  ;;  %v12967_v35 = vcombine.low %v3935_v22, %v3939_v20  ;;  %v555_v22 = vrot.slane %v14262_v48, %v14208_v33  ;;  %v3975_v20 = vld [vmem:[#allocation7 + $0x17c0] sm:$0xff] }
 0x2ea   :  { %9617 = vmatpush1.bf16.msra.mxu0 %v12927_v40  ;;  %9823 = vmatprep.subr.bf16.mxu1 %v12554_v41  ;;  %v12594_v40 = vcombine.high %v3560_v27, %v3564_v31  ;;  %v12976_v41 = vcombine.high %v3943_v32, %v3947_v46 }
 0x2eb   :  { %9618 = vmatprep.subr.bf16.mxu0 %v12936_v44  ;;  %v3568_v44 = vld [vmem:[#allocation7 + $0xb08] sm:$0xff] }
 0x2ec   :  { %v12601_v5 = vcombine.low %v3568_v44, %v3572_v45 }
 0x2ed   :  { %9824 = vmatpush1.bf16.msra.mxu1 %v12553_v47  ;;  %v12975_v47 = vcombine.low %v3943_v32, %v3947_v46  ;;  %v3600_v32 = vld [vmem:[#allocation7 + $0xc08] sm:$0xff] }
 0x2ee   :  { %9619 = vmatpush1.bf16.msra.mxu0 %v12935_v55  ;;  %9825 = vmatprep.subr.bf16.mxu1 %v12562_v58  ;;  %v12602_v55 = vcombine.high %v3568_v44, %v3572_v45  ;;  %v12984_v58 = vcombine.high %v3951_v49, %v3955_v51  ;;  %v3604_v46 = vld [vmem:[#allocation7 + $0xc28] sm:$0xff] }
 0x2ef   :  { %9620 = vmatprep.subr.bf16.mxu0 %v12944_v63  ;;  %v3576_v63 = vld [vmem:[#allocation7 + $0xb48] sm:$0xff]  ;;  %v12634_v44 = vcombine.high %v3600_v32, %v3604_v46 }
 0x2f0   :  { %v12609_v54 = vcombine.low %v3576_v63, %v3580_v0 }
 0x2f1   :  { %9826 = vmatpush1.bf16.msra.mxu1 %v12561_v34  ;;  %v12983_v34 = vcombine.low %v3951_v49, %v3955_v51 }
 0x2f2   :  { %9621 = vmatpush1.bf16.msra.mxu0 %v12943_v6  ;;  %9827 = vmatprep.subr.bf16.mxu1 %v12570_v42  ;;  %v12610_v6 = vcombine.high %v3576_v63, %v3580_v0  ;;  %v12992_v42 = vcombine.high %v3959_v2, %v3963_v3 }
 0x2f3   :  { %9622 = vmatprep.subr.bf16.mxu0 %v12952_v7  ;;  %v3584_v7 = vld [vmem:[#allocation7 + $0xb88] sm:$0xff] }
 0x2f5   :  { %9828 = vmatpush1.bf16.msra.mxu1 %v12569_v12  ;;  %v12991_v12 = vcombine.low %v3959_v2, %v3963_v3  ;;  %v3616_v2 = vld [vmem:[#allocation7 + $0xc88] sm:$0xff] }
 0x2f6   :  { %9623 = vmatpush1.bf16.msra.mxu0 %v12951_v4  ;;  %9829 = vmatprep.subr.bf16.mxu1 %v12578_v14  ;;  %v12618_v4 = vcombine.high %v3584_v7, %v3588_v8  ;;  %v543_v14 = vrot.slane %v14262_v48, %v14205_v30  ;;  %v12625_v48 = vcombine.low %v3592_v17, %v3596_v18  ;;  %v3620_v3 = vld [vmem:[#allocation7 + $0xca8] sm:$0xff] }
 0x2f7   :  { %9624 = vmatprep.subr.bf16.mxu0 %v12960_v16  ;;  %v13000_v16 = vcombine.high %v3967_v10, %v3971_v11 }
 0x2f8   :  { %v13448_v27 = vadd.f32 %v14280_v1, %v543_v14  ;;  %v3995_v1 = vld [vmem:[#allocation7 + $0x1860] sm:$0xff] }
 0x2f9   :  { %9830 = vmatpush1.bf16.msra.mxu1 %v12577_v21  ;;  %v3979_v21 = vld [vmem:[#allocation7 + $0x17e0] sm:$0xff] }
 0x2fa   :  { %9625 = vmatpush1.bf16.msra.mxu0 %v12959_v59  ;;  %9831 = vmatprep.subr.bf16.mxu1 %v12586_v61  ;;  %v12617_v59 = vcombine.low %v3584_v7, %v3588_v8  ;;  %v12999_v61 = vcombine.low %v3967_v10, %v3971_v11  ;;  %v13008_v31 = vcombine.high %v3975_v20, %v3979_v21  ;;  %v3193_v45 = vmax.f32 %v13448_v27, 0.0  ;;  %v4011_v14 = vld [vmem:[#allocation7 + $0x18e0] sm:$0xff] }
 0x2fb   :  { %9626 = vmatprep.subr.bf16.mxu0 %v12968_v24  ;;  %v12626_v24 = vcombine.high %v3592_v17, %v3596_v18  ;;  %v12650_v10 = vcombine.high %v3616_v2, %v3620_v3 }
 0x2fc   :  { %v14299_v63 = vpack.c.bf16 %v3193_v45, %v3193_v45 }
 0x2fd   :  { %9832 = vmatpush1.bf16.msra.mxu1 %v12585_v53  ;;  %v13451_v53 = vadd.f32 %v14254_v19, %v555_v22 }
 0x2fe   :  { %9627 = vmatpush1.bf16.msra.mxu0 %v12967_v35  ;;  %9833 = vmatprep.subr.bf16.mxu1 %v12594_v40  ;;  %v3983_v35 = vld [vmem:[#allocation7 + $0x1800] sm:$0xff] }
 0x2ff   :  { %9628 = vmatprep.subr.bf16.mxu0 %v12976_v41  ;;  %v3987_v40 = vld [vmem:[#allocation7 + $0x1820] sm:$0xff]  ;;  %v13007_v41 = vcombine.low %v3975_v20, %v3979_v21  ;;  %v3196_v51 = vmax.f32 %v13451_v53, 0.0  ;;  %v3632_v20 = vld [vmem:[#allocation7 + $0xd08] sm:$0xff] }
 0x300   :  { %v13016_v49 = vcombine.high %v3983_v35, %v3987_v40  ;;  %v13015_v19 = vcombine.low %v3983_v35, %v3987_v40  ;;  %v3636_v21 = vld [vmem:[#allocation7 + $0xd28] sm:$0xff]  ;;  %v4023_v35 = vld [vmem:[#allocation7 + $0x1940] sm:$0xff] }
 0x301   :  { %9834 = vmatpush1.bf16.msra.mxu1 %v12593_v52  ;;  %v3991_v52 = vld [vmem:[#allocation7 + $0x1840] sm:$0xff]  ;;  %v3644_v53 = vld [vmem:[#allocation7 + $0xd68] sm:$0xff] }
 0x302   :  { %9629 = vmatpush1.bf16.msra.mxu0 %v12975_v47  ;;  %9835 = vmatprep.subr.bf16.mxu1 %v12602_v55  ;;  %v12633_v47 = vcombine.low %v3600_v32, %v3604_v46  ;;  %v3608_v55 = vld [vmem:[#allocation7 + $0xc48] sm:$0xff]  ;;  %v13024_v0 = vcombine.high %v3991_v52, %v3995_v1  ;;  %v13023_v8 = vcombine.low %v3991_v52, %v3995_v1  ;;  %v4027_v40 = vld [vmem:[#allocation7 + $0x1960] sm:$0xff] }
 0x303   :  { %9630 = vmatprep.subr.bf16.mxu0 %v12984_v58  ;;  %v3612_v58 = vld [vmem:[#allocation7 + $0xc68] sm:$0xff]  ;;  %v13056_v45 = vcombine.high %v4023_v35, %v4027_v40  ;;  %v4031_v52 = vld [vmem:[#allocation7 + $0x1980] sm:$0xff] }
 0x304   :  { %v12641_v7 = vcombine.low %v3608_v55, %v3612_v58  ;;  %v3640_v46 = vld [vmem:[#allocation7 + $0xd48] sm:$0xff]  ;;  %v4035_v1 = vld [vmem:[#allocation7 + $0x19a0] sm:$0xff] }
 0x305   :  { %9836 = vmatpush1.bf16.msra.mxu1 %v12601_v5  ;;  %v14301_v5 = vpack.c.bf16 %v3196_v51, %v3196_v51  ;;  %v3652_v51 = vld [vmem:[#allocation7 + $0xda8] sm:$0xff] }
 0x306   :  { %9631 = vmatpush1.bf16.msra.mxu0 %v12983_v34  ;;  %9837 = vmatprep.subr.bf16.mxu1 %v12610_v6  ;;  %v12642_v34 = vcombine.high %v3608_v55, %v3612_v58  ;;  %v3999_v6 = vld [vmem:[#allocation7 + $0x1880] sm:$0xff]  ;;  %v13055_v55 = vcombine.low %v4023_v35, %v4027_v40  ;;  %v3680_v35 = vld [vmem:[#allocation7 + $0xe88] sm:$0xff] }
 0x307   :  { %9632 = vmatprep.subr.bf16.mxu0 %v12992_v42  ;;  %v4003_v42 = vld [vmem:[#allocation7 + $0x18a0] sm:$0xff]  ;;  %v3684_v40 = vld [vmem:[#allocation7 + $0xea8] sm:$0xff] }
 0x308   :  { %v13032_v11 = vcombine.high %v3999_v6, %v4003_v42  ;;  %v13031_v17 = vcombine.low %v3999_v6, %v4003_v42  ;;  %v4039_v6 = vld [vmem:[#allocation7 + $0x19c0] sm:$0xff] }
 0x309   :  { %9838 = vmatpush1.bf16.msra.mxu1 %v12609_v54  ;;  %v3624_v54 = vld [vmem:[#allocation7 + $0xcc8] sm:$0xff]  ;;  %v4043_v42 = vld [vmem:[#allocation7 + $0x19e0] sm:$0xff] }
 0x30a   :  { %9633 = vmatpush1.bf16.msra.mxu0 %v12991_v12  ;;  %9839 = vmatprep.subr.bf16.mxu1 %v12618_v4  ;;  %v3628_v12 = vld [vmem:[#allocation7 + $0xce8] sm:$0xff]  ;;  %v4007_v4 = vld [vmem:[#allocation7 + $0x18c0] sm:$0xff] }
 0x30b   :  { %9634 = vmatprep.subr.bf16.mxu0 %v13000_v16  ;;  %v12649_v16 = vcombine.low %v3616_v2, %v3620_v3  ;;  %v12658_v18 = vcombine.high %v3624_v54, %v3628_v12  ;;  %v13040_v22 = vcombine.high %v4007_v4, %v4011_v14  ;;  %v13039_v27 = vcombine.low %v4007_v4, %v4011_v14  ;;  %v3656_v2 = vld [vmem:[#allocation7 + $0xdc8] sm:$0xff] }
 0x30c   :  { %v3660_v3 = vld [vmem:[#allocation7 + $0xde8] sm:$0xff] }
 0x30d   :  { %9840 = vmatpush1.bf16.msra.mxu1 %v12617_v59  ;;  %v4015_v59 = vld [vmem:[#allocation7 + $0x1900] sm:$0xff]  ;;  %v3664_v4 = vld [vmem:[#allocation7 + $0xe08] sm:$0xff] }
 0x30e   :  { %9635 = vmatpush1.bf16.msra.mxu0 %v12999_v61  ;;  %9841 = vmatprep.subr.bf16.mxu1 %v12626_v24  ;;  %v4019_v61 = vld [vmem:[#allocation7 + $0x1920] sm:$0xff]  ;;  %v12657_v24 = vcombine.low %v3624_v54, %v3628_v12  ;;  %v12690_v54 = vcombine.high %v3656_v2, %v3660_v3  ;;  %v13072_v12 = vcombine.high %v4039_v6, %v4043_v42  ;;  %v3668_v14 = vld [vmem:[#allocation7 + $0xe28] sm:$0xff] }
 0x30f   :  { %9636 = vmatprep.subr.bf16.mxu0 %v13008_v31  ;;  %v12666_v31 = vcombine.high %v3632_v20, %v3636_v21  ;;  %v13048_v32 = vcombine.high %v4015_v59, %v4019_v61 }
 0x311   :  { %9842 = vmatpush1.bf16.msra.mxu1 %v12625_v48  ;;  %v12665_v48 = vcombine.low %v3632_v20, %v3636_v21  ;;  %v12698_v20 = vcombine.high %v3664_v4, %v3668_v14 }
 0x312   :  { %9637 = vmatpush1.bf16.msra.mxu0 %v13007_v41  ;;  %9852 = vmatprep.subr.bf16.mxu1 %v12634_v44  ;;  %v13047_v41 = vcombine.low %v4015_v59, %v4019_v61  ;;  %v12674_v44 = vcombine.high %v3640_v46, %v3644_v53  ;;  %v3672_v59 = vld [vmem:[#allocation7 + $0xe48] sm:$0xff] }
 0x313   :  { %9647 = vmatprep.subr.bf16.mxu0 %v13016_v49  ;;  %v3648_v49 = vld [vmem:[#allocation7 + $0xd88] sm:$0xff] }
 0x314   :  { %9844 = vmatmul.mubr.bf16.vlgmr.msra.gmra.mrb[20].mxu1 %v14240_v39  ;;  %v12682_v58 = vcombine.high %v3648_v49, %v3652_v51  ;;  %v3676_v61 = vld [vmem:[#allocation7 + $0xe68] sm:$0xff] }
 0x315   :  { %9639 = vmatmul.mubr.bf16.vlgmr.msra.gmra.mrb[12].mxu0 %v14299_v63  ;;  %9853 = vmatpush1.bf16.msra.mxu1 %v12633_v47  ;;  %v12673_v47 = vcombine.low %v3640_v46, %v3644_v53  ;;  %v12706_v46 = vcombine.high %v3672_v59, %v3676_v61 }
 0x316   :  { %9648 = vmatpush1.bf16.msra.mxu0 %v13015_v19  ;;  %9679 = vmatprep.mubr.bf16.mxu0 %v14301_v5 }
 0x317   :  { %9884 = vmatprep.mubr.bf16.mxu1 %v14256_v36  ;;  %9649 = vmatprep.subr.bf16.mxu0 %v13024_v0  ;;  %v13064_v0 = vcombine.high %v4031_v52, %v4035_v1 }
 0x318   :  { %9854 = vmatprep.subr.bf16.mxu1 %v12642_v34 }
 0x319   :  { %9855 = vmatpush1.bf16.msra.mxu1 %v12641_v7 }
 0x31a   :  { %9650 = vmatpush1.bf16.msra.mxu0 %v13023_v8  ;;  %9856 = vmatprep.subr.bf16.mxu1 %v12650_v10  ;;  %v12681_v8 = vcombine.low %v3648_v49, %v3652_v51  ;;  %v12714_v49 = vcombine.high %v3680_v35, %v3684_v40 }
 0x31b   :  { %9651 = vmatprep.subr.bf16.mxu0 %v13032_v11  ;;  %v13063_v11 = vcombine.low %v4031_v52, %v4035_v1  ;;  %v3688_v52 = vld [vmem:[#allocation7 + $0xec8] sm:$0xff] }
 0x31c   :  { %v3692_v1 = vld [vmem:[#allocation7 + $0xee8] sm:$0xff] }
 0x31d   :  { %9857 = vmatpush1.bf16.msra.mxu1 %v12649_v16  ;;  %v4047_v16 = vld [vmem:[#allocation7 + $0x1a00] sm:$0xff] }
 0x31e   :  { %9652 = vmatpush1.bf16.msra.mxu0 %v13031_v17  ;;  %9858 = vmatprep.subr.bf16.mxu1 %v12658_v18  ;;  %v4051_v17 = vld [vmem:[#allocation7 + $0x1a20] sm:$0xff]  ;;  %v12689_v18 = vcombine.low %v3656_v2, %v3660_v3  ;;  %v12722_v2 = vcombine.high %v3688_v52, %v3692_v1 }
 0x31f   :  { %9653 = vmatprep.subr.bf16.mxu0 %v13040_v22  ;;  %v13071_v22 = vcombine.low %v4039_v6, %v4043_v42  ;;  %v13080_v21 = vcombine.high %v4047_v16, %v4051_v17  ;;  %v3696_v6 = vld [vmem:[#allocation7 + $0xf08] sm:$0xff] }
 0x320   :  { %v3700_v42 = vld [vmem:[#allocation7 + $0xf28] sm:$0xff] }
 0x321   :  { %9859 = vmatpush1.bf16.msra.mxu1 %v12657_v24  ;;  %v4055_v24 = vld [vmem:[#allocation7 + $0x1a40] sm:$0xff] }
 0x322   :  { %9654 = vmatpush1.bf16.msra.mxu0 %v13039_v27  ;;  %9860 = vmatprep.subr.bf16.mxu1 %v12666_v31  ;;  %v4059_v27 = vld [vmem:[#allocation7 + $0x1a60] sm:$0xff]  ;;  %v12697_v31 = vcombine.low %v3664_v4, %v3668_v14  ;;  %v3704_v4 = vld [vmem:[#allocation7 + $0xf48] sm:$0xff] }
 0x323   :  { %9655 = vmatprep.subr.bf16.mxu0 %v13048_v32  ;;  %v13079_v32 = vcombine.low %v4047_v16, %v4051_v17  ;;  %v13088_v53 = vcombine.high %v4055_v24, %v4059_v27  ;;  %v3708_v14 = vld [vmem:[#allocation7 + $0xf68] sm:$0xff]  ;;  %v4087_v16 = vld [vmem:[#allocation7 + $0x1b40] sm:$0xff] }
 0x324   :  { %v4091_v17 = vld [vmem:[#allocation7 + $0x1b60] sm:$0xff] }
 0x325   :  { %9861 = vmatpush1.bf16.msra.mxu1 %v12665_v48  ;;  %v4063_v48 = vld [vmem:[#allocation7 + $0x1a80] sm:$0xff] }
 0x326   :  { %9656 = vmatpush1.bf16.msra.mxu0 %v13047_v41  ;;  %9862 = vmatprep.subr.bf16.mxu1 %v12674_v44  ;;  %v4067_v41 = vld [vmem:[#allocation7 + $0x1aa0] sm:$0xff]  ;;  %v12705_v44 = vcombine.low %v3672_v59, %v3676_v61  ;;  %v3712_v59 = vld [vmem:[#allocation7 + $0xf88] sm:$0xff] }
 0x327   :  { %v14307_v19 = vpop.f32.mrb[16].mxu1  ;;  %9657 = vmatprep.subr.bf16.mxu0 %v13056_v45  ;;  %v13087_v45 = vcombine.low %v4055_v24, %v4059_v27  ;;  %v13096_v51 = vcombine.high %v4063_v48, %v4067_v41  ;;  %v3716_v61 = vld [vmem:[#allocation7 + $0xfa8] sm:$0xff]  ;;  %v4095_v24 = vld [vmem:[#allocation7 + $0x1b80] sm:$0xff] }
 0x328   :  { %v14309_v34 = vpop.f32.mrb[17].mxu1  ;;  %v4099_v27 = vld [vmem:[#allocation7 + $0x1ba0] sm:$0xff] }
 0x329   :  { %v3180_v7 = vpop.f32.mrb[18].mxu1  ;;  %9863 = vmatpush1.bf16.msra.mxu1 %v12673_v47  ;;  %v4071_v47 = vld [vmem:[#allocation7 + $0x1ac0] sm:$0xff] }
 0x32a   :  { %9658 = vmatpush1.bf16.msra.mxu0 %v13055_v55  ;;  %v3181_v10 = vpop.f32.mrb[19].mxu1  ;;  %9864 = vmatprep.subr.bf16.mxu1 %v12682_v58  ;;  %v4075_v55 = vld [vmem:[#allocation7 + $0x1ae0] sm:$0xff]  ;;  %v12713_v58 = vcombine.low %v3680_v35, %v3684_v40  ;;  %v13128_v40 = vcombine.high %v4095_v24, %v4099_v27 }
 0x32b   :  { %9659 = vmatprep.subr.bf16.mxu0 %v13064_v0  ;;  %v13095_v0 = vcombine.low %v4063_v48, %v4067_v41  ;;  %v13104_v3 = vcombine.high %v4071_v47, %v4075_v55  ;;  %v4079_v7 = vld [vmem:[#allocation7 + $0x1b00] sm:$0xff]  ;;  %v12721_v10 = vcombine.low %v3688_v52, %v3692_v1  ;;  %v3720_v48 = vld [vmem:[#allocation7 + $0xfc8] sm:$0xff]  ;;  %v13127_v52 = vcombine.low %v4095_v24, %v4099_v27 }
 0x32c   :  { %v3724_v41 = vld [vmem:[#allocation7 + $0xfe8] sm:$0xff]  ;;  %v4131_v24 = vld [vmem:[#allocation7 + $0x1ca0] sm:$0xff] }
 0x32d   :  { %9865 = vmatpush1.bf16.msra.mxu1 %v12681_v8  ;;  %v4083_v8 = vld [vmem:[#allocation7 + $0x1b20] sm:$0xff]  ;;  %v12754_v1 = vcombine.high %v3720_v48, %v3724_v41 }
 0x32e   :  { %9660 = vmatpush1.bf16.msra.mxu0 %v13063_v11  ;;  %9866 = vmatprep.subr.bf16.mxu1 %v12690_v54  ;;  %v13103_v11 = vcombine.low %v4071_v47, %v4075_v55  ;;  %v12730_v54 = vcombine.high %v3696_v6, %v3700_v42 }
 0x32f   :  { %9661 = vmatprep.subr.bf16.mxu0 %v13072_v12  ;;  %v13112_v12 = vcombine.high %v4079_v7, %v4083_v8 }
 0x331   :  { %9867 = vmatpush1.bf16.msra.mxu1 %v12689_v18  ;;  %v12729_v18 = vcombine.low %v3696_v6, %v3700_v42  ;;  %v4115_v6 = vld [vmem:[#allocation7 + $0x1c20] sm:$0xff]  ;;  %v12753_v42 = vcombine.low %v3720_v48, %v3724_v41 }
 0x332   :  { %9662 = vmatpush1.bf16.msra.mxu0 %v13071_v22  ;;  %9868 = vmatprep.subr.bf16.mxu1 %v12698_v20  ;;  %v13111_v22 = vcombine.low %v4079_v7, %v4083_v8  ;;  %v12738_v20 = vcombine.high %v3704_v4, %v3708_v14  ;;  %v4135_v48 = vld [vmem:[#allocation7 + $0x1cc0] sm:$0xff] }
 0x333   :  { %9663 = vmatprep.subr.bf16.mxu0 %v13080_v21  ;;  %v13120_v21 = vcombine.high %v4087_v16, %v4091_v17  ;;  %v4139_v41 = vld [vmem:[#allocation7 + $0x1ce0] sm:$0xff] }
 0x335   :  { %9869 = vmatpush1.bf16.msra.mxu1 %v12697_v31  ;;  %v12737_v31 = vcombine.low %v3704_v4, %v3708_v14  ;;  %v3736_v14 = vld [vmem:[#allocation7 + $0x1048] sm:$0xff] }
 0x336   :  { %9664 = vmatpush1.bf16.msra.mxu0 %v13079_v32  ;;  %9870 = vmatprep.subr.bf16.mxu1 %v12706_v46  ;;  %v13119_v32 = vcombine.low %v4087_v16, %v4091_v17  ;;  %v12746_v46 = vcombine.high %v3712_v59, %v3716_v61  ;;  %v3740_v16 = vld [vmem:[#allocation7 + $0x1068] sm:$0xff] }
 0x337   :  { %9665 = vmatprep.subr.bf16.mxu0 %v13088_v53  ;;  %v14311_v53 = vld [vmem:[#allocation5 + $0x8] sm:$0xff]  ;;  %v12769_v27 = vcombine.low %v3736_v14, %v3740_v16 }
 0x338   :  { %v551_v35 = vrot.slane %v14311_v53, %v14233_v28 }
 0x339   :  { %9871 = vmatpush1.bf16.msra.mxu1 %v12705_v44  ;;  %v563_v44 = vrot.slane %v14311_v53, %v14246_v56 }
 0x33a   :  { %9666 = vmatpush1.bf16.msra.mxu0 %v13087_v45  ;;  %9872 = vmatprep.subr.bf16.mxu1 %v12714_v49  ;;  %v4103_v45 = vld [vmem:[#allocation7 + $0x1bc0] sm:$0xff]  ;;  %v13450_v47 = vadd.f32 %v14252_v15, %v551_v35  ;;  %v3752_v35 = vld [vmem:[#allocation7 + $0x10c8] sm:$0xff] }
 0x33b   :  { %9667 = vmatprep.subr.bf16.mxu0 %v13096_v51  ;;  %v4107_v49 = vld [vmem:[#allocation7 + $0x1be0] sm:$0xff]  ;;  %v12745_v51 = vcombine.low %v3712_v59, %v3716_v61  ;;  %v12770_v59 = vcombine.high %v3736_v14, %v3740_v16 }
 0x33c   :  { %v13136_v55 = vcombine.high %v4103_v45, %v4107_v49  ;;  %v13135_v7 = vcombine.low %v4103_v45, %v4107_v49  ;;  %v4123_v15 = vld [vmem:[#allocation7 + $0x1c60] sm:$0xff] }
 0x33d   :  { %9873 = vmatpush1.bf16.msra.mxu1 %v12713_v58  ;;  %v3728_v58 = vld [vmem:[#allocation7 + $0x1008] sm:$0xff]  ;;  %v4127_v61 = vld [vmem:[#allocation7 + $0x1c80] sm:$0xff] }
 0x33e   :  { %9668 = vmatpush1.bf16.msra.mxu0 %v13095_v0  ;;  %9874 = vmatprep.subr.bf16.mxu1 %v12722_v2  ;;  %v3732_v0 = vld [vmem:[#allocation7 + $0x1028] sm:$0xff]  ;;  %v13453_v2 = vadd.f32 %v14309_v34, %v563_v44  ;;  %v13159_v45 = vcombine.low %v4127_v61, %v4131_v24  ;;  %v4159_v14 = vld [vmem:[#allocation7 + $0x1d80] sm:$0xff] }
 0x33f   :  { %9669 = vmatprep.subr.bf16.mxu0 %v13104_v3  ;;  %v4111_v3 = vld [vmem:[#allocation7 + $0x1c00] sm:$0xff]  ;;  %v12762_v8 = vcombine.high %v3728_v58, %v3732_v0  ;;  %v12761_v4 = vcombine.low %v3728_v58, %v3732_v0  ;;  %v13167_v0 = vcombine.low %v4135_v48, %v4139_v41 }
 0x340   :  { %v13143_v34 = vcombine.low %v4111_v3, %v4115_v6  ;;  %v4163_v16 = vld [vmem:[#allocation7 + $0x1da0] sm:$0xff] }
 0x341   :  { %9875 = vmatpush1.bf16.msra.mxu1 %v12721_v10  ;;  %v3195_v10 = vmax.f32 %v13450_v47, 0.0  ;;  %v4143_v47 = vld [vmem:[#allocation7 + $0x1d00] sm:$0xff] }
 0x342   :  { %9670 = vmatpush1.bf16.msra.mxu0 %v13103_v11  ;;  %9876 = vmatprep.subr.bf16.mxu1 %v12730_v54  ;;  %v13144_v11 = vcombine.high %v4111_v3, %v4115_v6  ;;  %v3198_v54 = vmax.f32 %v13453_v2, 0.0  ;;  %v3768_v6 = vld [vmem:[#allocation7 + $0x1148] sm:$0xff] }
 0x343   :  { %9671 = vmatprep.subr.bf16.mxu0 %v13112_v12  ;;  %v4119_v12 = vld [vmem:[#allocation7 + $0x1c40] sm:$0xff]  ;;  %v14319_v17 = vpack.c.bf16 %v3195_v10, %v3195_v10 }
 0x345   :  { %9877 = vmatpush1.bf16.msra.mxu1 %v12729_v18  ;;  %v13152_v18 = vcombine.high %v4119_v12, %v4123_v15 }
 0x346   :  { %9672 = vmatpush1.bf16.msra.mxu0 %v13111_v22  ;;  %9878 = vmatprep.subr.bf16.mxu1 %v12738_v20  ;;  %v3744_v22 = vld [vmem:[#allocation7 + $0x1088] sm:$0xff] }
 0x347   :  { %9673 = vmatprep.subr.bf16.mxu0 %v13120_v21  ;;  %v3748_v20 = vld [vmem:[#allocation7 + $0x10a8] sm:$0xff]  ;;  %v14321_v21 = vpack.c.bf16 %v3198_v54, %v3198_v54 }
 0x348   :  { %v12777_v44 = vcombine.low %v3744_v22, %v3748_v20 }
 0x349   :  { %9879 = vmatpush1.bf16.msra.mxu1 %v12737_v31  ;;  %v13151_v31 = vcombine.low %v4119_v12, %v4123_v15  ;;  %v3776_v15 = vld [vmem:[#allocation7 + $0x1188] sm:$0xff] }
 0x34a   :  { %9674 = vmatpush1.bf16.msra.mxu0 %v13119_v32  ;;  %9880 = vmatprep.subr.bf16.mxu1 %v12746_v46  ;;  %v12778_v32 = vcombine.high %v3744_v22, %v3748_v20  ;;  %v13160_v46 = vcombine.high %v4127_v61, %v4131_v24  ;;  %v13192_v20 = vcombine.high %v4159_v14, %v4163_v16  ;;  %v3788_v61 = vld [vmem:[#allocation7 + $0x11e8] sm:$0xff]  ;;  %v4167_v24 = vld [vmem:[#allocation7 + $0x1dc0] sm:$0xff] }
 0x34b   :  { %9675 = vmatprep.subr.bf16.mxu0 %v13128_v40  ;;  %v3756_v40 = vld [vmem:[#allocation7 + $0x10e8] sm:$0xff] }
 0x34c   :  { %v12786_v49 = vcombine.high %v3752_v35, %v3756_v40  ;;  %v12785_v58 = vcombine.low %v3752_v35, %v3756_v40  ;;  %v3792_v40 = vld [vmem:[#allocation7 + $0x1208] sm:$0xff] }
 0x34d   :  { %9881 = vmatpush1.bf16.msra.mxu1 %v12745_v51  ;;  %v13168_v51 = vcombine.high %v4135_v48, %v4139_v41  ;;  %v3796_v48 = vld [vmem:[#allocation7 + $0x1228] sm:$0xff]  ;;  %v4175_v41 = vld [vmem:[#allocation7 + $0x1e00] sm:$0xff] }
 0x34e   :  { %9676 = vmatpush1.bf16.msra.mxu0 %v13127_v52  ;;  %9882 = vmatprep.subr.bf16.mxu1 %v12754_v1  ;;  %v3760_v52 = vld [vmem:[#allocation7 + $0x1108] sm:$0xff] }
 0x34f   :  { %9677 = vmatprep.subr.bf16.mxu0 %v13136_v55  ;;  %v3764_v1 = vld [vmem:[#allocation7 + $0x1128] sm:$0xff]  ;;  %v4147_v55 = vld [vmem:[#allocation7 + $0x1d20] sm:$0xff] }
 0x350   :  { %v12794_v2 = vcombine.high %v3760_v52, %v3764_v1  ;;  %v13176_v3 = vcombine.high %v4143_v47, %v4147_v55  ;;  %v12793_v10 = vcombine.low %v3760_v52, %v3764_v1  ;;  %v3800_v1 = vld [vmem:[#allocation7 + $0x1248] sm:$0xff] }
 0x351   :  { %9883 = vmatpush1.bf16.msra.mxu1 %v12753_v42  ;;  %v3772_v42 = vld [vmem:[#allocation7 + $0x1168] sm:$0xff] }
 0x352   :  { %9678 = vmatpush1.bf16.msra.mxu0 %v13135_v7  ;;  %9893 = vmatprep.subr.bf16.mxu1 %v12762_v8  ;;  %v4151_v7 = vld [vmem:[#allocation7 + $0x1d40] sm:$0xff]  ;;  %v12802_v54 = vcombine.high %v3768_v6, %v3772_v42 }
 0x353   :  { %9688 = vmatprep.subr.bf16.mxu0 %v13144_v11  ;;  %v4155_v8 = vld [vmem:[#allocation7 + $0x1d60] sm:$0xff]  ;;  %v13175_v11 = vcombine.low %v4143_v47, %v4147_v55  ;;  %v3804_v47 = vld [vmem:[#allocation7 + $0x1268] sm:$0xff] }
 0x354   :  { %9885 = vmatmul.mubr.bf16.vlgmr.msra.gmra.mrb[20].mxu1 %v14270_v23  ;;  %v13184_v12 = vcombine.high %v4151_v7, %v4155_v8  ;;  %v4183_v55 = vld [vmem:[#allocation7 + $0x1e40] sm:$0xff] }
 0x355   :  { %9680 = vmatmul.mubr.bf16.vlgmr.msra.gmra.mrb[12].mxu0 %v14319_v17  ;;  %9894 = vmatpush1.bf16.msra.mxu1 %v12761_v4  ;;  %v3780_v4 = vld [vmem:[#allocation7 + $0x11a8] sm:$0xff] }
 0x356   :  { %9689 = vmatpush1.bf16.msra.mxu0 %v13143_v34  ;;  %9720 = vmatprep.mubr.bf16.mxu0 %v14321_v21  ;;  %v12801_v34 = vcombine.low %v3768_v6, %v3772_v42  ;;  %v12810_v22 = vcombine.high %v3776_v15, %v3780_v4  ;;  %v3808_v42 = vld [vmem:[#allocation7 + $0x1288] sm:$0xff] }
 0x357   :  { %9925 = vmatprep.mubr.bf16.mxu1 %v14272_v29  ;;  %9690 = vmatprep.subr.bf16.mxu0 %v13152_v18  ;;  %v13183_v18 = vcombine.low %v4151_v7, %v4155_v8  ;;  %v3812_v7 = vld [vmem:[#allocation7 + $0x12a8] sm:$0xff]  ;;  %v4191_v8 = vld [vmem:[#allocation7 + $0x1e80] sm:$0xff] }
 0x358   :  { %9895 = vmatprep.subr.bf16.mxu1 %v12770_v59  ;;  %v3784_v59 = vld [vmem:[#allocation7 + $0x11c8] sm:$0xff] }
 0x359   :  { %9896 = vmatpush1.bf16.msra.mxu1 %v12769_v27  ;;  %v4171_v27 = vld [vmem:[#allocation7 + $0x1de0] sm:$0xff] }
 0x35a   :  { %9691 = vmatpush1.bf16.msra.mxu0 %v13151_v31  ;;  %9897 = vmatprep.subr.bf16.mxu1 %v12778_v32  ;;  %v12809_v31 = vcombine.low %v3776_v15, %v3780_v4  ;;  %v13191_v32 = vcombine.low %v4159_v14, %v4163_v16  ;;  %v13200_v35 = vcombine.high %v4167_v24, %v4171_v27  ;;  %v3816_v4 = vld [vmem:[#allocation7 + $0x12c8] sm:$0xff]  ;;  %v4199_v16 = vld [vmem:[#allocation7 + $0x1ec0] sm:$0xff] }
 0x35b   :  { %9692 = vmatprep.subr.bf16.mxu0 %v13160_v46  ;;  %v12818_v46 = vcombine.high %v3784_v59, %v3788_v61  ;;  %v3820_v14 = vld [vmem:[#allocation7 + $0x12e8] sm:$0xff] }
 0x35d   :  { %9898 = vmatpush1.bf16.msra.mxu1 %v12777_v44  ;;  %v4179_v44 = vld [vmem:[#allocation7 + $0x1e20] sm:$0xff] }
 0x35e   :  { %9693 = vmatpush1.bf16.msra.mxu0 %v13159_v45  ;;  %9899 = vmatprep.subr.bf16.mxu1 %v12786_v49  ;;  %v12817_v45 = vcombine.low %v3784_v59, %v3788_v61  ;;  %v13199_v49 = vcombine.low %v4167_v24, %v4171_v27  ;;  %v13208_v52 = vcombine.high %v4175_v41, %v4179_v44  ;;  %v3824_v61 = vld [vmem:[#allocation7 + $0x1308] sm:$0xff]  ;;  %v4207_v27 = vld [vmem:[#allocation7 + $0x1f00] sm:$0xff] }
 0x35f   :  { %9694 = vmatprep.subr.bf16.mxu0 %v13168_v51  ;;  %v12826_v51 = vcombine.high %v3792_v40, %v3796_v48  ;;  %v3828_v24 = vld [vmem:[#allocation7 + $0x1328] sm:$0xff] }
 0x361   :  { %9900 = vmatpush1.bf16.msra.mxu1 %v12785_v58  ;;  %v4187_v58 = vld [vmem:[#allocation7 + $0x1e60] sm:$0xff] }
 0x362   :  { %9695 = vmatpush1.bf16.msra.mxu0 %v13167_v0  ;;  %9901 = vmatprep.subr.bf16.mxu1 %v12794_v2  ;;  %v12825_v0 = vcombine.low %v3792_v40, %v3796_v48  ;;  %v13207_v2 = vcombine.low %v4175_v41, %v4179_v44  ;;  %v13216_v6 = vcombine.high %v4183_v55, %v4187_v58  ;;  %v3832_v48 = vld [vmem:[#allocation7 + $0x1348] sm:$0xff]  ;;  %v4215_v44 = vld [vmem:[#allocation7 + $0x1f40] sm:$0xff] }
 0x363   :  { %9696 = vmatprep.subr.bf16.mxu0 %v13176_v3  ;;  %v12834_v3 = vcombine.high %v3800_v1, %v3804_v47  ;;  %v3836_v41 = vld [vmem:[#allocation7 + $0x1368] sm:$0xff] }
 0x365   :  { %9902 = vmatpush1.bf16.msra.mxu1 %v12793_v10  ;;  %v4195_v10 = vld [vmem:[#allocation7 + $0x1ea0] sm:$0xff] }
 0x366   :  { %9697 = vmatpush1.bf16.msra.mxu0 %v13175_v11  ;;  %9903 = vmatprep.subr.bf16.mxu1 %v12802_v54  ;;  %v12833_v11 = vcombine.low %v3800_v1, %v3804_v47  ;;  %v13215_v54 = vcombine.low %v4183_v55, %v4187_v58  ;;  %v13224_v15 = vcombine.high %v4191_v8, %v4195_v10  ;;  %v3840_v47 = vld [vmem:[#allocation7 + $0x1388] sm:$0xff]  ;;  %v4223_v58 = vld [vmem:[#allocation7 + $0x1f80] sm:$0xff] }
 0x367   :  { %9698 = vmatprep.subr.bf16.mxu0 %v13184_v12  ;;  %v12842_v12 = vcombine.high %v3808_v42, %v3812_v7  ;;  %v3844_v55 = vld [vmem:[#allocation7 + $0x13a8] sm:$0xff] }
 0x369   :  { %9904 = vmatpush1.bf16.msra.mxu1 %v12801_v34  ;;  %v4203_v34 = vld [vmem:[#allocation7 + $0x1ee0] sm:$0xff] }
 0x36a   :  { %9699 = vmatpush1.bf16.msra.mxu0 %v13183_v18  ;;  %9905 = vmatprep.subr.bf16.mxu1 %v12810_v22  ;;  %v12841_v18 = vcombine.low %v3808_v42, %v3812_v7  ;;  %v13223_v22 = vcombine.low %v4191_v8, %v4195_v10  ;;  %v13232_v59 = vcombine.high %v4199_v16, %v4203_v34  ;;  %v3848_v8 = vld [vmem:[#allocation7 + $0x13c8] sm:$0xff] }
 0x36b   :  { %9700 = vmatprep.subr.bf16.mxu0 %v13192_v20  ;;  %v12850_v20 = vcombine.high %v3816_v4, %v3820_v14  ;;  %v559_v42 = vrot.slane %v14311_v53, %v14260_v38  ;;  %v3852_v10 = vld [vmem:[#allocation7 + $0x13e8] sm:$0xff]  ;;  %v3221_v53 = vld [vmem:[#allocation7 + $0x30] sm:$0xff] }
 0x36d   :  { %9906 = vmatpush1.bf16.msra.mxu1 %v12809_v31  ;;  %v4211_v31 = vld [vmem:[#allocation7 + $0x1f20] sm:$0xff] }
 0x36e   :  { %9701 = vmatpush1.bf16.msra.mxu0 %v13191_v32  ;;  %9907 = vmatprep.subr.bf16.mxu1 %v12818_v46  ;;  %v12849_v32 = vcombine.low %v3816_v4, %v3820_v14  ;;  %v13231_v46 = vcombine.low %v4199_v16, %v4203_v34  ;;  %v13240_v40 = vcombine.high %v4207_v27, %v4211_v31  ;;  %v3856_v34 = vld [vmem:[#allocation7 + $0x1408] sm:$0xff] }
 0x36f   :  { %9702 = vmatprep.subr.bf16.mxu0 %v13200_v35  ;;  %v12858_v35 = vcombine.high %v3824_v61, %v3828_v24  ;;  %v12882_v4 = vcombine.high %v3848_v8, %v3852_v10  ;;  %v13452_v14 = vadd.f32 %v14307_v19, %v559_v42  ;;  %v3225_v19 = vld [vmem:[#allocation7 + $0x50] sm:$0xff] }
 0x371   :  { %9908 = vmatpush1.bf16.msra.mxu1 %v12817_v45  ;;  %v4219_v45 = vld [vmem:[#allocation7 + $0x1f60] sm:$0xff] }
 0x372   :  { %9703 = vmatpush1.bf16.msra.mxu0 %v13199_v49  ;;  %9909 = vmatprep.subr.bf16.mxu1 %v12826_v51  ;;  %v12857_v49 = vcombine.low %v3824_v61, %v3828_v24  ;;  %v13239_v51 = vcombine.low %v4207_v27, %v4211_v31  ;;  %v13248_v1 = vcombine.high %v4215_v44, %v4219_v45  ;;  %v3197_v24 = vmax.f32 %v13452_v14, 0.0  ;;  %v3864_v31 = vld [vmem:[#allocation7 + $0x1448] sm:$0xff] }
 0x373   :  { %9704 = vmatprep.subr.bf16.mxu0 %v13208_v52  ;;  %v12866_v52 = vcombine.high %v3832_v48, %v3836_v41 }
 0x375   :  { %9910 = vmatpush1.bf16.msra.mxu1 %v12825_v0  ;;  %v4227_v0 = vld [vmem:[#allocation7 + $0x1fa0] sm:$0xff] }
 0x376   :  { %9705 = vmatpush1.bf16.msra.mxu0 %v13207_v2  ;;  %9911 = vmatprep.subr.bf16.mxu1 %v12834_v3  ;;  %v12865_v2 = vcombine.low %v3832_v48, %v3836_v41  ;;  %v13247_v3 = vcombine.low %v4215_v44, %v4219_v45  ;;  %v13256_v7 = vcombine.high %v4223_v58, %v4227_v0  ;;  %v3872_v44 = vld [vmem:[#allocation7 + $0x1488] sm:$0xff] }
 0x377   :  { %9706 = vmatprep.subr.bf16.mxu0 %v13216_v6  ;;  %v12874_v6 = vcombine.high %v3840_v47, %v3844_v55  ;;  %v14330_v48 = vpack.c.bf16 %v3197_v24, %v3197_v24  ;;  %v3876_v45 = vld [vmem:[#allocation7 + $0x14a8] sm:$0xff] }
 0x378   :  { %v12905_v42 = vcombine.low %v3872_v44, %v3876_v45 }
 0x379   :  { %9912 = vmatpush1.bf16.msra.mxu1 %v12833_v11  ;;  %v4231_v11 = vld [vmem:[#allocation7 + $0x1fc0] sm:$0xff] }
 0x37a   :  { %9707 = vmatpush1.bf16.msra.mxu0 %v13215_v54  ;;  %9913 = vmatprep.subr.bf16.mxu1 %v12842_v12  ;;  %v4235_v54 = vld [vmem:[#allocation7 + $0x1fe0] sm:$0xff]  ;;  %v12873_v12 = vcombine.low %v3840_v47, %v3844_v55  ;;  %v12906_v55 = vcombine.high %v3872_v44, %v3876_v45  ;;  %v3912_v45 = vld [vmem:[#allocation7 + $0x15c8] sm:$0xff] }
 0x37b   :  { %9708 = vmatprep.subr.bf16.mxu0 %v13224_v15  ;;  %v13255_v15 = vcombine.low %v4223_v58, %v4227_v0  ;;  %v13264_v16 = vcombine.high %v4231_v11, %v4235_v54  ;;  %v3880_v0 = vld [vmem:[#allocation7 + $0x14c8] sm:$0xff] }
 0x37d   :  { %9914 = vmatpush1.bf16.msra.mxu1 %v12841_v18  ;;  %v3860_v18 = vld [vmem:[#allocation7 + $0x1428] sm:$0xff] }
 0x37e   :  { %9709 = vmatpush1.bf16.msra.mxu0 %v13223_v22  ;;  %9915 = vmatprep.subr.bf16.mxu1 %v12850_v20  ;;  %v3217_v22 = vld [vmem:[#allocation7 + $0x10] sm:$0xff]  ;;  %v12881_v20 = vcombine.low %v3848_v8, %v3852_v10  ;;  %v12890_v61 = vcombine.high %v3856_v34, %v3860_v18 }
 0x37f   :  { %9710 = vmatprep.subr.bf16.mxu0 %v13232_v59  ;;  %v13263_v59 = vcombine.low %v4231_v11, %v4235_v54  ;;  %v12252_v27 = vcombine.high %v3217_v22, %v3221_v53  ;;  %v3888_v11 = vld [vmem:[#allocation7 + $0x1508] sm:$0xff] }
 0x380   :  { %v3892_v54 = vld [vmem:[#allocation7 + $0x1528] sm:$0xff] }
 0x381   :  { %9916 = vmatpush1.bf16.msra.mxu1 %v12849_v32  ;;  %v3868_v32 = vld [vmem:[#allocation7 + $0x1468] sm:$0xff] }
 0x382   :  { %9711 = vmatpush1.bf16.msra.mxu0 %v13231_v46  ;;  %9917 = vmatprep.subr.bf16.mxu1 %v12858_v35  ;;  %v12889_v46 = vcombine.low %v3856_v34, %v3860_v18  ;;  %v3229_v35 = vld [vmem:[#allocation7 + $0x70] sm:$0xff]  ;;  %v12898_v41 = vcombine.high %v3864_v31, %v3868_v32  ;;  %v3896_v18 = vld [vmem:[#allocation7 + $0x1548] sm:$0xff] }
 0x383   :  { %9712 = vmatprep.subr.bf16.mxu0 %v13240_v40  ;;  %v12251_v40 = vcombine.low %v3217_v22, %v3221_v53  ;;  %v12259_v47 = vcombine.low %v3225_v19, %v3229_v35  ;;  %v3900_v22 = vld [vmem:[#allocation7 + $0x1568] sm:$0xff]  ;;  %v3257_v53 = vld [vmem:[#allocation7 + $0x150] sm:$0xff] }
 0x384   :  { %v12930_v24 = vcombine.high %v3896_v18, %v3900_v22 }
 0x385   :  { %9918 = vmatpush1.bf16.msra.mxu1 %v12857_v49  ;;  %v12260_v49 = vcombine.high %v3225_v19, %v3229_v35  ;;  %v3269_v19 = vld [vmem:[#allocation7 + $0x1b0] sm:$0xff]  ;;  %v12929_v35 = vcombine.low %v3896_v18, %v3900_v22  ;;  %v3936_v18 = vld [vmem:[#allocation7 + $0x1688] sm:$0xff] }
 0x386   :  { %9713 = vmatpush1.bf16.msra.mxu0 %v13239_v51  ;;  %9919 = vmatprep.subr.bf16.mxu1 %v12866_v52  ;;  %v3233_v51 = vld [vmem:[#allocation7 + $0x90] sm:$0xff]  ;;  %v3940_v22 = vld [vmem:[#allocation7 + $0x16a8] sm:$0xff] }
 0x387   :  { %9714 = vmatprep.subr.bf16.mxu0 %v13248_v1  ;;  %v3237_v52 = vld [vmem:[#allocation7 + $0xb0] sm:$0xff]  ;;  %v12897_v1 = vcombine.low %v3864_v31, %v3868_v32  ;;  %v3904_v31 = vld [vmem:[#allocation7 + $0x1588] sm:$0xff] }
 0x388   :  { %v12268_v58 = vcombine.high %v3233_v51, %v3237_v52  ;;  %v3908_v32 = vld [vmem:[#allocation7 + $0x15a8] sm:$0xff] }
 0x389   :  { %9920 = vmatpush1.bf16.msra.mxu1 %v12865_v2  ;;  %v3884_v2 = vld [vmem:[#allocation7 + $0x14e8] sm:$0xff] }
 0x38a   :  { %9715 = vmatpush1.bf16.msra.mxu0 %v13247_v3  ;;  %9921 = vmatprep.subr.bf16.mxu1 %v12874_v6  ;;  %v3241_v3 = vld [vmem:[#allocation7 + $0xd0] sm:$0xff]  ;;  %v12914_v8 = vcombine.high %v3880_v0, %v3884_v2 }
 0x38b   :  { %9716 = vmatprep.subr.bf16.mxu0 %v13256_v7  ;;  %v3245_v6 = vld [vmem:[#allocation7 + $0xf0] sm:$0xff]  ;;  %v12267_v7 = vcombine.low %v3233_v51, %v3237_v52 }
 0x38c   :  { %v12276_v10 = vcombine.high %v3241_v3, %v3245_v6  ;;  %v12275_v14 = vcombine.low %v3241_v3, %v3245_v6  ;;  %v3273_v51 = vld [vmem:[#allocation7 + $0x1d0] sm:$0xff] }
 0x38d   :  { %9922 = vmatpush1.bf16.msra.mxu1 %v12873_v12  ;;  %v3249_v12 = vld [vmem:[#allocation7 + $0x110] sm:$0xff] }
 0x38e   :  { %9717 = vmatpush1.bf16.msra.mxu0 %v13255_v15  ;;  %9923 = vmatprep.subr.bf16.mxu1 %v12882_v4  ;;  %v3253_v15 = vld [vmem:[#allocation7 + $0x130] sm:$0xff]  ;;  %v12913_v4 = vcombine.low %v3880_v0, %v3884_v2  ;;  %v3920_v0 = vld [vmem:[#allocation7 + $0x1608] sm:$0xff] }
 0x38f   :  { %9718 = vmatprep.subr.bf16.mxu0 %v13264_v16  ;;  %v12922_v16 = vcombine.high %v3888_v11, %v3892_v54  ;;  %v12284_v34 = vcombine.high %v3249_v12, %v3253_v15  ;;  %v3277_v52 = vld [vmem:[#allocation7 + $0x1f0] sm:$0xff]  ;;  %v3924_v2 = vld [vmem:[#allocation7 + $0x1628] sm:$0xff] }
 0x390   :  { %v3281_v3 = vld [vmem:[#allocation7 + $0x210] sm:$0xff] }
 0x391   :  { %9924 = vmatpush1.bf16.msra.mxu1 %v12881_v20  ;;  %v3261_v20 = vld [vmem:[#allocation7 + $0x170] sm:$0xff] }
 0x392   :  { %9719 = vmatpush1.bf16.msra.mxu0 %v13263_v59  ;;  %9934 = vmatprep.subr.bf16.mxu1 %v12890_v61  ;;  %v12921_v59 = vcombine.low %v3888_v11, %v3892_v54  ;;  %v12283_v61 = vcombine.low %v3249_v12, %v3253_v15  ;;  %v3285_v6 = vld [vmem:[#allocation7 + $0x230] sm:$0xff]  ;;  %v3928_v11 = vld [vmem:[#allocation7 + $0x1648] sm:$0xff] }
 0x393   :  { %10057 = vmatprep.subr.bf16.mxu0 %v12252_v27  ;;  %v12292_v27 = vcombine.high %v3257_v53, %v3261_v20  ;;  %v3932_v54 = vld [vmem:[#allocation7 + $0x1668] sm:$0xff]  ;;  %v3289_v12 = vld [vmem:[#allocation7 + $0x250] sm:$0xff] }
 0x394   :  { %9926 = vmatmul.mubr.bf16.vlgmr.msra.gmra.mrb[20].mxu1 %v14285_v43  ;;  %v3293_v15 = vld [vmem:[#allocation7 + $0x270] sm:$0xff] }
 0x395   :  { %9721 = vmatmul.mubr.bf16.vlgmr.msra.gmra.mrb[12].mxu0 %v14330_v48  ;;  %9935 = vmatpush1.bf16.msra.mxu1 %v12889_v46  ;;  %v3265_v46 = vld [vmem:[#allocation7 + $0x190] sm:$0xff] }
 0x396   :  { %9966 = vmatprep.mubr.bf16.mxu1 %v14287_v50  ;;  %10058 = vmatpush1.bf16.msra.mxu0 %v12251_v40  ;;  %v12291_v40 = vcombine.low %v3257_v53, %v3261_v20  ;;  %v12300_v44 = vcombine.high %v3265_v46, %v3269_v19  ;;  %v3297_v53 = vld [vmem:[#allocation7 + $0x290] sm:$0xff] }
 0x397   :  { %10089 = vmatprep.mubr.bf16.mxu0 %v14185_v9  ;;  %9936 = vmatprep.subr.bf16.mxu1 %v12898_v41  ;;  %v12938_v41 = vcombine.high %v3904_v31, %v3908_v32  ;;  %v3301_v20 = vld [vmem:[#allocation7 + $0x2b0] sm:$0xff] }
 0x398   :  { %10059 = vmatprep.subr.bf16.mxu0 %v12260_v49  ;;  %v3916_v49 = vld [vmem:[#allocation7 + $0x15e8] sm:$0xff] }
 0x399   :  { %9937 = vmatpush1.bf16.msra.mxu1 %v12897_v1  ;;  %v12937_v1 = vcombine.low %v3904_v31, %v3908_v32  ;;  %v3944_v31 = vld [vmem:[#allocation7 + $0x16c8] sm:$0xff] }
 0x39a   :  { %10060 = vmatpush1.bf16.msra.mxu0 %v12259_v47  ;;  %9938 = vmatprep.subr.bf16.mxu1 %v12906_v55  ;;  %v12299_v47 = vcombine.low %v3265_v46, %v3269_v19  ;;  %v12946_v55 = vcombine.high %v3912_v45, %v3916_v49  ;;  %v3948_v32 = vld [vmem:[#allocation7 + $0x16e8] sm:$0xff]  ;;  %v3305_v46 = vld [vmem:[#allocation7 + $0x2d0] sm:$0xff] }
 0x39b   :  { %10061 = vmatprep.subr.bf16.mxu0 %v12268_v58  ;;  %v12308_v58 = vcombine.high %v3273_v51, %v3277_v52  ;;  %v3309_v19 = vld [vmem:[#allocation7 + $0x2f0] sm:$0xff] }
 0x39d   :  { %9939 = vmatpush1.bf16.msra.mxu1 %v12905_v42  ;;  %v12945_v42 = vcombine.low %v3912_v45, %v3916_v49  ;;  %v3952_v45 = vld [vmem:[#allocation7 + $0x1708] sm:$0xff] }
 0x39e   :  { %10062 = vmatpush1.bf16.msra.mxu0 %v12267_v7  ;;  %9940 = vmatprep.subr.bf16.mxu1 %v12914_v8  ;;  %v12307_v7 = vcombine.low %v3273_v51, %v3277_v52  ;;  %v12954_v8 = vcombine.high %v3920_v0, %v3924_v2  ;;  %v3956_v49 = vld [vmem:[#allocation7 + $0x1728] sm:$0xff]  ;;  %v3313_v51 = vld [vmem:[#allocation7 + $0x310] sm:$0xff] }
 0x39f   :  { %10063 = vmatprep.subr.bf16.mxu0 %v12276_v10  ;;  %v12316_v10 = vcombine.high %v3281_v3, %v3285_v6  ;;  %v3317_v52 = vld [vmem:[#allocation7 + $0x330] sm:$0xff] }
 0x3a1   :  { %9941 = vmatpush1.bf16.msra.mxu1 %v12913_v4  ;;  %v12953_v4 = vcombine.low %v3920_v0, %v3924_v2  ;;  %v3960_v0 = vld [vmem:[#allocation7 + $0x1748] sm:$0xff] }
 0x3a2   :  { %10064 = vmatpush1.bf16.msra.mxu0 %v12275_v14  ;;  %9942 = vmatprep.subr.bf16.mxu1 %v12922_v16  ;;  %v12315_v14 = vcombine.low %v3281_v3, %v3285_v6  ;;  %v12962_v16 = vcombine.high %v3928_v11, %v3932_v54  ;;  %v3964_v2 = vld [vmem:[#allocation7 + $0x1768] sm:$0xff]  ;;  %v3321_v3 = vld [vmem:[#allocation7 + $0x350] sm:$0xff] }
 0x3a3   :  { %10065 = vmatprep.subr.bf16.mxu0 %v12284_v34  ;;  %v12324_v34 = vcombine.high %v3289_v12, %v3293_v15  ;;  %v3325_v6 = vld [vmem:[#allocation7 + $0x370] sm:$0xff] }
 0x3a5   :  { %9943 = vmatpush1.bf16.msra.mxu1 %v12921_v59  ;;  %v12961_v59 = vcombine.low %v3928_v11, %v3932_v54  ;;  %v3968_v11 = vld [vmem:[#allocation7 + $0x1788] sm:$0xff] }
 0x3a6   :  { %10066 = vmatpush1.bf16.msra.mxu0 %v12283_v61  ;;  %9944 = vmatprep.subr.bf16.mxu1 %v12930_v24  ;;  %v12323_v61 = vcombine.low %v3289_v12, %v3293_v15  ;;  %v12970_v24 = vcombine.high %v3936_v18, %v3940_v22  ;;  %v3972_v54 = vld [vmem:[#allocation7 + $0x17a8] sm:$0xff]  ;;  %v3329_v12 = vld [vmem:[#allocation7 + $0x390] sm:$0xff] }
 0x3a7   :  { %10067 = vmatprep.subr.bf16.mxu0 %v12292_v27  ;;  %v12332_v27 = vcombine.high %v3297_v53, %v3301_v20  ;;  %v3333_v15 = vld [vmem:[#allocation7 + $0x3b0] sm:$0xff] }
 0x3a9   :  { %9945 = vmatpush1.bf16.msra.mxu1 %v12929_v35  ;;  %v12969_v35 = vcombine.low %v3936_v18, %v3940_v22  ;;  %v3976_v18 = vld [vmem:[#allocation7 + $0x17c8] sm:$0xff] }
 0x3aa   :  { %10068 = vmatpush1.bf16.msra.mxu0 %v12291_v40  ;;  %9946 = vmatprep.subr.bf16.mxu1 %v12938_v41  ;;  %v12331_v40 = vcombine.low %v3297_v53, %v3301_v20  ;;  %v12978_v41 = vcombine.high %v3944_v31, %v3948_v32  ;;  %v3980_v22 = vld [vmem:[#allocation7 + $0x17e8] sm:$0xff]  ;;  %v3337_v53 = vld [vmem:[#allocation7 + $0x3d0] sm:$0xff] }
 0x3ab   :  { %10069 = vmatprep.subr.bf16.mxu0 %v12300_v44  ;;  %v12340_v44 = vcombine.high %v3305_v46, %v3309_v19  ;;  %v3341_v20 = vld [vmem:[#allocation7 + $0x3f0] sm:$0xff] }
 0x3ad   :  { %9947 = vmatpush1.bf16.msra.mxu1 %v12937_v1  ;;  %v12977_v1 = vcombine.low %v3944_v31, %v3948_v32  ;;  %v3984_v31 = vld [vmem:[#allocation7 + $0x1808] sm:$0xff] }
 0x3ae   :  { %10070 = vmatpush1.bf16.msra.mxu0 %v12299_v47  ;;  %9948 = vmatprep.subr.bf16.mxu1 %v12946_v55  ;;  %v12339_v47 = vcombine.low %v3305_v46, %v3309_v19  ;;  %v12986_v55 = vcombine.high %v3952_v45, %v3956_v49  ;;  %v3988_v32 = vld [vmem:[#allocation7 + $0x1828] sm:$0xff]  ;;  %v3345_v46 = vld [vmem:[#allocation7 + $0x410] sm:$0xff] }
 0x3af   :  { %10071 = vmatprep.subr.bf16.mxu0 %v12308_v58  ;;  %v12348_v58 = vcombine.high %v3313_v51, %v3317_v52  ;;  %v3349_v19 = vld [vmem:[#allocation7 + $0x430] sm:$0xff] }
 0x3b1   :  { %9949 = vmatpush1.bf16.msra.mxu1 %v12945_v42  ;;  %v12985_v42 = vcombine.low %v3952_v45, %v3956_v49  ;;  %v3992_v45 = vld [vmem:[#allocation7 + $0x1848] sm:$0xff] }
 0x3b2   :  { %10072 = vmatpush1.bf16.msra.mxu0 %v12307_v7  ;;  %9950 = vmatprep.subr.bf16.mxu1 %v12954_v8  ;;  %v12347_v7 = vcombine.low %v3313_v51, %v3317_v52  ;;  %v12994_v8 = vcombine.high %v3960_v0, %v3964_v2  ;;  %v3996_v49 = vld [vmem:[#allocation7 + $0x1868] sm:$0xff]  ;;  %v13017_v51 = vcombine.low %v3984_v31, %v3988_v32  ;;  %v3353_v52 = vld [vmem:[#allocation7 + $0x450] sm:$0xff] }
 0x3b3   :  { %10073 = vmatprep.subr.bf16.mxu0 %v12316_v10  ;;  %v12356_v10 = vcombine.high %v3321_v3, %v3325_v6 }
 0x3b5   :  { %9951 = vmatpush1.bf16.msra.mxu1 %v12953_v4  ;;  %v12993_v4 = vcombine.low %v3960_v0, %v3964_v2  ;;  %v4004_v0 = vld [vmem:[#allocation7 + $0x18a8] sm:$0xff] }
 0x3b6   :  { %10074 = vmatpush1.bf16.msra.mxu0 %v12315_v14  ;;  %9952 = vmatprep.subr.bf16.mxu1 %v12962_v16  ;;  %v12355_v14 = vcombine.low %v3321_v3, %v3325_v6  ;;  %v13002_v16 = vcombine.high %v3968_v11, %v3972_v54  ;;  %v3361_v3 = vld [vmem:[#allocation7 + $0x490] sm:$0xff] }
 0x3b7   :  { %10075 = vmatprep.subr.bf16.mxu0 %v12324_v34  ;;  %v12364_v34 = vcombine.high %v3329_v12, %v3333_v15  ;;  %v3365_v6 = vld [vmem:[#allocation7 + $0x4b0] sm:$0xff] }
 0x3b9   :  { %9953 = vmatpush1.bf16.msra.mxu1 %v12961_v59  ;;  %v13001_v59 = vcombine.low %v3968_v11, %v3972_v54  ;;  %v4008_v11 = vld [vmem:[#allocation7 + $0x18c8] sm:$0xff] }
 0x3ba   :  { %10076 = vmatpush1.bf16.msra.mxu0 %v12323_v61  ;;  %9954 = vmatprep.subr.bf16.mxu1 %v12970_v24  ;;  %v12363_v61 = vcombine.low %v3329_v12, %v3333_v15  ;;  %v13010_v24 = vcombine.high %v3976_v18, %v3980_v22  ;;  %v4012_v54 = vld [vmem:[#allocation7 + $0x18e8] sm:$0xff]  ;;  %v3369_v12 = vld [vmem:[#allocation7 + $0x4d0] sm:$0xff] }
 0x3bb   :  { %10077 = vmatprep.subr.bf16.mxu0 %v12332_v27  ;;  %v12372_v27 = vcombine.high %v3337_v53, %v3341_v20  ;;  %v3373_v15 = vld [vmem:[#allocation7 + $0x4f0] sm:$0xff] }
 0x3bd   :  { %9955 = vmatpush1.bf16.msra.mxu1 %v12969_v35  ;;  %v13009_v35 = vcombine.low %v3976_v18, %v3980_v22  ;;  %v4016_v18 = vld [vmem:[#allocation7 + $0x1908] sm:$0xff] }
 0x3be   :  { %10078 = vmatpush1.bf16.msra.mxu0 %v12331_v40  ;;  %9956 = vmatprep.subr.bf16.mxu1 %v12978_v41  ;;  %v12371_v40 = vcombine.low %v3337_v53, %v3341_v20  ;;  %v13018_v41 = vcombine.high %v3984_v31, %v3988_v32  ;;  %v4020_v22 = vld [vmem:[#allocation7 + $0x1928] sm:$0xff]  ;;  %v3377_v53 = vld [vmem:[#allocation7 + $0x510] sm:$0xff] }
 0x3bf   :  { %10079 = vmatprep.subr.bf16.mxu0 %v12340_v44  ;;  %v12380_v44 = vcombine.high %v3345_v46, %v3349_v19  ;;  %v3381_v20 = vld [vmem:[#allocation7 + $0x530] sm:$0xff]  ;;  %v4024_v31 = vld [vmem:[#allocation7 + $0x1948] sm:$0xff] }
 0x3c0   :  { %v4028_v32 = vld [vmem:[#allocation7 + $0x1968] sm:$0xff] }
 0x3c1   :  { %9957 = vmatpush1.bf16.msra.mxu1 %v12977_v1  ;;  %v3357_v1 = vld [vmem:[#allocation7 + $0x470] sm:$0xff] }
 0x3c2   :  { %10080 = vmatpush1.bf16.msra.mxu0 %v12339_v47  ;;  %9958 = vmatprep.subr.bf16.mxu1 %v12986_v55  ;;  %v12379_v47 = vcombine.low %v3345_v46, %v3349_v19  ;;  %v13026_v55 = vcombine.high %v3992_v45, %v3996_v49  ;;  %v12388_v2 = vcombine.high %v3353_v52, %v3357_v1  ;;  %v3385_v46 = vld [vmem:[#allocation7 + $0x550] sm:$0xff] }
 0x3c3   :  { %10081 = vmatprep.subr.bf16.mxu0 %v12348_v58  ;;  %v4000_v58 = vld [vmem:[#allocation7 + $0x1888] sm:$0xff]  ;;  %v3389_v19 = vld [vmem:[#allocation7 + $0x570] sm:$0xff] }
 0x3c5   :  { %9959 = vmatpush1.bf16.msra.mxu1 %v12985_v42  ;;  %v13025_v42 = vcombine.low %v3992_v45, %v3996_v49  ;;  %v4032_v45 = vld [vmem:[#allocation7 + $0x1988] sm:$0xff] }
 0x3c6   :  { %10082 = vmatpush1.bf16.msra.mxu0 %v12347_v7  ;;  %9960 = vmatprep.subr.bf16.mxu1 %v12994_v8  ;;  %v12387_v7 = vcombine.low %v3353_v52, %v3357_v1  ;;  %v13034_v8 = vcombine.high %v4000_v58, %v4004_v0  ;;  %v4036_v49 = vld [vmem:[#allocation7 + $0x19a8] sm:$0xff]  ;;  %v3397_v52 = vld [vmem:[#allocation7 + $0x5b0] sm:$0xff]  ;;  %v13057_v1 = vcombine.low %v4024_v31, %v4028_v32 }
 0x3c7   :  { %10083 = vmatprep.subr.bf16.mxu0 %v12356_v10  ;;  %v12396_v10 = vcombine.high %v3361_v3, %v3365_v6 }
 0x3c9   :  { %9961 = vmatpush1.bf16.msra.mxu1 %v12993_v4  ;;  %v13033_v4 = vcombine.low %v4000_v58, %v4004_v0  ;;  %v4040_v0 = vld [vmem:[#allocation7 + $0x19c8] sm:$0xff] }
 0x3ca   :  { %10084 = vmatpush1.bf16.msra.mxu0 %v12355_v14  ;;  %9962 = vmatprep.subr.bf16.mxu1 %v13002_v16  ;;  %v12395_v14 = vcombine.low %v3361_v3, %v3365_v6  ;;  %v13042_v16 = vcombine.high %v4008_v11, %v4012_v54  ;;  %v3401_v3 = vld [vmem:[#allocation7 + $0x5d0] sm:$0xff] }
 0x3cb   :  { %10085 = vmatprep.subr.bf16.mxu0 %v12364_v34  ;;  %v12404_v34 = vcombine.high %v3369_v12, %v3373_v15  ;;  %v3405_v6 = vld [vmem:[#allocation7 + $0x5f0] sm:$0xff] }
 0x3cd   :  { %9963 = vmatpush1.bf16.msra.mxu1 %v13001_v59  ;;  %v13041_v59 = vcombine.low %v4008_v11, %v4012_v54  ;;  %v4048_v11 = vld [vmem:[#allocation7 + $0x1a08] sm:$0xff] }
 0x3ce   :  { %10086 = vmatpush1.bf16.msra.mxu0 %v12363_v61  ;;  %9964 = vmatprep.subr.bf16.mxu1 %v13010_v24  ;;  %v12403_v61 = vcombine.low %v3369_v12, %v3373_v15  ;;  %v13050_v24 = vcombine.high %v4016_v18, %v4020_v22  ;;  %v4052_v54 = vld [vmem:[#allocation7 + $0x1a28] sm:$0xff]  ;;  %v3409_v12 = vld [vmem:[#allocation7 + $0x610] sm:$0xff] }
 0x3cf   :  { %10087 = vmatprep.subr.bf16.mxu0 %v12372_v27  ;;  %v12412_v27 = vcombine.high %v3377_v53, %v3381_v20  ;;  %v3413_v15 = vld [vmem:[#allocation7 + $0x630] sm:$0xff] }
 0x3d1   :  { %9965 = vmatpush1.bf16.msra.mxu1 %v13009_v35  ;;  %v13049_v35 = vcombine.low %v4016_v18, %v4020_v22  ;;  %v4056_v18 = vld [vmem:[#allocation7 + $0x1a48] sm:$0xff] }
 0x3d2   :  { %10088 = vmatpush1.bf16.msra.mxu0 %v12371_v40  ;;  %9975 = vmatprep.subr.bf16.mxu1 %v13018_v41  ;;  %v12411_v40 = vcombine.low %v3377_v53, %v3381_v20  ;;  %v13058_v41 = vcombine.high %v4024_v31, %v4028_v32  ;;  %v4060_v22 = vld [vmem:[#allocation7 + $0x1a68] sm:$0xff]  ;;  %v3417_v53 = vld [vmem:[#allocation7 + $0x650] sm:$0xff] }
 0x3d3   :  { %10098 = vmatprep.subr.bf16.mxu0 %v12380_v44  ;;  %v12420_v44 = vcombine.high %v3385_v46, %v3389_v19  ;;  %v3421_v20 = vld [vmem:[#allocation7 + $0x670] sm:$0xff]  ;;  %v4064_v31 = vld [vmem:[#allocation7 + $0x1a88] sm:$0xff] }
 0x3d4   :  { %9967 = vmatmul.mubr.bf16.vlgmr.msra.gmra.mrb[20].mxu1 %v14299_v63  ;;  %v4068_v32 = vld [vmem:[#allocation7 + $0x1aa8] sm:$0xff] }
 0x3d5   :  { %10090 = vmatmul.mubr.bf16.vlgmr.msra.gmra.mrb[16].mxu0 %v14194_v37  ;;  %9976 = vmatpush1.bf16.msra.mxu1 %v13017_v51  ;;  %v3393_v51 = vld [vmem:[#allocation7 + $0x590] sm:$0xff] }
 0x3d6   :  { %10007 = vmatprep.mubr.bf16.mxu1 %v14301_v5  ;;  %10099 = vmatpush1.bf16.msra.mxu0 %v12379_v47  ;;  %v12419_v47 = vcombine.low %v3385_v46, %v3389_v19  ;;  %v12428_v58 = vcombine.high %v3393_v51, %v3397_v52  ;;  %v3425_v46 = vld [vmem:[#allocation7 + $0x690] sm:$0xff] }
 0x3d7   :  { %10130 = vmatprep.mubr.bf16.mxu0 %v14221_v13  ;;  %9977 = vmatprep.subr.bf16.mxu1 %v13026_v55  ;;  %v13066_v55 = vcombine.high %v4032_v45, %v4036_v49  ;;  %v3429_v19 = vld [vmem:[#allocation7 + $0x6b0] sm:$0xff] }
 0x3d8   :  { %10100 = vmatprep.subr.bf16.mxu0 %v12388_v2  ;;  %v4044_v2 = vld [vmem:[#allocation7 + $0x19e8] sm:$0xff] }
 0x3d9   :  { %9978 = vmatpush1.bf16.msra.mxu1 %v13025_v42  ;;  %v13065_v42 = vcombine.low %v4032_v45, %v4036_v49  ;;  %v4072_v45 = vld [vmem:[#allocation7 + $0x1ac8] sm:$0xff] }
 0x3da   :  { %10101 = vmatpush1.bf16.msra.mxu0 %v12387_v7  ;;  %9979 = vmatprep.subr.bf16.mxu1 %v13034_v8  ;;  %v12427_v7 = vcombine.low %v3393_v51, %v3397_v52  ;;  %v13074_v8 = vcombine.high %v4040_v0, %v4044_v2  ;;  %v4076_v49 = vld [vmem:[#allocation7 + $0x1ae8] sm:$0xff]  ;;  %v3433_v51 = vld [vmem:[#allocation7 + $0x6d0] sm:$0xff] }
 0x3db   :  { %10102 = vmatprep.subr.bf16.mxu0 %v12396_v10  ;;  %v12436_v10 = vcombine.high %v3401_v3, %v3405_v6  ;;  %v3437_v52 = vld [vmem:[#allocation7 + $0x6f0] sm:$0xff] }
 0x3dd   :  { %9980 = vmatpush1.bf16.msra.mxu1 %v13033_v4  ;;  %v13073_v4 = vcombine.low %v4040_v0, %v4044_v2  ;;  %v4080_v0 = vld [vmem:[#allocation7 + $0x1b08] sm:$0xff] }
 0x3de   :  { %10103 = vmatpush1.bf16.msra.mxu0 %v12395_v14  ;;  %9981 = vmatprep.subr.bf16.mxu1 %v13042_v16  ;;  %v12435_v14 = vcombine.low %v3401_v3, %v3405_v6  ;;  %v13082_v16 = vcombine.high %v4048_v11, %v4052_v54  ;;  %v4084_v2 = vld [vmem:[#allocation7 + $0x1b28] sm:$0xff]  ;;  %v3441_v3 = vld [vmem:[#allocation7 + $0x710] sm:$0xff] }
 0x3df   :  { %10104 = vmatprep.subr.bf16.mxu0 %v12404_v34  ;;  %v12444_v34 = vcombine.high %v3409_v12, %v3413_v15  ;;  %v3445_v6 = vld [vmem:[#allocation7 + $0x730] sm:$0xff] }
 0x3e1   :  { %9982 = vmatpush1.bf16.msra.mxu1 %v13041_v59  ;;  %v13081_v59 = vcombine.low %v4048_v11, %v4052_v54  ;;  %v4088_v11 = vld [vmem:[#allocation7 + $0x1b48] sm:$0xff] }
 0x3e2   :  { %10105 = vmatpush1.bf16.msra.mxu0 %v12403_v61  ;;  %9983 = vmatprep.subr.bf16.mxu1 %v13050_v24  ;;  %v12443_v61 = vcombine.low %v3409_v12, %v3413_v15  ;;  %v13090_v24 = vcombine.high %v4056_v18, %v4060_v22  ;;  %v4092_v54 = vld [vmem:[#allocation7 + $0x1b68] sm:$0xff]  ;;  %v3449_v12 = vld [vmem:[#allocation7 + $0x750] sm:$0xff] }
 0x3e3   :  { %10106 = vmatprep.subr.bf16.mxu0 %v12412_v27  ;;  %v12452_v27 = vcombine.high %v3417_v53, %v3421_v20  ;;  %v3453_v15 = vld [vmem:[#allocation7 + $0x770] sm:$0xff] }
 0x3e5   :  { %9984 = vmatpush1.bf16.msra.mxu1 %v13049_v35  ;;  %v13089_v35 = vcombine.low %v4056_v18, %v4060_v22  ;;  %v4096_v18 = vld [vmem:[#allocation7 + $0x1b88] sm:$0xff] }
 0x3e6   :  { %10107 = vmatpush1.bf16.msra.mxu0 %v12411_v40  ;;  %9985 = vmatprep.subr.bf16.mxu1 %v13058_v41  ;;  %v12451_v40 = vcombine.low %v3417_v53, %v3421_v20  ;;  %v13098_v41 = vcombine.high %v4064_v31, %v4068_v32  ;;  %v4100_v22 = vld [vmem:[#allocation7 + $0x1ba8] sm:$0xff]  ;;  %v3457_v53 = vld [vmem:[#allocation7 + $0x790] sm:$0xff] }
 0x3e7   :  { %10108 = vmatprep.subr.bf16.mxu0 %v12420_v44  ;;  %v12460_v44 = vcombine.high %v3425_v46, %v3429_v19  ;;  %v3461_v20 = vld [vmem:[#allocation7 + $0x7b0] sm:$0xff] }
 0x3e9   :  { %9986 = vmatpush1.bf16.msra.mxu1 %v13057_v1  ;;  %v13097_v1 = vcombine.low %v4064_v31, %v4068_v32  ;;  %v4104_v31 = vld [vmem:[#allocation7 + $0x1bc8] sm:$0xff] }
 0x3ea   :  { %10109 = vmatpush1.bf16.msra.mxu0 %v12419_v47  ;;  %9987 = vmatprep.subr.bf16.mxu1 %v13066_v55  ;;  %v12459_v47 = vcombine.low %v3425_v46, %v3429_v19  ;;  %v13106_v55 = vcombine.high %v4072_v45, %v4076_v49  ;;  %v4108_v32 = vld [vmem:[#allocation7 + $0x1be8] sm:$0xff]  ;;  %v3465_v46 = vld [vmem:[#allocation7 + $0x7d0] sm:$0xff] }
 0x3eb   :  { %10110 = vmatprep.subr.bf16.mxu0 %v12428_v58  ;;  %v12468_v58 = vcombine.high %v3433_v51, %v3437_v52  ;;  %v3469_v19 = vld [vmem:[#allocation7 + $0x7f0] sm:$0xff] }
 0x3ed   :  { %9988 = vmatpush1.bf16.msra.mxu1 %v13065_v42  ;;  %v13105_v42 = vcombine.low %v4072_v45, %v4076_v49  ;;  %v4112_v45 = vld [vmem:[#allocation7 + $0x1c08] sm:$0xff] }
 0x3ee   :  { %10111 = vmatpush1.bf16.msra.mxu0 %v12427_v7  ;;  %9989 = vmatprep.subr.bf16.mxu1 %v13074_v8  ;;  %v12467_v7 = vcombine.low %v3433_v51, %v3437_v52  ;;  %v13114_v8 = vcombine.high %v4080_v0, %v4084_v2  ;;  %v4116_v49 = vld [vmem:[#allocation7 + $0x1c28] sm:$0xff]  ;;  %v3473_v51 = vld [vmem:[#allocation7 + $0x810] sm:$0xff] }
 0x3ef   :  { %10112 = vmatprep.subr.bf16.mxu0 %v12436_v10  ;;  %v12476_v10 = vcombine.high %v3441_v3, %v3445_v6  ;;  %v3477_v52 = vld [vmem:[#allocation7 + $0x830] sm:$0xff] }
 0x3f1   :  { %9990 = vmatpush1.bf16.msra.mxu1 %v13073_v4  ;;  %v13113_v4 = vcombine.low %v4080_v0, %v4084_v2  ;;  %v4120_v0 = vld [vmem:[#allocation7 + $0x1c48] sm:$0xff] }
 0x3f2   :  { %10113 = vmatpush1.bf16.msra.mxu0 %v12435_v14  ;;  %9991 = vmatprep.subr.bf16.mxu1 %v13082_v16  ;;  %v12475_v14 = vcombine.low %v3441_v3, %v3445_v6  ;;  %v13122_v16 = vcombine.high %v4088_v11, %v4092_v54  ;;  %v4124_v2 = vld [vmem:[#allocation7 + $0x1c68] sm:$0xff]  ;;  %v13145_v3 = vcombine.low %v4112_v45, %v4116_v49  ;;  %v3481_v6 = vld [vmem:[#allocation7 + $0x850] sm:$0xff] }
 0x3f3   :  { %10114 = vmatprep.subr.bf16.mxu0 %v12444_v34  ;;  %v12484_v34 = vcombine.high %v3449_v12, %v3453_v15 }
 0x3f5   :  { %9992 = vmatpush1.bf16.msra.mxu1 %v13081_v59  ;;  %v13121_v59 = vcombine.low %v4088_v11, %v4092_v54  ;;  %v4132_v11 = vld [vmem:[#allocation7 + $0x1ca8] sm:$0xff] }
 0x3f6   :  { %10115 = vmatpush1.bf16.msra.mxu0 %v12443_v61  ;;  %9993 = vmatprep.subr.bf16.mxu1 %v13090_v24  ;;  %v12483_v61 = vcombine.low %v3449_v12, %v3453_v15  ;;  %v13130_v24 = vcombine.high %v4096_v18, %v4100_v22  ;;  %v3489_v12 = vld [vmem:[#allocation7 + $0x890] sm:$0xff] }
 0x3f7   :  { %10116 = vmatprep.subr.bf16.mxu0 %v12452_v27  ;;  %v12492_v27 = vcombine.high %v3457_v53, %v3461_v20  ;;  %v3493_v15 = vld [vmem:[#allocation7 + $0x8b0] sm:$0xff] }
 0x3f9   :  { %9994 = vmatpush1.bf16.msra.mxu1 %v13089_v35  ;;  %v13129_v35 = vcombine.low %v4096_v18, %v4100_v22  ;;  %v4136_v18 = vld [vmem:[#allocation7 + $0x1cc8] sm:$0xff] }
 0x3fa   :  { %10117 = vmatpush1.bf16.msra.mxu0 %v12451_v40  ;;  %9995 = vmatprep.subr.bf16.mxu1 %v13098_v41  ;;  %v12491_v40 = vcombine.low %v3457_v53, %v3461_v20  ;;  %v13138_v41 = vcombine.high %v4104_v31, %v4108_v32  ;;  %v4140_v22 = vld [vmem:[#allocation7 + $0x1ce8] sm:$0xff]  ;;  %v3497_v53 = vld [vmem:[#allocation7 + $0x8d0] sm:$0xff] }
 0x3fb   :  { %10118 = vmatprep.subr.bf16.mxu0 %v12460_v44  ;;  %v12500_v44 = vcombine.high %v3465_v46, %v3469_v19  ;;  %v3501_v20 = vld [vmem:[#allocation7 + $0x8f0] sm:$0xff] }
 0x3fd   :  { %9996 = vmatpush1.bf16.msra.mxu1 %v13097_v1  ;;  %v13137_v1 = vcombine.low %v4104_v31, %v4108_v32  ;;  %v4144_v31 = vld [vmem:[#allocation7 + $0x1d08] sm:$0xff] }
 0x3fe   :  { %10119 = vmatpush1.bf16.msra.mxu0 %v12459_v47  ;;  %9997 = vmatprep.subr.bf16.mxu1 %v13106_v55  ;;  %v12499_v47 = vcombine.low %v3465_v46, %v3469_v19  ;;  %v13146_v55 = vcombine.high %v4112_v45, %v4116_v49  ;;  %v4148_v32 = vld [vmem:[#allocation7 + $0x1d28] sm:$0xff]  ;;  %v3505_v46 = vld [vmem:[#allocation7 + $0x910] sm:$0xff] }
 0x3ff   :  { %10120 = vmatprep.subr.bf16.mxu0 %v12468_v58  ;;  %v12508_v58 = vcombine.high %v3473_v51, %v3477_v52  ;;  %v3509_v19 = vld [vmem:[#allocation7 + $0x930] sm:$0xff]  ;;  %v4152_v45 = vld [vmem:[#allocation7 + $0x1d48] sm:$0xff] }
 0x400   :  { %v4156_v49 = vld [vmem:[#allocation7 + $0x1d68] sm:$0xff] }
 0x401   :  { %9998 = vmatpush1.bf16.msra.mxu1 %v13105_v42  ;;  %v3485_v42 = vld [vmem:[#allocation7 + $0x870] sm:$0xff] }
 0x402   :  { %10121 = vmatpush1.bf16.msra.mxu0 %v12467_v7  ;;  %9999 = vmatprep.subr.bf16.mxu1 %v13114_v8  ;;  %v12507_v7 = vcombine.low %v3473_v51, %v3477_v52  ;;  %v13154_v8 = vcombine.high %v4120_v0, %v4124_v2  ;;  %v12516_v54 = vcombine.high %v3481_v6, %v3485_v42  ;;  %v3513_v51 = vld [vmem:[#allocation7 + $0x950] sm:$0xff] }
 0x403   :  { %10122 = vmatprep.subr.bf16.mxu0 %v12476_v10  ;;  %v4128_v10 = vld [vmem:[#allocation7 + $0x1c88] sm:$0xff]  ;;  %v3517_v52 = vld [vmem:[#allocation7 + $0x970] sm:$0xff] }
 0x405   :  { %10000 = vmatpush1.bf16.msra.mxu1 %v13113_v4  ;;  %v13153_v4 = vcombine.low %v4120_v0, %v4124_v2  ;;  %v4160_v0 = vld [vmem:[#allocation7 + $0x1d88] sm:$0xff] }
 0x406   :  { %10123 = vmatpush1.bf16.msra.mxu0 %v12475_v14  ;;  %10001 = vmatprep.subr.bf16.mxu1 %v13122_v16  ;;  %v12515_v14 = vcombine.low %v3481_v6, %v3485_v42  ;;  %v13162_v16 = vcombine.high %v4128_v10, %v4132_v11  ;;  %v4164_v2 = vld [vmem:[#allocation7 + $0x1da8] sm:$0xff]  ;;  %v3525_v6 = vld [vmem:[#allocation7 + $0x9b0] sm:$0xff]  ;;  %v13185_v42 = vcombine.low %v4152_v45, %v4156_v49 }
 0x407   :  { %10124 = vmatprep.subr.bf16.mxu0 %v12484_v34  ;;  %v12524_v34 = vcombine.high %v3489_v12, %v3493_v15 }
 0x409   :  { %10002 = vmatpush1.bf16.msra.mxu1 %v13121_v59  ;;  %v13161_v59 = vcombine.low %v4128_v10, %v4132_v11  ;;  %v4168_v11 = vld [vmem:[#allocation7 + $0x1dc8] sm:$0xff] }
 0x40a   :  { %10125 = vmatpush1.bf16.msra.mxu0 %v12483_v61  ;;  %10003 = vmatprep.subr.bf16.mxu1 %v13130_v24  ;;  %v12523_v61 = vcombine.low %v3489_v12, %v3493_v15  ;;  %v13170_v24 = vcombine.high %v4136_v18, %v4140_v22  ;;  %v3529_v12 = vld [vmem:[#allocation7 + $0x9d0] sm:$0xff] }
 0x40b   :  { %10126 = vmatprep.subr.bf16.mxu0 %v12492_v27  ;;  %v12532_v27 = vcombine.high %v3497_v53, %v3501_v20  ;;  %v3533_v15 = vld [vmem:[#allocation7 + $0x9f0] sm:$0xff] }
 0x40d   :  { %10004 = vmatpush1.bf16.msra.mxu1 %v13129_v35  ;;  %v13169_v35 = vcombine.low %v4136_v18, %v4140_v22  ;;  %v4176_v18 = vld [vmem:[#allocation7 + $0x1e08] sm:$0xff] }
 0x40e   :  { %10127 = vmatpush1.bf16.msra.mxu0 %v12491_v40  ;;  %10005 = vmatprep.subr.bf16.mxu1 %v13138_v41  ;;  %v12531_v40 = vcombine.low %v3497_v53, %v3501_v20  ;;  %v13178_v41 = vcombine.high %v4144_v31, %v4148_v32  ;;  %v4180_v22 = vld [vmem:[#allocation7 + $0x1e28] sm:$0xff]  ;;  %v3537_v53 = vld [vmem:[#allocation7 + $0xa10] sm:$0xff] }
 0x40f   :  { %10128 = vmatprep.subr.bf16.mxu0 %v12500_v44  ;;  %v12540_v44 = vcombine.high %v3505_v46, %v3509_v19  ;;  %v3541_v20 = vld [vmem:[#allocation7 + $0xa30] sm:$0xff] }
 0x411   :  { %10006 = vmatpush1.bf16.msra.mxu1 %v13137_v1  ;;  %v13177_v1 = vcombine.low %v4144_v31, %v4148_v32  ;;  %v4184_v31 = vld [vmem:[#allocation7 + $0x1e48] sm:$0xff] }
 0x412   :  { %10129 = vmatpush1.bf16.msra.mxu0 %v12499_v47  ;;  %10016 = vmatprep.subr.bf16.mxu1 %v13146_v55  ;;  %v12539_v47 = vcombine.low %v3505_v46, %v3509_v19  ;;  %v13186_v55 = vcombine.high %v4152_v45, %v4156_v49  ;;  %v4188_v32 = vld [vmem:[#allocation7 + $0x1e68] sm:$0xff]  ;;  %v3545_v46 = vld [vmem:[#allocation7 + $0xa50] sm:$0xff] }
 0x413   :  { %10139 = vmatprep.subr.bf16.mxu0 %v12508_v58  ;;  %v12548_v58 = vcombine.high %v3513_v51, %v3517_v52  ;;  %v3549_v19 = vld [vmem:[#allocation7 + $0xa70] sm:$0xff]  ;;  %v4192_v45 = vld [vmem:[#allocation7 + $0x1e88] sm:$0xff] }
 0x414   :  { %10008 = vmatmul.mubr.bf16.vlgmr.msra.gmra.mrb[20].mxu1 %v14319_v17  ;;  %v4196_v49 = vld [vmem:[#allocation7 + $0x1ea8] sm:$0xff] }
 0x415   :  { %10131 = vmatmul.mubr.bf16.vlgmr.msra.gmra.mrb[16].mxu0 %v14224_v25  ;;  %10017 = vmatpush1.bf16.msra.mxu1 %v13145_v3  ;;  %v3521_v3 = vld [vmem:[#allocation7 + $0x990] sm:$0xff] }
 0x416   :  { %10048 = vmatprep.mubr.bf16.mxu1 %v14321_v21  ;;  %10140 = vmatpush1.bf16.msra.mxu0 %v12507_v7  ;;  %v12547_v7 = vcombine.low %v3513_v51, %v3517_v52  ;;  %v12556_v10 = vcombine.high %v3521_v3, %v3525_v6  ;;  %v3553_v51 = vld [vmem:[#allocation7 + $0xa90] sm:$0xff] }
 0x417   :  { %10171 = vmatprep.mubr.bf16.mxu0 %v14226_v57  ;;  %10018 = vmatprep.subr.bf16.mxu1 %v13154_v8  ;;  %v13194_v8 = vcombine.high %v4160_v0, %v4164_v2  ;;  %v3557_v52 = vld [vmem:[#allocation7 + $0xab0] sm:$0xff] }
 0x418   :  { %10141 = vmatprep.subr.bf16.mxu0 %v12516_v54  ;;  %v4172_v54 = vld [vmem:[#allocation7 + $0x1de8] sm:$0xff] }
 0x419   :  { %10019 = vmatpush1.bf16.msra.mxu1 %v13153_v4  ;;  %v13193_v4 = vcombine.low %v4160_v0, %v4164_v2  ;;  %v4200_v0 = vld [vmem:[#allocation7 + $0x1ec8] sm:$0xff] }
 0x41a   :  { %10142 = vmatpush1.bf16.msra.mxu0 %v12515_v14  ;;  %10020 = vmatprep.subr.bf16.mxu1 %v13162_v16  ;;  %v12555_v14 = vcombine.low %v3521_v3, %v3525_v6  ;;  %v13202_v16 = vcombine.high %v4168_v11, %v4172_v54  ;;  %v4204_v2 = vld [vmem:[#allocation7 + $0x1ee8] sm:$0xff]  ;;  %v3561_v3 = vld [vmem:[#allocation7 + $0xad0] sm:$0xff] }
 0x41b   :  { %10143 = vmatprep.subr.bf16.mxu0 %v12524_v34  ;;  %v12564_v34 = vcombine.high %v3529_v12, %v3533_v15  ;;  %v3565_v6 = vld [vmem:[#allocation7 + $0xaf0] sm:$0xff] }
 0x41d   :  { %10021 = vmatpush1.bf16.msra.mxu1 %v13161_v59  ;;  %v13201_v59 = vcombine.low %v4168_v11, %v4172_v54  ;;  %v4208_v11 = vld [vmem:[#allocation7 + $0x1f08] sm:$0xff] }
 0x41e   :  { %10144 = vmatpush1.bf16.msra.mxu0 %v12523_v61  ;;  %10022 = vmatprep.subr.bf16.mxu1 %v13170_v24  ;;  %v12563_v61 = vcombine.low %v3529_v12, %v3533_v15  ;;  %v13210_v24 = vcombine.high %v4176_v18, %v4180_v22  ;;  %v4212_v54 = vld [vmem:[#allocation7 + $0x1f28] sm:$0xff]  ;;  %v3569_v12 = vld [vmem:[#allocation7 + $0xb10] sm:$0xff] }
 0x41f   :  { %10145 = vmatprep.subr.bf16.mxu0 %v12532_v27  ;;  %v12572_v27 = vcombine.high %v3537_v53, %v3541_v20  ;;  %v3573_v15 = vld [vmem:[#allocation7 + $0xb30] sm:$0xff] }
 0x421   :  { %10023 = vmatpush1.bf16.msra.mxu1 %v13169_v35  ;;  %v13209_v35 = vcombine.low %v4176_v18, %v4180_v22  ;;  %v4216_v18 = vld [vmem:[#allocation7 + $0x1f48] sm:$0xff] }
 0x422   :  { %10146 = vmatpush1.bf16.msra.mxu0 %v12531_v40  ;;  %10024 = vmatprep.subr.bf16.mxu1 %v13178_v41  ;;  %v12571_v40 = vcombine.low %v3537_v53, %v3541_v20  ;;  %v13218_v41 = vcombine.high %v4184_v31, %v4188_v32  ;;  %v4220_v22 = vld [vmem:[#allocation7 + $0x1f68] sm:$0xff]  ;;  %v3577_v53 = vld [vmem:[#allocation7 + $0xb50] sm:$0xff] }
 0x423   :  { %10147 = vmatprep.subr.bf16.mxu0 %v12540_v44  ;;  %v12580_v44 = vcombine.high %v3545_v46, %v3549_v19  ;;  %v3581_v20 = vld [vmem:[#allocation7 + $0xb70] sm:$0xff] }
 0x425   :  { %10025 = vmatpush1.bf16.msra.mxu1 %v13177_v1  ;;  %v13217_v1 = vcombine.low %v4184_v31, %v4188_v32  ;;  %v4224_v31 = vld [vmem:[#allocation7 + $0x1f88] sm:$0xff] }
 0x426   :  { %10148 = vmatpush1.bf16.msra.mxu0 %v12539_v47  ;;  %10026 = vmatprep.subr.bf16.mxu1 %v13186_v55  ;;  %v12579_v47 = vcombine.low %v3545_v46, %v3549_v19  ;;  %v13226_v55 = vcombine.high %v4192_v45, %v4196_v49  ;;  %v4228_v32 = vld [vmem:[#allocation7 + $0x1fa8] sm:$0xff]  ;;  %v3585_v46 = vld [vmem:[#allocation7 + $0xb90] sm:$0xff] }
 0x427   :  { %10149 = vmatprep.subr.bf16.mxu0 %v12548_v58  ;;  %v12588_v58 = vcombine.high %v3553_v51, %v3557_v52  ;;  %v3589_v19 = vld [vmem:[#allocation7 + $0xbb0] sm:$0xff] }
 0x429   :  { %10027 = vmatpush1.bf16.msra.mxu1 %v13185_v42  ;;  %v13225_v42 = vcombine.low %v4192_v45, %v4196_v49  ;;  %v4232_v45 = vld [vmem:[#allocation7 + $0x1fc8] sm:$0xff] }
 0x42a   :  { %10150 = vmatpush1.bf16.msra.mxu0 %v12547_v7  ;;  %10028 = vmatprep.subr.bf16.mxu1 %v13194_v8  ;;  %v12587_v7 = vcombine.low %v3553_v51, %v3557_v52  ;;  %v13234_v8 = vcombine.high %v4200_v0, %v4204_v2  ;;  %v4236_v49 = vld [vmem:[#allocation7 + $0x1fe8] sm:$0xff]  ;;  %v3593_v51 = vld [vmem:[#allocation7 + $0xbd0] sm:$0xff] }
 0x42b   :  { %10151 = vmatprep.subr.bf16.mxu0 %v12556_v10  ;;  %v12596_v10 = vcombine.high %v3561_v3, %v3565_v6  ;;  %v3597_v52 = vld [vmem:[#allocation7 + $0xbf0] sm:$0xff] }
 0x42d   :  { %10029 = vmatpush1.bf16.msra.mxu1 %v13193_v4  ;;  %v13233_v4 = vcombine.low %v4200_v0, %v4204_v2  ;;  %v3218_v0 = vld [vmem:[#allocation7 + $0x18] sm:$0xff] }
 0x42e   :  { %10152 = vmatpush1.bf16.msra.mxu0 %v12555_v14  ;;  %10030 = vmatprep.subr.bf16.mxu1 %v13202_v16  ;;  %v12595_v14 = vcombine.low %v3561_v3, %v3565_v6  ;;  %v13242_v16 = vcombine.high %v4208_v11, %v4212_v54  ;;  %v3222_v2 = vld [vmem:[#allocation7 + $0x38] sm:$0xff]  ;;  %v3601_v3 = vld [vmem:[#allocation7 + $0xc10] sm:$0xff] }
 0x42f   :  { %10153 = vmatprep.subr.bf16.mxu0 %v12564_v34  ;;  %v12604_v34 = vcombine.high %v3569_v12, %v3573_v15  ;;  %v3605_v6 = vld [vmem:[#allocation7 + $0xc30] sm:$0xff] }
 0x431   :  { %10031 = vmatpush1.bf16.msra.mxu1 %v13201_v59  ;;  %v13241_v59 = vcombine.low %v4208_v11, %v4212_v54  ;;  %v3609_v11 = vld [vmem:[#allocation7 + $0xc50] sm:$0xff] }
 0x432   :  { %10154 = vmatpush1.bf16.msra.mxu0 %v12563_v61  ;;  %10032 = vmatprep.subr.bf16.mxu1 %v13210_v24  ;;  %v12603_v61 = vcombine.low %v3569_v12, %v3573_v15  ;;  %v13250_v24 = vcombine.high %v4216_v18, %v4220_v22  ;;  %v3613_v54 = vld [vmem:[#allocation7 + $0xc70] sm:$0xff]  ;;  %v12253_v12 = vcombine.low %v3218_v0, %v3222_v2  ;;  %v3226_v15 = vld [vmem:[#allocation7 + $0x58] sm:$0xff] }
 0x433   :  { %10155 = vmatprep.subr.bf16.mxu0 %v12572_v27  ;;  %v12612_v27 = vcombine.high %v3577_v53, %v3581_v20 }
 0x435   :  { %10033 = vmatpush1.bf16.msra.mxu1 %v13209_v35  ;;  %v13249_v35 = vcombine.low %v4216_v18, %v4220_v22  ;;  %v3238_v18 = vld [vmem:[#allocation7 + $0xb8] sm:$0xff] }
 0x436   :  { %10156 = vmatpush1.bf16.msra.mxu0 %v12571_v40  ;;  %10034 = vmatprep.subr.bf16.mxu1 %v13218_v41  ;;  %v12611_v40 = vcombine.low %v3577_v53, %v3581_v20  ;;  %v13258_v41 = vcombine.high %v4224_v31, %v4228_v32  ;;  %v3617_v53 = vld [vmem:[#allocation7 + $0xc90] sm:$0xff] }
 0x437   :  { %10157 = vmatprep.subr.bf16.mxu0 %v12580_v44  ;;  %v12620_v44 = vcombine.high %v3585_v46, %v3589_v19  ;;  %v3621_v20 = vld [vmem:[#allocation7 + $0xcb0] sm:$0xff] }
 0x439   :  { %10035 = vmatpush1.bf16.msra.mxu1 %v13217_v1  ;;  %v13257_v1 = vcombine.low %v4224_v31, %v4228_v32  ;;  %v3242_v31 = vld [vmem:[#allocation7 + $0xd8] sm:$0xff] }
 0x43a   :  { %10158 = vmatpush1.bf16.msra.mxu0 %v12579_v47  ;;  %10036 = vmatprep.subr.bf16.mxu1 %v13226_v55  ;;  %v12619_v47 = vcombine.low %v3585_v46, %v3589_v19  ;;  %v13266_v55 = vcombine.high %v4232_v45, %v4236_v49  ;;  %v3246_v32 = vld [vmem:[#allocation7 + $0xf8] sm:$0xff]  ;;  %v3625_v46 = vld [vmem:[#allocation7 + $0xcd0] sm:$0xff] }
 0x43b   :  { %10159 = vmatprep.subr.bf16.mxu0 %v12588_v58  ;;  %v12628_v58 = vcombine.high %v3593_v51, %v3597_v52  ;;  %v3629_v19 = vld [vmem:[#allocation7 + $0xcf0] sm:$0xff] }
 0x43d   :  { %10037 = vmatpush1.bf16.msra.mxu1 %v13225_v42  ;;  %v13265_v42 = vcombine.low %v4232_v45, %v4236_v49  ;;  %v3250_v45 = vld [vmem:[#allocation7 + $0x118] sm:$0xff] }
 0x43e   :  { %10160 = vmatpush1.bf16.msra.mxu0 %v12587_v7  ;;  %10038 = vmatprep.subr.bf16.mxu1 %v13234_v8  ;;  %v12627_v7 = vcombine.low %v3593_v51, %v3597_v52  ;;  %v12254_v8 = vcombine.high %v3218_v0, %v3222_v2  ;;  %v3254_v49 = vld [vmem:[#allocation7 + $0x138] sm:$0xff]  ;;  %v3633_v51 = vld [vmem:[#allocation7 + $0xd10] sm:$0xff] }
 0x43f   :  { %10161 = vmatprep.subr.bf16.mxu0 %v12596_v10  ;;  %v12636_v10 = vcombine.high %v3601_v3, %v3605_v6  ;;  %v3637_v52 = vld [vmem:[#allocation7 + $0xd30] sm:$0xff]  ;;  %v3262_v0 = vld [vmem:[#allocation7 + $0x178] sm:$0xff] }
 0x440   :  { %v3641_v2 = vld [vmem:[#allocation7 + $0xd50] sm:$0xff] }
 0x441   :  { %10039 = vmatpush1.bf16.msra.mxu1 %v13233_v4  ;;  %v3230_v4 = vld [vmem:[#allocation7 + $0x78] sm:$0xff] }
 0x442   :  { %10162 = vmatpush1.bf16.msra.mxu0 %v12595_v14  ;;  %10040 = vmatprep.subr.bf16.mxu1 %v13242_v16  ;;  %v12635_v14 = vcombine.low %v3601_v3, %v3605_v6  ;;  %v12644_v16 = vcombine.high %v3609_v11, %v3613_v54  ;;  %v12262_v22 = vcombine.high %v3226_v15, %v3230_v4  ;;  %v3645_v3 = vld [vmem:[#allocation7 + $0xd70] sm:$0xff] }
 0x443   :  { %10163 = vmatprep.subr.bf16.mxu0 %v12604_v34  ;;  %v3234_v34 = vld [vmem:[#allocation7 + $0x98] sm:$0xff]  ;;  %v12285_v6 = vcombine.low %v3250_v45, %v3254_v49 }
 0x445   :  { %10041 = vmatpush1.bf16.msra.mxu1 %v13241_v59  ;;  %v12261_v59 = vcombine.low %v3226_v15, %v3230_v4  ;;  %v12675_v4 = vcombine.low %v3641_v2, %v3645_v3 }
 0x446   :  { %10164 = vmatpush1.bf16.msra.mxu0 %v12603_v61  ;;  %10042 = vmatprep.subr.bf16.mxu1 %v13250_v24  ;;  %v12643_v61 = vcombine.low %v3609_v11, %v3613_v54  ;;  %v12270_v24 = vcombine.high %v3234_v34, %v3238_v18  ;;  %v3270_v11 = vld [vmem:[#allocation7 + $0x1b8] sm:$0xff]  ;;  %v3649_v54 = vld [vmem:[#allocation7 + $0xd90] sm:$0xff] }
 0x447   :  { %10165 = vmatprep.subr.bf16.mxu0 %v12612_v27  ;;  %v12652_v27 = vcombine.high %v3617_v53, %v3621_v20 }
 0x449   :  { %10043 = vmatpush1.bf16.msra.mxu1 %v13249_v35  ;;  %v12269_v35 = vcombine.low %v3234_v34, %v3238_v18  ;;  %v3274_v34 = vld [vmem:[#allocation7 + $0x1d8] sm:$0xff] }
 0x44a   :  { %10166 = vmatpush1.bf16.msra.mxu0 %v12611_v40  ;;  %10044 = vmatprep.subr.bf16.mxu1 %v13258_v41  ;;  %v12651_v40 = vcombine.low %v3617_v53, %v3621_v20  ;;  %v12278_v41 = vcombine.high %v3242_v31, %v3246_v32  ;;  %v3278_v18 = vld [vmem:[#allocation7 + $0x1f8] sm:$0xff]  ;;  %v3657_v53 = vld [vmem:[#allocation7 + $0xdd0] sm:$0xff] }
 0x44b   :  { %10167 = vmatprep.subr.bf16.mxu0 %v12620_v44  ;;  %v12660_v44 = vcombine.high %v3625_v46, %v3629_v19  ;;  %v3661_v20 = vld [vmem:[#allocation7 + $0xdf0] sm:$0xff] }
 0x44d   :  { %10045 = vmatpush1.bf16.msra.mxu1 %v13257_v1  ;;  %v12659_v1 = vcombine.low %v3625_v46, %v3629_v19  ;;  %v12692_v46 = vcombine.high %v3657_v53, %v3661_v20  ;;  %v3282_v19 = vld [vmem:[#allocation7 + $0x218] sm:$0xff] }
 0x44e   :  { %10168 = vmatpush1.bf16.msra.mxu0 %v12619_v47  ;;  %10046 = vmatprep.subr.bf16.mxu1 %v13266_v55  ;;  %v12286_v47 = vcombine.high %v3250_v45, %v3254_v49  ;;  %v12668_v55 = vcombine.high %v3633_v51, %v3637_v52  ;;  %v12691_v45 = vcombine.low %v3657_v53, %v3661_v20  ;;  %v3314_v20 = vld [vmem:[#allocation7 + $0x318] sm:$0xff] }
 0x44f   :  { %10169 = vmatprep.subr.bf16.mxu0 %v12628_v58  ;;  %v3258_v58 = vld [vmem:[#allocation7 + $0x158] sm:$0xff] }
 0x450   :  { %v12293_v15 = vcombine.low %v3258_v58, %v3262_v0 }
 0x451   :  { %10047 = vmatpush1.bf16.msra.mxu1 %v13265_v42  ;;  %v12667_v42 = vcombine.low %v3633_v51, %v3637_v52  ;;  %v3290_v52 = vld [vmem:[#allocation7 + $0x258] sm:$0xff] }
 0x452   :  { %10170 = vmatpush1.bf16.msra.mxu0 %v12627_v7  ;;  %10385 = vmatprep.subr.bf16.mxu1 %v12254_v8  ;;  %v12294_v7 = vcombine.high %v3258_v58, %v3262_v0  ;;  %v12676_v8 = vcombine.high %v3641_v2, %v3645_v3  ;;  %v3298_v3 = vld [vmem:[#allocation7 + $0x298] sm:$0xff] }
 0x453   :  { %10180 = vmatprep.subr.bf16.mxu0 %v12636_v10  ;;  %v3266_v10 = vld [vmem:[#allocation7 + $0x198] sm:$0xff] }
 0x454   :  { %10049 = vmatmul.mubr.bf16.vlgmr.msra.gmra.mrb[20].mxu1 %v14330_v48 }
 0x455   :  { %10172 = vmatmul.mubr.bf16.vlgmr.msra.gmra.mrb[16].mxu0 %v14240_v39  ;;  %10386 = vmatpush1.bf16.msra.mxu1 %v12253_v12  ;;  %v3653_v12 = vld [vmem:[#allocation7 + $0xdb0] sm:$0xff] }
 0x456   :  { %10181 = vmatpush1.bf16.msra.mxu0 %v12635_v14  ;;  %10212 = vmatprep.mubr.bf16.mxu0 %v14256_v36  ;;  %v12302_v14 = vcombine.high %v3266_v10, %v3270_v11 }
 0x457   :  { %10417 = vmatprep.mubr.bf16.mxu1 %v14185_v9  ;;  %10182 = vmatprep.subr.bf16.mxu0 %v12644_v16  ;;  %v12277_v9 = vcombine.low %v3242_v31, %v3246_v32  ;;  %v12684_v16 = vcombine.high %v3649_v54, %v3653_v12  ;;  %v12310_v31 = vcombine.high %v3274_v34, %v3278_v18 }
 0x458   :  { %10387 = vmatprep.subr.bf16.mxu1 %v12262_v22 }
 0x459   :  { %10388 = vmatpush1.bf16.msra.mxu1 %v12261_v59 }
 0x45a   :  { %10183 = vmatpush1.bf16.msra.mxu0 %v12643_v61  ;;  %10389 = vmatprep.subr.bf16.mxu1 %v12270_v24  ;;  %v12301_v61 = vcombine.low %v3266_v10, %v3270_v11 }
 0x45b   :  { %10184 = vmatprep.subr.bf16.mxu0 %v12652_v27  ;;  %v12683_v27 = vcombine.low %v3649_v54, %v3653_v12  ;;  %v3306_v12 = vld [vmem:[#allocation7 + $0x2d8] sm:$0xff] }
 0x45d   :  { %10390 = vmatpush1.bf16.msra.mxu1 %v12269_v35  ;;  %v3286_v35 = vld [vmem:[#allocation7 + $0x238] sm:$0xff] }
 0x45e   :  { %10185 = vmatpush1.bf16.msra.mxu0 %v12651_v40  ;;  %10391 = vmatprep.subr.bf16.mxu1 %v12278_v41  ;;  %v3665_v40 = vld [vmem:[#allocation7 + $0xe10] sm:$0xff]  ;;  %v12318_v49 = vcombine.high %v3282_v19, %v3286_v35 }
 0x45f   :  { %10186 = vmatprep.subr.bf16.mxu0 %v12660_v44  ;;  %v3669_v41 = vld [vmem:[#allocation7 + $0xe30] sm:$0xff]  ;;  %v12309_v44 = vcombine.low %v3274_v34, %v3278_v18 }
 0x460   :  { %v12700_v51 = vcombine.high %v3665_v40, %v3669_v41  ;;  %v12699_v58 = vcombine.low %v3665_v40, %v3669_v41  ;;  %v3326_v40 = vld [vmem:[#allocation7 + $0x378] sm:$0xff]  ;;  %v3705_v41 = vld [vmem:[#allocation7 + $0xf50] sm:$0xff] }
 0x461   :  { %10392 = vmatpush1.bf16.msra.mxu1 %v12277_v9  ;;  %v3294_v9 = vld [vmem:[#allocation7 + $0x278] sm:$0xff] }
 0x462   :  { %10187 = vmatpush1.bf16.msra.mxu0 %v12659_v1  ;;  %10393 = vmatprep.subr.bf16.mxu1 %v12286_v47  ;;  %v3673_v1 = vld [vmem:[#allocation7 + $0xe50] sm:$0xff]  ;;  %v12326_v0 = vcombine.high %v3290_v52, %v3294_v9 }
 0x463   :  { %10188 = vmatprep.subr.bf16.mxu0 %v12668_v55  ;;  %v3677_v47 = vld [vmem:[#allocation7 + $0xe70] sm:$0xff]  ;;  %v12317_v55 = vcombine.low %v3282_v19, %v3286_v35  ;;  %v3322_v35 = vld [vmem:[#allocation7 + $0x358] sm:$0xff] }
 0x464   :  { %v12708_v2 = vcombine.high %v3673_v1, %v3677_v47  ;;  %v12707_v10 = vcombine.low %v3673_v1, %v3677_v47  ;;  %v3334_v1 = vld [vmem:[#allocation7 + $0x3b8] sm:$0xff]  ;;  %v3713_v47 = vld [vmem:[#allocation7 + $0xf90] sm:$0xff] }
 0x465   :  { %10394 = vmatpush1.bf16.msra.mxu1 %v12285_v6  ;;  %v3302_v6 = vld [vmem:[#allocation7 + $0x2b8] sm:$0xff] }
 0x466   :  { %10189 = vmatpush1.bf16.msra.mxu0 %v12667_v42  ;;  %10395 = vmatprep.subr.bf16.mxu1 %v12294_v7  ;;  %v3681_v42 = vld [vmem:[#allocation7 + $0xe90] sm:$0xff]  ;;  %v12334_v11 = vcombine.high %v3298_v3, %v3302_v6 }
 0x467   :  { %10190 = vmatprep.subr.bf16.mxu0 %v12676_v8  ;;  %v3685_v7 = vld [vmem:[#allocation7 + $0xeb0] sm:$0xff]  ;;  %v12325_v8 = vcombine.low %v3290_v52, %v3294_v9  ;;  %v3330_v9 = vld [vmem:[#allocation7 + $0x398] sm:$0xff] }
 0x468   :  { %v14348_v22 = vpop.f32.mrb[12].mxu0  ;;  %v12716_v54 = vcombine.high %v3681_v42, %v3685_v7  ;;  %v12715_v34 = vcombine.low %v3681_v42, %v3685_v7  ;;  %v3342_v42 = vld [vmem:[#allocation7 + $0x3f8] sm:$0xff]  ;;  %v3721_v7 = vld [vmem:[#allocation7 + $0xfd0] sm:$0xff] }
 0x469   :  { %v14350_v59 = vpop.f32.mrb[13].mxu0  ;;  %10396 = vmatpush1.bf16.msra.mxu1 %v12293_v15  ;;  %v3310_v15 = vld [vmem:[#allocation7 + $0x2f8] sm:$0xff] }
 0x46a   :  { %v9726_v24 = vpop.f32.mrb[14].mxu0  ;;  %10191 = vmatpush1.bf16.msra.mxu0 %v12675_v4  ;;  %10397 = vmatprep.subr.bf16.mxu1 %v12302_v14  ;;  %v3689_v4 = vld [vmem:[#allocation7 + $0xed0] sm:$0xff]  ;;  %v12342_v18 = vcombine.high %v3306_v12, %v3310_v15 }
 0x46b   :  { %v9727_v32 = vpop.f32.mrb[15].mxu0  ;;  %10192 = vmatprep.subr.bf16.mxu0 %v12684_v16  ;;  %v3693_v14 = vld [vmem:[#allocation7 + $0xef0] sm:$0xff]  ;;  %v12333_v16 = vcombine.low %v3298_v3, %v3302_v6  ;;  %v3338_v6 = vld [vmem:[#allocation7 + $0x3d8] sm:$0xff] }
 0x46c   :  { %v12724_v53 = vcombine.high %v3689_v4, %v3693_v14  ;;  %v3697_v24 = vld [vmem:[#allocation7 + $0xf10] sm:$0xff]  ;;  %v12723_v32 = vcombine.low %v3689_v4, %v3693_v14  ;;  %v3350_v4 = vld [vmem:[#allocation7 + $0x438] sm:$0xff] }
 0x46d   :  { %10398 = vmatpush1.bf16.msra.mxu1 %v12301_v61  ;;  %v3318_v61 = vld [vmem:[#allocation7 + $0x338] sm:$0xff]  ;;  %v3729_v14 = vld [vmem:[#allocation7 + $0x1010] sm:$0xff] }
 0x46e   :  { %10193 = vmatpush1.bf16.msra.mxu0 %v12683_v27  ;;  %10399 = vmatprep.subr.bf16.mxu1 %v12310_v31  ;;  %v3701_v27 = vld [vmem:[#allocation7 + $0xf30] sm:$0xff]  ;;  %v12341_v31 = vcombine.low %v3306_v12, %v3310_v15  ;;  %v3346_v15 = vld [vmem:[#allocation7 + $0x418] sm:$0xff] }
 0x46f   :  { %10194 = vmatprep.subr.bf16.mxu0 %v12692_v46  ;;  %v12350_v46 = vcombine.high %v3314_v20, %v3318_v61  ;;  %v12732_v19 = vcombine.high %v3697_v24, %v3701_v27 }
 0x471   :  { %10400 = vmatpush1.bf16.msra.mxu1 %v12309_v44  ;;  %v3709_v44 = vld [vmem:[#allocation7 + $0xf70] sm:$0xff] }
 0x472   :  { %10195 = vmatpush1.bf16.msra.mxu0 %v12691_v45  ;;  %10401 = vmatprep.subr.bf16.mxu1 %v12318_v49  ;;  %v12349_v45 = vcombine.low %v3314_v20, %v3318_v61  ;;  %v12731_v49 = vcombine.low %v3697_v24, %v3701_v27  ;;  %v12740_v52 = vcombine.high %v3705_v41, %v3709_v44  ;;  %v3737_v61 = vld [vmem:[#allocation7 + $0x1050] sm:$0xff] }
 0x473   :  { %10196 = vmatprep.subr.bf16.mxu0 %v12700_v51  ;;  %v12358_v51 = vcombine.high %v3322_v35, %v3326_v40  ;;  %v3741_v24 = vld [vmem:[#allocation7 + $0x1070] sm:$0xff]  ;;  %v12381_v27 = vcombine.low %v3346_v15, %v3350_v4 }
 0x475   :  { %10402 = vmatpush1.bf16.msra.mxu1 %v12317_v55  ;;  %v3717_v55 = vld [vmem:[#allocation7 + $0xfb0] sm:$0xff] }
 0x476   :  { %10197 = vmatpush1.bf16.msra.mxu0 %v12699_v58  ;;  %10403 = vmatprep.subr.bf16.mxu1 %v12326_v0  ;;  %v12357_v58 = vcombine.low %v3322_v35, %v3326_v40  ;;  %v12739_v0 = vcombine.low %v3705_v41, %v3709_v44  ;;  %v12748_v3 = vcombine.high %v3713_v47, %v3717_v55  ;;  %v3362_v35 = vld [vmem:[#allocation7 + $0x498] sm:$0xff]  ;;  %v3745_v44 = vld [vmem:[#allocation7 + $0x1090] sm:$0xff] }
 0x477   :  { %10198 = vmatprep.subr.bf16.mxu0 %v12708_v2  ;;  %v12366_v2 = vcombine.high %v3330_v9, %v3334_v1  ;;  %v3366_v40 = vld [vmem:[#allocation7 + $0x4b8] sm:$0xff] }
 0x479   :  { %10404 = vmatpush1.bf16.msra.mxu1 %v12325_v8  ;;  %v3725_v8 = vld [vmem:[#allocation7 + $0xff0] sm:$0xff] }
 0x47a   :  { %10199 = vmatpush1.bf16.msra.mxu0 %v12707_v10  ;;  %10405 = vmatprep.subr.bf16.mxu1 %v12334_v11  ;;  %v12365_v10 = vcombine.low %v3330_v9, %v3334_v1  ;;  %v12747_v11 = vcombine.low %v3713_v47, %v3717_v55  ;;  %v12756_v12 = vcombine.high %v3721_v7, %v3725_v8  ;;  %v3370_v1 = vld [vmem:[#allocation7 + $0x4d8] sm:$0xff]  ;;  %v3757_v55 = vld [vmem:[#allocation7 + $0x10f0] sm:$0xff] }
 0x47b   :  { %10200 = vmatprep.subr.bf16.mxu0 %v12716_v54  ;;  %v12374_v54 = vcombine.high %v3338_v6, %v3342_v42  ;;  %v3374_v47 = vld [vmem:[#allocation7 + $0x4f8] sm:$0xff] }
 0x47d   :  { %10406 = vmatpush1.bf16.msra.mxu1 %v12333_v16  ;;  %v3733_v16 = vld [vmem:[#allocation7 + $0x1030] sm:$0xff] }
 0x47e   :  { %10201 = vmatpush1.bf16.msra.mxu0 %v12715_v34  ;;  %10407 = vmatprep.subr.bf16.mxu1 %v12342_v18  ;;  %v12373_v34 = vcombine.low %v3338_v6, %v3342_v42  ;;  %v12755_v18 = vcombine.low %v3721_v7, %v3725_v8  ;;  %v12764_v20 = vcombine.high %v3729_v14, %v3733_v16  ;;  %v3378_v6 = vld [vmem:[#allocation7 + $0x518] sm:$0xff]  ;;  %v3761_v7 = vld [vmem:[#allocation7 + $0x1110] sm:$0xff] }
 0x47f   :  { %10202 = vmatprep.subr.bf16.mxu0 %v12724_v53  ;;  %v12382_v53 = vcombine.high %v3346_v15, %v3350_v4  ;;  %v3382_v42 = vld [vmem:[#allocation7 + $0x538] sm:$0xff]  ;;  %v3765_v8 = vld [vmem:[#allocation7 + $0x1130] sm:$0xff] }
 0x480   :  { %v3390_v15 = vld [vmem:[#allocation7 + $0x578] sm:$0xff]  ;;  %v3769_v4 = vld [vmem:[#allocation7 + $0x1150] sm:$0xff] }
 0x481   :  { %10408 = vmatpush1.bf16.msra.mxu1 %v12341_v31  ;;  %v3354_v31 = vld [vmem:[#allocation7 + $0x458] sm:$0xff] }
 0x482   :  { %10203 = vmatpush1.bf16.msra.mxu0 %v12723_v32  ;;  %10409 = vmatprep.subr.bf16.mxu1 %v12350_v46  ;;  %v3358_v32 = vld [vmem:[#allocation7 + $0x478] sm:$0xff]  ;;  %v12763_v46 = vcombine.low %v3729_v14, %v3733_v16  ;;  %v3773_v14 = vld [vmem:[#allocation7 + $0x1170] sm:$0xff]  ;;  %v12413_v16 = vcombine.low %v3378_v6, %v3382_v42 }
 0x483   :  { %10204 = vmatprep.subr.bf16.mxu0 %v12732_v19  ;;  %v12772_v19 = vcombine.high %v3737_v61, %v3741_v24  ;;  %v12390_v41 = vcombine.high %v3354_v31, %v3358_v32 }
 0x485   :  { %10410 = vmatpush1.bf16.msra.mxu1 %v12349_v45  ;;  %v3749_v45 = vld [vmem:[#allocation7 + $0x10b0] sm:$0xff] }
 0x486   :  { %10205 = vmatpush1.bf16.msra.mxu0 %v12731_v49  ;;  %10411 = vmatprep.subr.bf16.mxu1 %v12358_v51  ;;  %v12389_v49 = vcombine.low %v3354_v31, %v3358_v32  ;;  %v12771_v51 = vcombine.low %v3737_v61, %v3741_v24  ;;  %v12780_v9 = vcombine.high %v3745_v44, %v3749_v45  ;;  %v3398_v61 = vld [vmem:[#allocation7 + $0x5b8] sm:$0xff]  ;;  %v3777_v24 = vld [vmem:[#allocation7 + $0x1190] sm:$0xff] }
 0x487   :  { %10206 = vmatprep.subr.bf16.mxu0 %v12740_v52  ;;  %v12398_v52 = vcombine.high %v3362_v35, %v3366_v40  ;;  %v12803_v32 = vcombine.low %v3769_v4, %v3773_v14 }
 0x489   :  { %10412 = vmatpush1.bf16.msra.mxu1 %v12357_v58  ;;  %v12397_v58 = vcombine.low %v3362_v35, %v3366_v40  ;;  %v3402_v35 = vld [vmem:[#allocation7 + $0x5d8] sm:$0xff] }
 0x48a   :  { %10207 = vmatpush1.bf16.msra.mxu0 %v12739_v0  ;;  %10413 = vmatprep.subr.bf16.mxu1 %v12366_v2  ;;  %v12779_v0 = vcombine.low %v3745_v44, %v3749_v45  ;;  %v12406_v2 = vcombine.high %v3370_v1, %v3374_v47  ;;  %v3406_v40 = vld [vmem:[#allocation7 + $0x5f8] sm:$0xff]  ;;  %v3789_v44 = vld [vmem:[#allocation7 + $0x11f0] sm:$0xff] }
 0x48b   :  { %10208 = vmatprep.subr.bf16.mxu0 %v12748_v3 }
 0x48d   :  { %10414 = vmatpush1.bf16.msra.mxu1 %v12365_v10 }
 0x48e   :  { %10209 = vmatpush1.bf16.msra.mxu0 %v12747_v11  ;;  %10415 = vmatprep.subr.bf16.mxu1 %v12374_v54  ;;  %v12414_v11 = vcombine.high %v3378_v6, %v3382_v42  ;;  %v12796_v54 = vcombine.high %v3761_v7, %v3765_v8  ;;  %v3422_v6 = vld [vmem:[#allocation7 + $0x678] sm:$0xff]  ;;  %v3801_v42 = vld [vmem:[#allocation7 + $0x1250] sm:$0xff] }
 0x48f   :  { %10210 = vmatprep.subr.bf16.mxu0 %v12756_v12  ;;  %v3386_v12 = vld [vmem:[#allocation7 + $0x558] sm:$0xff] }
 0x490   :  { %v12421_v31 = vcombine.low %v3386_v12, %v3390_v15 }
 0x491   :  { %10416 = vmatpush1.bf16.msra.mxu1 %v12373_v34  ;;  %v12795_v34 = vcombine.low %v3761_v7, %v3765_v8  ;;  %v3805_v7 = vld [vmem:[#allocation7 + $0x1270] sm:$0xff] }
 0x492   :  { %10211 = vmatpush1.bf16.msra.mxu0 %v12755_v18  ;;  %10426 = vmatprep.subr.bf16.mxu1 %v12382_v53  ;;  %v12422_v18 = vcombine.high %v3386_v12, %v3390_v15  ;;  %v12804_v53 = vcombine.high %v3769_v4, %v3773_v14  ;;  %v3430_v12 = vld [vmem:[#allocation7 + $0x6b8] sm:$0xff]  ;;  %v3809_v15 = vld [vmem:[#allocation7 + $0x1290] sm:$0xff] }
 0x493   :  { %10221 = vmatprep.subr.bf16.mxu0 %v12764_v20  ;;  %v3394_v20 = vld [vmem:[#allocation7 + $0x598] sm:$0xff]  ;;  %v3813_v4 = vld [vmem:[#allocation7 + $0x12b0] sm:$0xff] }
 0x494   :  { %10418 = vmatmul.mubr.bf16.vlgmr.msra.gmra.mrb[24].mxu1 %v14194_v37  ;;  %v3753_v37 = vld [vmem:[#allocation7 + $0x10d0] sm:$0xff]  ;;  %v12429_v45 = vcombine.low %v3394_v20, %v3398_v61 }
 0x495   :  { %10213 = vmatmul.mubr.bf16.vlgmr.msra.gmra.mrb[16].mxu0 %v14270_v23  ;;  %10427 = vmatpush1.bf16.msra.mxu1 %v12381_v27  ;;  %v12788_v3 = vcombine.high %v3753_v37, %v3757_v55  ;;  %v12787_v10 = vcombine.low %v3753_v37, %v3757_v55  ;;  %v3781_v27 = vld [vmem:[#allocation7 + $0x11b0] sm:$0xff]  ;;  %v12437_v55 = vcombine.low %v3402_v35, %v3406_v40 }
 0x496   :  { %10222 = vmatpush1.bf16.msra.mxu0 %v12763_v46  ;;  %10253 = vmatprep.mubr.bf16.mxu0 %v14272_v29  ;;  %v12430_v46 = vcombine.high %v3394_v20, %v3398_v61  ;;  %v3797_v37 = vld [vmem:[#allocation7 + $0x1230] sm:$0xff]  ;;  %v3438_v20 = vld [vmem:[#allocation7 + $0x6f8] sm:$0xff] }
 0x497   :  { %10458 = vmatprep.mubr.bf16.mxu1 %v14221_v13  ;;  %10223 = vmatprep.subr.bf16.mxu0 %v12772_v19  ;;  %v12405_v13 = vcombine.low %v3370_v1, %v3374_v47  ;;  %v12812_v19 = vcombine.high %v3777_v24, %v3781_v27  ;;  %v3414_v1 = vld [vmem:[#allocation7 + $0x638] sm:$0xff]  ;;  %v3793_v47 = vld [vmem:[#allocation7 + $0x1210] sm:$0xff] }
 0x498   :  { %10428 = vmatprep.subr.bf16.mxu1 %v12390_v41  ;;  %v3785_v41 = vld [vmem:[#allocation7 + $0x11d0] sm:$0xff] }
 0x499   :  { %10429 = vmatpush1.bf16.msra.mxu1 %v12389_v49  ;;  %v12811_v49 = vcombine.low %v3777_v24, %v3781_v27  ;;  %v3817_v61 = vld [vmem:[#allocation7 + $0x12d0] sm:$0xff] }
 0x49a   :  { %10224 = vmatpush1.bf16.msra.mxu0 %v12771_v51  ;;  %10430 = vmatprep.subr.bf16.mxu1 %v12398_v52  ;;  %v12438_v51 = vcombine.high %v3402_v35, %v3406_v40  ;;  %v12820_v52 = vcombine.high %v3785_v41, %v3789_v44  ;;  %v3821_v24 = vld [vmem:[#allocation7 + $0x12f0] sm:$0xff]  ;;  %v3446_v35 = vld [vmem:[#allocation7 + $0x738] sm:$0xff] }
 0x49b   :  { %10225 = vmatprep.subr.bf16.mxu0 %v12780_v9  ;;  %v3410_v9 = vld [vmem:[#allocation7 + $0x618] sm:$0xff]  ;;  %v3825_v40 = vld [vmem:[#allocation7 + $0x1310] sm:$0xff] }
 0x49c   :  { %v12445_v8 = vcombine.low %v3410_v9, %v3414_v1 }
 0x49d   :  { %10431 = vmatpush1.bf16.msra.mxu1 %v12397_v58  ;;  %v12819_v58 = vcombine.low %v3785_v41, %v3789_v44  ;;  %v3829_v41 = vld [vmem:[#allocation7 + $0x1330] sm:$0xff] }
 0x49e   :  { %10226 = vmatpush1.bf16.msra.mxu0 %v12779_v0  ;;  %10432 = vmatprep.subr.bf16.mxu1 %v12406_v2  ;;  %v12446_v0 = vcombine.high %v3410_v9, %v3414_v1  ;;  %v12828_v2 = vcombine.high %v3793_v47, %v3797_v37  ;;  %v3454_v9 = vld [vmem:[#allocation7 + $0x778] sm:$0xff]  ;;  %v3833_v1 = vld [vmem:[#allocation7 + $0x1350] sm:$0xff] }
 0x49f   :  { %10227 = vmatprep.subr.bf16.mxu0 %v12788_v3  ;;  %v3418_v3 = vld [vmem:[#allocation7 + $0x658] sm:$0xff] }
 0x4a0   :  { %v12453_v14 = vcombine.low %v3418_v3, %v3422_v6 }
 0x4a1   :  { %10433 = vmatpush1.bf16.msra.mxu1 %v12405_v13  ;;  %v12827_v13 = vcombine.low %v3793_v47, %v3797_v37  ;;  %v3837_v47 = vld [vmem:[#allocation7 + $0x1370] sm:$0xff] }
 0x4a2   :  { %10228 = vmatpush1.bf16.msra.mxu0 %v12787_v10  ;;  %10434 = vmatprep.subr.bf16.mxu1 %v12414_v11  ;;  %v12454_v10 = vcombine.high %v3418_v3, %v3422_v6  ;;  %v12836_v11 = vcombine.high %v3801_v42, %v3805_v7  ;;  %v3462_v3 = vld [vmem:[#allocation7 + $0x7b8] sm:$0xff]  ;;  %v3841_v6 = vld [vmem:[#allocation7 + $0x1390] sm:$0xff] }
 0x4a3   :  { %10229 = vmatprep.subr.bf16.mxu0 %v12796_v54  ;;  %v3426_v54 = vld [vmem:[#allocation7 + $0x698] sm:$0xff] }
 0x4a4   :  { %v12461_v27 = vcombine.low %v3426_v54, %v3430_v12 }
 0x4a5   :  { %10435 = vmatpush1.bf16.msra.mxu1 %v12413_v16  ;;  %v12835_v16 = vcombine.low %v3801_v42, %v3805_v7  ;;  %v3845_v42 = vld [vmem:[#allocation7 + $0x13b0] sm:$0xff] }
 0x4a6   :  { %10230 = vmatpush1.bf16.msra.mxu0 %v12795_v34  ;;  %10436 = vmatprep.subr.bf16.mxu1 %v12422_v18  ;;  %v12462_v34 = vcombine.high %v3426_v54, %v3430_v12  ;;  %v12844_v18 = vcombine.high %v3809_v15, %v3813_v4  ;;  %v3470_v54 = vld [vmem:[#allocation7 + $0x7f8] sm:$0xff]  ;;  %v3849_v12 = vld [vmem:[#allocation7 + $0x13d0] sm:$0xff] }
 0x4a7   :  { %10231 = vmatprep.subr.bf16.mxu0 %v12804_v53  ;;  %v3434_v53 = vld [vmem:[#allocation7 + $0x6d8] sm:$0xff] }
 0x4a8   :  { %v12469_v44 = vcombine.low %v3434_v53, %v3438_v20 }
 0x4a9   :  { %10437 = vmatpush1.bf16.msra.mxu1 %v12421_v31  ;;  %v12843_v31 = vcombine.low %v3809_v15, %v3813_v4  ;;  %v3853_v15 = vld [vmem:[#allocation7 + $0x13f0] sm:$0xff] }
 0x4aa   :  { %10232 = vmatpush1.bf16.msra.mxu0 %v12803_v32  ;;  %10438 = vmatprep.subr.bf16.mxu1 %v12430_v46  ;;  %v12470_v32 = vcombine.high %v3434_v53, %v3438_v20  ;;  %v12852_v46 = vcombine.high %v3817_v61, %v3821_v24  ;;  %v3478_v53 = vld [vmem:[#allocation7 + $0x838] sm:$0xff]  ;;  %v3857_v20 = vld [vmem:[#allocation7 + $0x1410] sm:$0xff] }
 0x4ab   :  { %10233 = vmatprep.subr.bf16.mxu0 %v12812_v19  ;;  %v3442_v19 = vld [vmem:[#allocation7 + $0x718] sm:$0xff] }
 0x4ac   :  { %v12477_v37 = vcombine.low %v3442_v19, %v3446_v35 }
 0x4ad   :  { %10439 = vmatpush1.bf16.msra.mxu1 %v12429_v45  ;;  %v12851_v45 = vcombine.low %v3817_v61, %v3821_v24  ;;  %v3861_v61 = vld [vmem:[#allocation7 + $0x1430] sm:$0xff] }
 0x4ae   :  { %10234 = vmatpush1.bf16.msra.mxu0 %v12811_v49  ;;  %10440 = vmatprep.subr.bf16.mxu1 %v12438_v51  ;;  %v12478_v49 = vcombine.high %v3442_v19, %v3446_v35  ;;  %v12860_v51 = vcombine.high %v3825_v40, %v3829_v41  ;;  %v3869_v19 = vld [vmem:[#allocation7 + $0x1470] sm:$0xff] }
 0x4af   :  { %10235 = vmatprep.subr.bf16.mxu0 %v12820_v52  ;;  %v3450_v52 = vld [vmem:[#allocation7 + $0x758] sm:$0xff] }
 0x4b0   :  { %v12485_v7 = vcombine.low %v3450_v52, %v3454_v9 }
 0x4b1   :  { %10441 = vmatpush1.bf16.msra.mxu1 %v12437_v55  ;;  %v12859_v55 = vcombine.low %v3825_v40, %v3829_v41  ;;  %v3482_v40 = vld [vmem:[#allocation7 + $0x858] sm:$0xff] }
 0x4b2   :  { %10236 = vmatpush1.bf16.msra.mxu0 %v12819_v58  ;;  %10442 = vmatprep.subr.bf16.mxu1 %v12446_v0  ;;  %v12486_v58 = vcombine.high %v3450_v52, %v3454_v9  ;;  %v12868_v0 = vcombine.high %v3833_v1, %v3837_v47  ;;  %v3486_v41 = vld [vmem:[#allocation7 + $0x878] sm:$0xff]  ;;  %v3873_v9 = vld [vmem:[#allocation7 + $0x1490] sm:$0xff] }
 0x4b3   :  { %10237 = vmatprep.subr.bf16.mxu0 %v12828_v2  ;;  %v3458_v2 = vld [vmem:[#allocation7 + $0x798] sm:$0xff]  ;;  %v12518_v52 = vcombine.high %v3482_v40, %v3486_v41 }
 0x4b4   :  { %v12493_v4 = vcombine.low %v3458_v2, %v3462_v3 }
 0x4b5   :  { %10443 = vmatpush1.bf16.msra.mxu1 %v12445_v8  ;;  %v12867_v8 = vcombine.low %v3833_v1, %v3837_v47  ;;  %v3877_v1 = vld [vmem:[#allocation7 + $0x14b0] sm:$0xff]  ;;  %v12517_v47 = vcombine.low %v3482_v40, %v3486_v41 }
 0x4b6   :  { %10238 = vmatpush1.bf16.msra.mxu0 %v12827_v13  ;;  %10444 = vmatprep.subr.bf16.mxu1 %v12454_v10  ;;  %v12494_v13 = vcombine.high %v3458_v2, %v3462_v3  ;;  %v12876_v10 = vcombine.high %v3841_v6, %v3845_v42  ;;  %v3502_v2 = vld [vmem:[#allocation7 + $0x8f8] sm:$0xff]  ;;  %v3885_v3 = vld [vmem:[#allocation7 + $0x14f0] sm:$0xff] }
 0x4b7   :  { %10239 = vmatprep.subr.bf16.mxu0 %v12836_v11  ;;  %v3466_v11 = vld [vmem:[#allocation7 + $0x7d8] sm:$0xff] }
 0x4b8   :  { %v12501_v24 = vcombine.low %v3466_v11, %v3470_v54 }
 0x4b9   :  { %10445 = vmatpush1.bf16.msra.mxu1 %v12453_v14  ;;  %v12875_v14 = vcombine.low %v3841_v6, %v3845_v42  ;;  %v12907_v42 = vcombine.low %v3873_v9, %v3877_v1 }
 0x4ba   :  { %10240 = vmatpush1.bf16.msra.mxu0 %v12835_v16  ;;  %10446 = vmatprep.subr.bf16.mxu1 %v12462_v34  ;;  %v12502_v16 = vcombine.high %v3466_v11, %v3470_v54  ;;  %v12884_v34 = vcombine.high %v3849_v12, %v3853_v15  ;;  %v3889_v11 = vld [vmem:[#allocation7 + $0x1510] sm:$0xff] }
 0x4bb   :  { %10241 = vmatprep.subr.bf16.mxu0 %v12844_v18  ;;  %v3474_v18 = vld [vmem:[#allocation7 + $0x818] sm:$0xff]  ;;  %v3893_v54 = vld [vmem:[#allocation7 + $0x1530] sm:$0xff] }
 0x4bc   :  { %v12509_v35 = vcombine.low %v3474_v18, %v3478_v53 }
 0x4bd   :  { %10447 = vmatpush1.bf16.msra.mxu1 %v12461_v27  ;;  %v12883_v27 = vcombine.low %v3849_v12, %v3853_v15 }
 0x4be   :  { %10242 = vmatpush1.bf16.msra.mxu0 %v12843_v31  ;;  %10448 = vmatprep.subr.bf16.mxu1 %v12470_v32  ;;  %v12510_v31 = vcombine.high %v3474_v18, %v3478_v53  ;;  %v12892_v32 = vcombine.high %v3857_v20, %v3861_v61  ;;  %v3901_v18 = vld [vmem:[#allocation7 + $0x1570] sm:$0xff] }
 0x4bf   :  { %10243 = vmatprep.subr.bf16.mxu0 %v12852_v46  ;;  %v3865_v46 = vld [vmem:[#allocation7 + $0x1450] sm:$0xff] }
 0x4c1   :  { %10449 = vmatpush1.bf16.msra.mxu1 %v12469_v44  ;;  %v12891_v44 = vcombine.low %v3857_v20, %v3861_v61  ;;  %v12923_v20 = vcombine.low %v3889_v11, %v3893_v54 }
 0x4c2   :  { %10244 = vmatpush1.bf16.msra.mxu0 %v12851_v45  ;;  %10450 = vmatprep.subr.bf16.mxu1 %v12478_v49  ;;  %v12900_v45 = vcombine.high %v3865_v46, %v3869_v19  ;;  %v3490_v49 = vld [vmem:[#allocation7 + $0x898] sm:$0xff] }
 0x4c3   :  { %10245 = vmatprep.subr.bf16.mxu0 %v12860_v51  ;;  %v3494_v51 = vld [vmem:[#allocation7 + $0x8b8] sm:$0xff] }
 0x4c4   :  { %v12525_v6 = vcombine.low %v3490_v49, %v3494_v51 }
 0x4c5   :  { %10451 = vmatpush1.bf16.msra.mxu1 %v12477_v37  ;;  %v12899_v37 = vcombine.low %v3865_v46, %v3869_v19  ;;  %v3909_v46 = vld [vmem:[#allocation7 + $0x15b0] sm:$0xff] }
 0x4c6   :  { %10246 = vmatpush1.bf16.msra.mxu0 %v12859_v55  ;;  %10452 = vmatprep.subr.bf16.mxu1 %v12486_v58  ;;  %v12526_v55 = vcombine.high %v3490_v49, %v3494_v51  ;;  %v12908_v58 = vcombine.high %v3873_v9, %v3877_v1  ;;  %v3913_v49 = vld [vmem:[#allocation7 + $0x15d0] sm:$0xff] }
 0x4c7   :  { %10247 = vmatprep.subr.bf16.mxu0 %v12868_v0  ;;  %v3498_v0 = vld [vmem:[#allocation7 + $0x8d8] sm:$0xff]  ;;  %v3917_v51 = vld [vmem:[#allocation7 + $0x15f0] sm:$0xff] }
 0x4c9   :  { %10453 = vmatpush1.bf16.msra.mxu1 %v12485_v7  ;;  %v12534_v7 = vcombine.high %v3498_v0, %v3502_v2 }
 0x4ca   :  { %10248 = vmatpush1.bf16.msra.mxu0 %v12867_v8  ;;  %10454 = vmatprep.subr.bf16.mxu1 %v12494_v13  ;;  %v3506_v13 = vld [vmem:[#allocation7 + $0x918] sm:$0xff] }
 0x4cb   :  { %10249 = vmatprep.subr.bf16.mxu0 %v12876_v10  ;;  %v3510_v10 = vld [vmem:[#allocation7 + $0x938] sm:$0xff] }
 0x4cc   :  { %v12542_v15 = vcombine.high %v3506_v13, %v3510_v10  ;;  %v12541_v53 = vcombine.low %v3506_v13, %v3510_v10  ;;  %v3933_v13 = vld [vmem:[#allocation7 + $0x1670] sm:$0xff] }
 0x4cd   :  { %10455 = vmatpush1.bf16.msra.mxu1 %v12493_v4  ;;  %v12924_v4 = vcombine.high %v3889_v11, %v3893_v54 }
 0x4ce   :  { %10250 = vmatpush1.bf16.msra.mxu0 %v12875_v14  ;;  %10456 = vmatprep.subr.bf16.mxu1 %v12502_v16  ;;  %v3514_v14 = vld [vmem:[#allocation7 + $0x958] sm:$0xff] }
 0x4cf   :  { %10251 = vmatprep.subr.bf16.mxu0 %v12884_v34  ;;  %v3518_v16 = vld [vmem:[#allocation7 + $0x978] sm:$0xff]  ;;  %v3897_v34 = vld [vmem:[#allocation7 + $0x1550] sm:$0xff] }
 0x4d0   :  { %v12550_v61 = vcombine.high %v3514_v14, %v3518_v16  ;;  %v12549_v19 = vcombine.low %v3514_v14, %v3518_v16  ;;  %v3941_v14 = vld [vmem:[#allocation7 + $0x16b0] sm:$0xff] }
 0x4d1   :  { %10457 = vmatpush1.bf16.msra.mxu1 %v12501_v24  ;;  %v12932_v24 = vcombine.high %v3897_v34, %v3901_v18 }
 0x4d2   :  { %10252 = vmatpush1.bf16.msra.mxu0 %v12883_v27  ;;  %10467 = vmatprep.subr.bf16.mxu1 %v12510_v31  ;;  %v3522_v27 = vld [vmem:[#allocation7 + $0x998] sm:$0xff] }
 0x4d3   :  { %10262 = vmatprep.subr.bf16.mxu0 %v12892_v32  ;;  %v3526_v31 = vld [vmem:[#allocation7 + $0x9b8] sm:$0xff]  ;;  %v3905_v32 = vld [vmem:[#allocation7 + $0x1590] sm:$0xff] }
 0x4d4   :  { %10459 = vmatmul.mubr.bf16.vlgmr.msra.gmra.mrb[24].mxu1 %v14224_v25  ;;  %v3881_v25 = vld [vmem:[#allocation7 + $0x14d0] sm:$0xff]  ;;  %v12558_v40 = vcombine.high %v3522_v27, %v3526_v31  ;;  %v12940_v41 = vcombine.high %v3905_v32, %v3909_v46  ;;  %v12939_v9 = vcombine.low %v3905_v32, %v3909_v46 }
 0x4d5   :  { %10254 = vmatmul.mubr.bf16.vlgmr.msra.gmra.mrb[16].mxu0 %v14285_v43  ;;  %10468 = vmatpush1.bf16.msra.mxu1 %v12509_v35  ;;  %v12916_v8 = vcombine.high %v3881_v25, %v3885_v3  ;;  %v12915_v12 = vcombine.low %v3881_v25, %v3885_v3  ;;  %v12931_v35 = vcombine.low %v3897_v34, %v3901_v18 }
 0x4d6   :  { %10263 = vmatpush1.bf16.msra.mxu0 %v12891_v44  ;;  %10294 = vmatprep.mubr.bf16.mxu0 %v14287_v50  ;;  %v3530_v44 = vld [vmem:[#allocation7 + $0x9d8] sm:$0xff]  ;;  %v12947_v25 = vcombine.low %v3913_v49, %v3917_v51 }
 0x4d7   :  { %10499 = vmatprep.mubr.bf16.mxu1 %v14226_v57  ;;  %10264 = vmatprep.subr.bf16.mxu0 %v12900_v45  ;;  %v12533_v57 = vcombine.low %v3498_v0, %v3502_v2  ;;  %v3534_v45 = vld [vmem:[#allocation7 + $0x9f8] sm:$0xff]  ;;  %v3925_v0 = vld [vmem:[#allocation7 + $0x1630] sm:$0xff] }
 0x4d8   :  { %10469 = vmatprep.subr.bf16.mxu1 %v12518_v52  ;;  %v12557_v52 = vcombine.low %v3522_v27, %v3526_v31  ;;  %v12566_v1 = vcombine.high %v3530_v44, %v3534_v45  ;;  %v12565_v2 = vcombine.low %v3530_v44, %v3534_v45  ;;  %v3949_v27 = vld [vmem:[#allocation7 + $0x16f0] sm:$0xff] }
 0x4d9   :  { %10470 = vmatpush1.bf16.msra.mxu1 %v12517_v47  ;;  %v12948_v47 = vcombine.high %v3913_v49, %v3917_v51  ;;  %v3957_v44 = vld [vmem:[#allocation7 + $0x1730] sm:$0xff] }
 0x4da   :  { %10265 = vmatpush1.bf16.msra.mxu0 %v12899_v37  ;;  %10471 = vmatprep.subr.bf16.mxu1 %v12526_v55  ;;  %v3538_v37 = vld [vmem:[#allocation7 + $0xa18] sm:$0xff] }
 0x4db   :  { %10266 = vmatprep.subr.bf16.mxu0 %v12908_v58  ;;  %v3542_v55 = vld [vmem:[#allocation7 + $0xa38] sm:$0xff]  ;;  %v3921_v58 = vld [vmem:[#allocation7 + $0x1610] sm:$0xff] }
 0x4dc   :  { %v12574_v3 = vcombine.high %v3538_v37, %v3542_v55  ;;  %v12573_v10 = vcombine.low %v3538_v37, %v3542_v55  ;;  %v12955_v11 = vcombine.low %v3921_v58, %v3925_v0  ;;  %v3965_v37 = vld [vmem:[#allocation7 + $0x1770] sm:$0xff] }
 0x4dd   :  { %10472 = vmatpush1.bf16.msra.mxu1 %v12525_v6  ;;  %v12956_v6 = vcombine.high %v3921_v58, %v3925_v0 }
 0x4de   :  { %10267 = vmatpush1.bf16.msra.mxu0 %v12907_v42  ;;  %10473 = vmatprep.subr.bf16.mxu1 %v12534_v7  ;;  %v3546_v42 = vld [vmem:[#allocation7 + $0xa58] sm:$0xff] }
 0x4df   :  { %10268 = vmatprep.subr.bf16.mxu0 %v12916_v8  ;;  %v3550_v7 = vld [vmem:[#allocation7 + $0xa78] sm:$0xff]  ;;  %v3929_v8 = vld [vmem:[#allocation7 + $0x1650] sm:$0xff] }
 0x4e0   :  { %v12582_v54 = vcombine.high %v3546_v42, %v3550_v7  ;;  %v12581_v16 = vcombine.low %v3546_v42, %v3550_v7  ;;  %v12963_v34 = vcombine.low %v3929_v8, %v3933_v13  ;;  %v3973_v42 = vld [vmem:[#allocation7 + $0x17b0] sm:$0xff] }
 0x4e1   :  { %10474 = vmatpush1.bf16.msra.mxu1 %v12533_v57  ;;  %v12964_v57 = vcombine.high %v3929_v8, %v3933_v13 }
 0x4e2   :  { %10269 = vmatpush1.bf16.msra.mxu0 %v12915_v12  ;;  %10475 = vmatprep.subr.bf16.mxu1 %v12542_v15  ;;  %v3554_v12 = vld [vmem:[#allocation7 + $0xa98] sm:$0xff] }
 0x4e3   :  { %10270 = vmatprep.subr.bf16.mxu0 %v12924_v4  ;;  %v3558_v15 = vld [vmem:[#allocation7 + $0xab8] sm:$0xff]  ;;  %v3937_v4 = vld [vmem:[#allocation7 + $0x1690] sm:$0xff] }
 0x4e4   :  { %v12590_v18 = vcombine.high %v3554_v12, %v3558_v15  ;;  %v12589_v31 = vcombine.low %v3554_v12, %v3558_v15  ;;  %v12971_v32 = vcombine.low %v3937_v4, %v3941_v14  ;;  %v3981_v12 = vld [vmem:[#allocation7 + $0x17f0] sm:$0xff] }
 0x4e5   :  { %10476 = vmatpush1.bf16.msra.mxu1 %v12541_v53  ;;  %v12972_v53 = vcombine.high %v3937_v4, %v3941_v14 }
 0x4e6   :  { %10271 = vmatpush1.bf16.msra.mxu0 %v12923_v20  ;;  %10477 = vmatprep.subr.bf16.mxu1 %v12550_v61  ;;  %v3562_v20 = vld [vmem:[#allocation7 + $0xad8] sm:$0xff] }
 0x4e7   :  { %10272 = vmatprep.subr.bf16.mxu0 %v12932_v24  ;;  %v3566_v61 = vld [vmem:[#allocation7 + $0xaf8] sm:$0xff]  ;;  %v3945_v24 = vld [vmem:[#allocation7 + $0x16d0] sm:$0xff] }
 0x4e8   :  { %v12598_v46 = vcombine.high %v3562_v20, %v3566_v61  ;;  %v12597_v45 = vcombine.low %v3562_v20, %v3566_v61  ;;  %v12979_v49 = vcombine.low %v3945_v24, %v3949_v27  ;;  %v3989_v20 = vld [vmem:[#allocation7 + $0x1830] sm:$0xff] }
 0x4e9   :  { %10478 = vmatpush1.bf16.msra.mxu1 %v12549_v19  ;;  %v12980_v19 = vcombine.high %v3945_v24, %v3949_v27 }
 0x4ea   :  { %10273 = vmatpush1.bf16.msra.mxu0 %v12931_v35  ;;  %10479 = vmatprep.subr.bf16.mxu1 %v12558_v40  ;;  %v3570_v35 = vld [vmem:[#allocation7 + $0xb18] sm:$0xff] }
 0x4eb   :  { %10274 = vmatprep.subr.bf16.mxu0 %v12940_v41  ;;  %v3574_v40 = vld [vmem:[#allocation7 + $0xb38] sm:$0xff]  ;;  %v3953_v41 = vld [vmem:[#allocation7 + $0x1710] sm:$0xff] }
 0x4ec   :  { %v12606_v51 = vcombine.high %v3570_v35, %v3574_v40  ;;  %v12605_v55 = vcombine.low %v3570_v35, %v3574_v40  ;;  %v12987_v58 = vcombine.low %v3953_v41, %v3957_v44  ;;  %v3610_v35 = vld [vmem:[#allocation7 + $0xc58] sm:$0xff] }
 0x4ed   :  { %10480 = vmatpush1.bf16.msra.mxu1 %v12557_v52  ;;  %v12988_v52 = vcombine.high %v3953_v41, %v3957_v44  ;;  %v3614_v40 = vld [vmem:[#allocation7 + $0xc78] sm:$0xff] }
 0x4ee   :  { %10275 = vmatpush1.bf16.msra.mxu0 %v12939_v9  ;;  %10481 = vmatprep.subr.bf16.mxu1 %v12566_v1  ;;  %v3578_v9 = vld [vmem:[#allocation7 + $0xb58] sm:$0xff] }
 0x4ef   :  { %10276 = vmatprep.subr.bf16.mxu0 %v12948_v47  ;;  %v3582_v1 = vld [vmem:[#allocation7 + $0xb78] sm:$0xff]  ;;  %v3961_v47 = vld [vmem:[#allocation7 + $0x1750] sm:$0xff] }
 0x4f0   :  { %v12614_v0 = vcombine.high %v3578_v9, %v3582_v1  ;;  %v12613_v7 = vcombine.low %v3578_v9, %v3582_v1  ;;  %v12995_v8 = vcombine.low %v3961_v47, %v3965_v37  ;;  %v4005_v9 = vld [vmem:[#allocation7 + $0x18b0] sm:$0xff]  ;;  %v12645_v1 = vcombine.low %v3610_v35, %v3614_v40 }
 0x4f1   :  { %10482 = vmatpush1.bf16.msra.mxu1 %v12565_v2  ;;  %v12996_v2 = vcombine.high %v3961_v47, %v3965_v37 }
 0x4f2   :  { %10277 = vmatpush1.bf16.msra.mxu0 %v12947_v25  ;;  %10483 = vmatprep.subr.bf16.mxu1 %v12574_v3  ;;  %v3586_v25 = vld [vmem:[#allocation7 + $0xb98] sm:$0xff] }
 0x4f3   :  { %10278 = vmatprep.subr.bf16.mxu0 %v12956_v6  ;;  %v3590_v3 = vld [vmem:[#allocation7 + $0xbb8] sm:$0xff]  ;;  %v3969_v6 = vld [vmem:[#allocation7 + $0x1790] sm:$0xff] }
 0x4f4   :  { %v12622_v13 = vcombine.high %v3586_v25, %v3590_v3  ;;  %v12621_v15 = vcombine.low %v3586_v25, %v3590_v3  ;;  %v13003_v4 = vcombine.low %v3969_v6, %v3973_v42 }
 0x4f5   :  { %10484 = vmatpush1.bf16.msra.mxu1 %v12573_v10  ;;  %v13004_v10 = vcombine.high %v3969_v6, %v3973_v42 }
 0x4f6   :  { %10279 = vmatpush1.bf16.msra.mxu0 %v12955_v11  ;;  %10485 = vmatprep.subr.bf16.mxu1 %v12582_v54  ;;  %v3594_v11 = vld [vmem:[#allocation7 + $0xbd8] sm:$0xff] }
 0x4f7   :  { %10280 = vmatprep.subr.bf16.mxu0 %v12964_v57  ;;  %v3598_v54 = vld [vmem:[#allocation7 + $0xbf8] sm:$0xff]  ;;  %v3977_v57 = vld [vmem:[#allocation7 + $0x17d0] sm:$0xff] }
 0x4f8   :  { %v12630_v14 = vcombine.high %v3594_v11, %v3598_v54  ;;  %v12629_v61 = vcombine.low %v3594_v11, %v3598_v54  ;;  %v13011_v24 = vcombine.low %v3977_v57, %v3981_v12 }
 0x4f9   :  { %10486 = vmatpush1.bf16.msra.mxu1 %v12581_v16  ;;  %v13012_v16 = vcombine.high %v3977_v57, %v3981_v12  ;;  %v3642_v12 = vld [vmem:[#allocation7 + $0xd58] sm:$0xff] }
 0x4fa   :  { %10281 = vmatpush1.bf16.msra.mxu0 %v12963_v34  ;;  %10487 = vmatprep.subr.bf16.mxu1 %v12590_v18  ;;  %v3602_v34 = vld [vmem:[#allocation7 + $0xc18] sm:$0xff] }
 0x4fb   :  { %10282 = vmatprep.subr.bf16.mxu0 %v12972_v53  ;;  %v3606_v18 = vld [vmem:[#allocation7 + $0xc38] sm:$0xff]  ;;  %v3985_v53 = vld [vmem:[#allocation7 + $0x1810] sm:$0xff] }
 0x4fc   :  { %v12638_v27 = vcombine.high %v3602_v34, %v3606_v18  ;;  %v13019_v41 = vcombine.low %v3985_v53, %v3989_v20 }
 0x4fd   :  { %10488 = vmatpush1.bf16.msra.mxu1 %v12589_v31  ;;  %v13020_v31 = vcombine.high %v3985_v53, %v3989_v20  ;;  %v3650_v20 = vld [vmem:[#allocation7 + $0xd98] sm:$0xff] }
 0x4fe   :  { %10283 = vmatpush1.bf16.msra.mxu0 %v12971_v32  ;;  %10489 = vmatprep.subr.bf16.mxu1 %v12598_v46  ;;  %v3993_v32 = vld [vmem:[#allocation7 + $0x1850] sm:$0xff] }
 0x4ff   :  { %10284 = vmatprep.subr.bf16.mxu0 %v12980_v19  ;;  %v3997_v46 = vld [vmem:[#allocation7 + $0x1870] sm:$0xff]  ;;  %v12637_v19 = vcombine.low %v3602_v34, %v3606_v18 }
 0x500   :  { %v13028_v44 = vcombine.high %v3993_v32, %v3997_v46  ;;  %v13027_v47 = vcombine.low %v3993_v32, %v3997_v46 }
 0x501   :  { %10490 = vmatpush1.bf16.msra.mxu1 %v12597_v45  ;;  %v3618_v45 = vld [vmem:[#allocation7 + $0xc98] sm:$0xff] }
 0x502   :  { %10285 = vmatpush1.bf16.msra.mxu0 %v12979_v49  ;;  %10491 = vmatprep.subr.bf16.mxu1 %v12606_v51  ;;  %v3622_v49 = vld [vmem:[#allocation7 + $0xcb8] sm:$0xff]  ;;  %v12646_v51 = vcombine.high %v3610_v35, %v3614_v40 }
 0x503   :  { %10286 = vmatprep.subr.bf16.mxu0 %v12988_v52  ;;  %v4001_v52 = vld [vmem:[#allocation7 + $0x1890] sm:$0xff]  ;;  %v12654_v37 = vcombine.high %v3618_v45, %v3622_v49  ;;  %v12653_v25 = vcombine.low %v3618_v45, %v3622_v49  ;;  %v3658_v40 = vld [vmem:[#allocation7 + $0xdd8] sm:$0xff] }
 0x504   :  { %v13035_v3 = vcombine.low %v4001_v52, %v4005_v9  ;;  %v4041_v45 = vld [vmem:[#allocation7 + $0x19d0] sm:$0xff] }
 0x505   :  { %10492 = vmatpush1.bf16.msra.mxu1 %v12605_v55  ;;  %v13036_v55 = vcombine.high %v4001_v52, %v4005_v9  ;;  %v4045_v49 = vld [vmem:[#allocation7 + $0x19f0] sm:$0xff] }
 0x506   :  { %10287 = vmatpush1.bf16.msra.mxu0 %v12987_v58  ;;  %10493 = vmatprep.subr.bf16.mxu1 %v12614_v0  ;;  %v3626_v58 = vld [vmem:[#allocation7 + $0xcd8] sm:$0xff] }
 0x507   :  { %10288 = vmatprep.subr.bf16.mxu0 %v12996_v2  ;;  %v3630_v0 = vld [vmem:[#allocation7 + $0xcf8] sm:$0xff]  ;;  %v4013_v2 = vld [vmem:[#allocation7 + $0x18f0] sm:$0xff] }
 0x508   :  { %v12662_v6 = vcombine.high %v3626_v58, %v3630_v0 }
 0x509   :  { %10494 = vmatpush1.bf16.msra.mxu1 %v12613_v7  ;;  %v3634_v7 = vld [vmem:[#allocation7 + $0xd18] sm:$0xff] }
 0x50a   :  { %10289 = vmatpush1.bf16.msra.mxu0 %v12995_v8  ;;  %10495 = vmatprep.subr.bf16.mxu1 %v12622_v13  ;;  %v3638_v8 = vld [vmem:[#allocation7 + $0xd38] sm:$0xff]  ;;  %v4017_v13 = vld [vmem:[#allocation7 + $0x1910] sm:$0xff] }
 0x50b   :  { %10290 = vmatprep.subr.bf16.mxu0 %v13004_v10  ;;  %v4021_v10 = vld [vmem:[#allocation7 + $0x1930] sm:$0xff]  ;;  %v12670_v54 = vcombine.high %v3634_v7, %v3638_v8 }
 0x50c   :  { %v13052_v57 = vcombine.high %v4017_v13, %v4021_v10  ;;  %v13051_v34 = vcombine.low %v4017_v13, %v4021_v10  ;;  %v4061_v13 = vld [vmem:[#allocation7 + $0x1a70] sm:$0xff] }
 0x50d   :  { %10496 = vmatpush1.bf16.msra.mxu1 %v12621_v15  ;;  %v3646_v15 = vld [vmem:[#allocation7 + $0xd78] sm:$0xff] }
 0x50e   :  { %10291 = vmatpush1.bf16.msra.mxu0 %v13003_v4  ;;  %10497 = vmatprep.subr.bf16.mxu1 %v12630_v14  ;;  %v4025_v4 = vld [vmem:[#allocation7 + $0x1950] sm:$0xff]  ;;  %v12678_v18 = vcombine.high %v3642_v12, %v3646_v15 }
 0x50f   :  { %10292 = vmatprep.subr.bf16.mxu0 %v13012_v16  ;;  %v4029_v14 = vld [vmem:[#allocation7 + $0x1970] sm:$0xff]  ;;  %v12669_v16 = vcombine.low %v3634_v7, %v3638_v8  ;;  %v3678_v7 = vld [vmem:[#allocation7 + $0xe78] sm:$0xff] }
 0x510   :  { %v13060_v53 = vcombine.high %v4025_v4, %v4029_v14  ;;  %v13059_v32 = vcombine.low %v4025_v4, %v4029_v14  ;;  %v4057_v8 = vld [vmem:[#allocation7 + $0x1a50] sm:$0xff] }
 0x511   :  { %10498 = vmatpush1.bf16.msra.mxu1 %v12629_v61  ;;  %v3654_v61 = vld [vmem:[#allocation7 + $0xdb8] sm:$0xff]  ;;  %v4069_v4 = vld [vmem:[#allocation7 + $0x1ab0] sm:$0xff] }
 0x512   :  { %10293 = vmatpush1.bf16.msra.mxu0 %v13011_v24  ;;  %10508 = vmatprep.subr.bf16.mxu1 %v12638_v27  ;;  %v4033_v24 = vld [vmem:[#allocation7 + $0x1990] sm:$0xff]  ;;  %v12686_v46 = vcombine.high %v3650_v20, %v3654_v61  ;;  %v12685_v52 = vcombine.low %v3650_v20, %v3654_v61  ;;  %v3694_v20 = vld [vmem:[#allocation7 + $0xef8] sm:$0xff] }
 0x513   :  { %10303 = vmatprep.subr.bf16.mxu0 %v13020_v31  ;;  %v4037_v27 = vld [vmem:[#allocation7 + $0x19b0] sm:$0xff]  ;;  %v12677_v31 = vcombine.low %v3642_v12, %v3646_v15  ;;  %v3686_v12 = vld [vmem:[#allocation7 + $0xeb8] sm:$0xff] }
 0x514   :  { %10500 = vmatmul.mubr.bf16.vlgmr.msra.gmra.mrb[24].mxu1 %v14240_v39  ;;  %v4009_v39 = vld [vmem:[#allocation7 + $0x18d0] sm:$0xff]  ;;  %v13068_v35 = vcombine.high %v4033_v24, %v4037_v27 }
 0x515   :  { %10295 = vmatmul.mubr.bf16.vlgmr.msra.gmra.mrb[16].mxu0 %v14299_v63  ;;  %10509 = vmatpush1.bf16.msra.mxu1 %v12637_v19  ;;  %v13044_v42 = vcombine.high %v4009_v39, %v4013_v2  ;;  %v13043_v11 = vcombine.low %v4009_v39, %v4013_v2  ;;  %v4053_v39 = vld [vmem:[#allocation7 + $0x1a30] sm:$0xff] }
 0x516   :  { %10304 = vmatpush1.bf16.msra.mxu0 %v13019_v41  ;;  %10335 = vmatprep.mubr.bf16.mxu0 %v14301_v5  ;;  %v3662_v41 = vld [vmem:[#allocation7 + $0xdf8] sm:$0xff]  ;;  %v4065_v15 = vld [vmem:[#allocation7 + $0x1a90] sm:$0xff] }
 0x517   :  { %10540 = vmatprep.mubr.bf16.mxu1 %v14256_v36  ;;  %10305 = vmatprep.subr.bf16.mxu0 %v13028_v44  ;;  %v12661_v36 = vcombine.low %v3626_v58, %v3630_v0  ;;  %v3670_v58 = vld [vmem:[#allocation7 + $0xe38] sm:$0xff]  ;;  %v4049_v0 = vld [vmem:[#allocation7 + $0x1a10] sm:$0xff]  ;;  %v12693_v2 = vcombine.low %v3658_v40, %v3662_v41 }
 0x518   :  { %10510 = vmatprep.subr.bf16.mxu1 %v12646_v51  ;;  %v4073_v61 = vld [vmem:[#allocation7 + $0x1ad0] sm:$0xff] }
 0x519   :  { %10511 = vmatpush1.bf16.msra.mxu1 %v12645_v1  ;;  %v13067_v1 = vcombine.low %v4033_v24, %v4037_v27  ;;  %v4077_v24 = vld [vmem:[#allocation7 + $0x1af0] sm:$0xff] }
 0x51a   :  { %10306 = vmatpush1.bf16.msra.mxu0 %v13027_v47  ;;  %10512 = vmatprep.subr.bf16.mxu1 %v12654_v37  ;;  %v12694_v47 = vcombine.high %v3658_v40, %v3662_v41  ;;  %v13076_v37 = vcombine.high %v4041_v45, %v4045_v49  ;;  %v3702_v40 = vld [vmem:[#allocation7 + $0xf38] sm:$0xff]  ;;  %v4081_v41 = vld [vmem:[#allocation7 + $0x1b10] sm:$0xff] }
 0x51b   :  { %10307 = vmatprep.subr.bf16.mxu0 %v13036_v55  ;;  %v3666_v55 = vld [vmem:[#allocation7 + $0xe18] sm:$0xff] }
 0x51c   :  { %v12701_v10 = vcombine.low %v3666_v55, %v3670_v58 }
 0x51d   :  { %10513 = vmatpush1.bf16.msra.mxu1 %v12653_v25  ;;  %v13075_v25 = vcombine.low %v4041_v45, %v4045_v49  ;;  %v4085_v45 = vld [vmem:[#allocation7 + $0x1b30] sm:$0xff] }
 0x51e   :  { %10308 = vmatpush1.bf16.msra.mxu0 %v13035_v3  ;;  %10514 = vmatprep.subr.bf16.mxu1 %v12662_v6  ;;  %v12702_v3 = vcombine.high %v3666_v55, %v3670_v58  ;;  %v13084_v6 = vcombine.high %v4049_v0, %v4053_v39  ;;  %v4093_v55 = vld [vmem:[#allocation7 + $0x1b70] sm:$0xff] }
 0x51f   :  { %10309 = vmatprep.subr.bf16.mxu0 %v13044_v42  ;;  %v3674_v42 = vld [vmem:[#allocation7 + $0xe58] sm:$0xff] }
 0x520   :  { %v12709_v14 = vcombine.low %v3674_v42, %v3678_v7 }
 0x521   :  { %10515 = vmatpush1.bf16.msra.mxu1 %v12661_v36  ;;  %v13083_v36 = vcombine.low %v4049_v0, %v4053_v39  ;;  %v13115_v0 = vcombine.low %v4081_v41, %v4085_v45 }
 0x522   :  { %10310 = vmatpush1.bf16.msra.mxu0 %v13043_v11  ;;  %10516 = vmatprep.subr.bf16.mxu1 %v12670_v54  ;;  %v12710_v11 = vcombine.high %v3674_v42, %v3678_v7  ;;  %v13092_v54 = vcombine.high %v4057_v8, %v4061_v13  ;;  %v4101_v42 = vld [vmem:[#allocation7 + $0x1bb0] sm:$0xff] }
 0x523   :  { %10311 = vmatprep.subr.bf16.mxu0 %v13052_v57  ;;  %v3682_v57 = vld [vmem:[#allocation7 + $0xe98] sm:$0xff] }
 0x524   :  { %v12717_v27 = vcombine.low %v3682_v57, %v3686_v12 }
 0x525   :  { %10517 = vmatpush1.bf16.msra.mxu1 %v12669_v16  ;;  %v13091_v16 = vcombine.low %v4057_v8, %v4061_v13 }
 0x526   :  { %10312 = vmatpush1.bf16.msra.mxu0 %v13051_v34  ;;  %10518 = vmatprep.subr.bf16.mxu1 %v12678_v18  ;;  %v12718_v34 = vcombine.high %v3682_v57, %v3686_v12  ;;  %v13100_v18 = vcombine.high %v4065_v15, %v4069_v4  ;;  %v4109_v57 = vld [vmem:[#allocation7 + $0x1bf0] sm:$0xff] }
 0x527   :  { %v14364_v19 = vpop.f32.mrb[20].mxu1  ;;  %10313 = vmatprep.subr.bf16.mxu0 %v13060_v53  ;;  %v3690_v53 = vld [vmem:[#allocation7 + $0xed8] sm:$0xff] }
 0x528   :  { %v14366_v44 = vpop.f32.mrb[21].mxu1  ;;  %v12725_v49 = vcombine.low %v3690_v53, %v3694_v20 }
 0x529   :  { %v10054_v51 = vpop.f32.mrb[22].mxu1  ;;  %10519 = vmatpush1.bf16.msra.mxu1 %v12677_v31  ;;  %v13099_v31 = vcombine.low %v4065_v15, %v4069_v4 }
 0x52a   :  { %10314 = vmatpush1.bf16.msra.mxu0 %v13059_v32  ;;  %v10055_v9 = vpop.f32.mrb[23].mxu1  ;;  %10520 = vmatprep.subr.bf16.mxu1 %v12686_v46  ;;  %v12726_v32 = vcombine.high %v3690_v53, %v3694_v20  ;;  %v13108_v46 = vcombine.high %v4073_v61, %v4077_v24  ;;  %v13107_v51 = vcombine.low %v4073_v61, %v4077_v24  ;;  %v4117_v53 = vld [vmem:[#allocation7 + $0x1c30] sm:$0xff] }
 0x52b   :  { %10315 = vmatprep.subr.bf16.mxu0 %v13068_v35  ;;  %v3698_v35 = vld [vmem:[#allocation7 + $0xf18] sm:$0xff]  ;;  %v13116_v9 = vcombine.high %v4081_v41, %v4085_v45 }
 0x52c   :  { %v12733_v58 = vcombine.low %v3698_v35, %v3702_v40 }
 0x52d   :  { %10521 = vmatpush1.bf16.msra.mxu1 %v12685_v52  ;;  %v12734_v52 = vcombine.high %v3698_v35, %v3702_v40  ;;  %v3738_v35 = vld [vmem:[#allocation7 + $0x1058] sm:$0xff] }
 0x52e   :  { %10316 = vmatpush1.bf16.msra.mxu0 %v13067_v1  ;;  %10522 = vmatprep.subr.bf16.mxu1 %v12694_v47  ;;  %v3706_v1 = vld [vmem:[#allocation7 + $0xf58] sm:$0xff] }
 0x52f   :  { %10317 = vmatprep.subr.bf16.mxu0 %v13076_v37  ;;  %v3710_v47 = vld [vmem:[#allocation7 + $0xf78] sm:$0xff]  ;;  %v4089_v37 = vld [vmem:[#allocation7 + $0x1b50] sm:$0xff] }
 0x530   :  { %v12742_v39 = vcombine.high %v3706_v1, %v3710_v47  ;;  %v12741_v7 = vcombine.low %v3706_v1, %v3710_v47  ;;  %v13123_v8 = vcombine.low %v4089_v37, %v4093_v55  ;;  %v3742_v40 = vld [vmem:[#allocation7 + $0x1078] sm:$0xff]  ;;  %v4133_v1 = vld [vmem:[#allocation7 + $0x1cb0] sm:$0xff] }
 0x531   :  { %10523 = vmatpush1.bf16.msra.mxu1 %v12693_v2  ;;  %v13124_v2 = vcombine.high %v4089_v37, %v4093_v55  ;;  %v12773_v47 = vcombine.low %v3738_v35, %v3742_v40 }
 0x532   :  { %10318 = vmatpush1.bf16.msra.mxu0 %v13075_v25  ;;  %10524 = vmatprep.subr.bf16.mxu1 %v12702_v3  ;;  %v3714_v25 = vld [vmem:[#allocation7 + $0xf98] sm:$0xff] }
 0x533   :  { %10319 = vmatprep.subr.bf16.mxu0 %v13084_v6  ;;  %v3718_v3 = vld [vmem:[#allocation7 + $0xfb8] sm:$0xff]  ;;  %v4097_v6 = vld [vmem:[#allocation7 + $0x1b90] sm:$0xff] }
 0x534   :  { %v12750_v13 = vcombine.high %v3714_v25, %v3718_v3  ;;  %v12749_v12 = vcombine.low %v3714_v25, %v3718_v3  ;;  %v13131_v15 = vcombine.low %v4097_v6, %v4101_v42 }
 0x535   :  { %10525 = vmatpush1.bf16.msra.mxu1 %v12701_v10  ;;  %v13132_v10 = vcombine.high %v4097_v6, %v4101_v42 }
 0x536   :  { %10320 = vmatpush1.bf16.msra.mxu0 %v13083_v36  ;;  %10526 = vmatprep.subr.bf16.mxu1 %v12710_v11  ;;  %v3722_v36 = vld [vmem:[#allocation7 + $0xfd8] sm:$0xff] }
 0x537   :  { %10321 = vmatprep.subr.bf16.mxu0 %v13092_v54  ;;  %v3726_v11 = vld [vmem:[#allocation7 + $0xff8] sm:$0xff]  ;;  %v4105_v54 = vld [vmem:[#allocation7 + $0x1bd0] sm:$0xff] }
 0x538   :  { %v12758_v4 = vcombine.high %v3722_v36, %v3726_v11  ;;  %v12757_v20 = vcombine.low %v3722_v36, %v3726_v11  ;;  %v13139_v61 = vcombine.low %v4105_v54, %v4109_v57 }
 0x539   :  { %10527 = vmatpush1.bf16.msra.mxu1 %v12709_v14  ;;  %v13140_v14 = vcombine.high %v4105_v54, %v4109_v57  ;;  %v3770_v57 = vld [vmem:[#allocation7 + $0x1158] sm:$0xff] }
 0x53a   :  { %10322 = vmatpush1.bf16.msra.mxu0 %v13091_v16  ;;  %10528 = vmatprep.subr.bf16.mxu1 %v12718_v34  ;;  %v3730_v16 = vld [vmem:[#allocation7 + $0x1018] sm:$0xff] }
 0x53b   :  { %10323 = vmatprep.subr.bf16.mxu0 %v13100_v18  ;;  %v3734_v34 = vld [vmem:[#allocation7 + $0x1038] sm:$0xff]  ;;  %v4113_v18 = vld [vmem:[#allocation7 + $0x1c10] sm:$0xff] }
 0x53c   :  { %v12766_v24 = vcombine.high %v3730_v16, %v3734_v34  ;;  %v13147_v41 = vcombine.low %v4113_v18, %v4117_v53 }
 0x53d   :  { %10529 = vmatpush1.bf16.msra.mxu1 %v12717_v27  ;;  %v13148_v27 = vcombine.high %v4113_v18, %v4117_v53  ;;  %v3778_v53 = vld [vmem:[#allocation7 + $0x1198] sm:$0xff] }
 0x53e   :  { %10324 = vmatpush1.bf16.msra.mxu0 %v13099_v31  ;;  %10530 = vmatprep.subr.bf16.mxu1 %v12726_v32  ;;  %v4121_v31 = vld [vmem:[#allocation7 + $0x1c50] sm:$0xff] }
 0x53f   :  { %10325 = vmatprep.subr.bf16.mxu0 %v13108_v46  ;;  %v4125_v32 = vld [vmem:[#allocation7 + $0x1c70] sm:$0xff]  ;;  %v12765_v46 = vcombine.low %v3730_v16, %v3734_v34 }
 0x540   :  { %v13156_v45 = vcombine.high %v4121_v31, %v4125_v32  ;;  %v13155_v37 = vcombine.low %v4121_v31, %v4125_v32 }
 0x541   :  { %10531 = vmatpush1.bf16.msra.mxu1 %v12725_v49  ;;  %v3746_v49 = vld [vmem:[#allocation7 + $0x1098] sm:$0xff] }
 0x542   :  { %10326 = vmatpush1.bf16.msra.mxu0 %v13107_v51  ;;  %10532 = vmatprep.subr.bf16.mxu1 %v12734_v52  ;;  %v3750_v51 = vld [vmem:[#allocation7 + $0x10b8] sm:$0xff]  ;;  %v12774_v52 = vcombine.high %v3738_v35, %v3742_v40 }
 0x543   :  { %10327 = vmatprep.subr.bf16.mxu0 %v13116_v9  ;;  %v4129_v9 = vld [vmem:[#allocation7 + $0x1c90] sm:$0xff]  ;;  %v12782_v55 = vcombine.high %v3746_v49, %v3750_v51  ;;  %v12781_v25 = vcombine.low %v3746_v49, %v3750_v51  ;;  %v3786_v35 = vld [vmem:[#allocation7 + $0x11d8] sm:$0xff] }
 0x544   :  { %v13163_v3 = vcombine.low %v4129_v9, %v4133_v1  ;;  %v3790_v40 = vld [vmem:[#allocation7 + $0x11f8] sm:$0xff] }
 0x545   :  { %10533 = vmatpush1.bf16.msra.mxu1 %v12733_v58  ;;  %v13164_v58 = vcombine.high %v4129_v9, %v4133_v1  ;;  %v3794_v1 = vld [vmem:[#allocation7 + $0x1218] sm:$0xff] }
 0x546   :  { %10328 = vmatpush1.bf16.msra.mxu0 %v13115_v0  ;;  %10534 = vmatprep.subr.bf16.mxu1 %v12742_v39  ;;  %v3754_v0 = vld [vmem:[#allocation7 + $0x10d8] sm:$0xff] }
 0x547   :  { %10329 = vmatprep.subr.bf16.mxu0 %v13124_v2  ;;  %v3758_v39 = vld [vmem:[#allocation7 + $0x10f8] sm:$0xff]  ;;  %v4141_v2 = vld [vmem:[#allocation7 + $0x1cf0] sm:$0xff] }
 0x548   :  { %v12790_v6 = vcombine.high %v3754_v0, %v3758_v39 }
 0x549   :  { %10535 = vmatpush1.bf16.msra.mxu1 %v12741_v7  ;;  %v3762_v7 = vld [vmem:[#allocation7 + $0x1118] sm:$0xff] }
 0x54a   :  { %10330 = vmatpush1.bf16.msra.mxu0 %v13123_v8  ;;  %10536 = vmatprep.subr.bf16.mxu1 %v12750_v13  ;;  %v3766_v8 = vld [vmem:[#allocation7 + $0x1138] sm:$0xff]  ;;  %v4145_v13 = vld [vmem:[#allocation7 + $0x1d10] sm:$0xff] }
 0x54b   :  { %10331 = vmatprep.subr.bf16.mxu0 %v13132_v10  ;;  %v4149_v10 = vld [vmem:[#allocation7 + $0x1d30] sm:$0xff]  ;;  %v12798_v11 = vcombine.high %v3762_v7, %v3766_v8 }
 0x54c   :  { %v13180_v54 = vcombine.high %v4145_v13, %v4149_v10  ;;  %v13179_v16 = vcombine.low %v4145_v13, %v4149_v10  ;;  %v3810_v10 = vld [vmem:[#allocation7 + $0x1298] sm:$0xff] }
 0x54d   :  { %10537 = vmatpush1.bf16.msra.mxu1 %v12749_v12  ;;  %v3774_v12 = vld [vmem:[#allocation7 + $0x1178] sm:$0xff] }
 0x54e   :  { %10332 = vmatpush1.bf16.msra.mxu0 %v13131_v15  ;;  %10538 = vmatprep.subr.bf16.mxu1 %v12758_v4  ;;  %v4153_v15 = vld [vmem:[#allocation7 + $0x1d50] sm:$0xff]  ;;  %v12806_v34 = vcombine.high %v3770_v57, %v3774_v12 }
 0x54f   :  { %10333 = vmatprep.subr.bf16.mxu0 %v13140_v14  ;;  %v4157_v4 = vld [vmem:[#allocation7 + $0x1d70] sm:$0xff]  ;;  %v12797_v14 = vcombine.low %v3762_v7, %v3766_v8 }
 0x550   :  { %v13188_v18 = vcombine.high %v4153_v15, %v4157_v4  ;;  %v13187_v31 = vcombine.low %v4153_v15, %v4157_v4  ;;  %v3818_v4 = vld [vmem:[#allocation7 + $0x12d8] sm:$0xff] }
 0x551   :  { %10539 = vmatpush1.bf16.msra.mxu1 %v12757_v20  ;;  %v3782_v20 = vld [vmem:[#allocation7 + $0x11b8] sm:$0xff] }
 0x552   :  { %10334 = vmatpush1.bf16.msra.mxu0 %v13139_v61  ;;  %10549 = vmatprep.subr.bf16.mxu1 %v12766_v24  ;;  %v4161_v61 = vld [vmem:[#allocation7 + $0x1d90] sm:$0xff]  ;;  %v12814_v32 = vcombine.high %v3778_v53, %v3782_v20  ;;  %v12813_v49 = vcombine.low %v3778_v53, %v3782_v20 }
 0x553   :  { %10344 = vmatprep.subr.bf16.mxu0 %v13148_v27  ;;  %v4165_v24 = vld [vmem:[#allocation7 + $0x1db0] sm:$0xff]  ;;  %v12805_v27 = vcombine.low %v3770_v57, %v3774_v12 }
 0x554   :  { %10541 = vmatmul.mubr.bf16.vlgmr.msra.gmra.mrb[24].mxu1 %v14270_v23  ;;  %v4137_v23 = vld [vmem:[#allocation7 + $0x1cd0] sm:$0xff]  ;;  %v13195_v51 = vcombine.low %v4161_v61, %v4165_v24 }
 0x555   :  { %10336 = vmatmul.mubr.bf16.vlgmr.msra.gmra.mrb[16].mxu0 %v14319_v17  ;;  %10550 = vmatpush1.bf16.msra.mxu1 %v12765_v46  ;;  %v13172_v42 = vcombine.high %v4137_v23, %v4141_v2  ;;  %v13171_v36 = vcombine.low %v4137_v23, %v4141_v2  ;;  %v13196_v46 = vcombine.high %v4161_v61, %v4165_v24  ;;  %v3802_v2 = vld [vmem:[#allocation7 + $0x1258] sm:$0xff] }
 0x556   :  { %10345 = vmatpush1.bf16.msra.mxu0 %v13147_v41  ;;  %10376 = vmatprep.mubr.bf16.mxu0 %v14321_v21  ;;  %v4169_v41 = vld [vmem:[#allocation7 + $0x1dd0] sm:$0xff]  ;;  %v3826_v24 = vld [vmem:[#allocation7 + $0x1318] sm:$0xff] }
 0x557   :  { %10581 = vmatprep.mubr.bf16.mxu1 %v14272_v29  ;;  %10346 = vmatprep.subr.bf16.mxu0 %v13156_v45  ;;  %v12789_v29 = vcombine.low %v3754_v0, %v3758_v39  ;;  %v4173_v45 = vld [vmem:[#allocation7 + $0x1df0] sm:$0xff] }
 0x558   :  { %10551 = vmatprep.subr.bf16.mxu1 %v12774_v52  ;;  %v12822_v52 = vcombine.high %v3786_v35, %v3790_v40  ;;  %v13204_v9 = vcombine.high %v4169_v41, %v4173_v45  ;;  %v13203_v0 = vcombine.low %v4169_v41, %v4173_v45  ;;  %v3834_v45 = vld [vmem:[#allocation7 + $0x1358] sm:$0xff] }
 0x559   :  { %10552 = vmatpush1.bf16.msra.mxu1 %v12773_v47  ;;  %v3798_v47 = vld [vmem:[#allocation7 + $0x1238] sm:$0xff] }
 0x55a   :  { %10347 = vmatpush1.bf16.msra.mxu0 %v13155_v37  ;;  %10553 = vmatprep.subr.bf16.mxu1 %v12782_v55  ;;  %v4177_v37 = vld [vmem:[#allocation7 + $0x1e10] sm:$0xff]  ;;  %v12830_v39 = vcombine.high %v3794_v1, %v3798_v47 }
 0x55b   :  { %10348 = vmatprep.subr.bf16.mxu0 %v13164_v58  ;;  %v4181_v55 = vld [vmem:[#allocation7 + $0x1e30] sm:$0xff]  ;;  %v12821_v58 = vcombine.low %v3786_v35, %v3790_v40 }
 0x55c   :  { %v13212_v23 = vcombine.high %v4177_v37, %v4181_v55  ;;  %v13211_v7 = vcombine.low %v4177_v37, %v4181_v55  ;;  %v3842_v55 = vld [vmem:[#allocation7 + $0x1398] sm:$0xff] }
 0x55d   :  { %10554 = vmatpush1.bf16.msra.mxu1 %v12781_v25  ;;  %v3806_v25 = vld [vmem:[#allocation7 + $0x1278] sm:$0xff] }
 0x55e   :  { %10349 = vmatpush1.bf16.msra.mxu0 %v13163_v3  ;;  %10555 = vmatprep.subr.bf16.mxu1 %v12790_v6  ;;  %v4185_v3 = vld [vmem:[#allocation7 + $0x1e50] sm:$0xff]  ;;  %v12838_v8 = vcombine.high %v3802_v2, %v3806_v25 }
 0x55f   :  { %10350 = vmatprep.subr.bf16.mxu0 %v13172_v42  ;;  %v4189_v6 = vld [vmem:[#allocation7 + $0x1e70] sm:$0xff]  ;;  %v12829_v42 = vcombine.low %v3794_v1, %v3798_v47 }
 0x560   :  { %v13220_v13 = vcombine.high %v4185_v3, %v4189_v6  ;;  %v13219_v57 = vcombine.low %v4185_v3, %v4189_v6 }
 0x561   :  { %10556 = vmatpush1.bf16.msra.mxu1 %v12789_v29  ;;  %v3814_v29 = vld [vmem:[#allocation7 + $0x12b8] sm:$0xff] }
 0x562   :  { %10351 = vmatpush1.bf16.msra.mxu0 %v13171_v36  ;;  %10557 = vmatprep.subr.bf16.mxu1 %v12798_v11  ;;  %v4193_v36 = vld [vmem:[#allocation7 + $0x1e90] sm:$0xff]  ;;  %v12846_v12 = vcombine.high %v3810_v10, %v3814_v29 }
 0x563   :  { %10352 = vmatprep.subr.bf16.mxu0 %v13180_v54  ;;  %v4197_v11 = vld [vmem:[#allocation7 + $0x1eb0] sm:$0xff]  ;;  %v12837_v54 = vcombine.low %v3802_v2, %v3806_v25  ;;  %v14372_v2 = vld [vmem:[#allocation8] sm:$0xff] }
 0x564   :  { %v13228_v15 = vcombine.high %v4193_v36, %v4197_v11  ;;  %v13227_v53 = vcombine.low %v4193_v36, %v4197_v11 }
 0x565   :  { %10558 = vmatpush1.bf16.msra.mxu1 %v12797_v14  ;;  %v3822_v14 = vld [vmem:[#allocation7 + $0x12f8] sm:$0xff] }
 0x566   :  { %10353 = vmatpush1.bf16.msra.mxu0 %v13179_v16  ;;  %10559 = vmatprep.subr.bf16.mxu1 %v12806_v34  ;;  %v4201_v16 = vld [vmem:[#allocation7 + $0x1ed0] sm:$0xff]  ;;  %v12854_v20 = vcombine.high %v3818_v4, %v3822_v14 }
 0x567   :  { %10354 = vmatprep.subr.bf16.mxu0 %v13188_v18  ;;  %v4205_v34 = vld [vmem:[#allocation7 + $0x1ef0] sm:$0xff]  ;;  %v12845_v18 = vcombine.low %v3810_v10, %v3814_v29  ;;  %v4248_v10 = vrot.slane %v14372_v2, %v14173_v60 }
 0x568   :  { %v13236_v61 = vcombine.high %v4201_v16, %v4205_v34  ;;  %v13235_v35 = vcombine.low %v4201_v16, %v4205_v34  ;;  %v13636_v34 = vld [vmem:[#allocation10 + $0x4] ss:$8 sps:$4 sm:$0xff]  }
 0x569   :  { %10560 = vmatpush1.bf16.msra.mxu1 %v12805_v27  ;;  %v3830_v27 = vld [vmem:[#allocation7 + $0x1338] sm:$0xff] }
 0x56a   :  { %10355 = vmatpush1.bf16.msra.mxu0 %v13187_v31  ;;  %10561 = vmatprep.subr.bf16.mxu1 %v12814_v32  ;;  %v4209_v31 = vld [vmem:[#allocation7 + $0x1f10] sm:$0xff]  ;;  %v12862_v40 = vcombine.high %v3826_v24, %v3830_v27 }
 0x56b   :  { %10356 = vmatprep.subr.bf16.mxu0 %v13196_v46  ;;  %v4213_v32 = vld [vmem:[#allocation7 + $0x1f30] sm:$0xff]  ;;  %v12853_v46 = vcombine.low %v3818_v4, %v3822_v14 }
 0x56c   :  { %v13244_v41 = vcombine.high %v4209_v31, %v4213_v32  ;;  %v13243_v1 = vcombine.low %v4209_v31, %v4213_v32  ;;  %v3874_v31 = vld [vmem:[#allocation7 + $0x1498] sm:$0xff] }
 0x56d   :  { %10562 = vmatpush1.bf16.msra.mxu1 %v12813_v49  ;;  %v3838_v49 = vld [vmem:[#allocation7 + $0x1378] sm:$0xff] }
 0x56e   :  { %10357 = vmatpush1.bf16.msra.mxu0 %v13195_v51  ;;  %10563 = vmatprep.subr.bf16.mxu1 %v12822_v52  ;;  %v4217_v51 = vld [vmem:[#allocation7 + $0x1f50] sm:$0xff]  ;;  %v12870_v47 = vcombine.high %v3834_v45, %v3838_v49  ;;  %v13639_v32 = vld [vmem:[#allocation10 + $0x14] ss:$8 sps:$4 sm:$0xff]  }
 0x56f   :  { %10358 = vmatprep.subr.bf16.mxu0 %v13204_v9  ;;  %v4221_v52 = vld [vmem:[#allocation7 + $0x1f70] sm:$0xff]  ;;  %v12861_v9 = vcombine.low %v3826_v24, %v3830_v27 }
 0x570   :  { %v13252_v37 = vcombine.high %v4217_v51, %v4221_v52  ;;  %v13251_v25 = vcombine.low %v4217_v51, %v4221_v52  ;;  %v13634_v24 = vld [vmem:[#allocation10] ss:$8 sps:$4 sm:$0xff]   ;;  %v3886_v51 = vld [vmem:[#allocation7 + $0x14f8] sm:$0xff] }
 0x571   :  { %10564 = vmatpush1.bf16.msra.mxu1 %v12821_v58  ;;  %v3846_v58 = vld [vmem:[#allocation7 + $0x13b8] sm:$0xff] }
 0x572   :  { %10359 = vmatpush1.bf16.msra.mxu0 %v13203_v0  ;;  %10565 = vmatprep.subr.bf16.mxu1 %v12830_v39  ;;  %v4225_v0 = vld [vmem:[#allocation7 + $0x1f90] sm:$0xff]  ;;  %v12878_v3 = vcombine.high %v3842_v55, %v3846_v58  ;;  %v12877_v29 = vcombine.low %v3842_v55, %v3846_v58  ;;  %v13643_v55 = vld [vmem:[#allocation10 + $0x30] ss:$8 sps:$4 sm:$0xff]  }
 0x573   :  { %10360 = vmatprep.subr.bf16.mxu0 %v13212_v23  ;;  %v4229_v39 = vld [vmem:[#allocation7 + $0x1fb0] sm:$0xff]  ;;  %v12869_v23 = vcombine.low %v3834_v45, %v3838_v49  ;;  %v3882_v49 = vld [vmem:[#allocation7 + $0x14d8] sm:$0xff] }
 0x574   :  { %v13260_v6 = vcombine.high %v4225_v0, %v4229_v39  ;;  %v13259_v36 = vcombine.low %v4225_v0, %v4229_v39  ;;  %v13642_v45 = vld [vmem:[#allocation10 + $0x24] ss:$8 sps:$4 sm:$0xff]   ;;  %v3898_v39 = vld [vmem:[#allocation7 + $0x1558] sm:$0xff] }
 0x575   :  { %10566 = vmatpush1.bf16.msra.mxu1 %v12829_v42  ;;  %v3850_v42 = vld [vmem:[#allocation7 + $0x13d8] sm:$0xff]  ;;  %v13648_v0 = vld [vmem:[#allocation10 + $0x44] ss:$8 sps:$4 sm:$0xff]  }
 0x576   :  { %10361 = vmatpush1.bf16.msra.mxu0 %v13211_v7  ;;  %10567 = vmatprep.subr.bf16.mxu1 %v12838_v8  ;;  %v3854_v7 = vld [vmem:[#allocation7 + $0x13f8] sm:$0xff]  ;;  %v4233_v8 = vld [vmem:[#allocation7 + $0x1fd0] sm:$0xff] }
 0x577   :  { %10362 = vmatprep.subr.bf16.mxu0 %v13220_v13  ;;  %v4237_v13 = vld [vmem:[#allocation7 + $0x1ff0] sm:$0xff]  ;;  %v12886_v11 = vcombine.high %v3850_v42, %v3854_v7  ;;  %v12885_v4 = vcombine.low %v3850_v42, %v3854_v7  ;;  %v13651_v42 = vld [vmem:[#allocation10 + $0x54] ss:$8 sps:$4 sm:$0xff]  }
 0x578   :  { %v13267_v14 = vcombine.low %v4233_v8, %v4237_v13  ;;  %v3906_v7 = vld [vmem:[#allocation7 + $0x1598] sm:$0xff] }
 0x579   :  { %10568 = vmatpush1.bf16.msra.mxu1 %v12837_v54  ;;  %v13268_v54 = vcombine.high %v4233_v8, %v4237_v13  ;;  %v3910_v8 = vld [vmem:[#allocation7 + $0x15b8] sm:$0xff] }
 0x57a   :  { %10363 = vmatpush1.bf16.msra.mxu0 %v13219_v57  ;;  %10569 = vmatprep.subr.bf16.mxu1 %v12846_v12  ;;  %v3858_v57 = vld [vmem:[#allocation7 + $0x1418] sm:$0xff] }
 0x57b   :  { %10364 = vmatprep.subr.bf16.mxu0 %v13228_v15  ;;  %v3862_v12 = vld [vmem:[#allocation7 + $0x1438] sm:$0xff]  ;;  %v13455_v15 = vadd.f32 %v14350_v59, %v4248_v10 }
 0x57c   :  { %v12894_v16 = vcombine.high %v3858_v57, %v3862_v12  ;;  %v3878_v59 = vld [vmem:[#allocation7 + $0x14b8] sm:$0xff] }
 0x57d   :  { %10570 = vmatpush1.bf16.msra.mxu1 %v12845_v18  ;;  %v3866_v18 = vld [vmem:[#allocation7 + $0x1458] sm:$0xff]  ;;  %v12909_v52 = vcombine.low %v3874_v31, %v3878_v59 }
 0x57e   :  { %10365 = vmatpush1.bf16.msra.mxu0 %v13227_v53  ;;  %10571 = vmatprep.subr.bf16.mxu1 %v12854_v20  ;;  %v3870_v53 = vld [vmem:[#allocation7 + $0x1478] sm:$0xff]  ;;  %v10714_v20 = vmax.f32 %v13455_v15, 0.0 }
 0x57f   :  { %10366 = vmatprep.subr.bf16.mxu0 %v13236_v61  ;;  %v12893_v61 = vcombine.low %v3858_v57, %v3862_v12  ;;  %v12902_v27 = vcombine.high %v3866_v18, %v3870_v53  ;;  %v13649_v10 = vld [vmem:[#allocation10 + $0x50] ss:$8 sps:$4 sm:$0xff]   ;;  %v12941_v57 = vcombine.low %v3906_v7, %v3910_v8  ;;  %v13652_v12 = vld [vmem:[#allocation10 + $0x60] ss:$8 sps:$4 sm:$0xff]  }
 0x581   :  { %10572 = vmatpush1.bf16.msra.mxu1 %v12853_v46  ;;  %v10722_v46 = vpack.c.bf16 %v10714_v20, %v10714_v20  ;;  %v13660_v20 = vld [vmem:[#allocation10 + $0x84] ss:$8 sps:$4 sm:$0xff]  }
 0x582   :  { %10367 = vmatpush1.bf16.msra.mxu0 %v13235_v35  ;;  %10573 = vmatprep.subr.bf16.mxu1 %v12862_v40  ;;  %v12901_v35 = vcombine.low %v3866_v18, %v3870_v53  ;;  %v13637_v40 = vld [vmem:[#allocation10 + $0x10] ss:$8 sps:$4 sm:$0xff]  }
 0x583   :  { %10368 = vmatprep.subr.bf16.mxu0 %v13244_v41  ;;  %v12910_v41 = vcombine.high %v3874_v31, %v3878_v59  ;;  %v13655_v18 = vld [vmem:[#allocation10 + $0x70] ss:$8 sps:$4 sm:$0xff]   ;;  %v13658_v31 = vld [vmem:[#allocation10 + $0x80] ss:$8 sps:$4 sm:$0xff]  }
 0x585   :  { %10574 = vmatpush1.bf16.msra.mxu1 %v12861_v9  ;;  %v12918_v9 = vcombine.high %v3882_v49, %v3886_v51 }
 0x586   :  { %10369 = vmatpush1.bf16.msra.mxu0 %v13243_v1  ;;  %10575 = vmatprep.subr.bf16.mxu1 %v12870_v47  ;;  %v13645_v1 = vld [vmem:[#allocation10 + $0x34] ss:$8 sps:$4 sm:$0xff]  }
 0x587   :  { %10370 = vmatprep.subr.bf16.mxu0 %v13252_v37  ;;  %v3890_v47 = vld [vmem:[#allocation7 + $0x1518] sm:$0xff] }
 0x588   :  { %v3894_v37 = vld [vmem:[#allocation7 + $0x1538] sm:$0xff] }
 0x589   :  { %10576 = vmatpush1.bf16.msra.mxu1 %v12869_v23  ;;  %v12926_v58 = vcombine.high %v3890_v47, %v3894_v37  ;;  %v3902_v23 = vld [vmem:[#allocation7 + $0x1578] sm:$0xff] }
 0x58a   :  { %10371 = vmatpush1.bf16.msra.mxu0 %v13251_v25  ;;  %10577 = vmatprep.subr.bf16.mxu1 %v12878_v3  ;;  %v12925_v25 = vcombine.low %v3890_v47, %v3894_v37  ;;  %v13646_v3 = vld [vmem:[#allocation10 + $0x40] ss:$8 sps:$4 sm:$0xff]   ;;  %v12933_v13 = vcombine.low %v3898_v39, %v3902_v23  ;;  %v13669_v47 = vld [vmem:[#allocation10 + $0xb4] ss:$8 sps:$4 sm:$0xff]  }
 0x58b   :  { %10372 = vmatprep.subr.bf16.mxu0 %v13260_v6  ;;  %v12934_v6 = vcombine.high %v3898_v39, %v3902_v23  ;;  %v3954_v37 = vld [vmem:[#allocation7 + $0x1718] sm:$0xff]  ;;  %v13672_v39 = vld [vmem:[#allocation10 + $0xc4] ss:$8 sps:$4 sm:$0xff]  }
 0x58c   :  { %v3962_v23 = vld [vmem:[#allocation7 + $0x1758] sm:$0xff] }
 0x58d   :  { %10578 = vmatpush1.bf16.msra.mxu1 %v12877_v29  ;;  %v12942_v29 = vcombine.high %v3906_v7, %v3910_v8  ;;  %v13675_v7 = vld [vmem:[#allocation10 + $0xd4] ss:$8 sps:$4 sm:$0xff]  }
 0x58e   :  { %10373 = vmatpush1.bf16.msra.mxu0 %v13259_v36  ;;  %10579 = vmatprep.subr.bf16.mxu1 %v12886_v11  ;;  %v13654_v36 = vld [vmem:[#allocation10 + $0x64] ss:$8 sps:$4 sm:$0xff]   ;;  %v3914_v11 = vld [vmem:[#allocation7 + $0x15d8] sm:$0xff] }
 0x58f   :  { %10374 = vmatprep.subr.bf16.mxu0 %v13268_v54  ;;  %v3918_v54 = vld [vmem:[#allocation7 + $0x15f8] sm:$0xff] }
 0x590   :  { %v12950_v15 = vcombine.high %v3914_v11, %v3918_v54  ;;  %v3970_v8 = vld [vmem:[#allocation7 + $0x1798] sm:$0xff] }
 0x591   :  { %10580 = vmatpush1.bf16.msra.mxu1 %v12885_v4  ;;  %v13657_v4 = vld [vmem:[#allocation10 + $0x74] ss:$8 sps:$4 sm:$0xff]  }
 0x592   :  { %10375 = vmatpush1.bf16.msra.mxu0 %v13267_v14  ;;  %10590 = vmatprep.subr.bf16.mxu1 %v12894_v16  ;;  %v3922_v14 = vld [vmem:[#allocation7 + $0x1618] sm:$0xff] }
 0x593   :  { %11509 = vmatprep.subr.bf16.mxu0 %v13636_v34  ;;  %v3926_v16 = vld [vmem:[#allocation7 + $0x1638] sm:$0xff]  ;;  %v12949_v34 = vcombine.low %v3914_v11, %v3918_v54  ;;  %v4244_v11 = vrot.slane %v14372_v2, %v14189_v62  ;;  %v13678_v54 = vld [vmem:[#allocation10 + $0xe4] ss:$8 sps:$4 sm:$0xff]  }
 0x594   :  { %10582 = vmatmul.mubr.bf16.vlgmr.msra.gmra.mrb[24].mxu1 %v14285_v43  ;;  %v13640_v43 = vld [vmem:[#allocation10 + $0x20] ss:$8 sps:$4 sm:$0xff]   ;;  %v12958_v53 = vcombine.high %v3922_v14, %v3926_v16 }
 0x595   :  { %10377 = vmatmul.mubr.bf16.vlgmr.msra.gmra.mrb[16].mxu0 %v14330_v48  ;;  %10591 = vmatpush1.bf16.msra.mxu1 %v12893_v61  ;;  %v3930_v61 = vld [vmem:[#allocation7 + $0x1658] sm:$0xff] }
 0x596   :  { %10622 = vmatprep.mubr.bf16.mxu1 %v14287_v50  ;;  %11510 = vmatpush1.bf16.msra.mxu0 %v13634_v24  ;;  %v12917_v50 = vcombine.low %v3882_v49, %v3886_v51  ;;  %v3934_v24 = vld [vmem:[#allocation7 + $0x1678] sm:$0xff]  ;;  %v13666_v49 = vld [vmem:[#allocation10 + $0xa4] ss:$8 sps:$4 sm:$0xff]  }
 0x597   :  { %11541 = vmatprep.mubr.bf16.mxu0 %v10722_v46  ;;  %10592 = vmatprep.subr.bf16.mxu1 %v12902_v27  ;;  %v12957_v27 = vcombine.low %v3922_v14, %v3926_v16  ;;  %v12966_v59 = vcombine.high %v3930_v61, %v3934_v24  ;;  %v3938_v46 = vld [vmem:[#allocation7 + $0x1698] sm:$0xff]  ;;  %v13676_v14 = vld [vmem:[#allocation10 + $0xe0] ss:$8 sps:$4 sm:$0xff]  }
 0x598   :  { %11511 = vmatprep.subr.bf16.mxu0 %v13639_v32  ;;  %v13663_v32 = vld [vmem:[#allocation10 + $0x94] ss:$8 sps:$4 sm:$0xff]  }
 0x599   :  { %10593 = vmatpush1.bf16.msra.mxu1 %v12901_v35  ;;  %v3942_v35 = vld [vmem:[#allocation7 + $0x16b8] sm:$0xff] }
 0x59a   :  { %11512 = vmatpush1.bf16.msra.mxu0 %v13637_v40  ;;  %10594 = vmatprep.subr.bf16.mxu1 %v12910_v41  ;;  %v12965_v40 = vcombine.low %v3930_v61, %v3934_v24  ;;  %v13661_v41 = vld [vmem:[#allocation10 + $0x90] ss:$8 sps:$4 sm:$0xff]  }
 0x59b   :  { %11513 = vmatprep.subr.bf16.mxu0 %v13642_v45  ;;  %v12974_v45 = vcombine.high %v3938_v46, %v3942_v35  ;;  %v3946_v51 = vld [vmem:[#allocation7 + $0x16d8] sm:$0xff] }
 0x59d   :  { %10595 = vmatpush1.bf16.msra.mxu1 %v12909_v52  ;;  %v3950_v52 = vld [vmem:[#allocation7 + $0x16f8] sm:$0xff] }
 0x59e   :  { %11514 = vmatpush1.bf16.msra.mxu0 %v13640_v43  ;;  %10596 = vmatprep.subr.bf16.mxu1 %v12918_v9  ;;  %v12973_v43 = vcombine.low %v3938_v46, %v3942_v35  ;;  %v13664_v9 = vld [vmem:[#allocation10 + $0xa0] ss:$8 sps:$4 sm:$0xff]   ;;  %v3998_v46 = vld [vmem:[#allocation7 + $0x1878] sm:$0xff] }
 0x59f   :  { %11515 = vmatprep.subr.bf16.mxu0 %v13645_v1  ;;  %v12982_v1 = vcombine.high %v3946_v51, %v3950_v52 }
 0x5a1   :  { %10597 = vmatpush1.bf16.msra.mxu1 %v12917_v50  ;;  %v3958_v50 = vld [vmem:[#allocation7 + $0x1738] sm:$0xff] }
 0x5a2   :  { %11516 = vmatpush1.bf16.msra.mxu0 %v13643_v55  ;;  %10598 = vmatprep.subr.bf16.mxu1 %v12926_v58  ;;  %v12981_v55 = vcombine.low %v3946_v51, %v3950_v52  ;;  %v13667_v58 = vld [vmem:[#allocation10 + $0xb0] ss:$8 sps:$4 sm:$0xff]   ;;  %v13687_v51 = vld [vmem:[#allocation10 + $0x114] ss:$8 sps:$4 sm:$0xff]  }
 0x5a3   :  { %11517 = vmatprep.subr.bf16.mxu0 %v13648_v0  ;;  %v12990_v0 = vcombine.high %v3954_v37, %v3958_v50 }
 0x5a5   :  { %10599 = vmatpush1.bf16.msra.mxu1 %v12925_v25  ;;  %v3966_v25 = vld [vmem:[#allocation7 + $0x1778] sm:$0xff] }
 0x5a6   :  { %11518 = vmatpush1.bf16.msra.mxu0 %v13646_v3  ;;  %10600 = vmatprep.subr.bf16.mxu1 %v12934_v6  ;;  %v12989_v3 = vcombine.low %v3954_v37, %v3958_v50  ;;  %v13670_v6 = vld [vmem:[#allocation10 + $0xc0] ss:$8 sps:$4 sm:$0xff]   ;;  %v4010_v37 = vld [vmem:[#allocation7 + $0x18d8] sm:$0xff] }
 0x5a7   :  { %11519 = vmatprep.subr.bf16.mxu0 %v13651_v42  ;;  %v12998_v42 = vcombine.high %v3962_v23, %v3966_v25  ;;  %v4014_v50 = vld [vmem:[#allocation7 + $0x18f8] sm:$0xff] }
 0x5a9   :  { %10601 = vmatpush1.bf16.msra.mxu1 %v12933_v13  ;;  %v3974_v13 = vld [vmem:[#allocation7 + $0x17b8] sm:$0xff] }
 0x5aa   :  { %11520 = vmatpush1.bf16.msra.mxu0 %v13649_v10  ;;  %10602 = vmatprep.subr.bf16.mxu1 %v12942_v29  ;;  %v12997_v10 = vcombine.low %v3962_v23, %v3966_v25  ;;  %v13673_v29 = vld [vmem:[#allocation10 + $0xd0] ss:$8 sps:$4 sm:$0xff]  }
 0x5ab   :  { %11521 = vmatprep.subr.bf16.mxu0 %v13654_v36  ;;  %v13006_v36 = vcombine.high %v3970_v8, %v3974_v13  ;;  %v4022_v23 = vld [vmem:[#allocation7 + $0x1938] sm:$0xff] }
 0x5ac   :  { %v13691_v25 = vld [vmem:[#allocation10 + $0x130] ss:$8 sps:$4 sm:$0xff]  }
 0x5ad   :  { %10603 = vmatpush1.bf16.msra.mxu1 %v12941_v57  ;;  %v3978_v57 = vld [vmem:[#allocation7 + $0x17d8] sm:$0xff] }
 0x5ae   :  { %11522 = vmatpush1.bf16.msra.mxu0 %v13652_v12  ;;  %10604 = vmatprep.subr.bf16.mxu1 %v12950_v15  ;;  %v3982_v12 = vld [vmem:[#allocation7 + $0x17f8] sm:$0xff]  ;;  %v4256_v15 = vrot.slane %v14372_v2, %v14202_v26 }
 0x5af   :  { %11523 = vmatprep.subr.bf16.mxu0 %v13657_v4  ;;  %v13005_v4 = vcombine.low %v3970_v8, %v3974_v13  ;;  %v13014_v16 = vcombine.high %v3978_v57, %v3982_v12  ;;  %v13013_v24 = vcombine.low %v3978_v57, %v3982_v12  ;;  %v13694_v13 = vld [vmem:[#allocation10 + $0x140] ss:$8 sps:$4 sm:$0xff]   ;;  %v13697_v57 = vld [vmem:[#allocation10 + $0x150] ss:$8 sps:$4 sm:$0xff]  }
 0x5b0   :  { %v13457_v61 = vadd.f32 %v14366_v44, %v4256_v15  ;;  %v13702_v15 = vld [vmem:[#allocation10 + $0x164] ss:$8 sps:$4 sm:$0xff]  }
 0x5b1   :  { %10605 = vmatpush1.bf16.msra.mxu1 %v12949_v34  ;;  %v13454_v34 = vadd.f32 %v14348_v22, %v4244_v11  ;;  %v4038_v11 = vld [vmem:[#allocation7 + $0x19b8] sm:$0xff] }
 0x5b2   :  { %11524 = vmatpush1.bf16.msra.mxu0 %v13655_v18  ;;  %10606 = vmatprep.subr.bf16.mxu1 %v12958_v53  ;;  %v13681_v18 = vld [vmem:[#allocation10 + $0xf4] ss:$8 sps:$4 sm:$0xff]   ;;  %v10716_v35 = vmax.f32 %v13457_v61, 0.0 }
 0x5b3   :  { %11525 = vmatprep.subr.bf16.mxu0 %v13660_v20  ;;  %v3986_v53 = vld [vmem:[#allocation7 + $0x1818] sm:$0xff] }
 0x5b4   :  { %v3990_v20 = vld [vmem:[#allocation7 + $0x1838] sm:$0xff]  ;;  %v10724_v52 = vpack.c.bf16 %v10716_v35, %v10716_v35  ;;  %v13706_v35 = vld [vmem:[#allocation10 + $0x180] ss:$8 sps:$4 sm:$0xff]  }
 0x5b5   :  { %10607 = vmatpush1.bf16.msra.mxu1 %v12957_v27  ;;  %v13679_v27 = vld [vmem:[#allocation10 + $0xf0] ss:$8 sps:$4 sm:$0xff]   ;;  %v13022_v26 = vcombine.high %v3986_v53, %v3990_v20  ;;  %v13021_v22 = vcombine.low %v3986_v53, %v3990_v20  ;;  %v13705_v53 = vld [vmem:[#allocation10 + $0x174] ss:$8 sps:$4 sm:$0xff]  }
 0x5b6   :  { %11526 = vmatpush1.bf16.msra.mxu0 %v13658_v31  ;;  %10608 = vmatprep.subr.bf16.mxu1 %v12966_v59  ;;  %v10713_v31 = vmax.f32 %v13454_v34, 0.0  ;;  %v13684_v59 = vld [vmem:[#allocation10 + $0x104] ss:$8 sps:$4 sm:$0xff]   ;;  %v13700_v34 = vld [vmem:[#allocation10 + $0x160] ss:$8 sps:$4 sm:$0xff]   ;;  %v4050_v20 = vld [vmem:[#allocation7 + $0x1a18] sm:$0xff] }
 0x5b7   :  { %11527 = vmatprep.subr.bf16.mxu0 %v13663_v32  ;;  %v3994_v32 = vld [vmem:[#allocation7 + $0x1858] sm:$0xff] }
 0x5b8   :  { %v13030_v44 = vcombine.high %v3994_v32, %v3998_v46  ;;  %v4054_v61 = vld [vmem:[#allocation7 + $0x1a38] sm:$0xff] }
 0x5b9   :  { %10609 = vmatpush1.bf16.msra.mxu1 %v12965_v40  ;;  %v13682_v40 = vld [vmem:[#allocation10 + $0x100] ss:$8 sps:$4 sm:$0xff]  }
 0x5ba   :  { %11528 = vmatpush1.bf16.msra.mxu0 %v13661_v41  ;;  %10610 = vmatprep.subr.bf16.mxu1 %v12974_v45  ;;  %v10721_v41 = vpack.c.bf16 %v10713_v31, %v10713_v31  ;;  %v4002_v45 = vld [vmem:[#allocation7 + $0x1898] sm:$0xff]  ;;  %v13708_v31 = vld [vmem:[#allocation10 + $0x184] ss:$8 sps:$4 sm:$0xff]  }
 0x5bb   :  { %11529 = vmatprep.subr.bf16.mxu0 %v13666_v49  ;;  %v4006_v49 = vld [vmem:[#allocation7 + $0x18b8] sm:$0xff] }
 0x5bd   :  { %10611 = vmatpush1.bf16.msra.mxu1 %v12973_v43  ;;  %v13029_v43 = vcombine.low %v3994_v32, %v3998_v46  ;;  %v4062_v32 = vld [vmem:[#allocation7 + $0x1a78] sm:$0xff]  ;;  %v13085_v46 = vcombine.low %v4050_v20, %v4054_v61 }
 0x5be   :  { %11530 = vmatpush1.bf16.msra.mxu0 %v13664_v9  ;;  %10612 = vmatprep.subr.bf16.mxu1 %v12982_v1  ;;  %v13685_v9 = vld [vmem:[#allocation10 + $0x110] ss:$8 sps:$4 sm:$0xff]   ;;  %v13038_v1 = vcombine.high %v4002_v45, %v4006_v49 }
 0x5bf   :  { %11531 = vmatprep.subr.bf16.mxu0 %v13669_v47  ;;  %v13690_v47 = vld [vmem:[#allocation10 + $0x124] ss:$8 sps:$4 sm:$0xff]  }
 0x5c1   :  { %10613 = vmatpush1.bf16.msra.mxu1 %v12981_v55  ;;  %v13037_v55 = vcombine.low %v4002_v45, %v4006_v49  ;;  %v13709_v49 = vld [vmem:[#allocation10 + $0x190] ss:$8 sps:$4 sm:$0xff]  }
 0x5c2   :  { %11532 = vmatpush1.bf16.msra.mxu0 %v13667_v58  ;;  %10614 = vmatprep.subr.bf16.mxu1 %v12990_v0  ;;  %v13046_v58 = vcombine.high %v4010_v37, %v4014_v50  ;;  %v13693_v0 = vld [vmem:[#allocation10 + $0x134] ss:$8 sps:$4 sm:$0xff]  }
 0x5c3   :  { %11533 = vmatprep.subr.bf16.mxu0 %v13672_v39  ;;  %v4018_v39 = vld [vmem:[#allocation7 + $0x1918] sm:$0xff] }
 0x5c4   :  { %v13053_v8 = vcombine.low %v4018_v39, %v4022_v23 }
 0x5c5   :  { %10615 = vmatpush1.bf16.msra.mxu1 %v12989_v3  ;;  %v13054_v3 = vcombine.high %v4018_v39, %v4022_v23  ;;  %v13720_v23 = vld [vmem:[#allocation10 + $0x1c4] ss:$8 sps:$4 sm:$0xff]  }
 0x5c6   :  { %11534 = vmatpush1.bf16.msra.mxu0 %v13670_v6  ;;  %10616 = vmatprep.subr.bf16.mxu1 %v12998_v42  ;;  %v13696_v6 = vld [vmem:[#allocation10 + $0x144] ss:$8 sps:$4 sm:$0xff]   ;;  %v4026_v42 = vld [vmem:[#allocation7 + $0x1958] sm:$0xff] }
 0x5c7   :  { %11535 = vmatprep.subr.bf16.mxu0 %v13675_v7  ;;  %v4030_v7 = vld [vmem:[#allocation7 + $0x1978] sm:$0xff] }
 0x5c9   :  { %10617 = vmatpush1.bf16.msra.mxu1 %v12997_v10  ;;  %v13062_v10 = vcombine.high %v4026_v42, %v4030_v7 }
 0x5ca   :  { %11536 = vmatpush1.bf16.msra.mxu0 %v13673_v29  ;;  %10618 = vmatprep.subr.bf16.mxu1 %v13006_v36  ;;  %v13699_v29 = vld [vmem:[#allocation10 + $0x154] ss:$8 sps:$4 sm:$0xff]  }
 0x5cb   :  { %11537 = vmatprep.subr.bf16.mxu0 %v13678_v54  ;;  %v4034_v36 = vld [vmem:[#allocation7 + $0x1998] sm:$0xff]  ;;  %v13061_v54 = vcombine.low %v4026_v42, %v4030_v7 }
 0x5cc   :  { %v13070_v12 = vcombine.high %v4034_v36, %v4038_v11  ;;  %v13723_v7 = vld [vmem:[#allocation10 + $0x1d4] ss:$8 sps:$4 sm:$0xff]  }
 0x5cd   :  { %10619 = vmatpush1.bf16.msra.mxu1 %v13005_v4  ;;  %v4042_v4 = vld [vmem:[#allocation7 + $0x19d8] sm:$0xff] }
 0x5ce   :  { %11538 = vmatpush1.bf16.msra.mxu0 %v13676_v14  ;;  %10620 = vmatprep.subr.bf16.mxu1 %v13014_v16  ;;  %v4046_v14 = vld [vmem:[#allocation7 + $0x19f8] sm:$0xff]  ;;  %v13069_v16 = vcombine.low %v4034_v36, %v4038_v11  ;;  %v4252_v11 = vrot.slane %v14372_v2, %v14205_v30 }
 0x5cf   :  { %11539 = vmatprep.subr.bf16.mxu0 %v13681_v18  ;;  %v13078_v18 = vcombine.high %v4042_v4, %v4046_v14  ;;  %v13727_v30 = vld [vmem:[#allocation10 + $0x1f0] ss:$8 sps:$4 sm:$0xff]  }
 0x5d1   :  { %10621 = vmatpush1.bf16.msra.mxu1 %v13013_v24  ;;  %v13077_v24 = vcombine.low %v4042_v4, %v4046_v14  ;;  %v13724_v4 = vld [vmem:[#allocation10 + $0x1e0] ss:$8 sps:$4 sm:$0xff]  }
 0x5d2   :  { %11540 = vmatpush1.bf16.msra.mxu0 %v13679_v27  ;;  %10631 = vmatprep.subr.bf16.mxu1 %v13022_v26  ;;  %v13703_v27 = vld [vmem:[#allocation10 + $0x170] ss:$8 sps:$4 sm:$0xff]   ;;  %v13086_v26 = vcombine.high %v4050_v20, %v4054_v61 }
 0x5d3   :  { %11550 = vmatprep.subr.bf16.mxu0 %v13684_v59  ;;  %v4058_v59 = vld [vmem:[#allocation7 + $0x1a58] sm:$0xff] }
 0x5d4   :  { %10623 = vmatmul.mubr.bf16.vlgmr.msra.gmra.mrb[24].mxu1 %v14299_v63  ;;  %v13688_v63 = vld [vmem:[#allocation10 + $0x120] ss:$8 sps:$4 sm:$0xff]   ;;  %v13093_v45 = vcombine.low %v4058_v59, %v4062_v32 }
 0x5d5   :  { %11542 = vmatmul.mubr.bf16.vlgmr.msra.gmra.mrb[20].mxu0 %v10721_v41  ;;  %10632 = vmatpush1.bf16.msra.mxu1 %v13021_v22  ;;  %v13094_v22 = vcombine.high %v4058_v59, %v4062_v32  ;;  %v4066_v41 = vld [vmem:[#allocation7 + $0x1a98] sm:$0xff] }
 0x5d6   :  { %10663 = vmatprep.mubr.bf16.mxu1 %v14301_v5  ;;  %11551 = vmatpush1.bf16.msra.mxu0 %v13682_v40  ;;  %v13045_v5 = vcombine.low %v4010_v37, %v4014_v50  ;;  %v13711_v40 = vld [vmem:[#allocation10 + $0x194] ss:$8 sps:$4 sm:$0xff]  }
 0x5d7   :  { %11582 = vmatprep.mubr.bf16.mxu0 %v10724_v52  ;;  %10633 = vmatprep.subr.bf16.mxu1 %v13030_v44  ;;  %v4070_v44 = vld [vmem:[#allocation7 + $0x1ab8] sm:$0xff]  ;;  %v13714_v52 = vld [vmem:[#allocation10 + $0x1a4] ss:$8 sps:$4 sm:$0xff]  }
 0x5d8   :  { %11552 = vmatprep.subr.bf16.mxu0 %v13687_v51  ;;  %v13102_v51 = vcombine.high %v4066_v41, %v4070_v44  ;;  %v13717_v50 = vld [vmem:[#allocation10 + $0x1b4] ss:$8 sps:$4 sm:$0xff]  }
 0x5d9   :  { %10634 = vmatpush1.bf16.msra.mxu1 %v13029_v43  ;;  %v4074_v43 = vld [vmem:[#allocation7 + $0x1ad8] sm:$0xff] }
 0x5da   :  { %11553 = vmatpush1.bf16.msra.mxu0 %v13685_v9  ;;  %10635 = vmatprep.subr.bf16.mxu1 %v13038_v1  ;;  %v4078_v9 = vld [vmem:[#allocation7 + $0x1af8] sm:$0xff]  ;;  %v13101_v1 = vcombine.low %v4066_v41, %v4070_v44 }
 0x5db   :  { %11554 = vmatprep.subr.bf16.mxu0 %v13690_v47  ;;  %v13712_v47 = vld [vmem:[#allocation10 + $0x1a0] ss:$8 sps:$4 sm:$0xff]   ;;  %v13110_v37 = vcombine.high %v4074_v43, %v4078_v9  ;;  %v4130_v32 = vld [vmem:[#allocation7 + $0x1c98] sm:$0xff] }
 0x5dc   :  { %v4138_v44 = vld [vmem:[#allocation7 + $0x1cd8] sm:$0xff] }
 0x5dd   :  { %10636 = vmatpush1.bf16.msra.mxu1 %v13037_v55  ;;  %v4082_v55 = vld [vmem:[#allocation7 + $0x1b18] sm:$0xff] }
 0x5de   :  { %11555 = vmatpush1.bf16.msra.mxu0 %v13688_v63  ;;  %10637 = vmatprep.subr.bf16.mxu1 %v13046_v58  ;;  %v4086_v63 = vld [vmem:[#allocation7 + $0x1b38] sm:$0xff]  ;;  %v13109_v58 = vcombine.low %v4074_v43, %v4078_v9 }
 0x5df   :  { %11556 = vmatprep.subr.bf16.mxu0 %v13693_v0  ;;  %v13715_v0 = vld [vmem:[#allocation10 + $0x1b0] ss:$8 sps:$4 sm:$0xff]   ;;  %v13118_v39 = vcombine.high %v4082_v55, %v4086_v63 }
 0x5e0   :  { %v4146_v9 = vld [vmem:[#allocation7 + $0x1d18] sm:$0xff] }
 0x5e1   :  { %10638 = vmatpush1.bf16.msra.mxu1 %v13045_v5  ;;  %v4090_v5 = vld [vmem:[#allocation7 + $0x1b58] sm:$0xff] }
 0x5e2   :  { %11557 = vmatpush1.bf16.msra.mxu0 %v13691_v25  ;;  %10639 = vmatprep.subr.bf16.mxu1 %v13054_v3  ;;  %v4094_v25 = vld [vmem:[#allocation7 + $0x1b78] sm:$0xff]  ;;  %v13117_v3 = vcombine.low %v4082_v55, %v4086_v63 }
 0x5e3   :  { %11558 = vmatprep.subr.bf16.mxu0 %v13696_v6  ;;  %v13718_v6 = vld [vmem:[#allocation10 + $0x1c0] ss:$8 sps:$4 sm:$0xff]   ;;  %v13126_v42 = vcombine.high %v4090_v5, %v4094_v25  ;;  %v4158_v55 = vld [vmem:[#allocation7 + $0x1d78] sm:$0xff] }
 0x5e4   :  { %v13739_v63 = vld [vmem:[#allocation10 + $0x230] ss:$8 sps:$4 sm:$0xff]  }
 0x5e5   :  { %10640 = vmatpush1.bf16.msra.mxu1 %v13053_v8  ;;  %v4098_v8 = vld [vmem:[#allocation7 + $0x1b98] sm:$0xff] }
 0x5e6   :  { %11559 = vmatpush1.bf16.msra.mxu0 %v13694_v13  ;;  %10641 = vmatprep.subr.bf16.mxu1 %v13062_v10  ;;  %v4102_v13 = vld [vmem:[#allocation7 + $0x1bb8] sm:$0xff]  ;;  %v13125_v10 = vcombine.low %v4090_v5, %v4094_v25  ;;  %v13742_v25 = vld [vmem:[#allocation10 + $0x240] ss:$8 sps:$4 sm:$0xff]  }
 0x5e7   :  { %11560 = vmatprep.subr.bf16.mxu0 %v13699_v29  ;;  %v13721_v29 = vld [vmem:[#allocation10 + $0x1d0] ss:$8 sps:$4 sm:$0xff]   ;;  %v13134_v36 = vcombine.high %v4098_v8, %v4102_v13 }
 0x5e8   :  { %v4166_v5 = vld [vmem:[#allocation7 + $0x1db8] sm:$0xff] }
 0x5e9   :  { %10642 = vmatpush1.bf16.msra.mxu1 %v13061_v54  ;;  %v13726_v54 = vld [vmem:[#allocation10 + $0x1e4] ss:$8 sps:$4 sm:$0xff]  }
 0x5ea   :  { %11561 = vmatpush1.bf16.msra.mxu0 %v13697_v57  ;;  %10643 = vmatprep.subr.bf16.mxu1 %v13070_v12  ;;  %v4106_v57 = vld [vmem:[#allocation7 + $0x1bd8] sm:$0xff] }
 0x5eb   :  { %11562 = vmatprep.subr.bf16.mxu0 %v13702_v15  ;;  %v4110_v12 = vld [vmem:[#allocation7 + $0x1bf8] sm:$0xff]  ;;  %v13133_v15 = vcombine.low %v4098_v8, %v4102_v13 }
 0x5ec   :  { %v13142_v14 = vcombine.high %v4106_v57, %v4110_v12  ;;  %v13141_v20 = vcombine.low %v4106_v57, %v4110_v12  ;;  %v4174_v8 = vld [vmem:[#allocation7 + $0x1df8] sm:$0xff]  ;;  %v13748_v57 = vld [vmem:[#allocation10 + $0x260] ss:$8 sps:$4 sm:$0xff]  }
 0x5ed   :  { %10644 = vmatpush1.bf16.msra.mxu1 %v13069_v16  ;;  %v13456_v16 = vadd.f32 %v14364_v19, %v4252_v11  ;;  %v13745_v13 = vld [vmem:[#allocation10 + $0x250] ss:$8 sps:$4 sm:$0xff]   ;;  %v13753_v12 = vld [vmem:[#allocation10 + $0x274] ss:$8 sps:$4 sm:$0xff]  }
 0x5ee   :  { %11563 = vmatpush1.bf16.msra.mxu0 %v13700_v34  ;;  %10645 = vmatprep.subr.bf16.mxu1 %v13078_v18  ;;  %v13729_v34 = vld [vmem:[#allocation10 + $0x1f4] ss:$8 sps:$4 sm:$0xff]  }
 0x5ef   :  { %11564 = vmatprep.subr.bf16.mxu0 %v13705_v53  ;;  %v4114_v18 = vld [vmem:[#allocation7 + $0x1c18] sm:$0xff]  ;;  %v10715_v61 = vmax.f32 %v13456_v16, 0.0 }
 0x5f0   :  { %v4118_v53 = vld [vmem:[#allocation7 + $0x1c38] sm:$0xff] }
 0x5f1   :  { %10646 = vmatpush1.bf16.msra.mxu1 %v13077_v24  ;;  %v13150_v2 = vcombine.high %v4114_v18, %v4118_v53  ;;  %v4122_v24 = vld [vmem:[#allocation7 + $0x1c58] sm:$0xff]  ;;  %v10723_v59 = vpack.c.bf16 %v10715_v61, %v10715_v61  ;;  %v13754_v61 = vld [vmem:[#allocation10 + $0x280] ss:$8 sps:$4 sm:$0xff]  }
 0x5f2   :  { %11565 = vmatpush1.bf16.msra.mxu0 %v13703_v27  ;;  %10647 = vmatprep.subr.bf16.mxu1 %v13086_v26  ;;  %v4126_v27 = vld [vmem:[#allocation7 + $0x1c78] sm:$0xff]  ;;  %v13732_v26 = vld [vmem:[#allocation10 + $0x204] ss:$8 sps:$4 sm:$0xff]  }
 0x5f3   :  { %11566 = vmatprep.subr.bf16.mxu0 %v13708_v31  ;;  %v13149_v31 = vcombine.low %v4114_v18, %v4118_v53  ;;  %v13158_v19 = vcombine.high %v4122_v24, %v4126_v27  ;;  %v4178_v11 = vld [vmem:[#allocation7 + $0x1e18] sm:$0xff]  ;;  %v13756_v18 = vld [vmem:[#allocation10 + $0x284] ss:$8 sps:$4 sm:$0xff]  }
 0x5f4   :  { %v4190_v16 = vld [vmem:[#allocation7 + $0x1e78] sm:$0xff] }
 0x5f5   :  { %10648 = vmatpush1.bf16.msra.mxu1 %v13085_v46  ;;  %v4134_v46 = vld [vmem:[#allocation7 + $0x1cb8] sm:$0xff] }
 0x5f6   :  { %11567 = vmatpush1.bf16.msra.mxu0 %v13706_v35  ;;  %10649 = vmatprep.subr.bf16.mxu1 %v13094_v22  ;;  %v13730_v35 = vld [vmem:[#allocation10 + $0x200] ss:$8 sps:$4 sm:$0xff]   ;;  %v13735_v22 = vld [vmem:[#allocation10 + $0x214] ss:$8 sps:$4 sm:$0xff]   ;;  %v13166_v41 = vcombine.high %v4130_v32, %v4134_v46 }
 0x5f7   :  { %11568 = vmatprep.subr.bf16.mxu0 %v13711_v40  ;;  %v13157_v40 = vcombine.low %v4122_v24, %v4126_v27  ;;  %v13759_v24 = vld [vmem:[#allocation10 + $0x294] ss:$8 sps:$4 sm:$0xff]  }
 0x5f9   :  { %10650 = vmatpush1.bf16.msra.mxu1 %v13093_v45  ;;  %v4142_v45 = vld [vmem:[#allocation7 + $0x1cf8] sm:$0xff] }
 0x5fa   :  { %11569 = vmatpush1.bf16.msra.mxu0 %v13709_v49  ;;  %10651 = vmatprep.subr.bf16.mxu1 %v13102_v51  ;;  %v13733_v49 = vld [vmem:[#allocation10 + $0x210] ss:$8 sps:$4 sm:$0xff]   ;;  %v13738_v51 = vld [vmem:[#allocation10 + $0x224] ss:$8 sps:$4 sm:$0xff]   ;;  %v13174_v43 = vcombine.high %v4138_v44, %v4142_v45 }
 0x5fb   :  { %11570 = vmatprep.subr.bf16.mxu0 %v13714_v52  ;;  %v13165_v52 = vcombine.low %v4130_v32, %v4134_v46  ;;  %v13762_v32 = vld [vmem:[#allocation10 + $0x2a4] ss:$8 sps:$4 sm:$0xff]  }
 0x5fd   :  { %10652 = vmatpush1.bf16.msra.mxu1 %v13101_v1  ;;  %v13736_v1 = vld [vmem:[#allocation10 + $0x220] ss:$8 sps:$4 sm:$0xff]  }
 0x5fe   :  { %11571 = vmatpush1.bf16.msra.mxu0 %v13712_v47  ;;  %10653 = vmatprep.subr.bf16.mxu1 %v13110_v37  ;;  %v13741_v47 = vld [vmem:[#allocation10 + $0x234] ss:$8 sps:$4 sm:$0xff]  }
 0x5ff   :  { %11572 = vmatprep.subr.bf16.mxu0 %v13717_v50  ;;  %v4154_v50 = vld [vmem:[#allocation7 + $0x1d58] sm:$0xff] }
 0x601   :  { %10654 = vmatpush1.bf16.msra.mxu1 %v13109_v58  ;;  %v13744_v58 = vld [vmem:[#allocation10 + $0x244] ss:$8 sps:$4 sm:$0xff]  }
 0x602   :  { %11573 = vmatpush1.bf16.msra.mxu0 %v13715_v0  ;;  %10655 = vmatprep.subr.bf16.mxu1 %v13118_v39  ;;  %v13190_v39 = vcombine.high %v4154_v50, %v4158_v55 }
 0x603   :  { %11574 = vmatprep.subr.bf16.mxu0 %v13720_v23  ;;  %v4162_v23 = vld [vmem:[#allocation7 + $0x1d98] sm:$0xff] }
 0x605   :  { %10656 = vmatpush1.bf16.msra.mxu1 %v13117_v3  ;;  %v13747_v3 = vld [vmem:[#allocation10 + $0x254] ss:$8 sps:$4 sm:$0xff]  }
 0x606   :  { %11575 = vmatpush1.bf16.msra.mxu0 %v13718_v6  ;;  %10657 = vmatprep.subr.bf16.mxu1 %v13126_v42  ;;  %v13189_v6 = vcombine.low %v4154_v50, %v4158_v55  ;;  %v13198_v42 = vcombine.high %v4162_v23, %v4166_v5  ;;  %v13771_v50 = vld [vmem:[#allocation10 + $0x2d4] ss:$8 sps:$4 sm:$0xff]  }
 0x607   :  { %11576 = vmatprep.subr.bf16.mxu0 %v13723_v7  ;;  %v4170_v7 = vld [vmem:[#allocation7 + $0x1dd8] sm:$0xff] }
 0x609   :  { %10658 = vmatpush1.bf16.msra.mxu1 %v13125_v10  ;;  %v13750_v10 = vld [vmem:[#allocation10 + $0x264] ss:$8 sps:$4 sm:$0xff]  }
 0x60a   :  { %11577 = vmatpush1.bf16.msra.mxu0 %v13721_v29  ;;  %10659 = vmatprep.subr.bf16.mxu1 %v13134_v36  ;;  %v13197_v29 = vcombine.low %v4162_v23, %v4166_v5  ;;  %v13206_v36 = vcombine.high %v4170_v7, %v4174_v8  ;;  %v13774_v23 = vld [vmem:[#allocation10 + $0x2e4] ss:$8 sps:$4 sm:$0xff]  }
 0x60b   :  { %11578 = vmatprep.subr.bf16.mxu0 %v13726_v54  ;;  %v4182_v54 = vld [vmem:[#allocation7 + $0x1e38] sm:$0xff] }
 0x60c   :  { %v13213_v53 = vcombine.low %v4178_v11, %v4182_v54 }
 0x60d   :  { %10660 = vmatpush1.bf16.msra.mxu1 %v13133_v15  ;;  %v13205_v15 = vcombine.low %v4170_v7, %v4174_v8  ;;  %v13775_v7 = vld [vmem:[#allocation10 + $0x2f0] ss:$8 sps:$4 sm:$0xff]   ;;  %v13780_v8 = vld [vmem:[#allocation10 + $0x304] ss:$8 sps:$4 sm:$0xff]  }
 0x60e   :  { %11579 = vmatpush1.bf16.msra.mxu0 %v13724_v4  ;;  %10661 = vmatprep.subr.bf16.mxu1 %v13142_v14  ;;  %v13214_v4 = vcombine.high %v4178_v11, %v4182_v54  ;;  %v4186_v14 = vld [vmem:[#allocation7 + $0x1e58] sm:$0xff] }
 0x60f   :  { %11580 = vmatprep.subr.bf16.mxu0 %v13729_v34  ;;  %v13751_v34 = vld [vmem:[#allocation10 + $0x270] ss:$8 sps:$4 sm:$0xff]   ;;  %v13221_v27 = vcombine.low %v4186_v14, %v4190_v16 }
 0x611   :  { %10662 = vmatpush1.bf16.msra.mxu1 %v13141_v20  ;;  %v13222_v20 = vcombine.high %v4186_v14, %v4190_v16 }
 0x612   :  { %11581 = vmatpush1.bf16.msra.mxu0 %v13727_v30  ;;  %10672 = vmatprep.subr.bf16.mxu1 %v13150_v2  ;;  %v4194_v30 = vld [vmem:[#allocation7 + $0x1e98] sm:$0xff] }
 0x613   :  { %11591 = vmatprep.subr.bf16.mxu0 %v13732_v26  ;;  %v4198_v2 = vld [vmem:[#allocation7 + $0x1eb8] sm:$0xff] }
 0x614   :  { %10664 = vmatmul.mubr.bf16.vlgmr.msra.gmra.mrb[24].mxu1 %v14319_v17  ;;  %v4150_v17 = vld [vmem:[#allocation7 + $0x1d38] sm:$0xff]  ;;  %v13230_v26 = vcombine.high %v4194_v30, %v4198_v2  ;;  %v13229_v46 = vcombine.low %v4194_v30, %v4198_v2  ;;  %v13792_v2 = vld [vmem:[#allocation10 + $0x344] ss:$8 sps:$4 sm:$0xff]  }
 0x615   :  { %11583 = vmatmul.mubr.bf16.vlgmr.msra.gmra.mrb[20].mxu0 %v10723_v59  ;;  %10673 = vmatpush1.bf16.msra.mxu1 %v13149_v31  ;;  %v13182_v37 = vcombine.high %v4146_v9, %v4150_v17  ;;  %v13181_v0 = vcombine.low %v4146_v9, %v4150_v17  ;;  %v4202_v31 = vld [vmem:[#allocation7 + $0x1ed8] sm:$0xff]  ;;  %v13768_v9 = vld [vmem:[#allocation10 + $0x2c4] ss:$8 sps:$4 sm:$0xff]  }
 0x616   :  { %10704 = vmatprep.mubr.bf16.mxu1 %v14321_v21  ;;  %10674 = vmatprep.subr.bf16.mxu1 %v13158_v19  ;;  %v13173_v21 = vcombine.low %v4138_v44, %v4142_v45  ;;  %v4206_v19 = vld [vmem:[#allocation7 + $0x1ef8] sm:$0xff] }
 0x617   :  { %11592 = vmatpush1.bf16.msra.mxu0 %v13730_v35  ;;  %v13757_v59 = vld [vmem:[#allocation10 + $0x290] ss:$8 sps:$4 sm:$0xff]   ;;  %v13238_v35 = vcombine.high %v4202_v31, %v4206_v19  ;;  %v13765_v44 = vld [vmem:[#allocation10 + $0x2b4] ss:$8 sps:$4 sm:$0xff]   ;;  %v13237_v45 = vcombine.low %v4202_v31, %v4206_v19  ;;  %v13796_v31 = vld [vmem:[#allocation10 + $0x360] ss:$8 sps:$4 sm:$0xff]  }
 0x618   :  { %11593 = vmatprep.subr.bf16.mxu0 %v13735_v22  ;;  %v4210_v22 = vld [vmem:[#allocation7 + $0x1f18] sm:$0xff] }
 0x619   :  { %10675 = vmatpush1.bf16.msra.mxu1 %v13157_v40  ;;  %v4214_v40 = vld [vmem:[#allocation7 + $0x1f38] sm:$0xff] }
 0x61a   :  { %10676 = vmatprep.subr.bf16.mxu1 %v13166_v41  ;;  %v13760_v41 = vld [vmem:[#allocation10 + $0x2a0] ss:$8 sps:$4 sm:$0xff]   ;;  %v13245_v17 = vcombine.low %v4210_v22, %v4214_v40  ;;  %v13787_v30 = vld [vmem:[#allocation10 + $0x330] ss:$8 sps:$4 sm:$0xff]   ;;  %v13801_v19 = vld [vmem:[#allocation10 + $0x374] ss:$8 sps:$4 sm:$0xff]  }
 0x61b   :  { %11594 = vmatpush1.bf16.msra.mxu0 %v13733_v49  ;;  %v13246_v49 = vcombine.high %v4210_v22, %v4214_v40  ;;  %v13805_v22 = vld [vmem:[#allocation10 + $0x390] ss:$8 sps:$4 sm:$0xff]   ;;  %v13810_v40 = vld [vmem:[#allocation10 + $0x3a4] ss:$8 sps:$4 sm:$0xff]  }
 0x61c   :  { %11595 = vmatprep.subr.bf16.mxu0 %v13738_v51  ;;  %v4218_v51 = vld [vmem:[#allocation7 + $0x1f58] sm:$0xff] }
 0x61d   :  { %10677 = vmatpush1.bf16.msra.mxu1 %v13165_v52  ;;  %v4222_v52 = vld [vmem:[#allocation7 + $0x1f78] sm:$0xff] }
 0x61e   :  { %10678 = vmatprep.subr.bf16.mxu1 %v13174_v43  ;;  %v13763_v43 = vld [vmem:[#allocation10 + $0x2b0] ss:$8 sps:$4 sm:$0xff]   ;;  %v13253_v55 = vcombine.low %v4218_v51, %v4222_v52 }
 0x61f   :  { %11596 = vmatpush1.bf16.msra.mxu0 %v13736_v1  ;;  %v13254_v1 = vcombine.high %v4218_v51, %v4222_v52  ;;  %v13814_v51 = vld [vmem:[#allocation10 + $0x3c0] ss:$8 sps:$4 sm:$0xff]   ;;  %v13819_v52 = vld [vmem:[#allocation10 + $0x3d4] ss:$8 sps:$4 sm:$0xff]  }
 0x620   :  { %11597 = vmatprep.subr.bf16.mxu0 %v13741_v47  ;;  %v4226_v47 = vld [vmem:[#allocation7 + $0x1f98] sm:$0xff] }
 0x621   :  { %10679 = vmatpush1.bf16.msra.mxu1 %v13173_v21  ;;  %v4230_v21 = vld [vmem:[#allocation7 + $0x1fb8] sm:$0xff] }
 0x622   :  { %10680 = vmatprep.subr.bf16.mxu1 %v13182_v37  ;;  %v13766_v37 = vld [vmem:[#allocation10 + $0x2c0] ss:$8 sps:$4 sm:$0xff]   ;;  %v13261_v5 = vcombine.low %v4226_v47, %v4230_v21 }
 0x623   :  { %11598 = vmatpush1.bf16.msra.mxu0 %v13739_v63  ;;  %v13262_v63 = vcombine.high %v4226_v47, %v4230_v21  ;;  %v13823_v47 = vld [vmem:[#allocation10 + $0x3f0] ss:$8 sps:$4 sm:$0xff]   ;;  %v13826_v21 = vld [vmem:[%s14464_s7 + $0x40] sm:$0xff]  }
 0x624   :  { %11599 = vmatprep.subr.bf16.mxu0 %v13744_v58  ;;  %v4234_v58 = vld [vmem:[#allocation7 + $0x1fd8] sm:$0xff] }
 0x625   :  { %10681 = vmatpush1.bf16.msra.mxu1 %v13181_v0  ;;  %v4238_v0 = vld [vmem:[#allocation7 + $0x1ff8] sm:$0xff] }
 0x626   :  { %10682 = vmatprep.subr.bf16.mxu1 %v13190_v39  ;;  %v13769_v39 = vld [vmem:[#allocation10 + $0x2d0] ss:$8 sps:$4 sm:$0xff]  }
 0x627   :  { %11600 = vmatpush1.bf16.msra.mxu0 %v13742_v25  ;;  %v13270_v25 = vcombine.high %v4234_v58, %v4238_v0 }
 0x628   :  { %11601 = vmatprep.subr.bf16.mxu0 %v13747_v3  ;;  %v13772_v3 = vld [vmem:[#allocation10 + $0x2e0] ss:$8 sps:$4 sm:$0xff]  }
 0x629   :  { %10683 = vmatpush1.bf16.msra.mxu1 %v13189_v6  ;;  %v13777_v6 = vld [vmem:[#allocation10 + $0x2f4] ss:$8 sps:$4 sm:$0xff]  }
 0x62a   :  { %10684 = vmatprep.subr.bf16.mxu1 %v13198_v42  ;;  %v13269_v42 = vcombine.low %v4234_v58, %v4238_v0  ;;  %v13831_v58 = vld [vmem:[%s14464_s7 + $0x10] sm:$0xff]   ;;  %v13832_v0 = vld [vmem:[%s14464_s7 + $0x58] sm:$0xff]  }
 0x62b   :  { %11602 = vmatpush1.bf16.msra.mxu0 %v13745_v13  ;;  %v14394_v13 = vld [vmem:[#allocation8] sm:$0xff] }
 0x62c   :  { %11603 = vmatprep.subr.bf16.mxu0 %v13750_v10  ;;  %v4260_v10 = vrot.slane %v14394_v13, %v14233_v28  ;;  %v13786_v28 = vld [vmem:[#allocation10 + $0x324] ss:$8 sps:$4 sm:$0xff]  }
 0x62d   :  { %10685 = vmatpush1.bf16.msra.mxu1 %v13197_v29  ;;  %v4264_v29 = vrot.slane %v14394_v13, %v14208_v33  ;;  %v13784_v33 = vld [vmem:[#allocation10 + $0x320] ss:$8 sps:$4 sm:$0xff]  }
 0x62e   :  { %10686 = vmatprep.subr.bf16.mxu1 %v13206_v36 }
 0x62f   :  { %11604 = vmatpush1.bf16.msra.mxu0 %v13748_v57 }
 0x630   :  { %11605 = vmatprep.subr.bf16.mxu0 %v13753_v12 }
 0x631   :  { %10687 = vmatpush1.bf16.msra.mxu1 %v13205_v15 }
 0x632   :  { %10688 = vmatprep.subr.bf16.mxu1 %v13214_v4 }
 0x633   :  { %11606 = vmatpush1.bf16.msra.mxu0 %v13751_v34  ;;  %v13778_v34 = vld [vmem:[#allocation10 + $0x300] ss:$8 sps:$4 sm:$0xff]  }
 0x634   :  { %11607 = vmatprep.subr.bf16.mxu0 %v13756_v18  ;;  %v13783_v18 = vld [vmem:[#allocation10 + $0x314] ss:$8 sps:$4 sm:$0xff]  }
 0x635   :  { %10689 = vmatpush1.bf16.msra.mxu1 %v13213_v53  ;;  %v13781_v53 = vld [vmem:[#allocation10 + $0x310] ss:$8 sps:$4 sm:$0xff]  }
 0x636   :  { %10690 = vmatprep.subr.bf16.mxu1 %v13222_v20  ;;  %v13789_v20 = vld [vmem:[#allocation10 + $0x334] ss:$8 sps:$4 sm:$0xff]  }
 0x637   :  { %11608 = vmatpush1.bf16.msra.mxu0 %v13754_v61  ;;  %v13790_v61 = vld [vmem:[#allocation10 + $0x340] ss:$8 sps:$4 sm:$0xff]  }
 0x638   :  { %11609 = vmatprep.subr.bf16.mxu0 %v13759_v24  ;;  %v13795_v24 = vld [vmem:[#allocation10 + $0x354] ss:$8 sps:$4 sm:$0xff]  }
 0x639   :  { %10691 = vmatpush1.bf16.msra.mxu1 %v13221_v27  ;;  %v13793_v27 = vld [vmem:[#allocation10 + $0x350] ss:$8 sps:$4 sm:$0xff]  }
 0x63a   :  { %10692 = vmatprep.subr.bf16.mxu1 %v13230_v26  ;;  %v13798_v26 = vld [vmem:[#allocation10 + $0x364] ss:$8 sps:$4 sm:$0xff]  }
 0x63b   :  { %11610 = vmatpush1.bf16.msra.mxu0 %v13757_v59  ;;  %v13799_v59 = vld [vmem:[#allocation10 + $0x370] ss:$8 sps:$4 sm:$0xff]  }
 0x63c   :  { %11611 = vmatprep.subr.bf16.mxu0 %v13762_v32  ;;  %v13804_v32 = vld [vmem:[#allocation10 + $0x384] ss:$8 sps:$4 sm:$0xff]  }
 0x63d   :  { %10693 = vmatpush1.bf16.msra.mxu1 %v13229_v46  ;;  %v13802_v46 = vld [vmem:[#allocation10 + $0x380] ss:$8 sps:$4 sm:$0xff]  }
 0x63e   :  { %10694 = vmatprep.subr.bf16.mxu1 %v13238_v35  ;;  %v13807_v35 = vld [vmem:[#allocation10 + $0x394] ss:$8 sps:$4 sm:$0xff]  }
 0x63f   :  { %11612 = vmatpush1.bf16.msra.mxu0 %v13760_v41  ;;  %v13808_v41 = vld [vmem:[#allocation10 + $0x3a0] ss:$8 sps:$4 sm:$0xff]  }
 0x640   :  { %11613 = vmatprep.subr.bf16.mxu0 %v13765_v44  ;;  %v13813_v44 = vld [vmem:[#allocation10 + $0x3b4] ss:$8 sps:$4 sm:$0xff]  }
 0x641   :  { %10695 = vmatpush1.bf16.msra.mxu1 %v13237_v45  ;;  %v13811_v45 = vld [vmem:[#allocation10 + $0x3b0] ss:$8 sps:$4 sm:$0xff]  }
 0x642   :  { %10696 = vmatprep.subr.bf16.mxu1 %v13246_v49  ;;  %v13816_v49 = vld [vmem:[#allocation10 + $0x3c4] ss:$8 sps:$4 sm:$0xff]  }
 0x643   :  { %11614 = vmatpush1.bf16.msra.mxu0 %v13763_v43  ;;  %v13817_v43 = vld [vmem:[#allocation10 + $0x3d0] ss:$8 sps:$4 sm:$0xff]  }
 0x644   :  { %11615 = vmatprep.subr.bf16.mxu0 %v13768_v9  ;;  %v13822_v9 = vld [vmem:[#allocation10 + $0x3e4] ss:$8 sps:$4 sm:$0xff]  }
 0x645   :  { %10697 = vmatpush1.bf16.msra.mxu1 %v13245_v17  ;;  %v13820_v17 = vld [vmem:[#allocation10 + $0x3e0] ss:$8 sps:$4 sm:$0xff]  }
 0x646   :  { %10698 = vmatprep.subr.bf16.mxu1 %v13254_v1  ;;  %v13825_v1 = vld [vmem:[#allocation10 + $0x3f4] ss:$8 sps:$4 sm:$0xff]  }
 0x647   :  { %11616 = vmatpush1.bf16.msra.mxu0 %v13766_v37  ;;  %v13827_v37 = vld [vmem:[%s14464_s7] sm:$0xff]  }
 0x648   :  { %11617 = vmatprep.subr.bf16.mxu0 %v13771_v50  ;;  %v13828_v50 = vld [vmem:[%s14464_s7 + $0x48] sm:$0xff]  }
 0x649   :  { %10699 = vmatpush1.bf16.msra.mxu1 %v13253_v55  ;;  %v13829_v55 = vld [vmem:[%s14464_s7 + $0x8] sm:$0xff]  }
 0x64a   :  { %10700 = vmatprep.subr.bf16.mxu1 %v13262_v63  ;;  %v13830_v63 = vld [vmem:[%s14464_s7 + $0x50] sm:$0xff]  }
 0x64b   :  { %11618 = vmatpush1.bf16.msra.mxu0 %v13769_v39  ;;  %v13833_v39 = vld [vmem:[%s14464_s7 + $0x18] sm:$0xff]  }
 0x64c   :  { %11619 = vmatprep.subr.bf16.mxu0 %v13774_v23  ;;  %v13834_v23 = vld [vmem:[%s14464_s7 + $0x60] sm:$0xff]  }
 0x64d   :  { %10701 = vmatpush1.bf16.msra.mxu1 %v13261_v5  ;;  %v13835_v5 = vld [vmem:[%s14464_s7 + $0x20] sm:$0xff]  }
 0x64e   :  { %10702 = vmatprep.subr.bf16.mxu1 %v13270_v25  ;;  %v13836_v25 = vld [vmem:[%s14464_s7 + $0x68] sm:$0xff]  }
 0x64f   :  { %11620 = vmatpush1.bf16.msra.mxu0 %v13772_v3  ;;  %v13837_v3 = vld [vmem:[%s14464_s7 + $0x28] sm:$0xff]  }
 0x650   :  { %11621 = vmatprep.subr.bf16.mxu0 %v13777_v6  ;;  %v4268_v6 = vrot.slane %v14394_v13, %v14260_v38  ;;  %v13840_v38 = vld [vmem:[%s14464_s7 + $0x78] sm:$0xff]  }
 0x651   :  { %10703 = vmatpush1.bf16.msra.mxu1 %v13269_v42  ;;  %v4272_v42 = vrot.slane %v14394_v13, %v14246_v56  ;;  %v13839_v56 = vld [vmem:[%s14464_s7 + $0x30] sm:$0xff]   ;;  %v13841_v13 = vld [vmem:[%s14464_s7 + $0x38] sm:$0xff]  }
 0x652   :  { %13416 = vmatprep.subr.bf16.mxu1 %v13826_v21 }
 0x653   :  { %11622 = vmatpush1.bf16.msra.mxu0 %v13775_v7 }
 0x654   :  { %10705 = vmatmul.mubr.bf16.vlgmr.msra.gmra.mrb[24].mxu1 %v14330_v48  ;;  %11632 = vmatprep.subr.bf16.mxu0 %v13780_v8 }
 0x655   :  { %13417 = vmatpush3.bf16.msra.mxu1 %v13827_v37 }
 0x656   :  { %13418 = vmatprep.subr.bf16.mxu1 %v13828_v50 }
 0x659   :  { %13419 = vmatpush3.bf16.msra.mxu1 %v13829_v55 }
 0x65a   :  { %13420 = vmatprep.subr.bf16.mxu1 %v13830_v63 }
 0x65d   :  { %13421 = vmatpush3.bf16.msra.mxu1 %v13831_v58 }
 0x65e   :  { %13422 = vmatprep.subr.bf16.mxu1 %v13832_v0 }
 0x661   :  { %13423 = vmatpush3.bf16.msra.mxu1 %v13833_v39 }
 0x662   :  { %13424 = vmatprep.subr.bf16.mxu1 %v13834_v23 }
 0x665   :  { %13425 = vmatpush3.bf16.msra.mxu1 %v13835_v5 }
 0x666   :  { %13426 = vmatprep.subr.bf16.mxu1 %v13836_v25 }
 0x668   :  { %v10378_v36 = vpop.f32.mrb[16].mxu0 }
 0x669   :  { %v13458_v11 = vadd.f32 %v10378_v36, %v4260_v10  ;;  %v10380_v54 = vpop.f32.mrb[17].mxu0  ;;  %13427 = vmatpush3.bf16.msra.mxu1 %v13837_v3 }
 0x66a   :  { %v13459_v57 = vadd.f32 %v10380_v54, %v4264_v29  ;;  %v10382_v12 = vpop.f32.mrb[18].mxu0 }
 0x66b   :  { %v10717_v15 = vmax.f32 %v13458_v11, 0.0  ;;  %v10383_v4 = vpop.f32.mrb[19].mxu0 }
 0x66c   :  { %v10718_v14 = vmax.f32 %v13459_v57, 0.0  ;;  %v13838_v4 = vld [vmem:[%s14464_s7 + $0x70] sm:$0xff]  }
 0x66d   :  { %v10725_v48 = vpack.c.bf16 %v10717_v15, %v10717_v15  ;;  %13428 = vmatprep.subr.bf16.mxu1 %v13838_v4 }
 0x66e   :  { %v10726_v16 = vpack.c.bf16 %v10718_v14, %v10718_v14  ;;  %13429 = vmatpush3.bf16.msra.mxu1 %v13839_v56  ;;  %v10857_v14 = vld [vmem:[#allocation11] sm:$0x3] }
 0x66f   :  { %13430 = vmatprep.subr.bf16.mxu1 %v13840_v38 }
 0x670   :  { %11623 = vmatprep.mubr.bf16.mxu0 %v10726_v16  ;;  %v10862_v16 = vrot.slane %v10857_v14, %v14189_v62 }
 0x671   :  { %11624 = vmatmul.mubr.bf16.vlgmr.msra.gmra.mrb[20].mxu0 %v10725_v48 }
 0x672   :  { %11633 = vmatpush1.bf16.msra.mxu0 %v13778_v34  ;;  %13431 = vmatpush3.bf16.msra.mxu1 %v13841_v13  ;;  %v10866_v34 = vrot.slane %v10857_v14, %v14173_v60 }
 0x673   :  { %11634 = vmatprep.subr.bf16.mxu0 %v13783_v18 }
 0x676   :  { %11635 = vmatpush1.bf16.msra.mxu0 %v13781_v53 }
 0x677   :  { %11636 = vmatprep.subr.bf16.mxu0 %v13786_v28 }
 0x67a   :  { %11637 = vmatpush1.bf16.msra.mxu0 %v13784_v33 }
 0x67b   :  { %11638 = vmatprep.subr.bf16.mxu0 %v13789_v20 }
 0x67e   :  { %11639 = vmatpush1.bf16.msra.mxu0 %v13787_v30 }
 0x67f   :  { %11640 = vmatprep.subr.bf16.mxu0 %v13792_v2 }
 0x682   :  { %11641 = vmatpush1.bf16.msra.mxu0 %v13790_v61 }
 0x683   :  { %11642 = vmatprep.subr.bf16.mxu0 %v13795_v24 }
 0x686   :  { %11643 = vmatpush1.bf16.msra.mxu0 %v13793_v27 }
 0x687   :  { %11644 = vmatprep.subr.bf16.mxu0 %v13798_v26  ;;  %v13399_v26 = vld [vmem:[#allocation2] ss:$0 sm:$0xff] }
 0x68a   :  { %11645 = vmatpush1.bf16.msra.mxu0 %v13796_v31 }
 0x68b   :  { %11646 = vmatprep.subr.bf16.mxu0 %v13801_v19 }
 0x68e   :  { %11647 = vmatpush1.bf16.msra.mxu0 %v13799_v59 }
 0x68f   :  { %11648 = vmatprep.subr.bf16.mxu0 %v13804_v32 }
 0x692   :  { %11649 = vmatpush1.bf16.msra.mxu0 %v13802_v46 }
 0x693   :  { %11650 = vmatprep.subr.bf16.mxu0 %v13807_v35 }
 0x696   :  { %11651 = vmatpush1.bf16.msra.mxu0 %v13805_v22 }
 0x697   :  { %11652 = vmatprep.subr.bf16.mxu0 %v13810_v40 }
 0x69a   :  { %11653 = vmatpush1.bf16.msra.mxu0 %v13808_v41 }
 0x69b   :  { %11654 = vmatprep.subr.bf16.mxu0 %v13813_v44 }
 0x69e   :  { %11655 = vmatpush1.bf16.msra.mxu0 %v13811_v45 }
 0x69f   :  { %11656 = vmatprep.subr.bf16.mxu0 %v13816_v49 }
 0x6a2   :  { %11657 = vmatpush1.bf16.msra.mxu0 %v13814_v51 }
 0x6a3   :  { %11658 = vmatprep.subr.bf16.mxu0 %v13819_v52 }
 0x6a6   :  { %11659 = vmatpush1.bf16.msra.mxu0 %v13817_v43 }
 0x6a7   :  { %11660 = vmatprep.subr.bf16.mxu0 %v13822_v9 }
 0x6aa   :  { %11661 = vmatpush1.bf16.msra.mxu0 %v13820_v17 }
 0x6ab   :  { %11662 = vmatprep.subr.bf16.mxu0 %v13825_v1 }
 0x6ae   :  { %11663 = vmatpush1.bf16.msra.mxu0 %v13823_v47 }
 0x727   :  { %v10706_v7 = vpop.f32.mrb[24].mxu1 }
 0x728   :  { %v13460_v8 = vadd.f32 %v10706_v7, %v4268_v6  ;;  %v10708_v10 = vpop.f32.mrb[25].mxu1 }
 0x729   :  { %v13461_v29 = vadd.f32 %v10708_v10, %v4272_v42  ;;  %v10710_v36 = vpop.f32.mrb[26].mxu1 }
 0x72a   :  { %v10719_v11 = vmax.f32 %v13460_v8, 0.0  ;;  %v10711_v54 = vpop.f32.mrb[27].mxu1 }
 0x72b   :  { %v10720_v57 = vmax.f32 %v13461_v29, 0.0 }
 0x72c   :  { %v10727_v15 = vpack.c.bf16 %v10719_v11, %v10719_v11 }
 0x72d   :  { %v10728_v12 = vpack.c.bf16 %v10720_v57, %v10720_v57 }
 0x72f   :  { %11664 = vmatprep.mubr.bf16.mxu0 %v10728_v12 }
 0x730   :  { %11665 = vmatmul.mubr.bf16.vlgmr.msra.gmra.mrb[20].mxu0 %v10727_v15 }
 0x803   :  { %v11666_v48 = vpop.f32.mrb[20].mxu0 }
 0x804   :  { %v13462_v18 = vadd.f32 %v11666_v48, %v10862_v16  ;;  %v11668_v53 = vpop.f32.mrb[21].mxu0 }
 0x805   :  { %v13463_v28 = vadd.f32 %v11668_v53, %v10866_v34  ;;  %v11670_v33 = vpop.f32.mrb[22].mxu0 }
 0x806   :  { %v11673_v20 = vmax.f32 %v13462_v18, 0.0  ;;  %v11671_v30 = vpop.f32.mrb[23].mxu0 }
 0x807   :  { %v11674_v2 = vmax.f32 %v13463_v28, 0.0 }
 0x808   :  { %v11675_v24 = vpack.c.bf16 %v11673_v20, %v11673_v20 }
 0x809   :  { %v11676_v61 = vpack.c.bf16 %v11674_v2, %v11674_v2 }
 0x80b   :  { %11844 = vmatprep.mubr.bf16.mxu1 %v11676_v61 }
 0x80c   :  { %11845 = vmatmul.mubr.bf16.vlgmr.msra.gmra.mrb[28].mxu1 %v11675_v24 }
 0x8df   :  { %v13432_v27 = vpop.f32.mrb[28].mxu1 }
 0x8e0   :  { %v13433_v31 = vpop.f32.mrb[29].mxu1 }
 0x8e1   :  { %v13434_v19 = vadd.f32 %v13433_v31, %v13432_v27  ;;  %v13435_v59 = vpop.f32.mrb[30].mxu1 }
 0x8e2   :  { %v13436_v62 = vpop.f32.mrb[31].mxu1 }
 0x8e3   :  { %v11847_v60 = vadd.f32 %v13434_v19, %v13399_v26 }
 0x8e5   :  { %11853 = vst.msk [vmem:[%s14466_s9] sm:$0x3] %vm11852_vm0, %v11847_v60 }
 0x8e6   :  { %11858 = vsyncpa [#allocation4], 1 }
 0x8e7   :  { %11859 = vsyncpa [#allocation6], 1 }
 0x8e8   :  { %11860 = vsyncpa [#allocation9], 1 }
 0x8e9   :  { %11861 = vsyncpa [#allocation12], 1 }

</bundles_post_ra>
